<compile_context>
chip_gen: v7x
topology: tpu7x:2x2x1
jax: 0.10.0
libtpu: 0.0.40
codegen_flags: <defaults>
</compile_context>

<pallas_src>
import functools

import jax
import jax.numpy as jnp
from jax.experimental import pallas as pl
from jax.experimental.pallas import tpu as pltpu

EPS = 1e-5  # nn.BatchNorm2d default eps


def _pick_tile(n, cands):
    for c in cands:
        if n % c == 0:
            return c
    return n


# --------------------------------------------------------------------------------------
# Fused matmul kernel: pre-activation -> bf16 MXU matmul (K-tiled, f32 acc) -> +bias
#                      -> optional tanh -> store  [+ optional per-channel sum / sumsq]
# --------------------------------------------------------------------------------------

def _fused_matmul_kernel(x_ref, w_ref, b_ref, o_ref, *rest, pre, post, with_stats):
    if with_stats:
        stats_ref, acc_ref = rest
    else:
        (acc_ref,) = rest
    m = pl.program_id(0)
    k = pl.program_id(1)
    nk = pl.num_programs(1)

    x = x_ref[...]
    # Fused pre-activation on the patch tile. act(0) == 0, so conv zero-padding stays exact.
    if pre == "lrelu":
        x = jnp.where(x >= 0, x, x * 0.2)
    elif pre == "relu":
        x = jnp.maximum(x, 0)

    @pl.when(k == 0)
    def _():
        acc_ref[...] = jnp.zeros_like(acc_ref)

    acc_ref[...] += jnp.dot(x, w_ref[...], preferred_element_type=jnp.float32)

    @pl.when(k == nk - 1)
    def _():
        y = acc_ref[...] + b_ref[...]
        if post == "tanh":
            y = jnp.tanh(y)
        o_ref[...] = y
        if with_stats:
            s = jnp.sum(y, axis=0, keepdims=True)
            ss = jnp.sum(y * y, axis=0, keepdims=True)
            st = jnp.concatenate([s, ss], axis=0)

            @pl.when(m == 0)
            def _():
                stats_ref[...] = st

            @pl.when(m != 0)
            def _():
                stats_ref[...] = stats_ref[...] + st


def fused_matmul(x2, w2, b, *, pre="none", post="none", with_stats=False):
    """y = post(pre(x2) @ w2 + b).  Optionally also returns per-column (sum, sumsq).

    x2: (M, K), w2: (K, N) -> cast to bf16 for the MXU; b: (N,) f32.
    Returns (y (M, N) f32, stats (2, N) f32 or None).
    """
    M0, K = x2.shape
    _, Nout = w2.shape
    x2 = x2.astype(jnp.bfloat16)
    w2 = w2.astype(jnp.bfloat16)
    b_f32 = b.astype(jnp.float32)
    b2 = b_f32.reshape(1, Nout)

    # Keep the sublane dim a multiple of 8 (only triggers at the tiny bottleneck layers).
    pad_rows = (-M0) % 8
    if pad_rows:
        x2 = jnp.pad(x2, ((0, pad_rows), (0, 0)))
    M = M0 + pad_rows

    tm = M if M <= 256 else _pick_tile(M, (256, 128, 64, 32, 16, 8))
    tk = K if K <= 1024 else _pick_tile(K, (512, 384, 256, 128))
    nm, nk = M // tm, K // tk

    out_shape = [jax.ShapeDtypeStruct((M, Nout), jnp.float32)]
    out_specs = [pl.BlockSpec((tm, Nout), lambda i, k: (i, 0))]
    if with_stats:
        out_shape.append(jax.ShapeDtypeStruct((2, Nout), jnp.float32))
        out_specs.append(pl.BlockSpec((2, Nout), lambda i, k: (0, 0)))
        dims = ("arbitrary", "arbitrary")     # stats block stays resident across M tiles
    else:
        dims = ("parallel", "arbitrary")

    cost = pl.CostEstimate(
        flops=2 * M * K * Nout,
        transcendentals=M * Nout if post == "tanh" else 0,
        bytes_accessed=M * K * 2 + K * Nout * 2 + M * Nout * 4,
    )

    kernel = functools.partial(_fused_matmul_kernel, pre=pre, post=post,
                               with_stats=with_stats)
    res = pl.pallas_call(
        kernel,
        grid=(nm, nk),
        in_specs=[
            pl.BlockSpec((tm, tk), lambda i, k: (i, k)),
            pl.BlockSpec((tk, Nout), lambda i, k: (k, 0)),
            pl.BlockSpec((1, Nout), lambda i, k: (0, 0)),
        ],
        out_specs=out_specs,
        out_shape=out_shape,
        scratch_shapes=[pltpu.VMEM((tm, Nout), jnp.float32)],
        compiler_params=pltpu.CompilerParams(dimension_semantics=dims),
        cost_estimate=cost,
    )(x2, w2, b2)

    y2 = res[0]
    stats = res[1] if with_stats else None
    if pad_rows:
        y2 = y2[:M0]
        if with_stats:
            # Padded zero rows contribute exactly `bias` per channel (pre(0)=0, post='none').
            corr = jnp.stack([pad_rows * b_f32, pad_rows * b_f32 * b_f32], axis=0)
            stats = stats - corr
    return y2, stats


# --------------------------------------------------------------------------------------
# Lane-dense per-channel affine (BatchNorm scale/shift) kernel
# --------------------------------------------------------------------------------------

def _scale_shift_kernel(x_ref, s_ref, t_ref, o_ref):
    o_ref[...] = x_ref[...] * s_ref[...] + t_ref[...]


def scale_shift_2d(y2, scale, shift):
    """y * scale + shift (per channel) on a (M, C) tensor, tiled and lane-dense."""
    M, C = y2.shape
    g = 1
    if C < 128:
        for cand in range(min(M, max(1, 128 // C)), 0, -1):
            if M % cand == 0:
                g = cand
                break
    rows, Cg = M // g, g * C
    yg = y2.reshape(rows, Cg)
    sg = jnp.tile(scale.astype(jnp.float32), g).reshape(1, Cg)
    tg = jnp.tile(shift.astype(jnp.float32), g).reshape(1, Cg)
    tr = rows if rows <= 512 else _pick_tile(rows, (512, 256, 128, 64, 32, 16, 8))
    out = pl.pallas_call(
        _scale_shift_kernel,
        grid=(rows // tr,),
        in_specs=[
            pl.BlockSpec((tr, Cg), lambda i: (i, 0)),
            pl.BlockSpec((1, Cg), lambda i: (0, 0)),
            pl.BlockSpec((1, Cg), lambda i: (0, 0)),
        ],
        out_specs=pl.BlockSpec((tr, Cg), lambda i: (i, 0)),
        out_shape=jax.ShapeDtypeStruct((rows, Cg), jnp.float32),
        compiler_params=pltpu.CompilerParams(dimension_semantics=("parallel",)),
    )(yg, sg, tg)
    return out.reshape(M, C)


def _bn_affine(stats, count, gamma, beta):
    """BatchNorm2d (training mode, biased variance) -> per-channel (scale, shift)."""
    mean = stats[0] / count
    var = jnp.maximum(stats[1] / count - mean * mean, 0.0)
    scale = gamma * jax.lax.rsqrt(var + EPS)
    shift = beta - mean * scale
    return scale, shift


# --------------------------------------------------------------------------------------
# Conv / ConvTranspose lowering (im2col glue + fused Pallas matmul)
# --------------------------------------------------------------------------------------

def _im2col(x, k, stride, pad):
    """x: NHWC -> patches (N*Ho*Wo, k*k*C) with (kh, kw, cin) inner ordering."""
    x = jnp.pad(x, ((0, 0), (pad, pad), (pad, pad), (0, 0)))
    N, H, W, C = x.shape
    Ho = (H - k) // stride + 1
    Wo = (W - k) // stride + 1
    cols = []
    for i in range(k):
        for j in range(k):
            cols.append(x[:, i:i + stride * (Ho - 1) + 1:stride,
                          j:j + stride * (Wo - 1) + 1:stride, :])
    p = jnp.stack(cols, axis=3)  # (N, Ho, Wo, k*k, C)
    return p.reshape(N * Ho * Wo, k * k * C), (N, Ho, Wo)


def down_layer(x4, w_torch, b, *, pre, bn=None):
    """[LeakyReLU] -> Conv2d(k=4, s=2, p=1) -> [BatchNorm].  w_torch: (Cout, Cin, 4, 4)."""
    Cout, Cin, kh, kw = w_torch.shape
    w2 = jnp.transpose(w_torch, (2, 3, 1, 0)).reshape(kh * kw * Cin, Cout)
    patches, (N, Ho, Wo) = _im2col(x4.astype(jnp.bfloat16), 4, 2, 1)
    y2, stats = fused_matmul(patches, w2, b, pre=pre, post="none",
                             with_stats=bn is not None)
    if bn is not None:
        gamma, beta = bn
        scale, shift = _bn_affine(stats, N * Ho * Wo, gamma, beta)
        y2 = scale_shift_2d(y2, scale, shift)
    return y2.reshape(N, Ho, Wo, Cout)


# ConvTranspose2d(4, s=2, p=1): output phase (ph, pw) only sees 2x2 kernel taps.
# (phase, 3x3-tap index) -> ConvTranspose kernel index; missing entries are zero taps.
_KH_OF_TAP = {(0, 0): 3, (0, 1): 1, (1, 1): 2, (1, 2): 0}


def _pack_convT_weight(w_torch):
    """(Cin, Cout, 4, 4) ConvTranspose2d weight -> phase-packed (9*Cin, 4*Cout) matrix."""
    Cin, Cout, _, _ = w_torch.shape
    W = jnp.zeros((3, 3, Cin, 4 * Cout), jnp.float32)
    for ph in (0, 1):
        for pw in (0, 1):
            p = 2 * ph + pw
            for th in (0, 1, 2):
                if (ph, th) not in _KH_OF_TAP:
                    continue
                kh = _KH_OF_TAP[(ph, th)]
                for tw in (0, 1, 2):
                    if (pw, tw) not in _KH_OF_TAP:
                        continue
                    kw = _KH_OF_TAP[(pw, tw)]
                    W = W.at[th, tw, :, p * Cout:(p + 1) * Cout].set(w_torch[:, :, kh, kw])
    return W.reshape(9 * Cin, 4 * Cout)


def _depth_to_space_2x(y2, N, H, W, Cout):
    y = y2.reshape(N, H, W, 2, 2, Cout)
    return jnp.transpose(y, (0, 1, 3, 2, 4, 5)).reshape(N, 2 * H, 2 * W, Cout)


def up_layer(x4, w_torch, b, *, post="none", bn=None):
    """ReLU -> ConvTranspose2d(k=4, s=2, p=1) -> [BatchNorm | Tanh].

    Phase-packed: one stride-1 matmul over 3x3 neighbourhoods of the non-dilated input
    produces all four output phases as extra channels; depth-to-space interleaves them.
    """
    Cin, Cout, _, _ = w_torch.shape
    N, H, W, _ = x4.shape
    wp = _pack_convT_weight(w_torch)               # (9*Cin, 4*Cout)
    bp = jnp.tile(b, 4)                            # (4*Cout,)
    patches, _ = _im2col(x4.astype(jnp.bfloat16), 3, 1, 1)   # (N*H*W, 9*Cin)
    y2, stats = fused_matmul(patches, wp, bp, pre="relu", post=post,
                             with_stats=bn is not None)
    if bn is not None:
        gamma, beta = bn
        stats_c = stats.reshape(2, 4, Cout).sum(axis=1)      # fold the 4 phases
        scale, shift = _bn_affine(stats_c, N * H * W * 4, gamma, beta)
        y2 = scale_shift_2d(y2, jnp.tile(scale, 4), jnp.tile(shift, 4))
    return _depth_to_space_2x(y2, N, H, W, Cout)


# --------------------------------------------------------------------------------------
# U-Net structure (mirrors UnetSkipConnectionBlock / UnetGenerator with BatchNorm2d
# => use_bias=False for inner convs; outermost upconv keeps its bias).
# --------------------------------------------------------------------------------------

def run_block(x, blk):
    kind = blk['kind']
    if kind == 'outermost':
        h = down_layer(x, blk['dw'], blk['db'], pre='none', bn=None)
        h = run_block(h, blk['sub'])
        return up_layer(h, blk['uw'], blk['ub'], post='tanh', bn=None)
    elif kind == 'innermost':
        h = down_layer(x, blk['dw'], blk['db'], pre='lrelu', bn=None)
        y = up_layer(h, blk['uw'], blk['ub'], post='none',
                     bn=(blk['un_g'], blk['un_b']))
        return jnp.concatenate([x, y], axis=-1)   # channel concat (dim=1 in NCHW)
    else:  # middle block
        h = down_layer(x, blk['dw'], blk['db'], pre='lrelu',
                       bn=(blk['dn_g'], blk['dn_b']))
        h = run_block(h, blk['sub'])
        y = up_layer(h, blk['uw'], blk['ub'], post='none',
                     bn=(blk['un_g'], blk['un_b']))
        return jnp.concatenate([x, y], axis=-1)


def make_params(key, input_nc, output_nc, num_downs, ngf):
    keys = iter(jax.random.split(key, 256))

    def w(shape, scale=0.05):
        return scale * jax.random.normal(next(keys), shape, jnp.float32)

    def bn(c):
        g = 1.0 + 0.1 * jax.random.normal(next(keys), (c,), jnp.float32)
        b = 0.1 * jax.random.normal(next(keys), (c,), jnp.float32)
        return g, b

    def make_block(outer_nc, inner_nc, in_nc, sub, kind):
        blk = {'kind': kind, 'sub': sub}
        # downconv: Conv2d(in_nc, inner_nc, 4, 2, 1, bias=False because BatchNorm)
        blk['dw'] = w((inner_nc, in_nc, 4, 4))
        blk['db'] = jnp.zeros((inner_nc,), jnp.float32)
        if kind == 'outermost':
            blk['uw'] = w((inner_nc * 2, outer_nc, 4, 4))
            blk['ub'] = w((outer_nc,))            # outermost upconv has bias=True
        elif kind == 'innermost':
            blk['uw'] = w((inner_nc, outer_nc, 4, 4))
            blk['ub'] = jnp.zeros((outer_nc,), jnp.float32)
            blk['un_g'], blk['un_b'] = bn(outer_nc)
        else:
            blk['dn_g'], blk['dn_b'] = bn(inner_nc)
            blk['uw'] = w((inner_nc * 2, outer_nc, 4, 4))
            blk['ub'] = jnp.zeros((outer_nc,), jnp.float32)
            blk['un_g'], blk['un_b'] = bn(outer_nc)
        return blk

    # Construction order mirrors UnetGenerator.__init__ (innermost -> outermost).
    block = make_block(ngf * 8, ngf * 8, ngf * 8, None, 'innermost')
    for _ in range(num_downs - 5):
        block = make_block(ngf * 8, ngf * 8, ngf * 8, block, 'middle')
    block = make_block(ngf * 4, ngf * 8, ngf * 4, block, 'middle')
    block = make_block(ngf * 2, ngf * 4, ngf * 2, block, 'middle')
    block = make_block(ngf, ngf * 2, ngf, block, 'middle')
    block = make_block(output_nc, ngf, input_nc, block, 'outermost')
    return block


def unet_generator_forward(x_nchw, params):
    x = jnp.transpose(x_nchw, (0, 2, 3, 1))       # NCHW -> NHWC
    y = run_block(x, params)
    return jnp.transpose(y, (0, 3, 1, 2))          # NHWC -> NCHW


if __name__ == "__main__":
    # Small config: num_downs=5 needs spatial >= 32 (32 -> 1 at the bottleneck).
    input_nc, output_nc, num_downs, ngf = 4, 4, 5, 8
    key = jax.random.PRNGKey(0)
    pkey, xkey = jax.random.split(key)
    params = make_params(pkey, input_nc, output_nc, num_downs, ngf)
    x = jax.random.normal(xkey, (2, input_nc, 32, 32), jnp.float32)  # NCHW like PyTorch

    fwd = jax.jit(lambda xx: unet_generator_forward(xx, params))
    y = fwd(x)
    jax.block_until_ready(y)
    assert y.shape == (2, output_nc, 32, 32), y.shape
    assert bool(jnp.all(jnp.isfinite(y)))
    print("KERNEL_OK")
</pallas_src>

<mosaic_0001>
module attributes {stable_mosaic.version = 11 : i64} {
  func.func @_fused_matmul_kernel(%arg0: i32, %arg1: i32, %arg2: memref<256x64xbf16, #tpu.memory_space<vmem>>, %arg3: memref<64x8xbf16, #tpu.memory_space<vmem>>, %arg4: memref<1x8xf32, #tpu.memory_space<vmem>>, %arg5: memref<256x8xf32, #tpu.memory_space<vmem>>, %arg6: memref<256x8xf32, #tpu.memory_space<vmem>>) attributes {dimension_semantics = [#tpu.dimension_semantics<parallel>, #tpu.dimension_semantics<arbitrary>], iteration_bounds = array<i64: 2, 1>, scalar_prefetch = 0 : i64, scratch_operands = 1 : i64, tpu.core_type = #tpu.core_type<tc>, window_params = [{transform_indices = @transform_0, window_bounds = array<i64: 256, 64>}, {transform_indices = @transform_1, window_bounds = array<i64: 64, 8>}, {pipeline_mode = #tpu.pipeline_mode<synchronous>, transform_indices = @transform_2, window_bounds = array<i64: 1, 8>}, {transform_indices = @transform_3, window_bounds = array<i64: 256, 8>}]} {
    %c0 = arith.constant 0 : index
    %c0_0 = arith.constant 0 : index
    %0 = vector.load %arg2[%c0, %c0_0] : memref<256x64xbf16, #tpu.memory_space<vmem>>, vector<256x64xbf16>
    %c0_i32 = arith.constant 0 : i32
    %1 = arith.cmpi eq, %arg1, %c0_i32 : i32
    %2 = arith.extui %1 : i1 to i32
    %c0_i32_1 = arith.constant 0 : i32
    %3 = arith.cmpi ne, %2, %c0_i32_1 : i32
    scf.if %3 {
      %cst_10 = arith.constant 0.000000e+00 : f32
      %12 = vector.broadcast %cst_10 : f32 to vector<256x8xf32>
      %c0_11 = arith.constant 0 : index
      %c0_12 = arith.constant 0 : index
      %13 = vector.load %arg6[%c0_11, %c0_12] : memref<256x8xf32, #tpu.memory_space<vmem>>, vector<256x8xf32>
      tpu.vector_store %arg6[%c0_11, %c0_12], %12 {strides = array<i32>} : memref<256x8xf32, #tpu.memory_space<vmem>>, vector<256x8xf32>,
    } else {
    }
    %c0_2 = arith.constant 0 : index
    %c0_3 = arith.constant 0 : index
    %4 = vector.load %arg6[%c0_2, %c0_3] : memref<256x8xf32, #tpu.memory_space<vmem>>, vector<256x8xf32>
    %c0_4 = arith.constant 0 : index
    %c0_5 = arith.constant 0 : index
    %5 = vector.load %arg3[%c0_4, %c0_5] : memref<64x8xbf16, #tpu.memory_space<vmem>>, vector<64x8xbf16>
    %cst = arith.constant dense<0.000000e+00> : vector<256x8xf32>
    %6 = tpu.matmul %0, %5, %cst {dimension_numbers = #tpu.dot_dimension_numbers<[1], [0], [0], [1], [0, 0, 1, 1], [], []>} : vector<256x64xbf16>, vector<64x8xbf16>, vector<256x8xf32> -> vector<256x8xf32>
    %7 = arith.addf %4, %6 : vector<256x8xf32>
    %c0_6 = arith.constant 0 : index
    %c0_7 = arith.constant 0 : index
    %8 = vector.load %arg6[%c0_6, %c0_7] : memref<256x8xf32, #tpu.memory_space<vmem>>, vector<256x8xf32>
    tpu.vector_store %arg6[%c0_6, %c0_7], %7 {strides = array<i32>} : memref<256x8xf32, #tpu.memory_space<vmem>>, vector<256x8xf32>,
    %c0_i32_8 = arith.constant 0 : i32
    %9 = arith.cmpi eq, %arg1, %c0_i32_8 : i32
    %10 = arith.extui %9 : i1 to i32
    %c0_i32_9 = arith.constant 0 : i32
    %11 = arith.cmpi ne, %10, %c0_i32_9 : i32
    scf.if %11 {
      %c0_10 = arith.constant 0 : index
      %c0_11 = arith.constant 0 : index
      %12 = vector.load %arg6[%c0_10, %c0_11] : memref<256x8xf32, #tpu.memory_space<vmem>>, vector<256x8xf32>
      %c0_12 = arith.constant 0 : index
      %c0_13 = arith.constant 0 : index
      %13 = vector.load %arg4[%c0_12, %c0_13] : memref<1x8xf32, #tpu.memory_space<vmem>>, vector<1x8xf32>
      %14 = vector.broadcast %13 : vector<1x8xf32> to vector<256x8xf32>
      %15 = arith.addf %12, %14 : vector<256x8xf32>
      %c0_14 = arith.constant 0 : index
      %c0_15 = arith.constant 0 : index
      %16 = vector.load %arg5[%c0_14, %c0_15] : memref<256x8xf32, #tpu.memory_space<vmem>>, vector<256x8xf32>
      tpu.vector_store %arg5[%c0_14, %c0_15], %15 {strides = array<i32>} : memref<256x8xf32, #tpu.memory_space<vmem>>, vector<256x8xf32>,
    } else {
    }
    return
  }
  func.func @transform_0(%arg0: i32, %arg1: i32) -> (i32, i32) {
    %c0_i32 = arith.constant 0 : i32
    return %arg0, %arg1 : i32, i32
  }
  func.func @transform_1(%arg0: i32, %arg1: i32) -> (i32, i32) {
    %c0_i32 = arith.constant 0 : i32
    %c0_i32_0 = arith.constant 0 : i32
    return %arg1, %c0_i32 : i32, i32
  }
  func.func @transform_2(%arg0: i32, %arg1: i32) -> (i32, i32) {
    %c0_i32 = arith.constant 0 : i32
    %c0_i32_0 = arith.constant 0 : i32
    %c0_i32_1 = arith.constant 0 : i32
    return %c0_i32, %c0_i32_0 : i32, i32
  }
  func.func @transform_3(%arg0: i32, %arg1: i32) -> (i32, i32) {
    %c0_i32 = arith.constant 0 : i32
    %c0_i32_0 = arith.constant 0 : i32
    return %arg0, %c0_i32 : i32, i32
  }
}

module attributes {stable_mosaic.version = 11 : i64} {
  func.func @_fused_matmul_kernel(%arg0: i32, %arg1: i32, %arg2: memref<128x128xbf16, #tpu.memory_space<vmem>>, %arg3: memref<128x16xbf16, #tpu.memory_space<vmem>>, %arg4: memref<1x16xf32, #tpu.memory_space<vmem>>, %arg5: memref<128x16xf32, #tpu.memory_space<vmem>>, %arg6: memref<2x16xf32, #tpu.memory_space<vmem>>, %arg7: memref<128x16xf32, #tpu.memory_space<vmem>>) attributes {dimension_semantics = [#tpu.dimension_semantics<arbitrary>, #tpu.dimension_semantics<arbitrary>], iteration_bounds = array<i64: 1, 1>, scalar_prefetch = 0 : i64, scratch_operands = 1 : i64, tpu.core_type = #tpu.core_type<tc>, window_params = [{transform_indices = @transform_0, window_bounds = array<i64: 128, 128>}, {transform_indices = @transform_1, window_bounds = array<i64: 128, 16>}, {pipeline_mode = #tpu.pipeline_mode<synchronous>, transform_indices = @transform_2, window_bounds = array<i64: 1, 16>}, {transform_indices = @transform_3, window_bounds = array<i64: 128, 16>}, {pipeline_mode = #tpu.pipeline_mode<synchronous>, transform_indices = @transform_4, window_bounds = array<i64: 2, 16>}]} {
    %c0 = arith.constant 0 : index
    %c0_0 = arith.constant 0 : index
    %0 = vector.load %arg2[%c0, %c0_0] : memref<128x128xbf16, #tpu.memory_space<vmem>>, vector<128x128xbf16>
    %cst = arith.constant 0.000000e+00 : bf16
    %1 = vector.broadcast %cst : bf16 to vector<128x128xbf16>
    %2 = arith.cmpf oge, %0, %1 : vector<128x128xbf16>
    %cst_1 = arith.constant 2.001950e-01 : bf16
    %3 = vector.broadcast %cst_1 : bf16 to vector<128x128xbf16>
    %4 = arith.mulf %0, %3 : vector<128x128xbf16>
    %5 = arith.select %2, %0, %4 : vector<128x128xi1>, vector<128x128xbf16>
    %c0_i32 = arith.constant 0 : i32
    %6 = arith.cmpi eq, %arg1, %c0_i32 : i32
    %7 = arith.extui %6 : i1 to i32
    %c0_i32_2 = arith.constant 0 : i32
    %8 = arith.cmpi ne, %7, %c0_i32_2 : i32
    scf.if %8 {
      %cst_12 = arith.constant 0.000000e+00 : f32
      %17 = vector.broadcast %cst_12 : f32 to vector<128x16xf32>
      %c0_13 = arith.constant 0 : index
      %c0_14 = arith.constant 0 : index
      %18 = vector.load %arg7[%c0_13, %c0_14] : memref<128x16xf32, #tpu.memory_space<vmem>>, vector<128x16xf32>
      tpu.vector_store %arg7[%c0_13, %c0_14], %17 {strides = array<i32>} : memref<128x16xf32, #tpu.memory_space<vmem>>, vector<128x16xf32>,
    } else {
    }
    %c0_3 = arith.constant 0 : index
    %c0_4 = arith.constant 0 : index
    %9 = vector.load %arg7[%c0_3, %c0_4] : memref<128x16xf32, #tpu.memory_space<vmem>>, vector<128x16xf32>
    %c0_5 = arith.constant 0 : index
    %c0_6 = arith.constant 0 : index
    %10 = vector.load %arg3[%c0_5, %c0_6] : memref<128x16xbf16, #tpu.memory_space<vmem>>, vector<128x16xbf16>
    %cst_7 = arith.constant dense<0.000000e+00> : vector<128x16xf32>
    %11 = tpu.matmul %5, %10, %cst_7 {dimension_numbers = #tpu.dot_dimension_numbers<[1], [0], [0], [1], [0, 0, 1, 1], [], []>} : vector<128x128xbf16>, vector<128x16xbf16>, vector<128x16xf32> -> vector<128x16xf32>
    %12 = arith.addf %9, %11 : vector<128x16xf32>
    %c0_8 = arith.constant 0 : index
    %c0_9 = arith.constant 0 : index
    %13 = vector.load %arg7[%c0_8, %c0_9] : memref<128x16xf32, #tpu.memory_space<vmem>>, vector<128x16xf32>
    tpu.vector_store %arg7[%c0_8, %c0_9], %12 {strides = array<i32>} : memref<128x16xf32, #tpu.memory_space<vmem>>, vector<128x16xf32>,
    %c0_i32_10 = arith.constant 0 : i32
    %14 = arith.cmpi eq, %arg1, %c0_i32_10 : i32
    %15 = arith.extui %14 : i1 to i32
    %c0_i32_11 = arith.constant 0 : i32
    %16 = arith.cmpi ne, %15, %c0_i32_11 : i32
    scf.if %16 {
      %c0_12 = arith.constant 0 : index
      %c0_13 = arith.constant 0 : index
      %17 = vector.load %arg7[%c0_12, %c0_13] : memref<128x16xf32, #tpu.memory_space<vmem>>, vector<128x16xf32>
      %c0_14 = arith.constant 0 : index
      %c0_15 = arith.constant 0 : index
      %18 = vector.load %arg4[%c0_14, %c0_15] : memref<1x16xf32, #tpu.memory_space<vmem>>, vector<1x16xf32>
      %19 = vector.broadcast %18 : vector<1x16xf32> to vector<128x16xf32>
      %20 = arith.addf %17, %19 : vector<128x16xf32>
      %c0_16 = arith.constant 0 : index
      %c0_17 = arith.constant 0 : index
      %21 = vector.load %arg5[%c0_16, %c0_17] : memref<128x16xf32, #tpu.memory_space<vmem>>, vector<128x16xf32>
      tpu.vector_store %arg5[%c0_16, %c0_17], %20 {strides = array<i32>} : memref<128x16xf32, #tpu.memory_space<vmem>>, vector<128x16xf32>,
      %cst_18 = arith.constant dense<0.000000e+00> : vector<16xf32>
      %22 = vector.multi_reduction <add>, %20, %cst_18 [0] : vector<128x16xf32> to vector<16xf32>
      %23 = vector.shape_cast %22 : vector<16xf32> to vector<1x16xf32>
      %24 = arith.mulf %20, %20 : vector<128x16xf32>
      %cst_19 = arith.constant dense<0.000000e+00> : vector<16xf32>
      %25 = vector.multi_reduction <add>, %24, %cst_19 [0] : vector<128x16xf32> to vector<16xf32>
      %26 = vector.shape_cast %25 : vector<16xf32> to vector<1x16xf32>
      %27 = tpu.concatenate %23, %26 in 0 : vector<1x16xf32>, vector<1x16xf32> -> vector<2x16xf32>
      %c0_i32_20 = arith.constant 0 : i32
      %28 = arith.cmpi eq, %arg0, %c0_i32_20 : i32
      %29 = arith.extui %28 : i1 to i32
      %c0_i32_21 = arith.constant 0 : i32
      %30 = arith.cmpi ne, %29, %c0_i32_21 : i32
      scf.if %30 {
        %c0_24 = arith.constant 0 : index
        %c0_25 = arith.constant 0 : index
        %34 = vector.load %arg6[%c0_24, %c0_25] : memref<2x16xf32, #tpu.memory_space<vmem>>, vector<2x16xf32>
        tpu.vector_store %arg6[%c0_24, %c0_25], %27 {strides = array<i32>} : memref<2x16xf32, #tpu.memory_space<vmem>>, vector<2x16xf32>,
      } else {
      }
      %c0_i32_22 = arith.constant 0 : i32
      %31 = arith.cmpi ne, %arg0, %c0_i32_22 : i32
      %32 = arith.extui %31 : i1 to i32
      %c0_i32_23 = arith.constant 0 : i32
      %33 = arith.cmpi ne, %32, %c0_i32_23 : i32
      scf.if %33 {
        %c0_24 = arith.constant 0 : index
        %c0_25 = arith.constant 0 : index
        %34 = vector.load %arg6[%c0_24, %c0_25] : memref<2x16xf32, #tpu.memory_space<vmem>>, vector<2x16xf32>
        %35 = arith.addf %34, %27 : vector<2x16xf32>
        %c0_26 = arith.constant 0 : index
        %c0_27 = arith.constant 0 : index
        %36 = vector.load %arg6[%c0_26, %c0_27] : memref<2x16xf32, #tpu.memory_space<vmem>>, vector<2x16xf32>
        tpu.vector_store %arg6[%c0_26, %c0_27], %35 {strides = array<i32>} : memref<2x16xf32, #tpu.memory_space<vmem>>, vector<2x16xf32>,
      } else {
      }
    } else {
    }
    return
  }
  func.func @transform_0(%arg0: i32, %arg1: i32) -> (i32, i32) {
    %c0_i32 = arith.constant 0 : i32
    return %arg0, %arg1 : i32, i32
  }
  func.func @transform_1(%arg0: i32, %arg1: i32) -> (i32, i32) {
    %c0_i32 = arith.constant 0 : i32
    %c0_i32_0 = arith.constant 0 : i32
    return %arg1, %c0_i32 : i32, i32
  }
  func.func @transform_2(%arg0: i32, %arg1: i32) -> (i32, i32) {
    %c0_i32 = arith.constant 0 : i32
    %c0_i32_0 = arith.constant 0 : i32
    %c0_i32_1 = arith.constant 0 : i32
    return %c0_i32, %c0_i32_0 : i32, i32
  }
  func.func @transform_3(%arg0: i32, %arg1: i32) -> (i32, i32) {
    %c0_i32 = arith.constant 0 : i32
    %c0_i32_0 = arith.constant 0 : i32
    return %arg0, %c0_i32 : i32, i32
  }
  func.func @transform_4(%arg0: i32, %arg1: i32) -> (i32, i32) {
    %c0_i32 = arith.constant 0 : i32
    %c0_i32_0 = arith.constant 0 : i32
    %c0_i32_1 = arith.constant 0 : i32
    return %c0_i32, %c0_i32_0 : i32, i32
  }
}

module attributes {stable_mosaic.version = 11 : i64} {
  func.func @_scale_shift_kernel(%arg0: i32, %arg1: memref<16x128xf32, #tpu.memory_space<vmem>>, %arg2: memref<1x128xf32, #tpu.memory_space<vmem>>, %arg3: memref<1x128xf32, #tpu.memory_space<vmem>>, %arg4: memref<16x128xf32, #tpu.memory_space<vmem>>) attributes {dimension_semantics = [#tpu.dimension_semantics<parallel>], iteration_bounds = array<i64: 1>, scalar_prefetch = 0 : i64, scratch_operands = 0 : i64, tpu.core_type = #tpu.core_type<tc>, window_params = [{transform_indices = @transform_0, window_bounds = array<i64: 16, 128>}, {pipeline_mode = #tpu.pipeline_mode<synchronous>, transform_indices = @transform_1, window_bounds = array<i64: 1, 128>}, {pipeline_mode = #tpu.pipeline_mode<synchronous>, transform_indices = @transform_2, window_bounds = array<i64: 1, 128>}, {transform_indices = @transform_3, window_bounds = array<i64: 16, 128>}]} {
    %c0 = arith.constant 0 : index
    %c0_0 = arith.constant 0 : index
    %0 = vector.load %arg1[%c0, %c0_0] : memref<16x128xf32, #tpu.memory_space<vmem>>, vector<16x128xf32>
    %c0_1 = arith.constant 0 : index
    %c0_2 = arith.constant 0 : index
    %1 = vector.load %arg2[%c0_1, %c0_2] : memref<1x128xf32, #tpu.memory_space<vmem>>, vector<1x128xf32>
    %2 = vector.broadcast %1 : vector<1x128xf32> to vector<16x128xf32>
    %3 = arith.mulf %0, %2 : vector<16x128xf32>
    %c0_3 = arith.constant 0 : index
    %c0_4 = arith.constant 0 : index
    %4 = vector.load %arg3[%c0_3, %c0_4] : memref<1x128xf32, #tpu.memory_space<vmem>>, vector<1x128xf32>
    %5 = vector.broadcast %4 : vector<1x128xf32> to vector<16x128xf32>
    %6 = arith.addf %3, %5 : vector<16x128xf32>
    %c0_5 = arith.constant 0 : index
    %c0_6 = arith.constant 0 : index
    %7 = vector.load %arg4[%c0_5, %c0_6] : memref<16x128xf32, #tpu.memory_space<vmem>>, vector<16x128xf32>
    tpu.vector_store %arg4[%c0_5, %c0_6], %6 {strides = array<i32>} : memref<16x128xf32, #tpu.memory_space<vmem>>, vector<16x128xf32>,
    return
  }
  func.func @transform_0(%arg0: i32) -> (i32, i32) {
    %c0_i32 = arith.constant 0 : i32
    %c0_i32_0 = arith.constant 0 : i32
    return %arg0, %c0_i32 : i32, i32
  }
  func.func @transform_1(%arg0: i32) -> (i32, i32) {
    %c0_i32 = arith.constant 0 : i32
    %c0_i32_0 = arith.constant 0 : i32
    %c0_i32_1 = arith.constant 0 : i32
    return %c0_i32, %c0_i32_0 : i32, i32
  }
  func.func @transform_2(%arg0: i32) -> (i32, i32) {
    %c0_i32 = arith.constant 0 : i32
    %c0_i32_0 = arith.constant 0 : i32
    %c0_i32_1 = arith.constant 0 : i32
    return %c0_i32, %c0_i32_0 : i32, i32
  }
  func.func @transform_3(%arg0: i32) -> (i32, i32) {
    %c0_i32 = arith.constant 0 : i32
    %c0_i32_0 = arith.constant 0 : i32
    return %arg0, %c0_i32 : i32, i32
  }
}

module attributes {stable_mosaic.version = 11 : i64} {
  func.func @_scale_shift_kernel(%arg0: i32, %arg1: memref<8x128xf32, #tpu.memory_space<vmem>>, %arg2: memref<1x128xf32, #tpu.memory_space<vmem>>, %arg3: memref<1x128xf32, #tpu.memory_space<vmem>>, %arg4: memref<8x128xf32, #tpu.memory_space<vmem>>) attributes {dimension_semantics = [#tpu.dimension_semantics<parallel>], iteration_bounds = array<i64: 1>, scalar_prefetch = 0 : i64, scratch_operands = 0 : i64, tpu.core_type = #tpu.core_type<tc>, window_params = [{transform_indices = @transform_0, window_bounds = array<i64: 8, 128>}, {pipeline_mode = #tpu.pipeline_mode<synchronous>, transform_indices = @transform_1, window_bounds = array<i64: 1, 128>}, {pipeline_mode = #tpu.pipeline_mode<synchronous>, transform_indices = @transform_2, window_bounds = array<i64: 1, 128>}, {transform_indices = @transform_3, window_bounds = array<i64: 8, 128>}]} {
    %c0 = arith.constant 0 : index
    %c0_0 = arith.constant 0 : index
    %0 = vector.load %arg1[%c0, %c0_0] : memref<8x128xf32, #tpu.memory_space<vmem>>, vector<8x128xf32>
    %c0_1 = arith.constant 0 : index
    %c0_2 = arith.constant 0 : index
    %1 = vector.load %arg2[%c0_1, %c0_2] : memref<1x128xf32, #tpu.memory_space<vmem>>, vector<1x128xf32>
    %2 = vector.broadcast %1 : vector<1x128xf32> to vector<8x128xf32>
    %3 = arith.mulf %0, %2 : vector<8x128xf32>
    %c0_3 = arith.constant 0 : index
    %c0_4 = arith.constant 0 : index
    %4 = vector.load %arg3[%c0_3, %c0_4] : memref<1x128xf32, #tpu.memory_space<vmem>>, vector<1x128xf32>
    %5 = vector.broadcast %4 : vector<1x128xf32> to vector<8x128xf32>
    %6 = arith.addf %3, %5 : vector<8x128xf32>
    %c0_5 = arith.constant 0 : index
    %c0_6 = arith.constant 0 : index
    %7 = vector.load %arg4[%c0_5, %c0_6] : memref<8x128xf32, #tpu.memory_space<vmem>>, vector<8x128xf32>
    tpu.vector_store %arg4[%c0_5, %c0_6], %6 {strides = array<i32>} : memref<8x128xf32, #tpu.memory_space<vmem>>, vector<8x128xf32>,
    return
  }
  func.func @transform_0(%arg0: i32) -> (i32, i32) {
    %c0_i32 = arith.constant 0 : i32
    %c0_i32_0 = arith.constant 0 : i32
    return %arg0, %c0_i32 : i32, i32
  }
  func.func @transform_1(%arg0: i32) -> (i32, i32) {
    %c0_i32 = arith.constant 0 : i32
    %c0_i32_0 = arith.constant 0 : i32
    %c0_i32_1 = arith.constant 0 : i32
    return %c0_i32, %c0_i32_0 : i32, i32
  }
  func.func @transform_2(%arg0: i32) -> (i32, i32) {
    %c0_i32 = arith.constant 0 : i32
    %c0_i32_0 = arith.constant 0 : i32
    %c0_i32_1 = arith.constant 0 : i32
    return %c0_i32, %c0_i32_0 : i32, i32
  }
  func.func @transform_3(%arg0: i32) -> (i32, i32) {
    %c0_i32 = arith.constant 0 : i32
    %c0_i32_0 = arith.constant 0 : i32
    return %arg0, %c0_i32 : i32, i32
  }
}

module attributes {stable_mosaic.version = 11 : i64} {
  func.func @_fused_matmul_kernel(%arg0: i32, %arg1: i32, %arg2: memref<32x256xbf16, #tpu.memory_space<vmem>>, %arg3: memref<256x32xbf16, #tpu.memory_space<vmem>>, %arg4: memref<1x32xf32, #tpu.memory_space<vmem>>, %arg5: memref<32x32xf32, #tpu.memory_space<vmem>>, %arg6: memref<2x32xf32, #tpu.memory_space<vmem>>, %arg7: memref<32x32xf32, #tpu.memory_space<vmem>>) attributes {dimension_semantics = [#tpu.dimension_semantics<arbitrary>, #tpu.dimension_semantics<arbitrary>], iteration_bounds = array<i64: 1, 1>, scalar_prefetch = 0 : i64, scratch_operands = 1 : i64, tpu.core_type = #tpu.core_type<tc>, window_params = [{transform_indices = @transform_0, window_bounds = array<i64: 32, 256>}, {transform_indices = @transform_1, window_bounds = array<i64: 256, 32>}, {pipeline_mode = #tpu.pipeline_mode<synchronous>, transform_indices = @transform_2, window_bounds = array<i64: 1, 32>}, {transform_indices = @transform_3, window_bounds = array<i64: 32, 32>}, {pipeline_mode = #tpu.pipeline_mode<synchronous>, transform_indices = @transform_4, window_bounds = array<i64: 2, 32>}]} {
    %c0 = arith.constant 0 : index
    %c0_0 = arith.constant 0 : index
    %0 = vector.load %arg2[%c0, %c0_0] : memref<32x256xbf16, #tpu.memory_space<vmem>>, vector<32x256xbf16>
    %cst = arith.constant 0.000000e+00 : bf16
    %1 = vector.broadcast %cst : bf16 to vector<32x256xbf16>
    %2 = arith.cmpf oge, %0, %1 : vector<32x256xbf16>
    %cst_1 = arith.constant 2.001950e-01 : bf16
    %3 = vector.broadcast %cst_1 : bf16 to vector<32x256xbf16>
    %4 = arith.mulf %0, %3 : vector<32x256xbf16>
    %5 = arith.select %2, %0, %4 : vector<32x256xi1>, vector<32x256xbf16>
    %c0_i32 = arith.constant 0 : i32
    %6 = arith.cmpi eq, %arg1, %c0_i32 : i32
    %7 = arith.extui %6 : i1 to i32
    %c0_i32_2 = arith.constant 0 : i32
    %8 = arith.cmpi ne, %7, %c0_i32_2 : i32
    scf.if %8 {
      %cst_12 = arith.constant 0.000000e+00 : f32
      %17 = vector.broadcast %cst_12 : f32 to vector<32x32xf32>
      %c0_13 = arith.constant 0 : index
      %c0_14 = arith.constant 0 : index
      %18 = vector.load %arg7[%c0_13, %c0_14] : memref<32x32xf32, #tpu.memory_space<vmem>>, vector<32x32xf32>
      tpu.vector_store %arg7[%c0_13, %c0_14], %17 {strides = array<i32>} : memref<32x32xf32, #tpu.memory_space<vmem>>, vector<32x32xf32>,
    } else {
    }
    %c0_3 = arith.constant 0 : index
    %c0_4 = arith.constant 0 : index
    %9 = vector.load %arg7[%c0_3, %c0_4] : memref<32x32xf32, #tpu.memory_space<vmem>>, vector<32x32xf32>
    %c0_5 = arith.constant 0 : index
    %c0_6 = arith.constant 0 : index
    %10 = vector.load %arg3[%c0_5, %c0_6] : memref<256x32xbf16, #tpu.memory_space<vmem>>, vector<256x32xbf16>
    %cst_7 = arith.constant dense<0.000000e+00> : vector<32x32xf32>
    %11 = tpu.matmul %5, %10, %cst_7 {dimension_numbers = #tpu.dot_dimension_numbers<[1], [0], [0], [1], [0, 0, 1, 1], [], []>} : vector<32x256xbf16>, vector<256x32xbf16>, vector<32x32xf32> -> vector<32x32xf32>
    %12 = arith.addf %9, %11 : vector<32x32xf32>
    %c0_8 = arith.constant 0 : index
    %c0_9 = arith.constant 0 : index
    %13 = vector.load %arg7[%c0_8, %c0_9] : memref<32x32xf32, #tpu.memory_space<vmem>>, vector<32x32xf32>
    tpu.vector_store %arg7[%c0_8, %c0_9], %12 {strides = array<i32>} : memref<32x32xf32, #tpu.memory_space<vmem>>, vector<32x32xf32>,
    %c0_i32_10 = arith.constant 0 : i32
    %14 = arith.cmpi eq, %arg1, %c0_i32_10 : i32
    %15 = arith.extui %14 : i1 to i32
    %c0_i32_11 = arith.constant 0 : i32
    %16 = arith.cmpi ne, %15, %c0_i32_11 : i32
    scf.if %16 {
      %c0_12 = arith.constant 0 : index
      %c0_13 = arith.constant 0 : index
      %17 = vector.load %arg7[%c0_12, %c0_13] : memref<32x32xf32, #tpu.memory_space<vmem>>, vector<32x32xf32>
      %c0_14 = arith.constant 0 : index
      %c0_15 = arith.constant 0 : index
      %18 = vector.load %arg4[%c0_14, %c0_15] : memref<1x32xf32, #tpu.memory_space<vmem>>, vector<1x32xf32>
      %19 = vector.broadcast %18 : vector<1x32xf32> to vector<32x32xf32>
      %20 = arith.addf %17, %19 : vector<32x32xf32>
      %c0_16 = arith.constant 0 : index
      %c0_17 = arith.constant 0 : index
      %21 = vector.load %arg5[%c0_16, %c0_17] : memref<32x32xf32, #tpu.memory_space<vmem>>, vector<32x32xf32>
      tpu.vector_store %arg5[%c0_16, %c0_17], %20 {strides = array<i32>} : memref<32x32xf32, #tpu.memory_space<vmem>>, vector<32x32xf32>,
      %cst_18 = arith.constant dense<0.000000e+00> : vector<32xf32>
      %22 = vector.multi_reduction <add>, %20, %cst_18 [0] : vector<32x32xf32> to vector<32xf32>
      %23 = vector.shape_cast %22 : vector<32xf32> to vector<1x32xf32>
      %24 = arith.mulf %20, %20 : vector<32x32xf32>
      %cst_19 = arith.constant dense<0.000000e+00> : vector<32xf32>
      %25 = vector.multi_reduction <add>, %24, %cst_19 [0] : vector<32x32xf32> to vector<32xf32>
      %26 = vector.shape_cast %25 : vector<32xf32> to vector<1x32xf32>
      %27 = tpu.concatenate %23, %26 in 0 : vector<1x32xf32>, vector<1x32xf32> -> vector<2x32xf32>
      %c0_i32_20 = arith.constant 0 : i32
      %28 = arith.cmpi eq, %arg0, %c0_i32_20 : i32
      %29 = arith.extui %28 : i1 to i32
      %c0_i32_21 = arith.constant 0 : i32
      %30 = arith.cmpi ne, %29, %c0_i32_21 : i32
      scf.if %30 {
        %c0_24 = arith.constant 0 : index
        %c0_25 = arith.constant 0 : index
        %34 = vector.load %arg6[%c0_24, %c0_25] : memref<2x32xf32, #tpu.memory_space<vmem>>, vector<2x32xf32>
        tpu.vector_store %arg6[%c0_24, %c0_25], %27 {strides = array<i32>} : memref<2x32xf32, #tpu.memory_space<vmem>>, vector<2x32xf32>,
      } else {
      }
      %c0_i32_22 = arith.constant 0 : i32
      %31 = arith.cmpi ne, %arg0, %c0_i32_22 : i32
      %32 = arith.extui %31 : i1 to i32
      %c0_i32_23 = arith.constant 0 : i32
      %33 = arith.cmpi ne, %32, %c0_i32_23 : i32
      scf.if %33 {
        %c0_24 = arith.constant 0 : index
        %c0_25 = arith.constant 0 : index
        %34 = vector.load %arg6[%c0_24, %c0_25] : memref<2x32xf32, #tpu.memory_space<vmem>>, vector<2x32xf32>
        %35 = arith.addf %34, %27 : vector<2x32xf32>
        %c0_26 = arith.constant 0 : index
        %c0_27 = arith.constant 0 : index
        %36 = vector.load %arg6[%c0_26, %c0_27] : memref<2x32xf32, #tpu.memory_space<vmem>>, vector<2x32xf32>
        tpu.vector_store %arg6[%c0_26, %c0_27], %35 {strides = array<i32>} : memref<2x32xf32, #tpu.memory_space<vmem>>, vector<2x32xf32>,
      } else {
      }
    } else {
    }
    return
  }
  func.func @transform_0(%arg0: i32, %arg1: i32) -> (i32, i32) {
    %c0_i32 = arith.constant 0 : i32
    return %arg0, %arg1 : i32, i32
  }
  func.func @transform_1(%arg0: i32, %arg1: i32) -> (i32, i32) {
    %c0_i32 = arith.constant 0 : i32
    %c0_i32_0 = arith.constant 0 : i32
    return %arg1, %c0_i32 : i32, i32
  }
  func.func @transform_2(%arg0: i32, %arg1: i32) -> (i32, i32) {
    %c0_i32 = arith.constant 0 : i32
    %c0_i32_0 = arith.constant 0 : i32
    %c0_i32_1 = arith.constant 0 : i32
    return %c0_i32, %c0_i32_0 : i32, i32
  }
  func.func @transform_3(%arg0: i32, %arg1: i32) -> (i32, i32) {
    %c0_i32 = arith.constant 0 : i32
    %c0_i32_0 = arith.constant 0 : i32
    return %arg0, %c0_i32 : i32, i32
  }
  func.func @transform_4(%arg0: i32, %arg1: i32) -> (i32, i32) {
    %c0_i32 = arith.constant 0 : i32
    %c0_i32_0 = arith.constant 0 : i32
    %c0_i32_1 = arith.constant 0 : i32
    return %c0_i32, %c0_i32_0 : i32, i32
  }
}

module attributes {stable_mosaic.version = 11 : i64} {
  func.func @_fused_matmul_kernel(%arg0: i32, %arg1: i32, %arg2: memref<8x512xbf16, #tpu.memory_space<vmem>>, %arg3: memref<512x64xbf16, #tpu.memory_space<vmem>>, %arg4: memref<1x64xf32, #tpu.memory_space<vmem>>, %arg5: memref<8x64xf32, #tpu.memory_space<vmem>>, %arg6: memref<2x64xf32, #tpu.memory_space<vmem>>, %arg7: memref<8x64xf32, #tpu.memory_space<vmem>>) attributes {dimension_semantics = [#tpu.dimension_semantics<arbitrary>, #tpu.dimension_semantics<arbitrary>], iteration_bounds = array<i64: 1, 1>, scalar_prefetch = 0 : i64, scratch_operands = 1 : i64, tpu.core_type = #tpu.core_type<tc>, window_params = [{transform_indices = @transform_0, window_bounds = array<i64: 8, 512>}, {transform_indices = @transform_1, window_bounds = array<i64: 512, 64>}, {pipeline_mode = #tpu.pipeline_mode<synchronous>, transform_indices = @transform_2, window_bounds = array<i64: 1, 64>}, {transform_indices = @transform_3, window_bounds = array<i64: 8, 64>}, {pipeline_mode = #tpu.pipeline_mode<synchronous>, transform_indices = @transform_4, window_bounds = array<i64: 2, 64>}]} {
    %c0 = arith.constant 0 : index
    %c0_0 = arith.constant 0 : index
    %0 = vector.load %arg2[%c0, %c0_0] : memref<8x512xbf16, #tpu.memory_space<vmem>>, vector<8x512xbf16>
    %cst = arith.constant 0.000000e+00 : bf16
    %1 = vector.broadcast %cst : bf16 to vector<8x512xbf16>
    %2 = arith.cmpf oge, %0, %1 : vector<8x512xbf16>
    %cst_1 = arith.constant 2.001950e-01 : bf16
    %3 = vector.broadcast %cst_1 : bf16 to vector<8x512xbf16>
    %4 = arith.mulf %0, %3 : vector<8x512xbf16>
    %5 = arith.select %2, %0, %4 : vector<8x512xi1>, vector<8x512xbf16>
    %c0_i32 = arith.constant 0 : i32
    %6 = arith.cmpi eq, %arg1, %c0_i32 : i32
    %7 = arith.extui %6 : i1 to i32
    %c0_i32_2 = arith.constant 0 : i32
    %8 = arith.cmpi ne, %7, %c0_i32_2 : i32
    scf.if %8 {
      %cst_12 = arith.constant 0.000000e+00 : f32
      %17 = vector.broadcast %cst_12 : f32 to vector<8x64xf32>
      %c0_13 = arith.constant 0 : index
      %c0_14 = arith.constant 0 : index
      %18 = vector.load %arg7[%c0_13, %c0_14] : memref<8x64xf32, #tpu.memory_space<vmem>>, vector<8x64xf32>
      tpu.vector_store %arg7[%c0_13, %c0_14], %17 {strides = array<i32>} : memref<8x64xf32, #tpu.memory_space<vmem>>, vector<8x64xf32>,
    } else {
    }
    %c0_3 = arith.constant 0 : index
    %c0_4 = arith.constant 0 : index
    %9 = vector.load %arg7[%c0_3, %c0_4] : memref<8x64xf32, #tpu.memory_space<vmem>>, vector<8x64xf32>
    %c0_5 = arith.constant 0 : index
    %c0_6 = arith.constant 0 : index
    %10 = vector.load %arg3[%c0_5, %c0_6] : memref<512x64xbf16, #tpu.memory_space<vmem>>, vector<512x64xbf16>
    %cst_7 = arith.constant dense<0.000000e+00> : vector<8x64xf32>
    %11 = tpu.matmul %5, %10, %cst_7 {dimension_numbers = #tpu.dot_dimension_numbers<[1], [0], [0], [1], [0, 0, 1, 1], [], []>} : vector<8x512xbf16>, vector<512x64xbf16>, vector<8x64xf32> -> vector<8x64xf32>
    %12 = arith.addf %9, %11 : vector<8x64xf32>
    %c0_8 = arith.constant 0 : index
    %c0_9 = arith.constant 0 : index
    %13 = vector.load %arg7[%c0_8, %c0_9] : memref<8x64xf32, #tpu.memory_space<vmem>>, vector<8x64xf32>
    tpu.vector_store %arg7[%c0_8, %c0_9], %12 {strides = array<i32>} : memref<8x64xf32, #tpu.memory_space<vmem>>, vector<8x64xf32>,
    %c0_i32_10 = arith.constant 0 : i32
    %14 = arith.cmpi eq, %arg1, %c0_i32_10 : i32
    %15 = arith.extui %14 : i1 to i32
    %c0_i32_11 = arith.constant 0 : i32
    %16 = arith.cmpi ne, %15, %c0_i32_11 : i32
    scf.if %16 {
      %c0_12 = arith.constant 0 : index
      %c0_13 = arith.constant 0 : index
      %17 = vector.load %arg7[%c0_12, %c0_13] : memref<8x64xf32, #tpu.memory_space<vmem>>, vector<8x64xf32>
      %c0_14 = arith.constant 0 : index
      %c0_15 = arith.constant 0 : index
      %18 = vector.load %arg4[%c0_14, %c0_15] : memref<1x64xf32, #tpu.memory_space<vmem>>, vector<1x64xf32>
      %19 = vector.broadcast %18 : vector<1x64xf32> to vector<8x64xf32>
      %20 = arith.addf %17, %19 : vector<8x64xf32>
      %c0_16 = arith.constant 0 : index
      %c0_17 = arith.constant 0 : index
      %21 = vector.load %arg5[%c0_16, %c0_17] : memref<8x64xf32, #tpu.memory_space<vmem>>, vector<8x64xf32>
      tpu.vector_store %arg5[%c0_16, %c0_17], %20 {strides = array<i32>} : memref<8x64xf32, #tpu.memory_space<vmem>>, vector<8x64xf32>,
      %cst_18 = arith.constant dense<0.000000e+00> : vector<64xf32>
      %22 = vector.multi_reduction <add>, %20, %cst_18 [0] : vector<8x64xf32> to vector<64xf32>
      %23 = vector.shape_cast %22 : vector<64xf32> to vector<1x64xf32>
      %24 = arith.mulf %20, %20 : vector<8x64xf32>
      %cst_19 = arith.constant dense<0.000000e+00> : vector<64xf32>
      %25 = vector.multi_reduction <add>, %24, %cst_19 [0] : vector<8x64xf32> to vector<64xf32>
      %26 = vector.shape_cast %25 : vector<64xf32> to vector<1x64xf32>
      %27 = tpu.concatenate %23, %26 in 0 : vector<1x64xf32>, vector<1x64xf32> -> vector<2x64xf32>
      %c0_i32_20 = arith.constant 0 : i32
      %28 = arith.cmpi eq, %arg0, %c0_i32_20 : i32
      %29 = arith.extui %28 : i1 to i32
      %c0_i32_21 = arith.constant 0 : i32
      %30 = arith.cmpi ne, %29, %c0_i32_21 : i32
      scf.if %30 {
        %c0_24 = arith.constant 0 : index
        %c0_25 = arith.constant 0 : index
        %34 = vector.load %arg6[%c0_24, %c0_25] : memref<2x64xf32, #tpu.memory_space<vmem>>, vector<2x64xf32>
        tpu.vector_store %arg6[%c0_24, %c0_25], %27 {strides = array<i32>} : memref<2x64xf32, #tpu.memory_space<vmem>>, vector<2x64xf32>,
      } else {
      }
      %c0_i32_22 = arith.constant 0 : i32
      %31 = arith.cmpi ne, %arg0, %c0_i32_22 : i32
      %32 = arith.extui %31 : i1 to i32
      %c0_i32_23 = arith.constant 0 : i32
      %33 = arith.cmpi ne, %32, %c0_i32_23 : i32
      scf.if %33 {
        %c0_24 = arith.constant 0 : index
        %c0_25 = arith.constant 0 : index
        %34 = vector.load %arg6[%c0_24, %c0_25] : memref<2x64xf32, #tpu.memory_space<vmem>>, vector<2x64xf32>
        %35 = arith.addf %34, %27 : vector<2x64xf32>
        %c0_26 = arith.constant 0 : index
        %c0_27 = arith.constant 0 : index
        %36 = vector.load %arg6[%c0_26, %c0_27] : memref<2x64xf32, #tpu.memory_space<vmem>>, vector<2x64xf32>
        tpu.vector_store %arg6[%c0_26, %c0_27], %35 {strides = array<i32>} : memref<2x64xf32, #tpu.memory_space<vmem>>, vector<2x64xf32>,
      } else {
      }
    } else {
    }
    return
  }
  func.func @transform_0(%arg0: i32, %arg1: i32) -> (i32, i32) {
    %c0_i32 = arith.constant 0 : i32
    return %arg0, %arg1 : i32, i32
  }
  func.func @transform_1(%arg0: i32, %arg1: i32) -> (i32, i32) {
    %c0_i32 = arith.constant 0 : i32
    %c0_i32_0 = arith.constant 0 : i32
    return %arg1, %c0_i32 : i32, i32
  }
  func.func @transform_2(%arg0: i32, %arg1: i32) -> (i32, i32) {
    %c0_i32 = arith.constant 0 : i32
    %c0_i32_0 = arith.constant 0 : i32
    %c0_i32_1 = arith.constant 0 : i32
    return %c0_i32, %c0_i32_0 : i32, i32
  }
  func.func @transform_3(%arg0: i32, %arg1: i32) -> (i32, i32) {
    %c0_i32 = arith.constant 0 : i32
    %c0_i32_0 = arith.constant 0 : i32
    return %arg0, %c0_i32 : i32, i32
  }
  func.func @transform_4(%arg0: i32, %arg1: i32) -> (i32, i32) {
    %c0_i32 = arith.constant 0 : i32
    %c0_i32_0 = arith.constant 0 : i32
    %c0_i32_1 = arith.constant 0 : i32
    return %c0_i32, %c0_i32_0 : i32, i32
  }
}

module attributes {stable_mosaic.version = 11 : i64} {
  func.func @_scale_shift_kernel(%arg0: i32, %arg1: memref<4x128xf32, #tpu.memory_space<vmem>>, %arg2: memref<1x128xf32, #tpu.memory_space<vmem>>, %arg3: memref<1x128xf32, #tpu.memory_space<vmem>>, %arg4: memref<4x128xf32, #tpu.memory_space<vmem>>) attributes {dimension_semantics = [#tpu.dimension_semantics<parallel>], iteration_bounds = array<i64: 1>, scalar_prefetch = 0 : i64, scratch_operands = 0 : i64, tpu.core_type = #tpu.core_type<tc>, window_params = [{transform_indices = @transform_0, window_bounds = array<i64: 4, 128>}, {pipeline_mode = #tpu.pipeline_mode<synchronous>, transform_indices = @transform_1, window_bounds = array<i64: 1, 128>}, {pipeline_mode = #tpu.pipeline_mode<synchronous>, transform_indices = @transform_2, window_bounds = array<i64: 1, 128>}, {transform_indices = @transform_3, window_bounds = array<i64: 4, 128>}]} {
    %c0 = arith.constant 0 : index
    %c0_0 = arith.constant 0 : index
    %0 = vector.load %arg1[%c0, %c0_0] : memref<4x128xf32, #tpu.memory_space<vmem>>, vector<4x128xf32>
    %c0_1 = arith.constant 0 : index
    %c0_2 = arith.constant 0 : index
    %1 = vector.load %arg2[%c0_1, %c0_2] : memref<1x128xf32, #tpu.memory_space<vmem>>, vector<1x128xf32>
    %2 = vector.broadcast %1 : vector<1x128xf32> to vector<4x128xf32>
    %3 = arith.mulf %0, %2 : vector<4x128xf32>
    %c0_3 = arith.constant 0 : index
    %c0_4 = arith.constant 0 : index
    %4 = vector.load %arg3[%c0_3, %c0_4] : memref<1x128xf32, #tpu.memory_space<vmem>>, vector<1x128xf32>
    %5 = vector.broadcast %4 : vector<1x128xf32> to vector<4x128xf32>
    %6 = arith.addf %3, %5 : vector<4x128xf32>
    %c0_5 = arith.constant 0 : index
    %c0_6 = arith.constant 0 : index
    %7 = vector.load %arg4[%c0_5, %c0_6] : memref<4x128xf32, #tpu.memory_space<vmem>>, vector<4x128xf32>
    tpu.vector_store %arg4[%c0_5, %c0_6], %6 {strides = array<i32>} : memref<4x128xf32, #tpu.memory_space<vmem>>, vector<4x128xf32>,
    return
  }
  func.func @transform_0(%arg0: i32) -> (i32, i32) {
    %c0_i32 = arith.constant 0 : i32
    %c0_i32_0 = arith.constant 0 : i32
    return %arg0, %c0_i32 : i32, i32
  }
  func.func @transform_1(%arg0: i32) -> (i32, i32) {
    %c0_i32 = arith.constant 0 : i32
    %c0_i32_0 = arith.constant 0 : i32
    %c0_i32_1 = arith.constant 0 : i32
    return %c0_i32, %c0_i32_0 : i32, i32
  }
  func.func @transform_2(%arg0: i32) -> (i32, i32) {
    %c0_i32 = arith.constant 0 : i32
    %c0_i32_0 = arith.constant 0 : i32
    %c0_i32_1 = arith.constant 0 : i32
    return %c0_i32, %c0_i32_0 : i32, i32
  }
  func.func @transform_3(%arg0: i32) -> (i32, i32) {
    %c0_i32 = arith.constant 0 : i32
    %c0_i32_0 = arith.constant 0 : i32
    return %arg0, %c0_i32 : i32, i32
  }
}

module attributes {stable_mosaic.version = 11 : i64} {
  func.func @_fused_matmul_kernel(%arg0: i32, %arg1: i32, %arg2: memref<8x1024xbf16, #tpu.memory_space<vmem>>, %arg3: memref<1024x64xbf16, #tpu.memory_space<vmem>>, %arg4: memref<1x64xf32, #tpu.memory_space<vmem>>, %arg5: memref<8x64xf32, #tpu.memory_space<vmem>>, %arg6: memref<8x64xf32, #tpu.memory_space<vmem>>) attributes {dimension_semantics = [#tpu.dimension_semantics<parallel>, #tpu.dimension_semantics<arbitrary>], iteration_bounds = array<i64: 1, 1>, scalar_prefetch = 0 : i64, scratch_operands = 1 : i64, tpu.core_type = #tpu.core_type<tc>, window_params = [{transform_indices = @transform_0, window_bounds = array<i64: 8, 1024>}, {transform_indices = @transform_1, window_bounds = array<i64: 1024, 64>}, {pipeline_mode = #tpu.pipeline_mode<synchronous>, transform_indices = @transform_2, window_bounds = array<i64: 1, 64>}, {transform_indices = @transform_3, window_bounds = array<i64: 8, 64>}]} {
    %c0 = arith.constant 0 : index
    %c0_0 = arith.constant 0 : index
    %0 = vector.load %arg2[%c0, %c0_0] : memref<8x1024xbf16, #tpu.memory_space<vmem>>, vector<8x1024xbf16>
    %cst = arith.constant 0.000000e+00 : bf16
    %1 = vector.broadcast %cst : bf16 to vector<8x1024xbf16>
    %2 = arith.cmpf oge, %0, %1 : vector<8x1024xbf16>
    %cst_1 = arith.constant 2.001950e-01 : bf16
    %3 = vector.broadcast %cst_1 : bf16 to vector<8x1024xbf16>
    %4 = arith.mulf %0, %3 : vector<8x1024xbf16>
    %5 = arith.select %2, %0, %4 : vector<8x1024xi1>, vector<8x1024xbf16>
    %c0_i32 = arith.constant 0 : i32
    %6 = arith.cmpi eq, %arg1, %c0_i32 : i32
    %7 = arith.extui %6 : i1 to i32
    %c0_i32_2 = arith.constant 0 : i32
    %8 = arith.cmpi ne, %7, %c0_i32_2 : i32
    scf.if %8 {
      %cst_12 = arith.constant 0.000000e+00 : f32
      %17 = vector.broadcast %cst_12 : f32 to vector<8x64xf32>
      %c0_13 = arith.constant 0 : index
      %c0_14 = arith.constant 0 : index
      %18 = vector.load %arg6[%c0_13, %c0_14] : memref<8x64xf32, #tpu.memory_space<vmem>>, vector<8x64xf32>
      tpu.vector_store %arg6[%c0_13, %c0_14], %17 {strides = array<i32>} : memref<8x64xf32, #tpu.memory_space<vmem>>, vector<8x64xf32>,
    } else {
    }
    %c0_3 = arith.constant 0 : index
    %c0_4 = arith.constant 0 : index
    %9 = vector.load %arg6[%c0_3, %c0_4] : memref<8x64xf32, #tpu.memory_space<vmem>>, vector<8x64xf32>
    %c0_5 = arith.constant 0 : index
    %c0_6 = arith.constant 0 : index
    %10 = vector.load %arg3[%c0_5, %c0_6] : memref<1024x64xbf16, #tpu.memory_space<vmem>>, vector<1024x64xbf16>
    %cst_7 = arith.constant dense<0.000000e+00> : vector<8x64xf32>
    %11 = tpu.matmul %5, %10, %cst_7 {dimension_numbers = #tpu.dot_dimension_numbers<[1], [0], [0], [1], [0, 0, 1, 1], [], []>} : vector<8x1024xbf16>, vector<1024x64xbf16>, vector<8x64xf32> -> vector<8x64xf32>
    %12 = arith.addf %9, %11 : vector<8x64xf32>
    %c0_8 = arith.constant 0 : index
    %c0_9 = arith.constant 0 : index
    %13 = vector.load %arg6[%c0_8, %c0_9] : memref<8x64xf32, #tpu.memory_space<vmem>>, vector<8x64xf32>
    tpu.vector_store %arg6[%c0_8, %c0_9], %12 {strides = array<i32>} : memref<8x64xf32, #tpu.memory_space<vmem>>, vector<8x64xf32>,
    %c0_i32_10 = arith.constant 0 : i32
    %14 = arith.cmpi eq, %arg1, %c0_i32_10 : i32
    %15 = arith.extui %14 : i1 to i32
    %c0_i32_11 = arith.constant 0 : i32
    %16 = arith.cmpi ne, %15, %c0_i32_11 : i32
    scf.if %16 {
      %c0_12 = arith.constant 0 : index
      %c0_13 = arith.constant 0 : index
      %17 = vector.load %arg6[%c0_12, %c0_13] : memref<8x64xf32, #tpu.memory_space<vmem>>, vector<8x64xf32>
      %c0_14 = arith.constant 0 : index
      %c0_15 = arith.constant 0 : index
      %18 = vector.load %arg4[%c0_14, %c0_15] : memref<1x64xf32, #tpu.memory_space<vmem>>, vector<1x64xf32>
      %19 = vector.broadcast %18 : vector<1x64xf32> to vector<8x64xf32>
      %20 = arith.addf %17, %19 : vector<8x64xf32>
      %c0_16 = arith.constant 0 : index
      %c0_17 = arith.constant 0 : index
      %21 = vector.load %arg5[%c0_16, %c0_17] : memref<8x64xf32, #tpu.memory_space<vmem>>, vector<8x64xf32>
      tpu.vector_store %arg5[%c0_16, %c0_17], %20 {strides = array<i32>} : memref<8x64xf32, #tpu.memory_space<vmem>>, vector<8x64xf32>,
    } else {
    }
    return
  }
  func.func @transform_0(%arg0: i32, %arg1: i32) -> (i32, i32) {
    %c0_i32 = arith.constant 0 : i32
    return %arg0, %arg1 : i32, i32
  }
  func.func @transform_1(%arg0: i32, %arg1: i32) -> (i32, i32) {
    %c0_i32 = arith.constant 0 : i32
    %c0_i32_0 = arith.constant 0 : i32
    return %arg1, %c0_i32 : i32, i32
  }
  func.func @transform_2(%arg0: i32, %arg1: i32) -> (i32, i32) {
    %c0_i32 = arith.constant 0 : i32
    %c0_i32_0 = arith.constant 0 : i32
    %c0_i32_1 = arith.constant 0 : i32
    return %c0_i32, %c0_i32_0 : i32, i32
  }
  func.func @transform_3(%arg0: i32, %arg1: i32) -> (i32, i32) {
    %c0_i32 = arith.constant 0 : i32
    %c0_i32_0 = arith.constant 0 : i32
    return %arg0, %c0_i32 : i32, i32
  }
}

module attributes {stable_mosaic.version = 11 : i64} {
  func.func @_fused_matmul_kernel(%arg0: i32, %arg1: i32, %arg2: memref<8x576xbf16, #tpu.memory_space<vmem>>, %arg3: memref<576x256xbf16, #tpu.memory_space<vmem>>, %arg4: memref<1x256xf32, #tpu.memory_space<vmem>>, %arg5: memref<8x256xf32, #tpu.memory_space<vmem>>, %arg6: memref<2x256xf32, #tpu.memory_space<vmem>>, %arg7: memref<8x256xf32, #tpu.memory_space<vmem>>) attributes {dimension_semantics = [#tpu.dimension_semantics<arbitrary>, #tpu.dimension_semantics<arbitrary>], iteration_bounds = array<i64: 1, 1>, scalar_prefetch = 0 : i64, scratch_operands = 1 : i64, tpu.core_type = #tpu.core_type<tc>, window_params = [{transform_indices = @transform_0, window_bounds = array<i64: 8, 576>}, {transform_indices = @transform_1, window_bounds = array<i64: 576, 256>}, {pipeline_mode = #tpu.pipeline_mode<synchronous>, transform_indices = @transform_2, window_bounds = array<i64: 1, 256>}, {transform_indices = @transform_3, window_bounds = array<i64: 8, 256>}, {pipeline_mode = #tpu.pipeline_mode<synchronous>, transform_indices = @transform_4, window_bounds = array<i64: 2, 256>}]} {
    %c0 = arith.constant 0 : index
    %c0_0 = arith.constant 0 : index
    %0 = vector.load %arg2[%c0, %c0_0] : memref<8x576xbf16, #tpu.memory_space<vmem>>, vector<8x576xbf16>
    %cst = arith.constant 0.000000e+00 : bf16
    %1 = vector.broadcast %cst : bf16 to vector<8x576xbf16>
    %2 = arith.maximumf %0, %1 : vector<8x576xbf16>
    %c0_i32 = arith.constant 0 : i32
    %3 = arith.cmpi eq, %arg1, %c0_i32 : i32
    %4 = arith.extui %3 : i1 to i32
    %c0_i32_1 = arith.constant 0 : i32
    %5 = arith.cmpi ne, %4, %c0_i32_1 : i32
    scf.if %5 {
      %cst_11 = arith.constant 0.000000e+00 : f32
      %14 = vector.broadcast %cst_11 : f32 to vector<8x256xf32>
      %c0_12 = arith.constant 0 : index
      %c0_13 = arith.constant 0 : index
      %15 = vector.load %arg7[%c0_12, %c0_13] : memref<8x256xf32, #tpu.memory_space<vmem>>, vector<8x256xf32>
      tpu.vector_store %arg7[%c0_12, %c0_13], %14 {strides = array<i32>} : memref<8x256xf32, #tpu.memory_space<vmem>>, vector<8x256xf32>,
    } else {
    }
    %c0_2 = arith.constant 0 : index
    %c0_3 = arith.constant 0 : index
    %6 = vector.load %arg7[%c0_2, %c0_3] : memref<8x256xf32, #tpu.memory_space<vmem>>, vector<8x256xf32>
    %c0_4 = arith.constant 0 : index
    %c0_5 = arith.constant 0 : index
    %7 = vector.load %arg3[%c0_4, %c0_5] : memref<576x256xbf16, #tpu.memory_space<vmem>>, vector<576x256xbf16>
    %cst_6 = arith.constant dense<0.000000e+00> : vector<8x256xf32>
    %8 = tpu.matmul %2, %7, %cst_6 {dimension_numbers = #tpu.dot_dimension_numbers<[1], [0], [0], [1], [0, 0, 1, 1], [], []>} : vector<8x576xbf16>, vector<576x256xbf16>, vector<8x256xf32> -> vector<8x256xf32>
    %9 = arith.addf %6, %8 : vector<8x256xf32>
    %c0_7 = arith.constant 0 : index
    %c0_8 = arith.constant 0 : index
    %10 = vector.load %arg7[%c0_7, %c0_8] : memref<8x256xf32, #tpu.memory_space<vmem>>, vector<8x256xf32>
    tpu.vector_store %arg7[%c0_7, %c0_8], %9 {strides = array<i32>} : memref<8x256xf32, #tpu.memory_space<vmem>>, vector<8x256xf32>,
    %c0_i32_9 = arith.constant 0 : i32
    %11 = arith.cmpi eq, %arg1, %c0_i32_9 : i32
    %12 = arith.extui %11 : i1 to i32
    %c0_i32_10 = arith.constant 0 : i32
    %13 = arith.cmpi ne, %12, %c0_i32_10 : i32
    scf.if %13 {
      %c0_11 = arith.constant 0 : index
      %c0_12 = arith.constant 0 : index
      %14 = vector.load %arg7[%c0_11, %c0_12] : memref<8x256xf32, #tpu.memory_space<vmem>>, vector<8x256xf32>
      %c0_13 = arith.constant 0 : index
      %c0_14 = arith.constant 0 : index
      %15 = vector.load %arg4[%c0_13, %c0_14] : memref<1x256xf32, #tpu.memory_space<vmem>>, vector<1x256xf32>
      %16 = vector.broadcast %15 : vector<1x256xf32> to vector<8x256xf32>
      %17 = arith.addf %14, %16 : vector<8x256xf32>
      %c0_15 = arith.constant 0 : index
      %c0_16 = arith.constant 0 : index
      %18 = vector.load %arg5[%c0_15, %c0_16] : memref<8x256xf32, #tpu.memory_space<vmem>>, vector<8x256xf32>
      tpu.vector_store %arg5[%c0_15, %c0_16], %17 {strides = array<i32>} : memref<8x256xf32, #tpu.memory_space<vmem>>, vector<8x256xf32>,
      %cst_17 = arith.constant dense<0.000000e+00> : vector<256xf32>
      %19 = vector.multi_reduction <add>, %17, %cst_17 [0] : vector<8x256xf32> to vector<256xf32>
      %20 = vector.shape_cast %19 : vector<256xf32> to vector<1x256xf32>
      %21 = arith.mulf %17, %17 : vector<8x256xf32>
      %cst_18 = arith.constant dense<0.000000e+00> : vector<256xf32>
      %22 = vector.multi_reduction <add>, %21, %cst_18 [0] : vector<8x256xf32> to vector<256xf32>
      %23 = vector.shape_cast %22 : vector<256xf32> to vector<1x256xf32>
      %24 = tpu.concatenate %20, %23 in 0 : vector<1x256xf32>, vector<1x256xf32> -> vector<2x256xf32>
      %c0_i32_19 = arith.constant 0 : i32
      %25 = arith.cmpi eq, %arg0, %c0_i32_19 : i32
      %26 = arith.extui %25 : i1 to i32
      %c0_i32_20 = arith.constant 0 : i32
      %27 = arith.cmpi ne, %26, %c0_i32_20 : i32
      scf.if %27 {
        %c0_23 = arith.constant 0 : index
        %c0_24 = arith.constant 0 : index
        %31 = vector.load %arg6[%c0_23, %c0_24] : memref<2x256xf32, #tpu.memory_space<vmem>>, vector<2x256xf32>
        tpu.vector_store %arg6[%c0_23, %c0_24], %24 {strides = array<i32>} : memref<2x256xf32, #tpu.memory_space<vmem>>, vector<2x256xf32>,
      } else {
      }
      %c0_i32_21 = arith.constant 0 : i32
      %28 = arith.cmpi ne, %arg0, %c0_i32_21 : i32
      %29 = arith.extui %28 : i1 to i32
      %c0_i32_22 = arith.constant 0 : i32
      %30 = arith.cmpi ne, %29, %c0_i32_22 : i32
      scf.if %30 {
        %c0_23 = arith.constant 0 : index
        %c0_24 = arith.constant 0 : index
        %31 = vector.load %arg6[%c0_23, %c0_24] : memref<2x256xf32, #tpu.memory_space<vmem>>, vector<2x256xf32>
        %32 = arith.addf %31, %24 : vector<2x256xf32>
        %c0_25 = arith.constant 0 : index
        %c0_26 = arith.constant 0 : index
        %33 = vector.load %arg6[%c0_25, %c0_26] : memref<2x256xf32, #tpu.memory_space<vmem>>, vector<2x256xf32>
        tpu.vector_store %arg6[%c0_25, %c0_26], %32 {strides = array<i32>} : memref<2x256xf32, #tpu.memory_space<vmem>>, vector<2x256xf32>,
      } else {
      }
    } else {
    }
    return
  }
  func.func @transform_0(%arg0: i32, %arg1: i32) -> (i32, i32) {
    %c0_i32 = arith.constant 0 : i32
    return %arg0, %arg1 : i32, i32
  }
  func.func @transform_1(%arg0: i32, %arg1: i32) -> (i32, i32) {
    %c0_i32 = arith.constant 0 : i32
    %c0_i32_0 = arith.constant 0 : i32
    return %arg1, %c0_i32 : i32, i32
  }
  func.func @transform_2(%arg0: i32, %arg1: i32) -> (i32, i32) {
    %c0_i32 = arith.constant 0 : i32
    %c0_i32_0 = arith.constant 0 : i32
    %c0_i32_1 = arith.constant 0 : i32
    return %c0_i32, %c0_i32_0 : i32, i32
  }
  func.func @transform_3(%arg0: i32, %arg1: i32) -> (i32, i32) {
    %c0_i32 = arith.constant 0 : i32
    %c0_i32_0 = arith.constant 0 : i32
    return %arg0, %c0_i32 : i32, i32
  }
  func.func @transform_4(%arg0: i32, %arg1: i32) -> (i32, i32) {
    %c0_i32 = arith.constant 0 : i32
    %c0_i32_0 = arith.constant 0 : i32
    %c0_i32_1 = arith.constant 0 : i32
    return %c0_i32, %c0_i32_0 : i32, i32
  }
}

module attributes {stable_mosaic.version = 11 : i64} {
  func.func @_scale_shift_kernel(%arg0: i32, %arg1: memref<2x256xf32, #tpu.memory_space<vmem>>, %arg2: memref<1x256xf32, #tpu.memory_space<vmem>>, %arg3: memref<1x256xf32, #tpu.memory_space<vmem>>, %arg4: memref<2x256xf32, #tpu.memory_space<vmem>>) attributes {dimension_semantics = [#tpu.dimension_semantics<parallel>], iteration_bounds = array<i64: 1>, scalar_prefetch = 0 : i64, scratch_operands = 0 : i64, tpu.core_type = #tpu.core_type<tc>, window_params = [{transform_indices = @transform_0, window_bounds = array<i64: 2, 256>}, {pipeline_mode = #tpu.pipeline_mode<synchronous>, transform_indices = @transform_1, window_bounds = array<i64: 1, 256>}, {pipeline_mode = #tpu.pipeline_mode<synchronous>, transform_indices = @transform_2, window_bounds = array<i64: 1, 256>}, {transform_indices = @transform_3, window_bounds = array<i64: 2, 256>}]} {
    %c0 = arith.constant 0 : index
    %c0_0 = arith.constant 0 : index
    %0 = vector.load %arg1[%c0, %c0_0] : memref<2x256xf32, #tpu.memory_space<vmem>>, vector<2x256xf32>
    %c0_1 = arith.constant 0 : index
    %c0_2 = arith.constant 0 : index
    %1 = vector.load %arg2[%c0_1, %c0_2] : memref<1x256xf32, #tpu.memory_space<vmem>>, vector<1x256xf32>
    %2 = vector.broadcast %1 : vector<1x256xf32> to vector<2x256xf32>
    %3 = arith.mulf %0, %2 : vector<2x256xf32>
    %c0_3 = arith.constant 0 : index
    %c0_4 = arith.constant 0 : index
    %4 = vector.load %arg3[%c0_3, %c0_4] : memref<1x256xf32, #tpu.memory_space<vmem>>, vector<1x256xf32>
    %5 = vector.broadcast %4 : vector<1x256xf32> to vector<2x256xf32>
    %6 = arith.addf %3, %5 : vector<2x256xf32>
    %c0_5 = arith.constant 0 : index
    %c0_6 = arith.constant 0 : index
    %7 = vector.load %arg4[%c0_5, %c0_6] : memref<2x256xf32, #tpu.memory_space<vmem>>, vector<2x256xf32>
    tpu.vector_store %arg4[%c0_5, %c0_6], %6 {strides = array<i32>} : memref<2x256xf32, #tpu.memory_space<vmem>>, vector<2x256xf32>,
    return
  }
  func.func @transform_0(%arg0: i32) -> (i32, i32) {
    %c0_i32 = arith.constant 0 : i32
    %c0_i32_0 = arith.constant 0 : i32
    return %arg0, %c0_i32 : i32, i32
  }
  func.func @transform_1(%arg0: i32) -> (i32, i32) {
    %c0_i32 = arith.constant 0 : i32
    %c0_i32_0 = arith.constant 0 : i32
    %c0_i32_1 = arith.constant 0 : i32
    return %c0_i32, %c0_i32_0 : i32, i32
  }
  func.func @transform_2(%arg0: i32) -> (i32, i32) {
    %c0_i32 = arith.constant 0 : i32
    %c0_i32_0 = arith.constant 0 : i32
    %c0_i32_1 = arith.constant 0 : i32
    return %c0_i32, %c0_i32_0 : i32, i32
  }
  func.func @transform_3(%arg0: i32) -> (i32, i32) {
    %c0_i32 = arith.constant 0 : i32
    %c0_i32_0 = arith.constant 0 : i32
    return %arg0, %c0_i32 : i32, i32
  }
}

module attributes {stable_mosaic.version = 11 : i64} {
  func.func @_fused_matmul_kernel(%arg0: i32, %arg1: i32, %arg2: memref<8x384xbf16, #tpu.memory_space<vmem>>, %arg3: memref<384x128xbf16, #tpu.memory_space<vmem>>, %arg4: memref<1x128xf32, #tpu.memory_space<vmem>>, %arg5: memref<8x128xf32, #tpu.memory_space<vmem>>, %arg6: memref<2x128xf32, #tpu.memory_space<vmem>>, %arg7: memref<8x128xf32, #tpu.memory_space<vmem>>) attributes {dimension_semantics = [#tpu.dimension_semantics<arbitrary>, #tpu.dimension_semantics<arbitrary>], iteration_bounds = array<i64: 1, 3>, scalar_prefetch = 0 : i64, scratch_operands = 1 : i64, tpu.core_type = #tpu.core_type<tc>, window_params = [{transform_indices = @transform_0, window_bounds = array<i64: 8, 384>}, {transform_indices = @transform_1, window_bounds = array<i64: 384, 128>}, {pipeline_mode = #tpu.pipeline_mode<synchronous>, transform_indices = @transform_2, window_bounds = array<i64: 1, 128>}, {transform_indices = @transform_3, window_bounds = array<i64: 8, 128>}, {pipeline_mode = #tpu.pipeline_mode<synchronous>, transform_indices = @transform_4, window_bounds = array<i64: 2, 128>}]} {
    %c0 = arith.constant 0 : index
    %c0_0 = arith.constant 0 : index
    %0 = vector.load %arg2[%c0, %c0_0] : memref<8x384xbf16, #tpu.memory_space<vmem>>, vector<8x384xbf16>
    %cst = arith.constant 0.000000e+00 : bf16
    %1 = vector.broadcast %cst : bf16 to vector<8x384xbf16>
    %2 = arith.maximumf %0, %1 : vector<8x384xbf16>
    %c0_i32 = arith.constant 0 : i32
    %3 = arith.cmpi eq, %arg1, %c0_i32 : i32
    %4 = arith.extui %3 : i1 to i32
    %c0_i32_1 = arith.constant 0 : i32
    %5 = arith.cmpi ne, %4, %c0_i32_1 : i32
    scf.if %5 {
      %cst_10 = arith.constant 0.000000e+00 : f32
      %14 = vector.broadcast %cst_10 : f32 to vector<8x128xf32>
      %c0_11 = arith.constant 0 : index
      %c0_12 = arith.constant 0 : index
      %15 = vector.load %arg7[%c0_11, %c0_12] : memref<8x128xf32, #tpu.memory_space<vmem>>, vector<8x128xf32>
      tpu.vector_store %arg7[%c0_11, %c0_12], %14 {strides = array<i32>} : memref<8x128xf32, #tpu.memory_space<vmem>>, vector<8x128xf32>,
    } else {
    }
    %c0_2 = arith.constant 0 : index
    %c0_3 = arith.constant 0 : index
    %6 = vector.load %arg7[%c0_2, %c0_3] : memref<8x128xf32, #tpu.memory_space<vmem>>, vector<8x128xf32>
    %c0_4 = arith.constant 0 : index
    %c0_5 = arith.constant 0 : index
    %7 = vector.load %arg3[%c0_4, %c0_5] : memref<384x128xbf16, #tpu.memory_space<vmem>>, vector<384x128xbf16>
    %cst_6 = arith.constant dense<0.000000e+00> : vector<8x128xf32>
    %8 = tpu.matmul %2, %7, %cst_6 {dimension_numbers = #tpu.dot_dimension_numbers<[1], [0], [0], [1], [0, 0, 1, 1], [], []>} : vector<8x384xbf16>, vector<384x128xbf16>, vector<8x128xf32> -> vector<8x128xf32>
    %9 = arith.addf %6, %8 : vector<8x128xf32>
    %c0_7 = arith.constant 0 : index
    %c0_8 = arith.constant 0 : index
    %10 = vector.load %arg7[%c0_7, %c0_8] : memref<8x128xf32, #tpu.memory_space<vmem>>, vector<8x128xf32>
    tpu.vector_store %arg7[%c0_7, %c0_8], %9 {strides = array<i32>} : memref<8x128xf32, #tpu.memory_space<vmem>>, vector<8x128xf32>,
    %c2_i32 = arith.constant 2 : i32
    %11 = arith.cmpi eq, %arg1, %c2_i32 : i32
    %12 = arith.extui %11 : i1 to i32
    %c0_i32_9 = arith.constant 0 : i32
    %13 = arith.cmpi ne, %12, %c0_i32_9 : i32
    scf.if %13 {
      %c0_10 = arith.constant 0 : index
      %c0_11 = arith.constant 0 : index
      %14 = vector.load %arg7[%c0_10, %c0_11] : memref<8x128xf32, #tpu.memory_space<vmem>>, vector<8x128xf32>
      %c0_12 = arith.constant 0 : index
      %c0_13 = arith.constant 0 : index
      %15 = vector.load %arg4[%c0_12, %c0_13] : memref<1x128xf32, #tpu.memory_space<vmem>>, vector<1x128xf32>
      %16 = vector.broadcast %15 : vector<1x128xf32> to vector<8x128xf32>
      %17 = arith.addf %14, %16 : vector<8x128xf32>
      %c0_14 = arith.constant 0 : index
      %c0_15 = arith.constant 0 : index
      %18 = vector.load %arg5[%c0_14, %c0_15] : memref<8x128xf32, #tpu.memory_space<vmem>>, vector<8x128xf32>
      tpu.vector_store %arg5[%c0_14, %c0_15], %17 {strides = array<i32>} : memref<8x128xf32, #tpu.memory_space<vmem>>, vector<8x128xf32>,
      %cst_16 = arith.constant dense<0.000000e+00> : vector<128xf32>
      %19 = vector.multi_reduction <add>, %17, %cst_16 [0] : vector<8x128xf32> to vector<128xf32>
      %20 = vector.shape_cast %19 : vector<128xf32> to vector<1x128xf32>
      %21 = arith.mulf %17, %17 : vector<8x128xf32>
      %cst_17 = arith.constant dense<0.000000e+00> : vector<128xf32>
      %22 = vector.multi_reduction <add>, %21, %cst_17 [0] : vector<8x128xf32> to vector<128xf32>
      %23 = vector.shape_cast %22 : vector<128xf32> to vector<1x128xf32>
      %24 = tpu.concatenate %20, %23 in 0 : vector<1x128xf32>, vector<1x128xf32> -> vector<2x128xf32>
      %c0_i32_18 = arith.constant 0 : i32
      %25 = arith.cmpi eq, %arg0, %c0_i32_18 : i32
      %26 = arith.extui %25 : i1 to i32
      %c0_i32_19 = arith.constant 0 : i32
      %27 = arith.cmpi ne, %26, %c0_i32_19 : i32
      scf.if %27 {
        %c0_22 = arith.constant 0 : index
        %c0_23 = arith.constant 0 : index
        %31 = vector.load %arg6[%c0_22, %c0_23] : memref<2x128xf32, #tpu.memory_space<vmem>>, vector<2x128xf32>
        tpu.vector_store %arg6[%c0_22, %c0_23], %24 {strides = array<i32>} : memref<2x128xf32, #tpu.memory_space<vmem>>, vector<2x128xf32>,
      } else {
      }
      %c0_i32_20 = arith.constant 0 : i32
      %28 = arith.cmpi ne, %arg0, %c0_i32_20 : i32
      %29 = arith.extui %28 : i1 to i32
      %c0_i32_21 = arith.constant 0 : i32
      %30 = arith.cmpi ne, %29, %c0_i32_21 : i32
      scf.if %30 {
        %c0_22 = arith.constant 0 : index
        %c0_23 = arith.constant 0 : index
        %31 = vector.load %arg6[%c0_22, %c0_23] : memref<2x128xf32, #tpu.memory_space<vmem>>, vector<2x128xf32>
        %32 = arith.addf %31, %24 : vector<2x128xf32>
        %c0_24 = arith.constant 0 : index
        %c0_25 = arith.constant 0 : index
        %33 = vector.load %arg6[%c0_24, %c0_25] : memref<2x128xf32, #tpu.memory_space<vmem>>, vector<2x128xf32>
        tpu.vector_store %arg6[%c0_24, %c0_25], %32 {strides = array<i32>} : memref<2x128xf32, #tpu.memory_space<vmem>>, vector<2x128xf32>,
      } else {
      }
    } else {
    }
    return
  }
  func.func @transform_0(%arg0: i32, %arg1: i32) -> (i32, i32) {
    %c0_i32 = arith.constant 0 : i32
    return %arg0, %arg1 : i32, i32
  }
  func.func @transform_1(%arg0: i32, %arg1: i32) -> (i32, i32) {
    %c0_i32 = arith.constant 0 : i32
    %c0_i32_0 = arith.constant 0 : i32
    return %arg1, %c0_i32 : i32, i32
  }
  func.func @transform_2(%arg0: i32, %arg1: i32) -> (i32, i32) {
    %c0_i32 = arith.constant 0 : i32
    %c0_i32_0 = arith.constant 0 : i32
    %c0_i32_1 = arith.constant 0 : i32
    return %c0_i32, %c0_i32_0 : i32, i32
  }
  func.func @transform_3(%arg0: i32, %arg1: i32) -> (i32, i32) {
    %c0_i32 = arith.constant 0 : i32
    %c0_i32_0 = arith.constant 0 : i32
    return %arg0, %c0_i32 : i32, i32
  }
  func.func @transform_4(%arg0: i32, %arg1: i32) -> (i32, i32) {
    %c0_i32 = arith.constant 0 : i32
    %c0_i32_0 = arith.constant 0 : i32
    %c0_i32_1 = arith.constant 0 : i32
    return %c0_i32, %c0_i32_0 : i32, i32
  }
}

module attributes {stable_mosaic.version = 11 : i64} {
  func.func @_fused_matmul_kernel(%arg0: i32, %arg1: i32, %arg2: memref<32x576xbf16, #tpu.memory_space<vmem>>, %arg3: memref<576x64xbf16, #tpu.memory_space<vmem>>, %arg4: memref<1x64xf32, #tpu.memory_space<vmem>>, %arg5: memref<32x64xf32, #tpu.memory_space<vmem>>, %arg6: memref<2x64xf32, #tpu.memory_space<vmem>>, %arg7: memref<32x64xf32, #tpu.memory_space<vmem>>) attributes {dimension_semantics = [#tpu.dimension_semantics<arbitrary>, #tpu.dimension_semantics<arbitrary>], iteration_bounds = array<i64: 1, 1>, scalar_prefetch = 0 : i64, scratch_operands = 1 : i64, tpu.core_type = #tpu.core_type<tc>, window_params = [{transform_indices = @transform_0, window_bounds = array<i64: 32, 576>}, {transform_indices = @transform_1, window_bounds = array<i64: 576, 64>}, {pipeline_mode = #tpu.pipeline_mode<synchronous>, transform_indices = @transform_2, window_bounds = array<i64: 1, 64>}, {transform_indices = @transform_3, window_bounds = array<i64: 32, 64>}, {pipeline_mode = #tpu.pipeline_mode<synchronous>, transform_indices = @transform_4, window_bounds = array<i64: 2, 64>}]} {
    %c0 = arith.constant 0 : index
    %c0_0 = arith.constant 0 : index
    %0 = vector.load %arg2[%c0, %c0_0] : memref<32x576xbf16, #tpu.memory_space<vmem>>, vector<32x576xbf16>
    %cst = arith.constant 0.000000e+00 : bf16
    %1 = vector.broadcast %cst : bf16 to vector<32x576xbf16>
    %2 = arith.maximumf %0, %1 : vector<32x576xbf16>
    %c0_i32 = arith.constant 0 : i32
    %3 = arith.cmpi eq, %arg1, %c0_i32 : i32
    %4 = arith.extui %3 : i1 to i32
    %c0_i32_1 = arith.constant 0 : i32
    %5 = arith.cmpi ne, %4, %c0_i32_1 : i32
    scf.if %5 {
      %cst_11 = arith.constant 0.000000e+00 : f32
      %14 = vector.broadcast %cst_11 : f32 to vector<32x64xf32>
      %c0_12 = arith.constant 0 : index
      %c0_13 = arith.constant 0 : index
      %15 = vector.load %arg7[%c0_12, %c0_13] : memref<32x64xf32, #tpu.memory_space<vmem>>, vector<32x64xf32>
      tpu.vector_store %arg7[%c0_12, %c0_13], %14 {strides = array<i32>} : memref<32x64xf32, #tpu.memory_space<vmem>>, vector<32x64xf32>,
    } else {
    }
    %c0_2 = arith.constant 0 : index
    %c0_3 = arith.constant 0 : index
    %6 = vector.load %arg7[%c0_2, %c0_3] : memref<32x64xf32, #tpu.memory_space<vmem>>, vector<32x64xf32>
    %c0_4 = arith.constant 0 : index
    %c0_5 = arith.constant 0 : index
    %7 = vector.load %arg3[%c0_4, %c0_5] : memref<576x64xbf16, #tpu.memory_space<vmem>>, vector<576x64xbf16>
    %cst_6 = arith.constant dense<0.000000e+00> : vector<32x64xf32>
    %8 = tpu.matmul %2, %7, %cst_6 {dimension_numbers = #tpu.dot_dimension_numbers<[1], [0], [0], [1], [0, 0, 1, 1], [], []>} : vector<32x576xbf16>, vector<576x64xbf16>, vector<32x64xf32> -> vector<32x64xf32>
    %9 = arith.addf %6, %8 : vector<32x64xf32>
    %c0_7 = arith.constant 0 : index
    %c0_8 = arith.constant 0 : index
    %10 = vector.load %arg7[%c0_7, %c0_8] : memref<32x64xf32, #tpu.memory_space<vmem>>, vector<32x64xf32>
    tpu.vector_store %arg7[%c0_7, %c0_8], %9 {strides = array<i32>} : memref<32x64xf32, #tpu.memory_space<vmem>>, vector<32x64xf32>,
    %c0_i32_9 = arith.constant 0 : i32
    %11 = arith.cmpi eq, %arg1, %c0_i32_9 : i32
    %12 = arith.extui %11 : i1 to i32
    %c0_i32_10 = arith.constant 0 : i32
    %13 = arith.cmpi ne, %12, %c0_i32_10 : i32
    scf.if %13 {
      %c0_11 = arith.constant 0 : index
      %c0_12 = arith.constant 0 : index
      %14 = vector.load %arg7[%c0_11, %c0_12] : memref<32x64xf32, #tpu.memory_space<vmem>>, vector<32x64xf32>
      %c0_13 = arith.constant 0 : index
      %c0_14 = arith.constant 0 : index
      %15 = vector.load %arg4[%c0_13, %c0_14] : memref<1x64xf32, #tpu.memory_space<vmem>>, vector<1x64xf32>
      %16 = vector.broadcast %15 : vector<1x64xf32> to vector<32x64xf32>
      %17 = arith.addf %14, %16 : vector<32x64xf32>
      %c0_15 = arith.constant 0 : index
      %c0_16 = arith.constant 0 : index
      %18 = vector.load %arg5[%c0_15, %c0_16] : memref<32x64xf32, #tpu.memory_space<vmem>>, vector<32x64xf32>
      tpu.vector_store %arg5[%c0_15, %c0_16], %17 {strides = array<i32>} : memref<32x64xf32, #tpu.memory_space<vmem>>, vector<32x64xf32>,
      %cst_17 = arith.constant dense<0.000000e+00> : vector<64xf32>
      %19 = vector.multi_reduction <add>, %17, %cst_17 [0] : vector<32x64xf32> to vector<64xf32>
      %20 = vector.shape_cast %19 : vector<64xf32> to vector<1x64xf32>
      %21 = arith.mulf %17, %17 : vector<32x64xf32>
      %cst_18 = arith.constant dense<0.000000e+00> : vector<64xf32>
      %22 = vector.multi_reduction <add>, %21, %cst_18 [0] : vector<32x64xf32> to vector<64xf32>
      %23 = vector.shape_cast %22 : vector<64xf32> to vector<1x64xf32>
      %24 = tpu.concatenate %20, %23 in 0 : vector<1x64xf32>, vector<1x64xf32> -> vector<2x64xf32>
      %c0_i32_19 = arith.constant 0 : i32
      %25 = arith.cmpi eq, %arg0, %c0_i32_19 : i32
      %26 = arith.extui %25 : i1 to i32
      %c0_i32_20 = arith.constant 0 : i32
      %27 = arith.cmpi ne, %26, %c0_i32_20 : i32
      scf.if %27 {
        %c0_23 = arith.constant 0 : index
        %c0_24 = arith.constant 0 : index
        %31 = vector.load %arg6[%c0_23, %c0_24] : memref<2x64xf32, #tpu.memory_space<vmem>>, vector<2x64xf32>
        tpu.vector_store %arg6[%c0_23, %c0_24], %24 {strides = array<i32>} : memref<2x64xf32, #tpu.memory_space<vmem>>, vector<2x64xf32>,
      } else {
      }
      %c0_i32_21 = arith.constant 0 : i32
      %28 = arith.cmpi ne, %arg0, %c0_i32_21 : i32
      %29 = arith.extui %28 : i1 to i32
      %c0_i32_22 = arith.constant 0 : i32
      %30 = arith.cmpi ne, %29, %c0_i32_22 : i32
      scf.if %30 {
        %c0_23 = arith.constant 0 : index
        %c0_24 = arith.constant 0 : index
        %31 = vector.load %arg6[%c0_23, %c0_24] : memref<2x64xf32, #tpu.memory_space<vmem>>, vector<2x64xf32>
        %32 = arith.addf %31, %24 : vector<2x64xf32>
        %c0_25 = arith.constant 0 : index
        %c0_26 = arith.constant 0 : index
        %33 = vector.load %arg6[%c0_25, %c0_26] : memref<2x64xf32, #tpu.memory_space<vmem>>, vector<2x64xf32>
        tpu.vector_store %arg6[%c0_25, %c0_26], %32 {strides = array<i32>} : memref<2x64xf32, #tpu.memory_space<vmem>>, vector<2x64xf32>,
      } else {
      }
    } else {
    }
    return
  }
  func.func @transform_0(%arg0: i32, %arg1: i32) -> (i32, i32) {
    %c0_i32 = arith.constant 0 : i32
    return %arg0, %arg1 : i32, i32
  }
  func.func @transform_1(%arg0: i32, %arg1: i32) -> (i32, i32) {
    %c0_i32 = arith.constant 0 : i32
    %c0_i32_0 = arith.constant 0 : i32
    return %arg1, %c0_i32 : i32, i32
  }
  func.func @transform_2(%arg0: i32, %arg1: i32) -> (i32, i32) {
    %c0_i32 = arith.constant 0 : i32
    %c0_i32_0 = arith.constant 0 : i32
    %c0_i32_1 = arith.constant 0 : i32
    return %c0_i32, %c0_i32_0 : i32, i32
  }
  func.func @transform_3(%arg0: i32, %arg1: i32) -> (i32, i32) {
    %c0_i32 = arith.constant 0 : i32
    %c0_i32_0 = arith.constant 0 : i32
    return %arg0, %c0_i32 : i32, i32
  }
  func.func @transform_4(%arg0: i32, %arg1: i32) -> (i32, i32) {
    %c0_i32 = arith.constant 0 : i32
    %c0_i32_0 = arith.constant 0 : i32
    %c0_i32_1 = arith.constant 0 : i32
    return %c0_i32, %c0_i32_0 : i32, i32
  }
}

module attributes {stable_mosaic.version = 11 : i64} {
  func.func @_fused_matmul_kernel(%arg0: i32, %arg1: i32, %arg2: memref<128x288xbf16, #tpu.memory_space<vmem>>, %arg3: memref<288x32xbf16, #tpu.memory_space<vmem>>, %arg4: memref<1x32xf32, #tpu.memory_space<vmem>>, %arg5: memref<128x32xf32, #tpu.memory_space<vmem>>, %arg6: memref<2x32xf32, #tpu.memory_space<vmem>>, %arg7: memref<128x32xf32, #tpu.memory_space<vmem>>) attributes {dimension_semantics = [#tpu.dimension_semantics<arbitrary>, #tpu.dimension_semantics<arbitrary>], iteration_bounds = array<i64: 1, 1>, scalar_prefetch = 0 : i64, scratch_operands = 1 : i64, tpu.core_type = #tpu.core_type<tc>, window_params = [{transform_indices = @transform_0, window_bounds = array<i64: 128, 288>}, {transform_indices = @transform_1, window_bounds = array<i64: 288, 32>}, {pipeline_mode = #tpu.pipeline_mode<synchronous>, transform_indices = @transform_2, window_bounds = array<i64: 1, 32>}, {transform_indices = @transform_3, window_bounds = array<i64: 128, 32>}, {pipeline_mode = #tpu.pipeline_mode<synchronous>, transform_indices = @transform_4, window_bounds = array<i64: 2, 32>}]} {
    %c0 = arith.constant 0 : index
    %c0_0 = arith.constant 0 : index
    %0 = vector.load %arg2[%c0, %c0_0] : memref<128x288xbf16, #tpu.memory_space<vmem>>, vector<128x288xbf16>
    %cst = arith.constant 0.000000e+00 : bf16
    %1 = vector.broadcast %cst : bf16 to vector<128x288xbf16>
    %2 = arith.maximumf %0, %1 : vector<128x288xbf16>
    %c0_i32 = arith.constant 0 : i32
    %3 = arith.cmpi eq, %arg1, %c0_i32 : i32
    %4 = arith.extui %3 : i1 to i32
    %c0_i32_1 = arith.constant 0 : i32
    %5 = arith.cmpi ne, %4, %c0_i32_1 : i32
    scf.if %5 {
      %cst_11 = arith.constant 0.000000e+00 : f32
      %14 = vector.broadcast %cst_11 : f32 to vector<128x32xf32>
      %c0_12 = arith.constant 0 : index
      %c0_13 = arith.constant 0 : index
      %15 = vector.load %arg7[%c0_12, %c0_13] : memref<128x32xf32, #tpu.memory_space<vmem>>, vector<128x32xf32>
      tpu.vector_store %arg7[%c0_12, %c0_13], %14 {strides = array<i32>} : memref<128x32xf32, #tpu.memory_space<vmem>>, vector<128x32xf32>,
    } else {
    }
    %c0_2 = arith.constant 0 : index
    %c0_3 = arith.constant 0 : index
    %6 = vector.load %arg7[%c0_2, %c0_3] : memref<128x32xf32, #tpu.memory_space<vmem>>, vector<128x32xf32>
    %c0_4 = arith.constant 0 : index
    %c0_5 = arith.constant 0 : index
    %7 = vector.load %arg3[%c0_4, %c0_5] : memref<288x32xbf16, #tpu.memory_space<vmem>>, vector<288x32xbf16>
    %cst_6 = arith.constant dense<0.000000e+00> : vector<128x32xf32>
    %8 = tpu.matmul %2, %7, %cst_6 {dimension_numbers = #tpu.dot_dimension_numbers<[1], [0], [0], [1], [0, 0, 1, 1], [], []>} : vector<128x288xbf16>, vector<288x32xbf16>, vector<128x32xf32> -> vector<128x32xf32>
    %9 = arith.addf %6, %8 : vector<128x32xf32>
    %c0_7 = arith.constant 0 : index
    %c0_8 = arith.constant 0 : index
    %10 = vector.load %arg7[%c0_7, %c0_8] : memref<128x32xf32, #tpu.memory_space<vmem>>, vector<128x32xf32>
    tpu.vector_store %arg7[%c0_7, %c0_8], %9 {strides = array<i32>} : memref<128x32xf32, #tpu.memory_space<vmem>>, vector<128x32xf32>,
    %c0_i32_9 = arith.constant 0 : i32
    %11 = arith.cmpi eq, %arg1, %c0_i32_9 : i32
    %12 = arith.extui %11 : i1 to i32
    %c0_i32_10 = arith.constant 0 : i32
    %13 = arith.cmpi ne, %12, %c0_i32_10 : i32
    scf.if %13 {
      %c0_11 = arith.constant 0 : index
      %c0_12 = arith.constant 0 : index
      %14 = vector.load %arg7[%c0_11, %c0_12] : memref<128x32xf32, #tpu.memory_space<vmem>>, vector<128x32xf32>
      %c0_13 = arith.constant 0 : index
      %c0_14 = arith.constant 0 : index
      %15 = vector.load %arg4[%c0_13, %c0_14] : memref<1x32xf32, #tpu.memory_space<vmem>>, vector<1x32xf32>
      %16 = vector.broadcast %15 : vector<1x32xf32> to vector<128x32xf32>
      %17 = arith.addf %14, %16 : vector<128x32xf32>
      %c0_15 = arith.constant 0 : index
      %c0_16 = arith.constant 0 : index
      %18 = vector.load %arg5[%c0_15, %c0_16] : memref<128x32xf32, #tpu.memory_space<vmem>>, vector<128x32xf32>
      tpu.vector_store %arg5[%c0_15, %c0_16], %17 {strides = array<i32>} : memref<128x32xf32, #tpu.memory_space<vmem>>, vector<128x32xf32>,
      %cst_17 = arith.constant dense<0.000000e+00> : vector<32xf32>
      %19 = vector.multi_reduction <add>, %17, %cst_17 [0] : vector<128x32xf32> to vector<32xf32>
      %20 = vector.shape_cast %19 : vector<32xf32> to vector<1x32xf32>
      %21 = arith.mulf %17, %17 : vector<128x32xf32>
      %cst_18 = arith.constant dense<0.000000e+00> : vector<32xf32>
      %22 = vector.multi_reduction <add>, %21, %cst_18 [0] : vector<128x32xf32> to vector<32xf32>
      %23 = vector.shape_cast %22 : vector<32xf32> to vector<1x32xf32>
      %24 = tpu.concatenate %20, %23 in 0 : vector<1x32xf32>, vector<1x32xf32> -> vector<2x32xf32>
      %c0_i32_19 = arith.constant 0 : i32
      %25 = arith.cmpi eq, %arg0, %c0_i32_19 : i32
      %26 = arith.extui %25 : i1 to i32
      %c0_i32_20 = arith.constant 0 : i32
      %27 = arith.cmpi ne, %26, %c0_i32_20 : i32
      scf.if %27 {
        %c0_23 = arith.constant 0 : index
        %c0_24 = arith.constant 0 : index
        %31 = vector.load %arg6[%c0_23, %c0_24] : memref<2x32xf32, #tpu.memory_space<vmem>>, vector<2x32xf32>
        tpu.vector_store %arg6[%c0_23, %c0_24], %24 {strides = array<i32>} : memref<2x32xf32, #tpu.memory_space<vmem>>, vector<2x32xf32>,
      } else {
      }
      %c0_i32_21 = arith.constant 0 : i32
      %28 = arith.cmpi ne, %arg0, %c0_i32_21 : i32
      %29 = arith.extui %28 : i1 to i32
      %c0_i32_22 = arith.constant 0 : i32
      %30 = arith.cmpi ne, %29, %c0_i32_22 : i32
      scf.if %30 {
        %c0_23 = arith.constant 0 : index
        %c0_24 = arith.constant 0 : index
        %31 = vector.load %arg6[%c0_23, %c0_24] : memref<2x32xf32, #tpu.memory_space<vmem>>, vector<2x32xf32>
        %32 = arith.addf %31, %24 : vector<2x32xf32>
        %c0_25 = arith.constant 0 : index
        %c0_26 = arith.constant 0 : index
        %33 = vector.load %arg6[%c0_25, %c0_26] : memref<2x32xf32, #tpu.memory_space<vmem>>, vector<2x32xf32>
        tpu.vector_store %arg6[%c0_25, %c0_26], %32 {strides = array<i32>} : memref<2x32xf32, #tpu.memory_space<vmem>>, vector<2x32xf32>,
      } else {
      }
    } else {
    }
    return
  }
  func.func @transform_0(%arg0: i32, %arg1: i32) -> (i32, i32) {
    %c0_i32 = arith.constant 0 : i32
    return %arg0, %arg1 : i32, i32
  }
  func.func @transform_1(%arg0: i32, %arg1: i32) -> (i32, i32) {
    %c0_i32 = arith.constant 0 : i32
    %c0_i32_0 = arith.constant 0 : i32
    return %arg1, %c0_i32 : i32, i32
  }
  func.func @transform_2(%arg0: i32, %arg1: i32) -> (i32, i32) {
    %c0_i32 = arith.constant 0 : i32
    %c0_i32_0 = arith.constant 0 : i32
    %c0_i32_1 = arith.constant 0 : i32
    return %c0_i32, %c0_i32_0 : i32, i32
  }
  func.func @transform_3(%arg0: i32, %arg1: i32) -> (i32, i32) {
    %c0_i32 = arith.constant 0 : i32
    %c0_i32_0 = arith.constant 0 : i32
    return %arg0, %c0_i32 : i32, i32
  }
  func.func @transform_4(%arg0: i32, %arg1: i32) -> (i32, i32) {
    %c0_i32 = arith.constant 0 : i32
    %c0_i32_0 = arith.constant 0 : i32
    %c0_i32_1 = arith.constant 0 : i32
    return %c0_i32, %c0_i32_0 : i32, i32
  }
}

module attributes {stable_mosaic.version = 11 : i64} {
  func.func @_scale_shift_kernel(%arg0: i32, %arg1: memref<32x128xf32, #tpu.memory_space<vmem>>, %arg2: memref<1x128xf32, #tpu.memory_space<vmem>>, %arg3: memref<1x128xf32, #tpu.memory_space<vmem>>, %arg4: memref<32x128xf32, #tpu.memory_space<vmem>>) attributes {dimension_semantics = [#tpu.dimension_semantics<parallel>], iteration_bounds = array<i64: 1>, scalar_prefetch = 0 : i64, scratch_operands = 0 : i64, tpu.core_type = #tpu.core_type<tc>, window_params = [{transform_indices = @transform_0, window_bounds = array<i64: 32, 128>}, {pipeline_mode = #tpu.pipeline_mode<synchronous>, transform_indices = @transform_1, window_bounds = array<i64: 1, 128>}, {pipeline_mode = #tpu.pipeline_mode<synchronous>, transform_indices = @transform_2, window_bounds = array<i64: 1, 128>}, {transform_indices = @transform_3, window_bounds = array<i64: 32, 128>}]} {
    %c0 = arith.constant 0 : index
    %c0_0 = arith.constant 0 : index
    %0 = vector.load %arg1[%c0, %c0_0] : memref<32x128xf32, #tpu.memory_space<vmem>>, vector<32x128xf32>
    %c0_1 = arith.constant 0 : index
    %c0_2 = arith.constant 0 : index
    %1 = vector.load %arg2[%c0_1, %c0_2] : memref<1x128xf32, #tpu.memory_space<vmem>>, vector<1x128xf32>
    %2 = vector.broadcast %1 : vector<1x128xf32> to vector<32x128xf32>
    %3 = arith.mulf %0, %2 : vector<32x128xf32>
    %c0_3 = arith.constant 0 : index
    %c0_4 = arith.constant 0 : index
    %4 = vector.load %arg3[%c0_3, %c0_4] : memref<1x128xf32, #tpu.memory_space<vmem>>, vector<1x128xf32>
    %5 = vector.broadcast %4 : vector<1x128xf32> to vector<32x128xf32>
    %6 = arith.addf %3, %5 : vector<32x128xf32>
    %c0_5 = arith.constant 0 : index
    %c0_6 = arith.constant 0 : index
    %7 = vector.load %arg4[%c0_5, %c0_6] : memref<32x128xf32, #tpu.memory_space<vmem>>, vector<32x128xf32>
    tpu.vector_store %arg4[%c0_5, %c0_6], %6 {strides = array<i32>} : memref<32x128xf32, #tpu.memory_space<vmem>>, vector<32x128xf32>,
    return
  }
  func.func @transform_0(%arg0: i32) -> (i32, i32) {
    %c0_i32 = arith.constant 0 : i32
    %c0_i32_0 = arith.constant 0 : i32
    return %arg0, %c0_i32 : i32, i32
  }
  func.func @transform_1(%arg0: i32) -> (i32, i32) {
    %c0_i32 = arith.constant 0 : i32
    %c0_i32_0 = arith.constant 0 : i32
    %c0_i32_1 = arith.constant 0 : i32
    return %c0_i32, %c0_i32_0 : i32, i32
  }
  func.func @transform_2(%arg0: i32) -> (i32, i32) {
    %c0_i32 = arith.constant 0 : i32
    %c0_i32_0 = arith.constant 0 : i32
    %c0_i32_1 = arith.constant 0 : i32
    return %c0_i32, %c0_i32_0 : i32, i32
  }
  func.func @transform_3(%arg0: i32) -> (i32, i32) {
    %c0_i32 = arith.constant 0 : i32
    %c0_i32_0 = arith.constant 0 : i32
    return %arg0, %c0_i32 : i32, i32
  }
}

module attributes {stable_mosaic.version = 11 : i64} {
  func.func @_fused_matmul_kernel(%arg0: i32, %arg1: i32, %arg2: memref<256x144xbf16, #tpu.memory_space<vmem>>, %arg3: memref<144x16xbf16, #tpu.memory_space<vmem>>, %arg4: memref<1x16xf32, #tpu.memory_space<vmem>>, %arg5: memref<256x16xf32, #tpu.memory_space<vmem>>, %arg6: memref<256x16xf32, #tpu.memory_space<vmem>>) attributes {dimension_semantics = [#tpu.dimension_semantics<parallel>, #tpu.dimension_semantics<arbitrary>], iteration_bounds = array<i64: 2, 1>, scalar_prefetch = 0 : i64, scratch_operands = 1 : i64, tpu.core_type = #tpu.core_type<tc>, window_params = [{transform_indices = @transform_0, window_bounds = array<i64: 256, 144>}, {transform_indices = @transform_1, window_bounds = array<i64: 144, 16>}, {pipeline_mode = #tpu.pipeline_mode<synchronous>, transform_indices = @transform_2, window_bounds = array<i64: 1, 16>}, {transform_indices = @transform_3, window_bounds = array<i64: 256, 16>}]} {
    %c0 = arith.constant 0 : index
    %c0_0 = arith.constant 0 : index
    %0 = vector.load %arg2[%c0, %c0_0] : memref<256x144xbf16, #tpu.memory_space<vmem>>, vector<256x144xbf16>
    %cst = arith.constant 0.000000e+00 : bf16
    %1 = vector.broadcast %cst : bf16 to vector<256x144xbf16>
    %2 = arith.maximumf %0, %1 : vector<256x144xbf16>
    %c0_i32 = arith.constant 0 : i32
    %3 = arith.cmpi eq, %arg1, %c0_i32 : i32
    %4 = arith.extui %3 : i1 to i32
    %c0_i32_1 = arith.constant 0 : i32
    %5 = arith.cmpi ne, %4, %c0_i32_1 : i32
    scf.if %5 {
      %cst_11 = arith.constant 0.000000e+00 : f32
      %14 = vector.broadcast %cst_11 : f32 to vector<256x16xf32>
      %c0_12 = arith.constant 0 : index
      %c0_13 = arith.constant 0 : index
      %15 = vector.load %arg6[%c0_12, %c0_13] : memref<256x16xf32, #tpu.memory_space<vmem>>, vector<256x16xf32>
      tpu.vector_store %arg6[%c0_12, %c0_13], %14 {strides = array<i32>} : memref<256x16xf32, #tpu.memory_space<vmem>>, vector<256x16xf32>,
    } else {
    }
    %c0_2 = arith.constant 0 : index
    %c0_3 = arith.constant 0 : index
    %6 = vector.load %arg6[%c0_2, %c0_3] : memref<256x16xf32, #tpu.memory_space<vmem>>, vector<256x16xf32>
    %c0_4 = arith.constant 0 : index
    %c0_5 = arith.constant 0 : index
    %7 = vector.load %arg3[%c0_4, %c0_5] : memref<144x16xbf16, #tpu.memory_space<vmem>>, vector<144x16xbf16>
    %cst_6 = arith.constant dense<0.000000e+00> : vector<256x16xf32>
    %8 = tpu.matmul %2, %7, %cst_6 {dimension_numbers = #tpu.dot_dimension_numbers<[1], [0], [0], [1], [0, 0, 1, 1], [], []>} : vector<256x144xbf16>, vector<144x16xbf16>, vector<256x16xf32> -> vector<256x16xf32>
    %9 = arith.addf %6, %8 : vector<256x16xf32>
    %c0_7 = arith.constant 0 : index
    %c0_8 = arith.constant 0 : index
    %10 = vector.load %arg6[%c0_7, %c0_8] : memref<256x16xf32, #tpu.memory_space<vmem>>, vector<256x16xf32>
    tpu.vector_store %arg6[%c0_7, %c0_8], %9 {strides = array<i32>} : memref<256x16xf32, #tpu.memory_space<vmem>>, vector<256x16xf32>,
    %c0_i32_9 = arith.constant 0 : i32
    %11 = arith.cmpi eq, %arg1, %c0_i32_9 : i32
    %12 = arith.extui %11 : i1 to i32
    %c0_i32_10 = arith.constant 0 : i32
    %13 = arith.cmpi ne, %12, %c0_i32_10 : i32
    scf.if %13 {
      %c0_11 = arith.constant 0 : index
      %c0_12 = arith.constant 0 : index
      %14 = vector.load %arg6[%c0_11, %c0_12] : memref<256x16xf32, #tpu.memory_space<vmem>>, vector<256x16xf32>
      %c0_13 = arith.constant 0 : index
      %c0_14 = arith.constant 0 : index
      %15 = vector.load %arg4[%c0_13, %c0_14] : memref<1x16xf32, #tpu.memory_space<vmem>>, vector<1x16xf32>
      %16 = vector.broadcast %15 : vector<1x16xf32> to vector<256x16xf32>
      %17 = arith.addf %14, %16 : vector<256x16xf32>
      %18 = math.tanh %17 : vector<256x16xf32>
      %c0_15 = arith.constant 0 : index
      %c0_16 = arith.constant 0 : index
      %19 = vector.load %arg5[%c0_15, %c0_16] : memref<256x16xf32, #tpu.memory_space<vmem>>, vector<256x16xf32>
      tpu.vector_store %arg5[%c0_15, %c0_16], %18 {strides = array<i32>} : memref<256x16xf32, #tpu.memory_space<vmem>>, vector<256x16xf32>,
    } else {
    }
    return
  }
  func.func @transform_0(%arg0: i32, %arg1: i32) -> (i32, i32) {
    %c0_i32 = arith.constant 0 : i32
    return %arg0, %arg1 : i32, i32
  }
  func.func @transform_1(%arg0: i32, %arg1: i32) -> (i32, i32) {
    %c0_i32 = arith.constant 0 : i32
    %c0_i32_0 = arith.constant 0 : i32
    return %arg1, %c0_i32 : i32, i32
  }
  func.func @transform_2(%arg0: i32, %arg1: i32) -> (i32, i32) {
    %c0_i32 = arith.constant 0 : i32
    %c0_i32_0 = arith.constant 0 : i32
    %c0_i32_1 = arith.constant 0 : i32
    return %c0_i32, %c0_i32_0 : i32, i32
  }
  func.func @transform_3(%arg0: i32, %arg1: i32) -> (i32, i32) {
    %c0_i32 = arith.constant 0 : i32
    %c0_i32_0 = arith.constant 0 : i32
    return %arg0, %c0_i32 : i32, i32
  }
}

</mosaic_0001>

<bundles_post_ra>
// kernel: _lambda_.17
= control target key start
LH: loop header
LB: loop body
LE: loop exit
PB: predicated region body
PF: predicated region fallthrough
CT: control target
= control target key end

     0   :  { %s1104_s12 = smov 0   ;;  %s1106_s13 = smov 0   ;;  %s1356_s0 = inlined_call_operand.vmem [shape: bf16[512,64], index: 0, kind: input, shape index: {}]   ;;  %s1357_s1 = inlined_call_operand.vmem [shape: bf16[64,8], index: 1, kind: input, shape index: {}]   ;;  %s1358_s2 = inlined_call_operand.vmem [shape: f32[1,8], index: 2, kind: input, shape index: {}]   ;;  %s1359_s3 = inlined_call_operand.vmem [shape: f32[512,8], index: 3, kind: output, shape index: {}]  }
   0x1   :  { %s1108_s14 = smov 0  }
   0x2 LB: > { %s25_s15 = sadd.s32 1, %s1077_s13  ;;  %p902_p0 = scmp.ge.s32.totalorder %s1081_s14, 1  ;;  %s1081_s14 = sphi %s1108_s14, %s13_s14   ;;  %s1077_s13 = sphi %s1106_s13, %s1361_s13   ;;  %s1073_s12 = sphi %s1104_s12, %s1360_s12  }
   0x3   : > { %p27_p1 = scmp.ge.s32.totalorder %s25_s15, 2  ;;  %p166_p2 = scmp.lt.s32.totalorder %s1081_s14, 3 }
   0x5   : > { %s1363_s15 = smov (%p27_p1, %s25_s15), 0  ;;  %p167_p3 = pnand %p902_p0, %p166_p2 }
   0x6   : > { %v1039_v0 = vld [vmem:[%s1357_s1] sm:$0xff] (!%p167_p3)   ;;  %s903_s18 = sshll.u32 (!%p167_p3), %s1073_s12, 5  ;;  %v1040_v1 = vld [vmem:[%s1357_s1 + $0x8] sm:$0xff] (!%p167_p3)   ;;  %v1041_v2 = vld [vmem:[%s1357_s1 + $0x10] sm:$0xff] (!%p167_p3)   ;;  %vm256_vm0 = vcmask (!%p167_p3), 64512   ;;  %v1083_v3 = vmov (!%p167_p3), 0.0  }
   0x7   : > { %170 = sbr.rel (%p167_p3) target bundleno = 278 (0x116), region = 32  ;;  %p199_p4 = scmp.lt.s32.totalorder (!%p167_p3), %s903_s18, 63  ;;  %966 = vmatprep.subr.bf16.mxu0 (!%p167_p3), %v1039_v0  ;;  %1006 = vmatprep.subr.bf16.mxu1 (!%p167_p3), %v1039_v0  ;;  %259 = vst.msk [vmem:[#allocation2 + $0x10] sm:$0xff] (!%p167_p3), %vm256_vm0, %v1083_v3  ;;  %257 = vst.msk [vmem:[#allocation2] sm:$0xff] (!%p167_p3), %vm256_vm0, %v1083_v3  ;;  %v1042_v4 = vld [vmem:[%s1357_s1 + $0x18] sm:$0xff] (!%p167_p3)   ;;  %vm433_vm1 = vcmask (!%p167_p3), 523264  }
   0x8   : > { %967 = vmatpush3.bf16.msra.mxu0 (!%p167_p3), %v1039_v0  ;;  %1010 = vmatpush3.bf16.msra.mxu1 (!%p167_p3), %v1039_v0  ;;  %258 = vst.msk [vmem:[#allocation2 + $0x8] sm:$0xff] (!%p167_p3), %vm256_vm0, %v1083_v3  ;;  %260 = vst.msk [vmem:[#allocation2 + $0x18] sm:$0xff] (!%p167_p3), %vm256_vm0, %v1083_v3  ;;  %v1220_v49 = vld [vmem:[%s1358_s2] ss:$0 sm:$0xff] (!%p167_p3) }
   0x9   : > { %968 = vmatprep.subr.bf16.mxu0 (!%p167_p3), %v1040_v1  ;;  %1007 = vmatprep.subr.bf16.mxu1 (!%p167_p3), %v1040_v1  ;;  %261 = vst.msk [vmem:[#allocation2 + $0x20] sm:$0xff] (!%p167_p3), %vm256_vm0, %v1083_v3  ;;  %262 = vst.msk [vmem:[#allocation2 + $0x28] sm:$0xff] (!%p167_p3), %vm256_vm0, %v1083_v3 }
   0xa   : > { %263 = vst.msk [vmem:[#allocation2 + $0x30] sm:$0xff] (!%p167_p3), %vm256_vm0, %v1083_v3  ;;  %264 = vst.msk [vmem:[#allocation2 + $0x38] sm:$0xff] (!%p167_p3), %vm256_vm0, %v1083_v3 }
   0xb   : > { %265 = vst.msk [vmem:[#allocation2 + $0x40] sm:$0xff] (!%p167_p3), %vm256_vm0, %v1083_v3  ;;  %266 = vst.msk [vmem:[#allocation2 + $0x48] sm:$0xff] (!%p167_p3), %vm256_vm0, %v1083_v3 }
   0xc   : > { %267 = vst.msk [vmem:[#allocation2 + $0x50] sm:$0xff] (!%p167_p3), %vm256_vm0, %v1083_v3  ;;  %268 = vst.msk [vmem:[#allocation2 + $0x58] sm:$0xff] (!%p167_p3), %vm256_vm0, %v1083_v3  ;;  %969 = vmatpush3.bf16.msra.mxu0 (!%p167_p3), %v1040_v1  ;;  %1011 = vmatpush3.bf16.msra.mxu1 (!%p167_p3), %v1040_v1 }
   0xd   : > { %269 = vst.msk [vmem:[#allocation2 + $0x60] sm:$0xff] (!%p167_p3), %vm256_vm0, %v1083_v3  ;;  %270 = vst.msk [vmem:[#allocation2 + $0x68] sm:$0xff] (!%p167_p3), %vm256_vm0, %v1083_v3  ;;  %970 = vmatprep.subr.bf16.mxu0 (!%p167_p3), %v1041_v2  ;;  %1008 = vmatprep.subr.bf16.mxu1 (!%p167_p3), %v1041_v2 }
   0xe   : > { %s1365_s18 = smov (!%p199_p4, %s903_s18), 63  ;;  %271 = vst.msk [vmem:[#allocation2 + $0x70] sm:$0xff] %vm256_vm0, %v1083_v3  ;;  %272 = vst.msk [vmem:[#allocation2 + $0x78] sm:$0xff] %vm256_vm0, %v1083_v3  ;;  %v291_v21 = vld [vmem:[#allocation2 + $0x10] sm:$0xff]  ;;  %v289_v23 = vld [vmem:[#allocation2] sm:$0xff] }
   0xf   : > { %s904_s23 = sshll.u32 %s1365_s18, 2  ;;  %273 = vst.msk [vmem:[#allocation2 + $0x80] sm:$0xff] %vm256_vm0, %v1083_v3  ;;  %274 = vst.msk [vmem:[#allocation2 + $0x88] sm:$0xff] %vm256_vm0, %v1083_v3  ;;  %v292_v27 = vld [vmem:[#allocation2 + $0x18] sm:$0xff]  ;;  %v290_v33 = vld [vmem:[#allocation2 + $0x8] sm:$0xff]  ;;  %s906_s29 = sshll.u32 %s1365_s18, 3 }
  0x10   : > { %275 = vst.msk [vmem:[#allocation2 + $0x90] sm:$0xff] %vm256_vm0, %v1083_v3  ;;  %276 = vst.msk [vmem:[#allocation2 + $0x98] sm:$0xff] %vm256_vm0, %v1083_v3  ;;  %s1174_s28 = scalar_lea.vmem %s1356_s0, %s904_s23  ;;  %971 = vmatpush3.bf16.msra.mxu0 %v1041_v2  ;;  %1012 = vmatpush3.bf16.msra.mxu1 %v1041_v2  ;;  %v293_v47 = vld [vmem:[#allocation2 + $0x20] sm:$0xff]  ;;  %v294_v58 = vld [vmem:[#allocation2 + $0x28] sm:$0xff]  ;;  %s1225_s7 = scalar_lea.vmem %s1359_s3, %s906_s29 }
  0x11   : > { %277 = vst.msk [vmem:[#allocation2 + $0xa0] sm:$0xff] %vm256_vm0, %v1083_v3  ;;  %278 = vst.msk [vmem:[#allocation2 + $0xa8] sm:$0xff] %vm256_vm0, %v1083_v3  ;;  %v1043_v5 = vld [vmem:[%s1174_s28] sm:$0xff]   ;;  %972 = vmatprep.subr.bf16.mxu0 %v1042_v4  ;;  %1009 = vmatprep.subr.bf16.mxu1 %v1042_v4  ;;  %v1045_v7 = vld [vmem:[%s1174_s28 + $0x8] sm:$0xff]  }
  0x12   : > { %279 = vst.msk [vmem:[#allocation2 + $0xb0] sm:$0xff] %vm256_vm0, %v1083_v3  ;;  %280 = vst.msk [vmem:[#allocation2 + $0xb8] sm:$0xff] %vm256_vm0, %v1083_v3  ;;  %v1044_v6 = vld [vmem:[%s1174_s28 + $0x40] sm:$0xff]   ;;  %974 = vmatprep.mubr.msk.bf16.mxu0 %vm433_vm1, %v1043_v5  ;;  %v1046_v8 = vld [vmem:[%s1174_s28 + $0x48] sm:$0xff]  }
  0x13   : > { %281 = vst.msk [vmem:[#allocation2 + $0xc0] sm:$0xff] %vm256_vm0, %v1083_v3  ;;  %282 = vst.msk [vmem:[#allocation2 + $0xc8] sm:$0xff] %vm256_vm0, %v1083_v3  ;;  %990 = vmatprep.mubr.msk.bf16.mxu1 %vm433_vm1, %v1044_v6  ;;  %v1047_v9 = vld [vmem:[%s1174_s28 + $0x10] sm:$0xff]   ;;  %v1049_v11 = vld [vmem:[%s1174_s28 + $0x18] sm:$0xff]  }
  0x14   : > { %283 = vst.msk [vmem:[#allocation2 + $0xd0] sm:$0xff] %vm256_vm0, %v1083_v3  ;;  %284 = vst.msk [vmem:[#allocation2 + $0xd8] sm:$0xff] %vm256_vm0, %v1083_v3  ;;  %973 = vmatpush3.bf16.msra.mxu0 %v1042_v4  ;;  %1013 = vmatpush3.bf16.msra.mxu1 %v1042_v4  ;;  %v1048_v10 = vld [vmem:[%s1174_s28 + $0x50] sm:$0xff]   ;;  %v1050_v12 = vld [vmem:[%s1174_s28 + $0x58] sm:$0xff]  }
  0x15   : > { %285 = vst.msk [vmem:[#allocation2 + $0xe0] sm:$0xff] %vm256_vm0, %v1083_v3  ;;  %286 = vst.msk [vmem:[#allocation2 + $0xe8] sm:$0xff] %vm256_vm0, %v1083_v3  ;;  %v1051_v13 = vld [vmem:[%s1174_s28 + $0x20] sm:$0xff]   ;;  %v1053_v15 = vld [vmem:[%s1174_s28 + $0x28] sm:$0xff]  }
  0x16   : > { %287 = vst.msk [vmem:[#allocation2 + $0xf0] sm:$0xff] %vm256_vm0, %v1083_v3  ;;  %288 = vst.msk [vmem:[#allocation2 + $0xf8] sm:$0xff] %vm256_vm0, %v1083_v3  ;;  %v1052_v14 = vld [vmem:[%s1174_s28 + $0x60] sm:$0xff]   ;;  %v1054_v16 = vld [vmem:[%s1174_s28 + $0x68] sm:$0xff]  }
  0x17   : > { %975 = vmatmul.mubr.msk.bf16.vlgmr.msra.gmra.mrb[0].mxu0 %vm433_vm1, %v1045_v7  ;;  %991 = vmatmul.mubr.msk.bf16.vlgmr.msra.gmra.mrb[0].mxu1 %vm433_vm1, %v1046_v8  ;;  %v1055_v17 = vld [vmem:[%s1174_s28 + $0x30] sm:$0xff]   ;;  %v1057_v19 = vld [vmem:[%s1174_s28 + $0x38] sm:$0xff]   ;;  %v305_v24 = vld [vmem:[#allocation2 + $0x80] sm:$0xff] }
  0x18   : > { %978 = vmatprep.mubr.msk.bf16.mxu0 %vm433_vm1, %v1047_v9  ;;  %994 = vmatprep.mubr.msk.bf16.mxu1 %vm433_vm1, %v1048_v10  ;;  %v1056_v18 = vld [vmem:[%s1174_s28 + $0x70] sm:$0xff]   ;;  %v1058_v20 = vld [vmem:[%s1174_s28 + $0x78] sm:$0xff]   ;;  %v306_v34 = vld [vmem:[#allocation2 + $0x88] sm:$0xff] }
  0x19   : > { %v307_v22 = vld [vmem:[#allocation2 + $0x90] sm:$0xff]  ;;  %v308_v28 = vld [vmem:[#allocation2 + $0x98] sm:$0xff]  ;;  %v309_v48 = vld [vmem:[#allocation2 + $0xa0] sm:$0xff] }
  0x1a   : > { %v295_v45 = vld [vmem:[#allocation2 + $0x30] sm:$0xff]  ;;  %v296_v52 = vld [vmem:[#allocation2 + $0x38] sm:$0xff]  ;;  %v310_v59 = vld [vmem:[#allocation2 + $0xa8] sm:$0xff] }
  0x1b   : > { %v311_v46 = vld [vmem:[#allocation2 + $0xb0] sm:$0xff]  ;;  %v312_v53 = vld [vmem:[#allocation2 + $0xb8] sm:$0xff] }
  0x1f   : > { %979 = vmatmul.mubr.msk.bf16.gmra.mrb[4].mxu0 %vm433_vm1, %v1049_v11  ;;  %995 = vmatmul.mubr.msk.bf16.gmra.mrb[4].mxu1 %vm433_vm1, %v1050_v12 }
  0x20   : > { %982 = vmatprep.mubr.msk.bf16.mxu0 %vm433_vm1, %v1051_v13  ;;  %998 = vmatprep.mubr.msk.bf16.mxu1 %vm433_vm1, %v1052_v14 }
  0x27   : > { %983 = vmatmul.mubr.msk.bf16.gmra.mrb[8].mxu0 %vm433_vm1, %v1053_v15  ;;  %999 = vmatmul.mubr.msk.bf16.gmra.mrb[8].mxu1 %vm433_vm1, %v1054_v16 }
  0x28   : > { %986 = vmatprep.mubr.msk.bf16.mxu0 %vm433_vm1, %v1055_v17  ;;  %1002 = vmatprep.mubr.msk.bf16.mxu1 %vm433_vm1, %v1056_v18 }
  0x2f   : > { %987 = vmatmul.mubr.msk.bf16.gmra.mrb[12].mxu0 %vm433_vm1, %v1057_v19  ;;  %1003 = vmatmul.mubr.msk.bf16.gmra.mrb[12].mxu1 %vm433_vm1, %v1058_v20 }
  0xea   : > { %v976_v25 = vpop.f32.mrb[0].mxu0  ;;  %v992_v26 = vpop.f32.mrb[0].mxu1 }
  0xeb   : > { %v645_v29 = vadd.f32 %v976_v25, %v291_v21  ;;  %v661_v30 = vadd.f32 %v992_v26, %v307_v22  ;;  %v516_v31 = vpop.f32.mrb[1].mxu0  ;;  %v580_v32 = vpop.f32.mrb[1].mxu1  ;;  %v299_v22 = vld [vmem:[#allocation2 + $0x50] sm:$0xff]  ;;  %v313_v25 = vld [vmem:[#allocation2 + $0xc0] sm:$0xff] }
  0xec   : > { %v643_v35 = vadd.f32 %v516_v31, %v289_v23  ;;  %v659_v36 = vadd.f32 %v580_v32, %v305_v24  ;;  %v977_v37 = vpop.f32.mrb[2].mxu0  ;;  %v993_v38 = vpop.f32.mrb[2].mxu1  ;;  %v315_v23 = vld [vmem:[#allocation2 + $0xd0] sm:$0xff]  ;;  %v297_v24 = vld [vmem:[#allocation2 + $0x40] sm:$0xff] }
  0xed   : > { %678 = vst.msk [vmem:[#allocation2 + $0x10] sm:$0xff] %vm256_vm0, %v645_v29  ;;  %694 = vst.msk [vmem:[#allocation2 + $0x90] sm:$0xff] %vm256_vm0, %v661_v30  ;;  %v646_v39 = vadd.f32 %v977_v37, %v292_v27  ;;  %v662_v40 = vadd.f32 %v993_v38, %v308_v28  ;;  %v519_v41 = vpop.f32.mrb[3].mxu0  ;;  %v583_v42 = vpop.f32.mrb[3].mxu1  ;;  %v300_v28 = vld [vmem:[#allocation2 + $0x58] sm:$0xff] }
  0xee   : > { %676 = vst.msk [vmem:[#allocation2] sm:$0xff] %vm256_vm0, %v643_v35  ;;  %692 = vst.msk [vmem:[#allocation2 + $0x80] sm:$0xff] %vm256_vm0, %v659_v36  ;;  %v644_v43 = vadd.f32 %v519_v41, %v290_v33  ;;  %v660_v44 = vadd.f32 %v583_v42, %v306_v34  ;;  %v316_v29 = vld [vmem:[#allocation2 + $0xd8] sm:$0xff]  ;;  %v298_v34 = vld [vmem:[#allocation2 + $0x48] sm:$0xff] }
  0xef   : > { %679 = vst.msk [vmem:[#allocation2 + $0x18] sm:$0xff] %vm256_vm0, %v646_v39  ;;  %695 = vst.msk [vmem:[#allocation2 + $0x98] sm:$0xff] %vm256_vm0, %v662_v40  ;;  %v314_v35 = vld [vmem:[#allocation2 + $0xc8] sm:$0xff] }
  0xf0   : > { %677 = vst.msk [vmem:[#allocation2 + $0x8] sm:$0xff] %vm256_vm0, %v644_v43  ;;  %693 = vst.msk [vmem:[#allocation2 + $0x88] sm:$0xff] %vm256_vm0, %v660_v44 }
  0xf2   : > { %v980_v50 = vpop.f32.mrb[4].mxu0  ;;  %v996_v51 = vpop.f32.mrb[4].mxu1 }
  0xf3   : > { %v649_v54 = vadd.f32 %v980_v50, %v295_v45  ;;  %v665_v55 = vadd.f32 %v996_v51, %v311_v46  ;;  %v532_v56 = vpop.f32.mrb[5].mxu0  ;;  %v596_v57 = vpop.f32.mrb[5].mxu1 }
  0xf4   : > { %v713_v60 = vld [vmem:[#allocation2 + $0x10] sm:$0xff]  ;;  %v647_v62 = vadd.f32 %v532_v56, %v293_v47  ;;  %v663_v63 = vadd.f32 %v596_v57, %v309_v48  ;;  %v981_v0 = vpop.f32.mrb[6].mxu0  ;;  %v997_v1 = vpop.f32.mrb[6].mxu1 }
  0xf5   : > { %v729_v61 = vld [vmem:[#allocation2 + $0x90] sm:$0xff]  ;;  %v752_v2 = vadd.f32 %v1220_v49, %v713_v60  ;;  %v711_v4 = vld [vmem:[#allocation2] sm:$0xff]  ;;  %682 = vst.msk [vmem:[#allocation2 + $0x30] sm:$0xff] %vm256_vm0, %v649_v54  ;;  %698 = vst.msk [vmem:[#allocation2 + $0xb0] sm:$0xff] %vm256_vm0, %v665_v55  ;;  %v650_v6 = vadd.f32 %v981_v0, %v296_v52  ;;  %v666_v7 = vadd.f32 %v997_v1, %v312_v53  ;;  %v535_v8 = vpop.f32.mrb[7].mxu0  ;;  %v599_v9 = vpop.f32.mrb[7].mxu1 }
  0xf6   : > { %v768_v3 = vadd.f32 %v1220_v49, %v729_v61  ;;  %v727_v5 = vld [vmem:[#allocation2 + $0x80] sm:$0xff]  ;;  %v750_v10 = vadd.f32 %v1220_v49, %v711_v4  ;;  %v714_v12 = vld [vmem:[#allocation2 + $0x18] sm:$0xff]  ;;  %680 = vst.msk [vmem:[#allocation2 + $0x20] sm:$0xff] %vm256_vm0, %v647_v62  ;;  %696 = vst.msk [vmem:[#allocation2 + $0xa0] sm:$0xff] %vm256_vm0, %v663_v63  ;;  %v648_v14 = vadd.f32 %v535_v8, %v294_v58 }
  0xf7   : > { %v766_v11 = vadd.f32 %v1220_v49, %v727_v5  ;;  %v730_v13 = vld [vmem:[#allocation2 + $0x98] sm:$0xff]  ;;  %v664_v15 = vadd.f32 %v599_v9, %v310_v59  ;;  %784 = vst.msk [vmem:[%s1225_s7 + $0x10] sm:$0xff] %vm256_vm0, %v752_v2  ;;  %v753_v16 = vadd.f32 %v1220_v49, %v714_v12  ;;  %v712_v18 = vld [vmem:[#allocation2 + $0x8] sm:$0xff]  ;;  %683 = vst.msk [vmem:[#allocation2 + $0x38] sm:$0xff] %vm256_vm0, %v650_v6 }
  0xf8   : > { %800 = vst.msk [vmem:[%s1225_s7 + $0x90] sm:$0xff] %vm256_vm0, %v768_v3  ;;  %v769_v17 = vadd.f32 %v1220_v49, %v730_v13  ;;  %v728_v19 = vld [vmem:[#allocation2 + $0x88] sm:$0xff]  ;;  %699 = vst.msk [vmem:[#allocation2 + $0xb8] sm:$0xff] %vm256_vm0, %v666_v7  ;;  %v751_v20 = vadd.f32 %v1220_v49, %v712_v18  ;;  %v303_v63 = vld [vmem:[#allocation2 + $0x70] sm:$0xff] }
  0xf9   : > { %782 = vst.msk [vmem:[%s1225_s7] sm:$0xff] %vm256_vm0, %v750_v10  ;;  %798 = vst.msk [vmem:[%s1225_s7 + $0x80] sm:$0xff] %vm256_vm0, %v766_v11  ;;  %v767_v21 = vadd.f32 %v1220_v49, %v728_v19  ;;  %v319_v0 = vld [vmem:[#allocation2 + $0xf0] sm:$0xff]  ;;  %v301_v1 = vld [vmem:[#allocation2 + $0x60] sm:$0xff] }
  0xfa   : > { %681 = vst.msk [vmem:[#allocation2 + $0x28] sm:$0xff] %vm256_vm0, %v648_v14  ;;  %697 = vst.msk [vmem:[#allocation2 + $0xa8] sm:$0xff] %vm256_vm0, %v664_v15  ;;  %v984_v26 = vpop.f32.mrb[8].mxu0  ;;  %v1000_v27 = vpop.f32.mrb[8].mxu1  ;;  %v317_v2 = vld [vmem:[#allocation2 + $0xe0] sm:$0xff]  ;;  %v304_v5 = vld [vmem:[#allocation2 + $0x78] sm:$0xff] }
  0xfb   : > { %785 = vst.msk [vmem:[%s1225_s7 + $0x18] sm:$0xff] %vm256_vm0, %v753_v16  ;;  %801 = vst.msk [vmem:[%s1225_s7 + $0x98] sm:$0xff] %vm256_vm0, %v769_v17  ;;  %v653_v30 = vadd.f32 %v984_v26, %v299_v22  ;;  %v669_v31 = vadd.f32 %v1000_v27, %v315_v23  ;;  %v548_v32 = vpop.f32.mrb[9].mxu0  ;;  %v612_v33 = vpop.f32.mrb[9].mxu1  ;;  %v320_v6 = vld [vmem:[#allocation2 + $0xf8] sm:$0xff]  ;;  %v302_v11 = vld [vmem:[#allocation2 + $0x68] sm:$0xff] }
  0xfc   : > { %783 = vst.msk [vmem:[%s1225_s7 + $0x8] sm:$0xff] %vm256_vm0, %v751_v20  ;;  %799 = vst.msk [vmem:[%s1225_s7 + $0x88] sm:$0xff] %vm256_vm0, %v767_v21  ;;  %v717_v36 = vld [vmem:[#allocation2 + $0x30] sm:$0xff]  ;;  %v651_v38 = vadd.f32 %v548_v32, %v297_v24  ;;  %v667_v39 = vadd.f32 %v612_v33, %v313_v25  ;;  %v985_v40 = vpop.f32.mrb[10].mxu0  ;;  %v1001_v41 = vpop.f32.mrb[10].mxu1  ;;  %v318_v12 = vld [vmem:[#allocation2 + $0xe8] sm:$0xff] }
  0xfd   : > { %v733_v37 = vld [vmem:[#allocation2 + $0xb0] sm:$0xff]  ;;  %v756_v42 = vadd.f32 %v1220_v49, %v717_v36  ;;  %v715_v44 = vld [vmem:[#allocation2 + $0x20] sm:$0xff]  ;;  %686 = vst.msk [vmem:[#allocation2 + $0x50] sm:$0xff] %vm256_vm0, %v653_v30  ;;  %702 = vst.msk [vmem:[#allocation2 + $0xd0] sm:$0xff] %vm256_vm0, %v669_v31  ;;  %v654_v46 = vadd.f32 %v985_v40, %v300_v28  ;;  %v670_v47 = vadd.f32 %v1001_v41, %v316_v29  ;;  %v551_v48 = vpop.f32.mrb[11].mxu0  ;;  %v615_v50 = vpop.f32.mrb[11].mxu1 }
  0xfe   : > { %v772_v43 = vadd.f32 %v1220_v49, %v733_v37  ;;  %v731_v45 = vld [vmem:[#allocation2 + $0xa0] sm:$0xff]  ;;  %v754_v51 = vadd.f32 %v1220_v49, %v715_v44  ;;  %v718_v53 = vld [vmem:[#allocation2 + $0x38] sm:$0xff]  ;;  %684 = vst.msk [vmem:[#allocation2 + $0x40] sm:$0xff] %vm256_vm0, %v651_v38  ;;  %700 = vst.msk [vmem:[#allocation2 + $0xc0] sm:$0xff] %vm256_vm0, %v667_v39  ;;  %v652_v55 = vadd.f32 %v551_v48, %v298_v34 }
  0xff   : > { %v770_v52 = vadd.f32 %v1220_v49, %v731_v45  ;;  %v734_v54 = vld [vmem:[#allocation2 + $0xb8] sm:$0xff]  ;;  %v668_v56 = vadd.f32 %v615_v50, %v314_v35  ;;  %788 = vst.msk [vmem:[%s1225_s7 + $0x30] sm:$0xff] %vm256_vm0, %v756_v42  ;;  %v757_v57 = vadd.f32 %v1220_v49, %v718_v53  ;;  %687 = vst.msk [vmem:[#allocation2 + $0x58] sm:$0xff] %vm256_vm0, %v654_v46 }
 0x100   : > { %804 = vst.msk [vmem:[%s1225_s7 + $0xb0] sm:$0xff] %vm256_vm0, %v772_v43  ;;  %v773_v58 = vadd.f32 %v1220_v49, %v734_v54  ;;  %703 = vst.msk [vmem:[#allocation2 + $0xd8] sm:$0xff] %vm256_vm0, %v670_v47 }
 0x101   : > { %v716_v59 = vld [vmem:[#allocation2 + $0x28] sm:$0xff]  ;;  %786 = vst.msk [vmem:[%s1225_s7 + $0x20] sm:$0xff] %vm256_vm0, %v754_v51  ;;  %802 = vst.msk [vmem:[%s1225_s7 + $0xa0] sm:$0xff] %vm256_vm0, %v770_v52 }
 0x102   : > { %v732_v60 = vld [vmem:[#allocation2 + $0xa8] sm:$0xff]  ;;  %v755_v61 = vadd.f32 %v1220_v49, %v716_v59  ;;  %685 = vst.msk [vmem:[#allocation2 + $0x48] sm:$0xff] %vm256_vm0, %v652_v55  ;;  %701 = vst.msk [vmem:[#allocation2 + $0xc8] sm:$0xff] %vm256_vm0, %v668_v56  ;;  %v988_v3 = vpop.f32.mrb[12].mxu0  ;;  %v1004_v4 = vpop.f32.mrb[12].mxu1 }
 0x103   : > { %v771_v62 = vadd.f32 %v1220_v49, %v732_v60  ;;  %789 = vst.msk [vmem:[%s1225_s7 + $0x38] sm:$0xff] %vm256_vm0, %v757_v57  ;;  %805 = vst.msk [vmem:[%s1225_s7 + $0xb8] sm:$0xff] %vm256_vm0, %v773_v58  ;;  %v657_v7 = vadd.f32 %v988_v3, %v303_v63  ;;  %v673_v8 = vadd.f32 %v1004_v4, %v319_v0  ;;  %v564_v9 = vpop.f32.mrb[13].mxu0  ;;  %v628_v10 = vpop.f32.mrb[13].mxu1 }
 0x104   : > { %787 = vst.msk [vmem:[%s1225_s7 + $0x28] sm:$0xff] %vm256_vm0, %v755_v61  ;;  %v721_v13 = vld [vmem:[#allocation2 + $0x50] sm:$0xff]  ;;  %v655_v15 = vadd.f32 %v564_v9, %v301_v1  ;;  %v671_v16 = vadd.f32 %v628_v10, %v317_v2  ;;  %v989_v17 = vpop.f32.mrb[14].mxu0  ;;  %v1005_v18 = vpop.f32.mrb[14].mxu1 }
 0x105   : > { %803 = vst.msk [vmem:[%s1225_s7 + $0xa8] sm:$0xff] %vm256_vm0, %v771_v62  ;;  %v737_v14 = vld [vmem:[#allocation2 + $0xd0] sm:$0xff]  ;;  %v760_v19 = vadd.f32 %v1220_v49, %v721_v13  ;;  %v719_v21 = vld [vmem:[#allocation2 + $0x40] sm:$0xff]  ;;  %690 = vst.msk [vmem:[#allocation2 + $0x70] sm:$0xff] %vm256_vm0, %v657_v7  ;;  %v658_v23 = vadd.f32 %v989_v17, %v304_v5  ;;  %v674_v24 = vadd.f32 %v1005_v18, %v320_v6  ;;  %v567_v25 = vpop.f32.mrb[15].mxu0  ;;  %v631_v26 = vpop.f32.mrb[15].mxu1 }
 0x106   : > { %v776_v20 = vadd.f32 %v1220_v49, %v737_v14  ;;  %v735_v22 = vld [vmem:[#allocation2 + $0xc0] sm:$0xff]  ;;  %706 = vst.msk [vmem:[#allocation2 + $0xf0] sm:$0xff] %vm256_vm0, %v673_v8  ;;  %v758_v27 = vadd.f32 %v1220_v49, %v719_v21  ;;  %v722_v29 = vld [vmem:[#allocation2 + $0x58] sm:$0xff]  ;;  %688 = vst.msk [vmem:[#allocation2 + $0x60] sm:$0xff] %vm256_vm0, %v655_v15  ;;  %v656_v31 = vadd.f32 %v567_v25, %v302_v11 }
 0x107   : > { %v774_v28 = vadd.f32 %v1220_v49, %v735_v22  ;;  %v738_v30 = vld [vmem:[#allocation2 + $0xd8] sm:$0xff]  ;;  %704 = vst.msk [vmem:[#allocation2 + $0xe0] sm:$0xff] %vm256_vm0, %v671_v16  ;;  %v672_v32 = vadd.f32 %v631_v26, %v318_v12  ;;  %792 = vst.msk [vmem:[%s1225_s7 + $0x50] sm:$0xff] %vm256_vm0, %v760_v19  ;;  %v761_v33 = vadd.f32 %v1220_v49, %v722_v29 }
 0x108   : > { %808 = vst.msk [vmem:[%s1225_s7 + $0xd0] sm:$0xff] %vm256_vm0, %v776_v20  ;;  %v777_v34 = vadd.f32 %v1220_v49, %v738_v30  ;;  %691 = vst.msk [vmem:[#allocation2 + $0x78] sm:$0xff] %vm256_vm0, %v658_v23 }
 0x109   : > { %v720_v35 = vld [vmem:[#allocation2 + $0x48] sm:$0xff]  ;;  %707 = vst.msk [vmem:[#allocation2 + $0xf8] sm:$0xff] %vm256_vm0, %v674_v24  ;;  %790 = vst.msk [vmem:[%s1225_s7 + $0x40] sm:$0xff] %vm256_vm0, %v758_v27 }
 0x10a   : > { %v736_v36 = vld [vmem:[#allocation2 + $0xc8] sm:$0xff]  ;;  %806 = vst.msk [vmem:[%s1225_s7 + $0xc0] sm:$0xff] %vm256_vm0, %v774_v28  ;;  %v759_v37 = vadd.f32 %v1220_v49, %v720_v35  ;;  %689 = vst.msk [vmem:[#allocation2 + $0x68] sm:$0xff] %vm256_vm0, %v656_v31 }
 0x10b   : > { %v775_v38 = vadd.f32 %v1220_v49, %v736_v36  ;;  %705 = vst.msk [vmem:[#allocation2 + $0xe8] sm:$0xff] %vm256_vm0, %v672_v32  ;;  %793 = vst.msk [vmem:[%s1225_s7 + $0x58] sm:$0xff] %vm256_vm0, %v761_v33 }
 0x10c   : > { %809 = vst.msk [vmem:[%s1225_s7 + $0xd8] sm:$0xff] %vm256_vm0, %v777_v34  ;;  %791 = vst.msk [vmem:[%s1225_s7 + $0x48] sm:$0xff] %vm256_vm0, %v759_v37  ;;  %v725_v39 = vld [vmem:[#allocation2 + $0x70] sm:$0xff] }
 0x10d   : > { %807 = vst.msk [vmem:[%s1225_s7 + $0xc8] sm:$0xff] %vm256_vm0, %v775_v38  ;;  %v741_v40 = vld [vmem:[#allocation2 + $0xf0] sm:$0xff]  ;;  %v764_v41 = vadd.f32 %v1220_v49, %v725_v39  ;;  %v723_v43 = vld [vmem:[#allocation2 + $0x60] sm:$0xff] }
 0x10e   : > { %v780_v42 = vadd.f32 %v1220_v49, %v741_v40  ;;  %v739_v44 = vld [vmem:[#allocation2 + $0xe0] sm:$0xff]  ;;  %v762_v45 = vadd.f32 %v1220_v49, %v723_v43 }
 0x10f   : > { %v778_v46 = vadd.f32 %v1220_v49, %v739_v44  ;;  %v726_v47 = vld [vmem:[#allocation2 + $0x78] sm:$0xff]  ;;  %796 = vst.msk [vmem:[%s1225_s7 + $0x70] sm:$0xff] %vm256_vm0, %v764_v41 }
 0x110   : > { %v742_v48 = vld [vmem:[#allocation2 + $0xf8] sm:$0xff]  ;;  %812 = vst.msk [vmem:[%s1225_s7 + $0xf0] sm:$0xff] %vm256_vm0, %v780_v42  ;;  %v765_v50 = vadd.f32 %v1220_v49, %v726_v47  ;;  %794 = vst.msk [vmem:[%s1225_s7 + $0x60] sm:$0xff] %vm256_vm0, %v762_v45 }
 0x111   : > { %v781_v51 = vadd.f32 %v1220_v49, %v742_v48  ;;  %v724_v52 = vld [vmem:[#allocation2 + $0x68] sm:$0xff]  ;;  %810 = vst.msk [vmem:[%s1225_s7 + $0xe0] sm:$0xff] %vm256_vm0, %v778_v46 }
 0x112   : > { %v740_v53 = vld [vmem:[#allocation2 + $0xe8] sm:$0xff]  ;;  %v763_v54 = vadd.f32 %v1220_v49, %v724_v52  ;;  %797 = vst.msk [vmem:[%s1225_s7 + $0x78] sm:$0xff] %vm256_vm0, %v765_v50 }
 0x113   : > { %v779_v55 = vadd.f32 %v1220_v49, %v740_v53  ;;  %813 = vst.msk [vmem:[%s1225_s7 + $0xf8] sm:$0xff] %vm256_vm0, %v781_v51 }
 0x114   : > { %795 = vst.msk [vmem:[%s1225_s7 + $0x68] sm:$0xff] %vm256_vm0, %v763_v54 }
 0x115   : > { %811 = vst.msk [vmem:[%s1225_s7 + $0xe8] sm:$0xff] %vm256_vm0, %v779_v55 }
 0x116 PF: > { %s13_s14 = sadd.s32 1, %s1081_s14   ;;  %s1360_s12 = smov %s1077_s13 }
 0x117   : > { %p10_p5 = scmp.ge.s32.totalorder %s13_s14, 4   ;;  %s1361_s13 = smov %s1363_s15 }
 0x119   :  { %12 = sbr.rel (!%p10_p5) target bundleno = 2 (0x2), region = 73 }

// kernel: _lambda_.18
= control target key start
LH: loop header
LB: loop body
LE: loop exit
PB: predicated region body
PF: predicated region fallthrough
CT: control target
= control target key end

     0   :  { %vm86_vm0 = vcmask 130048   ;;  %v623_v1 = vmov 0.0   ;;  %s894_s1 = inlined_call_operand.vmem [shape: bf16[128,16], index: 1, kind: input, shape index: {}]   ;;  %s895_s0 = inlined_call_operand.vmem [shape: bf16[128,128], index: 0, kind: input, shape index: {}]   ;;  %s896_s2 = inlined_call_operand.vmem [shape: f32[1,16], index: 2, kind: input, shape index: {}]   ;;  %s897_s3 = inlined_call_operand.vmem [shape: f32[128,16], index: 3, kind: output, shape index: {0}]   ;;  %s898_s4 = inlined_call_operand.vmem [shape: f32[2,16], index: 4, kind: output, shape index: {1}]  }
   0x1   :  { %v615_v0 = vld [vmem:[%s894_s1] sm:$0xff]   ;;  %89 = vst.msk [vmem:[#allocation2 + $0x10] sm:$0xff] %vm86_vm0, %v623_v1  ;;  %87 = vst.msk [vmem:[#allocation2] sm:$0xff] %vm86_vm0, %v623_v1  ;;  %v616_v2 = vld [vmem:[%s894_s1 + $0x8] sm:$0xff]  }
   0x2   :  { %88 = vst.msk [vmem:[#allocation2 + $0x8] sm:$0xff] %vm86_vm0, %v623_v1  ;;  %90 = vst.msk [vmem:[#allocation2 + $0x18] sm:$0xff] %vm86_vm0, %v623_v1  ;;  %566 = vmatprep.subr.bf16.mxu0 %v615_v0  ;;  %598 = vmatprep.subr.bf16.mxu1 %v615_v0  ;;  %v617_v3 = vld [vmem:[%s894_s1 + $0x10] sm:$0xff]   ;;  %v618_v4 = vld [vmem:[%s894_s1 + $0x18] sm:$0xff]  }
   0x3   :  { %91 = vst.msk [vmem:[#allocation2 + $0x20] sm:$0xff] %vm86_vm0, %v623_v1  ;;  %92 = vst.msk [vmem:[#allocation2 + $0x28] sm:$0xff] %vm86_vm0, %v623_v1  ;;  %567 = vmatpush3.bf16.msra.mxu0 %v615_v0  ;;  %606 = vmatpush3.bf16.msra.mxu1 %v615_v0  ;;  %v18_v5 = vld [vmem:[%s895_s0] sm:$0xf]  ;;  %v19_v6 = vld [vmem:[%s895_s0 + $0x4] sm:$0xf] }
   0x4   :  { %93 = vst.msk [vmem:[#allocation2 + $0x30] sm:$0xff] %vm86_vm0, %v623_v1  ;;  %94 = vst.msk [vmem:[#allocation2 + $0x38] sm:$0xff] %vm86_vm0, %v623_v1  ;;  %568 = vmatprep.subr.bf16.mxu0 %v616_v2  ;;  %599 = vmatprep.subr.bf16.mxu1 %v616_v2  ;;  %vm34_vm1 = vcmp.ge.bf16.partialorder %v18_v5, 0  ;;  %vm35_vm2 = vcmp.ge.bf16.partialorder %v19_v6, 0  ;;  %v50_v7 = vmul.bf16 1045249613, %v18_v5 }
   0x5   :  { %95 = vst.msk [vmem:[#allocation2 + $0x40] sm:$0xff] %vm86_vm0, %v623_v1  ;;  %96 = vst.msk [vmem:[#allocation2 + $0x48] sm:$0xff] %vm86_vm0, %v623_v1  ;;  %v51_v8 = vmul.bf16 1045249613, %v19_v6  ;;  %v619_v11 = vld [vmem:[%s894_s1 + $0x20] sm:$0xff]   ;;  %v620_v15 = vld [vmem:[%s894_s1 + $0x28] sm:$0xff]  }
   0x6   :  { %97 = vst.msk [vmem:[#allocation2 + $0x50] sm:$0xff] %vm86_vm0, %v623_v1  ;;  %98 = vst.msk [vmem:[#allocation2 + $0x58] sm:$0xff] %vm86_vm0, %v623_v1  ;;  %v66_v9 = vsel %vm34_vm1, %v18_v5, %v50_v7  ;;  %v20_v13 = vld [vmem:[%s895_s0 + $0x8] sm:$0xf]  ;;  %v26_v14 = vld [vmem:[%s895_s0 + $0x20] sm:$0xf] }
   0x7   :  { %99 = vst.msk [vmem:[#allocation2 + $0x60] sm:$0xff] %vm86_vm0, %v623_v1  ;;  %100 = vst.msk [vmem:[#allocation2 + $0x68] sm:$0xff] %vm86_vm0, %v623_v1  ;;  %569 = vmatpush3.bf16.msra.mxu0 %v616_v2  ;;  %607 = vmatpush3.bf16.msra.mxu1 %v616_v2  ;;  %v67_v10 = vsel %vm35_vm2, %v19_v6, %v51_v8  ;;  %v27_v16 = vld [vmem:[%s895_s0 + $0x24] sm:$0xf]  ;;  %vm42_vm3 = vcmp.ge.bf16.partialorder %v26_v14, 0  ;;  %v621_v20 = vld [vmem:[%s894_s1 + $0x30] sm:$0xff]  }
   0x8   :  { %101 = vst.msk [vmem:[#allocation2 + $0x70] sm:$0xff] %vm86_vm0, %v623_v1  ;;  %102 = vst.msk [vmem:[#allocation2 + $0x78] sm:$0xff] %vm86_vm0, %v623_v1  ;;  %570 = vmatprep.subr.bf16.mxu0 %v617_v3  ;;  %600 = vmatprep.subr.bf16.mxu1 %v617_v3  ;;  %v533_v12 = vcombine.low %v66_v9, %v67_v10  ;;  %v58_v17 = vmul.bf16 1045249613, %v26_v14  ;;  %vm43_vm4 = vcmp.ge.bf16.partialorder %v27_v16, 0  ;;  %vm36_vm5 = vcmp.ge.bf16.partialorder %v20_v13, 0 }
   0x9   :  { %v59_v18 = vmul.bf16 1045249613, %v27_v16  ;;  %v21_v21 = vld [vmem:[%s895_s0 + $0xc] sm:$0xf]  ;;  %v22_v22 = vld [vmem:[%s895_s0 + $0x10] sm:$0xf] }
   0xa   :  { %582 = vmatprep.mubr.bf16.mxu0 %v533_v12  ;;  %v74_v19 = vsel %vm42_vm3, %v26_v14, %v58_v17  ;;  %v23_v24 = vld [vmem:[%s895_s0 + $0x14] sm:$0xf]  ;;  %v28_v26 = vld [vmem:[%s895_s0 + $0x28] sm:$0xf]  ;;  %v29_v27 = vld [vmem:[%s895_s0 + $0x2c] sm:$0xf] }
   0xb   :  { %571 = vmatpush3.bf16.msra.mxu0 %v617_v3  ;;  %608 = vmatpush3.bf16.msra.mxu1 %v617_v3  ;;  %v75_v23 = vsel %vm43_vm4, %v27_v16, %v59_v18  ;;  %v52_v28 = vmul.bf16 1045249613, %v20_v13  ;;  %v30_v29 = vld [vmem:[%s895_s0 + $0x30] sm:$0xf]  ;;  %v31_v30 = vld [vmem:[%s895_s0 + $0x34] sm:$0xf] }
   0xc   :  { %572 = vmatprep.subr.bf16.mxu0 %v618_v4  ;;  %601 = vmatprep.subr.bf16.mxu1 %v618_v4  ;;  %v537_v25 = vcombine.low %v74_v19, %v75_v23  ;;  %v622_v31 = vld [vmem:[%s894_s1 + $0x38] sm:$0xff]   ;;  %vm37_vm6 = vcmp.ge.bf16.partialorder %v21_v21, 0  ;;  %v53_v32 = vmul.bf16 1045249613, %v21_v21  ;;  %vm38_vm7 = vcmp.ge.bf16.partialorder %v22_v22, 0  ;;  %v105_v1 = vld [vmem:[#allocation2 + $0x10] sm:$0xff] }
   0xd   :  { %v54_v33 = vmul.bf16 1045249613, %v22_v22  ;;  %v55_v34 = vmul.bf16 1045249613, %v23_v24  ;;  %v60_v35 = vmul.bf16 1045249613, %v28_v26  ;;  %v68_v39 = vsel %vm36_vm5, %v20_v13, %v52_v28 }
   0xe   :  { %590 = vmatprep.mubr.bf16.mxu1 %v537_v25  ;;  %v61_v36 = vmul.bf16 1045249613, %v29_v27  ;;  %vm44_vm8 = vcmp.ge.bf16.partialorder %v28_v26, 0  ;;  %vm45_vm9 = vcmp.ge.bf16.partialorder %v29_v27, 0  ;;  %v62_v37 = vmul.bf16 1045249613, %v30_v29 }
   0xf   :  { %573 = vmatpush3.bf16.msra.mxu0 %v618_v4  ;;  %609 = vmatpush3.bf16.msra.mxu1 %v618_v4  ;;  %v63_v38 = vmul.bf16 1045249613, %v31_v30  ;;  %vm39_vm10 = vcmp.ge.bf16.partialorder %v23_v24, 0  ;;  %vm46_vm11 = vcmp.ge.bf16.partialorder %v30_v29, 0  ;;  %vm47_vm12 = vcmp.ge.bf16.partialorder %v31_v30, 0  ;;  %v113_v2 = vld [vmem:[#allocation2 + $0x50] sm:$0xff] }
  0x10   :  { %574 = vmatprep.subr.bf16.mxu0 %v619_v11  ;;  %602 = vmatprep.subr.bf16.mxu1 %v619_v11  ;;  %v69_v40 = vsel %vm37_vm6, %v21_v21, %v53_v32  ;;  %v70_v41 = vsel %vm38_vm7, %v22_v22, %v54_v33  ;;  %v24_v42 = vld [vmem:[%s895_s0 + $0x18] sm:$0xf]  ;;  %v25_v43 = vld [vmem:[%s895_s0 + $0x1c] sm:$0xf]  ;;  %v76_v44 = vsel %vm44_vm8, %v28_v26, %v60_v35  ;;  %v103_v3 = vld [vmem:[#allocation2] sm:$0xff]  ;;  %vm509_vm2 = vcmask 1040384  }
  0x11   :  { %v77_v45 = vsel %vm45_vm9, %v29_v27, %v61_v36  ;;  %v71_v46 = vsel %vm39_vm10, %v23_v24, %v55_v34  ;;  %v78_v47 = vsel %vm46_vm11, %v30_v29, %v62_v37  ;;  %v79_v48 = vsel %vm47_vm12, %v31_v30, %v63_v38  ;;  %v32_v49 = vld [vmem:[%s895_s0 + $0x38] sm:$0xf]  ;;  %v33_v50 = vld [vmem:[%s895_s0 + $0x3c] sm:$0xf]  ;;  %v111_v4 = vld [vmem:[#allocation2 + $0x40] sm:$0xff] }
  0x12   :  { %v534_v51 = vcombine.low %v68_v39, %v69_v40  ;;  %vm40_vm13 = vcmp.ge.bf16.partialorder %v24_v42, 0  ;;  %v56_v52 = vmul.bf16 1045249613, %v24_v42  ;;  %v57_v53 = vmul.bf16 1045249613, %v25_v43  ;;  %v106_v6 = vld [vmem:[#allocation2 + $0x18] sm:$0xff] }
  0x13   :  { %575 = vmatpush3.bf16.msra.mxu0 %v619_v11  ;;  %610 = vmatpush3.bf16.msra.mxu1 %v619_v11  ;;  %v538_v54 = vcombine.low %v76_v44, %v77_v45  ;;  %v535_v55 = vcombine.low %v70_v41, %v71_v46  ;;  %v539_v56 = vcombine.low %v78_v47, %v79_v48  ;;  %v64_v57 = vmul.bf16 1045249613, %v32_v49  ;;  %v114_v8 = vld [vmem:[#allocation2 + $0x58] sm:$0xff]  ;;  %v104_v11 = vld [vmem:[#allocation2 + $0x8] sm:$0xff]  ;;  %v109_v25 = vld [vmem:[#allocation2 + $0x30] sm:$0xff] }
  0x14   :  { %576 = vmatprep.subr.bf16.mxu0 %v620_v15  ;;  %603 = vmatprep.subr.bf16.mxu1 %v620_v15  ;;  %v65_v58 = vmul.bf16 1045249613, %v33_v50  ;;  %vm41_vm14 = vcmp.ge.bf16.partialorder %v25_v43, 0  ;;  %vm48_vm15 = vcmp.ge.bf16.partialorder %v32_v49, 0  ;;  %vm49_vm1 = vcmp.ge.bf16.partialorder %v33_v50, 0  ;;  %v112_v14 = vld [vmem:[#allocation2 + $0x48] sm:$0xff] }
  0x15   :  { %v72_v59 = vsel %vm40_vm13, %v24_v42, %v56_v52  ;;  %v73_v60 = vsel %vm41_vm14, %v25_v43, %v57_v53  ;;  %v80_v61 = vsel %vm48_vm15, %v32_v49, %v64_v57  ;;  %v117_v26 = vld [vmem:[#allocation2 + $0x70] sm:$0xff]  ;;  %v107_v27 = vld [vmem:[#allocation2 + $0x20] sm:$0xff]  ;;  %v118_v33 = vld [vmem:[#allocation2 + $0x78] sm:$0xff]  ;;  %vm515_vm3 = vcmask 123904  }
  0x16   :  { %v81_v62 = vsel %vm49_vm1, %v33_v50, %v65_v58  ;;  %v536_v63 = vcombine.low %v72_v59, %v73_v60  ;;  %v115_v28 = vld [vmem:[#allocation2 + $0x60] sm:$0xff]  ;;  %v108_v36 = vld [vmem:[#allocation2 + $0x28] sm:$0xff] }
  0x17   :  { %577 = vmatpush3.bf16.msra.mxu0 %v620_v15  ;;  %611 = vmatpush3.bf16.msra.mxu1 %v620_v15  ;;  %v540_v0 = vcombine.low %v80_v61, %v81_v62  ;;  %v751_v29 = vld [vmem:[%s896_s2] ss:$0 sm:$0xff]  ;;  %v116_v39 = vld [vmem:[#allocation2 + $0x68] sm:$0xff] }
  0x18   :  { %578 = vmatprep.subr.bf16.mxu0 %v621_v20  ;;  %604 = vmatprep.subr.bf16.mxu1 %v621_v20 }
  0x1b   :  { %579 = vmatpush3.bf16.msra.mxu0 %v621_v20  ;;  %612 = vmatpush3.bf16.msra.mxu1 %v621_v20 }
  0x1c   :  { %580 = vmatprep.subr.bf16.mxu0 %v622_v31  ;;  %605 = vmatprep.subr.bf16.mxu1 %v622_v31 }
  0x1f   :  { %581 = vmatpush3.bf16.msra.mxu0 %v622_v31  ;;  %613 = vmatpush3.bf16.msra.mxu1 %v622_v31  ;;  %v110_v31 = vld [vmem:[#allocation2 + $0x38] sm:$0xff] }
  0x22   :  { %583 = vmatmul.mubr.bf16.vlgmr.msra.gmra.mrb[0].mxu0 %v534_v51  ;;  %591 = vmatmul.mubr.bf16.vlgmr.msra.gmra.mrb[0].mxu1 %v538_v54 }
  0x23   :  { %586 = vmatprep.mubr.bf16.mxu0 %v535_v55  ;;  %594 = vmatprep.mubr.bf16.mxu1 %v539_v56 }
  0x2a   :  { %587 = vmatmul.mubr.bf16.gmra.mrb[4].mxu0 %v536_v63  ;;  %595 = vmatmul.mubr.bf16.gmra.mrb[4].mxu1 %v540_v0 }
  0xf5   :  { %v584_v5 = vpop.f32.mrb[0].mxu0  ;;  %v592_v7 = vpop.f32.mrb[0].mxu1 }
  0xf6   :  { %v330_v9 = vadd.f32 %v584_v5, %v105_v1  ;;  %v265_v10 = vpop.f32.mrb[1].mxu0  ;;  %v338_v12 = vadd.f32 %v592_v7, %v113_v2  ;;  %v297_v13 = vpop.f32.mrb[1].mxu1 }
  0xf7   :  { %v328_v15 = vadd.f32 %v265_v10, %v103_v3  ;;  %v585_v16 = vpop.f32.mrb[2].mxu0  ;;  %v336_v17 = vadd.f32 %v297_v13, %v111_v4  ;;  %v593_v18 = vpop.f32.mrb[2].mxu1 }
  0xf8   :  { %347 = vst.msk [vmem:[#allocation2 + $0x10] sm:$0xff] %vm86_vm0, %v330_v9  ;;  %v331_v19 = vadd.f32 %v585_v16, %v106_v6  ;;  %v268_v20 = vpop.f32.mrb[3].mxu0  ;;  %355 = vst.msk [vmem:[#allocation2 + $0x50] sm:$0xff] %vm86_vm0, %v338_v12  ;;  %v339_v21 = vadd.f32 %v593_v18, %v114_v8  ;;  %v300_v22 = vpop.f32.mrb[3].mxu1 }
  0xf9   :  { %345 = vst.msk [vmem:[#allocation2] sm:$0xff] %vm86_vm0, %v328_v15  ;;  %v329_v23 = vadd.f32 %v268_v20, %v104_v11  ;;  %353 = vst.msk [vmem:[#allocation2 + $0x40] sm:$0xff] %vm86_vm0, %v336_v17  ;;  %v337_v24 = vadd.f32 %v300_v22, %v112_v14 }
  0xfa   :  { %348 = vst.msk [vmem:[#allocation2 + $0x18] sm:$0xff] %vm86_vm0, %v331_v19  ;;  %356 = vst.msk [vmem:[#allocation2 + $0x58] sm:$0xff] %vm86_vm0, %v339_v21 }
  0xfb   :  { %346 = vst.msk [vmem:[#allocation2 + $0x8] sm:$0xff] %vm86_vm0, %v329_v23  ;;  %354 = vst.msk [vmem:[#allocation2 + $0x48] sm:$0xff] %vm86_vm0, %v337_v24 }
  0xfd   :  { %v588_v30 = vpop.f32.mrb[4].mxu0  ;;  %v596_v32 = vpop.f32.mrb[4].mxu1 }
  0xfe   :  { %v334_v34 = vadd.f32 %v588_v30, %v109_v25  ;;  %v281_v35 = vpop.f32.mrb[5].mxu0  ;;  %v342_v37 = vadd.f32 %v596_v32, %v117_v26  ;;  %v313_v38 = vpop.f32.mrb[5].mxu1 }
  0xff   :  { %v366_v40 = vld [vmem:[#allocation2 + $0x10] sm:$0xff]  ;;  %v332_v41 = vadd.f32 %v281_v35, %v107_v27  ;;  %v589_v42 = vpop.f32.mrb[6].mxu0  ;;  %v340_v44 = vadd.f32 %v313_v38, %v115_v28  ;;  %v597_v45 = vpop.f32.mrb[6].mxu1 }
 0x100   :  { %v374_v43 = vld [vmem:[#allocation2 + $0x50] sm:$0xff]  ;;  %v389_v46 = vadd.f32 %v751_v29, %v366_v40  ;;  %v364_v47 = vld [vmem:[#allocation2] sm:$0xff]  ;;  %351 = vst.msk [vmem:[#allocation2 + $0x30] sm:$0xff] %vm86_vm0, %v334_v34  ;;  %v335_v48 = vadd.f32 %v589_v42, %v110_v31  ;;  %v284_v49 = vpop.f32.mrb[7].mxu0  ;;  %359 = vst.msk [vmem:[#allocation2 + $0x70] sm:$0xff] %vm86_vm0, %v342_v37  ;;  %v343_v52 = vadd.f32 %v597_v45, %v118_v33  ;;  %v316_v53 = vpop.f32.mrb[7].mxu1 }
 0x101   :  { %v756_v50 = vadd.f32 %v751_v29, %v374_v43  ;;  %v372_v51 = vld [vmem:[#allocation2 + $0x40] sm:$0xff]  ;;  %v387_v54 = vadd.f32 %v751_v29, %v364_v47  ;;  %v367_v55 = vld [vmem:[#allocation2 + $0x18] sm:$0xff]  ;;  %349 = vst.msk [vmem:[#allocation2 + $0x20] sm:$0xff] %vm86_vm0, %v332_v41  ;;  %v333_v56 = vadd.f32 %v284_v49, %v108_v36  ;;  %357 = vst.msk [vmem:[#allocation2 + $0x60] sm:$0xff] %vm86_vm0, %v340_v44 }
 0x102   :  { %v762_v57 = vadd.f32 %v751_v29, %v372_v51  ;;  %v341_v58 = vadd.f32 %v316_v53, %v116_v39  ;;  %405 = vst.msk [vmem:[%s897_s3 + $0x10] sm:$0xff] %vm86_vm0, %v389_v46  ;;  %v390_v59 = vadd.f32 %v751_v29, %v367_v55  ;;  %v365_v60 = vld [vmem:[#allocation2 + $0x8] sm:$0xff]  ;;  %352 = vst.msk [vmem:[#allocation2 + $0x38] sm:$0xff] %vm86_vm0, %v335_v48  ;;  %v375_v63 = vld [vmem:[#allocation2 + $0x58] sm:$0xff]  ;;  %v422_v8 = vsel %vm86_vm0, %v389_v46, 0.0 }
 0x103   :  { %413 = vst.msk [vmem:[%s897_s3 + $0x50] sm:$0xff] %vm86_vm0, %v756_v50  ;;  %360 = vst.msk [vmem:[#allocation2 + $0x78] sm:$0xff] %vm86_vm0, %v343_v52  ;;  %v456_v61 = vmul.f32 %v387_v54, %v387_v54  ;;  %v388_v62 = vadd.f32 %v751_v29, %v365_v60  ;;  %v373_v0 = vld [vmem:[#allocation2 + $0x48] sm:$0xff]  ;;  %v458_v1 = vmul.f32 %v389_v46, %v389_v46  ;;  %v419_v2 = vsel %vm86_vm0, %v387_v54, 0.0 }
 0x104   :  { %403 = vst.msk [vmem:[%s897_s3] sm:$0xff] %vm86_vm0, %v387_v54  ;;  %350 = vst.msk [vmem:[#allocation2 + $0x28] sm:$0xff] %vm86_vm0, %v333_v56  ;;  %v459_v5 = vmul.f32 %v390_v59, %v390_v59  ;;  %v800_v7 = vadd.f32 %v751_v29, %v375_v63  ;;  %v396_v12 = vadd.f32 %v751_v29, %v373_v0  ;;  %v424_v18 = vsel %vm86_vm0, %v390_v59, 0.0 }
 0x105   :  { %411 = vst.msk [vmem:[%s897_s3 + $0x40] sm:$0xff] %vm86_vm0, %v762_v57  ;;  %358 = vst.msk [vmem:[#allocation2 + $0x68] sm:$0xff] %vm86_vm0, %v341_v58  ;;  %v420_v3 = vsel %vm86_vm0, %v388_v62, 0.0  ;;  %v457_v4 = vmul.f32 %v388_v62, %v388_v62  ;;  %v472_v9 = vsel %vm86_vm0, %v456_v61, 0.0  ;;  %v475_v17 = vsel %vm86_vm0, %v458_v1, 0.0 }
 0x106   :  { %406 = vst.msk [vmem:[%s897_s3 + $0x18] sm:$0xff] %vm86_vm0, %v390_v59  ;;  %404 = vst.msk [vmem:[%s897_s3 + $0x8] sm:$0xff] %vm86_vm0, %v388_v62  ;;  %v421_v6 = vadd.f32 %v420_v3, %v419_v2  ;;  %v477_v21 = vsel %vm86_vm0, %v459_v5, 0.0  ;;  %v464_v37 = vmul.f32 %v762_v57, %v762_v57  ;;  %v434_v54 = vsel %vm86_vm0, %v762_v57, 0.0 }
 0x107   :  { %v473_v10 = vsel %vm86_vm0, %v457_v4, 0.0  ;;  %v370_v11 = vld [vmem:[#allocation2 + $0x30] sm:$0xff]  ;;  %414 = vst.msk [vmem:[%s897_s3 + $0x58] sm:$0xff] %vm86_vm0, %v800_v7  ;;  %412 = vst.msk [vmem:[%s897_s3 + $0x48] sm:$0xff] %vm86_vm0, %v396_v12  ;;  %v465_v60 = vmul.f32 %v396_v12, %v396_v12  ;;  %v436_v62 = vsel %vm86_vm0, %v396_v12, 0.0  ;;  %v466_v63 = vmul.f32 %v756_v50, %v756_v50 }
 0x108   :  { %v423_v13 = vadd.f32 %v422_v8, %v421_v6  ;;  %v474_v14 = vadd.f32 %v473_v10, %v472_v9  ;;  %v393_v15 = vadd.f32 %v751_v29, %v370_v11  ;;  %v368_v16 = vld [vmem:[#allocation2 + $0x20] sm:$0xff]  ;;  %v378_v32 = vld [vmem:[#allocation2 + $0x70] sm:$0xff]  ;;  %v487_v59 = vsel %vm86_vm0, %v464_v37, 0.0 }
 0x109   :  { %v391_v19 = vadd.f32 %v751_v29, %v368_v16  ;;  %v371_v20 = vld [vmem:[#allocation2 + $0x38] sm:$0xff]  ;;  %v376_v33 = vld [vmem:[#allocation2 + $0x60] sm:$0xff]  ;;  %v401_v44 = vadd.f32 %v751_v29, %v378_v32  ;;  %v438_v1 = vsel %vm86_vm0, %v756_v50, 0.0  ;;  %v467_v3 = vmul.f32 %v800_v7, %v800_v7 }
 0x10a   :  { %v476_v22 = vadd.f32 %v475_v17, %v474_v14  ;;  %409 = vst.msk [vmem:[%s897_s3 + $0x30] sm:$0xff] %vm86_vm0, %v393_v15  ;;  %v425_v23 = vadd.f32 %v424_v18, %v423_v13  ;;  %v394_v27 = vadd.f32 %v751_v29, %v371_v20  ;;  %v379_v34 = vld [vmem:[#allocation2 + $0x78] sm:$0xff]  ;;  %v462_v39 = vmul.f32 %v393_v15, %v393_v15 }
 0x10b   :  { %v369_v24 = vld [vmem:[#allocation2 + $0x28] sm:$0xff]  ;;  %407 = vst.msk [vmem:[%s897_s3 + $0x20] sm:$0xff] %vm86_vm0, %v391_v19  ;;  %v426_v25 = vsel %vm86_vm0, %v391_v19, 0.0  ;;  %v460_v26 = vmul.f32 %v391_v19, %v391_v19  ;;  %v430_v43 = vsel %vm86_vm0, %v393_v15, 0.0  ;;  %v399_v45 = vadd.f32 %v751_v29, %v376_v33  ;;  %417 = vst.msk [vmem:[%s897_s3 + $0x70] sm:$0xff] %vm86_vm0, %v401_v44 }
 0x10c   :  { %v392_v28 = vadd.f32 %v751_v29, %v369_v24  ;;  %v427_v30 = vadd.f32 %v426_v25, %v425_v23  ;;  %v478_v31 = vadd.f32 %v477_v21, %v476_v22  ;;  %410 = vst.msk [vmem:[%s897_s3 + $0x38] sm:$0xff] %vm86_vm0, %v394_v27  ;;  %v377_v38 = vld [vmem:[#allocation2 + $0x68] sm:$0xff]  ;;  %v402_v46 = vadd.f32 %v751_v29, %v379_v34 }
 0x10d   :  { %v479_v35 = vsel %vm86_vm0, %v460_v26, 0.0  ;;  %v463_v47 = vmul.f32 %v394_v27, %v394_v27  ;;  %v400_v51 = vadd.f32 %v751_v29, %v377_v38  ;;  %v432_v52 = vsel %vm86_vm0, %v394_v27, 0.0  ;;  %415 = vst.msk [vmem:[%s897_s3 + $0x60] sm:$0xff] %vm86_vm0, %v399_v45 }
 0x10e   :  { %408 = vst.msk [vmem:[%s897_s3 + $0x28] sm:$0xff] %vm86_vm0, %v392_v28  ;;  %v428_v36 = vsel %vm86_vm0, %v392_v28, 0.0  ;;  %v480_v40 = vadd.f32 %v479_v35, %v478_v31  ;;  %v461_v42 = vmul.f32 %v392_v28, %v392_v28  ;;  %418 = vst.msk [vmem:[%s897_s3 + $0x78] sm:$0xff] %vm86_vm0, %v402_v46  ;;  %v483_v29 = vsel %vm86_vm0, %v462_v39, 0.0 }
 0x10f   :  { %v429_v41 = vadd.f32 %v428_v36, %v427_v30  ;;  %416 = vst.msk [vmem:[%s897_s3 + $0x68] sm:$0xff] %vm86_vm0, %v400_v51  ;;  %v485_v57 = vsel %vm86_vm0, %v463_v47, 0.0  ;;  %v489_v5 = vsel %vm86_vm0, %v465_v60, 0.0  ;;  %v468_v6 = vmul.f32 %v399_v45, %v399_v45 }
 0x110   :  { %v481_v49 = vsel %vm86_vm0, %v461_v42, 0.0  ;;  %v440_v8 = vsel %vm86_vm0, %v800_v7, 0.0  ;;  %v442_v10 = vsel %vm86_vm0, %v399_v45, 0.0  ;;  %v491_v11 = vsel %vm86_vm0, %v466_v63, 0.0 }
 0x111   :  { %v431_v48 = vadd.f32 %v430_v43, %v429_v41  ;;  %v482_v53 = vadd.f32 %v481_v49, %v480_v40  ;;  %v493_v50 = vsel %vm86_vm0, %v467_v3, 0.0  ;;  %v495_v15 = vsel %vm86_vm0, %v468_v6, 0.0 }
 0x112   :  { %v469_v16 = vmul.f32 %v400_v51, %v400_v51  ;;  %v444_v18 = vsel %vm86_vm0, %v400_v51, 0.0  ;;  %v470_v19 = vmul.f32 %v401_v44, %v401_v44  ;;  %v446_v7 = vsel %vm86_vm0, %v401_v44, 0.0 }
 0x113   :  { %v433_v55 = vadd.f32 %v432_v52, %v431_v48  ;;  %v484_v56 = vadd.f32 %v483_v29, %v482_v53  ;;  %v471_v22 = vmul.f32 %v402_v46, %v402_v46  ;;  %v448_v25 = vsel %vm86_vm0, %v402_v46, 0.0 }
 0x114   :  { %v497_v24 = vsel %vm86_vm0, %v469_v16, 0.0  ;;  %v499_v27 = vsel %vm86_vm0, %v470_v19, 0.0 }
 0x115   :  { %v435_v58 = vadd.f32 %v434_v54, %v433_v55  ;;  %v486_v61 = vadd.f32 %v485_v57, %v484_v56  ;;  %v501_v31 = vsel %vm86_vm0, %v471_v22, 0.0 }
 0x117   :  { %v437_v0 = vadd.f32 %v436_v62, %v435_v58  ;;  %v488_v2 = vadd.f32 %v487_v59, %v486_v61 }
 0x119   :  { %v439_v4 = vadd.f32 %v438_v1, %v437_v0  ;;  %v490_v9 = vadd.f32 %v489_v5, %v488_v2 }
 0x11b   :  { %v441_v12 = vadd.f32 %v440_v8, %v439_v4  ;;  %v492_v13 = vadd.f32 %v491_v11, %v490_v9 }
 0x11d   :  { %v443_v14 = vadd.f32 %v442_v10, %v441_v12  ;;  %v494_v17 = vadd.f32 %v493_v50, %v492_v13 }
 0x11f   :  { %v445_v20 = vadd.f32 %v444_v18, %v443_v14  ;;  %v496_v21 = vadd.f32 %v495_v15, %v494_v17 }
 0x121   :  { %v447_v23 = vadd.f32 %v446_v7, %v445_v20  ;;  %v498_v26 = vadd.f32 %v497_v24, %v496_v21 }
 0x123   :  { %v449_v28 = vadd.f32 %v448_v25, %v447_v23  ;;  %v500_v30 = vadd.f32 %v499_v27, %v498_v26 }
 0x125   :  { %v450_v32 = vrot.slane %v449_v28, 4  ;;  %v502_v33 = vadd.f32 %v501_v31, %v500_v30 }
 0x127   :  { %v451_v34 = vadd.f32 %v450_v32, %v449_v28  ;;  %v503_v35 = vrot.slane %v502_v33, 4 }
 0x129   :  { %v452_v36 = vrot.slane %v451_v34, 2  ;;  %v504_v37 = vadd.f32 %v503_v35, %v502_v33 }
 0x12b   :  { %v453_v38 = vadd.f32 %v452_v36, %v451_v34  ;;  %v505_v39 = vrot.slane %v504_v37, 2 }
 0x12d   :  { %v454_v40 = vrot.slane %v453_v38, 1  ;;  %v506_v41 = vadd.f32 %v505_v39, %v504_v37 }
 0x12f   :  { %v507_v42 = vrot.slane %v506_v41, 1  ;;  %v455_v43 = vadd.f32 %v454_v40, %v453_v38 }
 0x131   :  { %v508_v44 = vadd.f32 %v507_v42, %v506_v41 }
 0x133   :  { %v510_v45 = vsel %vm509_vm2, %v455_v43, %v508_v44 }
 0x134   :  { %516 = vst.msk [vmem:[%s898_s4] sm:$0x3] %vm515_vm3, %v510_v45 }

// kernel: tile.102
= control target key start
LH: loop header
LB: loop body
LE: loop exit
PB: predicated region body
PF: predicated region fallthrough
CT: control target
= control target key end

     0   :  { %s22_s0 = inlined_call_operand.vmem [shape: f32[16], index: 0, kind: input, shape index: {}]   ;;  %s23_s1 = inlined_call_operand.vmem [shape: f32[8,16], index: 1, kind: output, shape index: {}]  }
   0x1   :  { %v4_v0 = vld [vmem:[%s22_s0] ss:$0 sm:$0xff] }
   0x2   :  { %5 = vst [vmem:[%s23_s1] sm:$0xff] %v4_v0 }

// kernel: tile.103
= control target key start
LH: loop header
LB: loop body
LE: loop exit
PB: predicated region body
PF: predicated region fallthrough
CT: control target
= control target key end

     0   :  { %s67_s10 = smov 112   ;;  %s68_s11 = smov 80   ;;  %vm3_vm0 = vcmask 130048   ;;  %vm9_vm1 = vcmask 1048448   ;;  %vm15_vm2 = vcmask 917248   ;;  %vm21_vm3 = vcmask 786048   ;;  %s111_s0 = inlined_call_operand.vmem [shape: f32[8,16], index: 0, kind: input, shape index: {}]   ;;  %s112_s1 = inlined_call_operand.vmem [shape: f32[1,128], index: 1, kind: output, shape index: {}]  }
   0x1   :  { %v53_v0 = vld [vmem:[%s111_s0 + $0x7] sm:$0x1]   ;;  %v55_v1 = vld [vmem:[%s111_s0 + $0x5] sm:$0x1]   ;;  %v54_v2 = vld [vmem:[%s111_s0 + $0x6] sm:$0x1]  }
   0x2   :  { %7 = vrot.lane.b32.xlu0 %v53_v0, %s67_s10  ;;  %19 = vrot.lane.b32.xlu1 %v55_v1, %s68_s11  ;;  %v56_v3 = vld [vmem:[%s111_s0 + $0x4] sm:$0x1]   ;;  %v2_v4 = vld [vmem:[%s111_s0] sm:$0x1]   ;;  %s69_s18 = smov 96   ;;  %s70_s19 = smov 64  }
   0x3   :  { %4 = vst.msk [vmem:[#allocation0] sm:$0x1] %vm3_vm0, %v2_v4   ;;  %v57_v5 = vld [vmem:[%s111_s0 + $0x3] sm:$0x1]   ;;  %v58_v6 = vld [vmem:[%s111_s0 + $0x2] sm:$0x1]  }
   0x4   :  { %s71_s24 = smov 48   ;;  %s72_s25 = smov 32   ;;  %v59_v7 = vld [vmem:[%s111_s0 + $0x1] sm:$0x1]   ;;  %vm27_vm4 = vcmask 654848   ;;  %vm33_vm5 = vcmask 523648  }
   0x5   :  { %s73_s0 = smov 16   ;;  %vm39_vm6 = vcmask 392448   ;;  %vm45_vm7 = vcmask 261248  }
   0x6   :  { %13 = vrot.lane.b32.xlu0 %v54_v2, %s69_s18  ;;  %25 = vrot.lane.b32.xlu1 %v56_v3, %s70_s19 }
   0xa   :  { %31 = vrot.lane.b32.xlu0 %v57_v5, %s71_s24  ;;  %37 = vrot.lane.b32.xlu1 %v58_v6, %s72_s25 }
   0xe   :  { %43 = vrot.lane.b32.xlu0 %v59_v7, %s73_s0 }
  0x74   :  { %v8_v8 = vpop.permute.xlu0 %7   ;;  %v20_v9 = vpop.permute.xlu1 %19  }
  0x75   :  { %10 = vst.msk [vmem:[#allocation0] sm:$0x1] %vm9_vm1, %v8_v8  }
  0x78   :  { %v14_v10 = vpop.permute.xlu0 %13   ;;  %v26_v11 = vpop.permute.xlu1 %25  }
  0x79   :  { %16 = vst.msk [vmem:[#allocation0] sm:$0x1] %vm15_vm2, %v14_v10  }
  0x7a   :  { %22 = vst.msk [vmem:[#allocation0] sm:$0x1] %vm21_vm3, %v20_v9  }
  0x7b   :  { %28 = vst.msk [vmem:[#allocation0] sm:$0x1] %vm27_vm4, %v26_v11  }
  0x7c   :  { %v32_v12 = vpop.permute.xlu0 %31   ;;  %v38_v13 = vpop.permute.xlu1 %37  }
  0x7d   :  { %34 = vst.msk [vmem:[#allocation0] sm:$0x1] %vm33_vm5, %v32_v12  }
  0x7e   :  { %40 = vst.msk [vmem:[#allocation0] sm:$0x1] %vm39_vm6, %v38_v13  }
  0x80   :  { %v44_v14 = vpop.permute.xlu0 %43  }
  0x81   :  { %46 = vst.msk [vmem:[#allocation0] sm:$0x1] %vm45_vm7, %v44_v14  }
  0x88   :  { %v50_v15 = vld [vmem:[#allocation0] sm:$0x1] }
  0x89   :  { %52 = vst [vmem:[%s112_s1] sm:$0x1] %v50_v15 }

// kernel: _lambda_.19
= control target key start
LH: loop header
LB: loop body
LE: loop exit
PB: predicated region body
PF: predicated region fallthrough
CT: control target
= control target key end

     0   :  { %s80_s0 = inlined_call_operand.vmem [shape: f32[16,128], index: 0, kind: input, shape index: {}]   ;;  %s81_s1 = inlined_call_operand.vmem [shape: f32[1,128], index: 1, kind: input, shape index: {}]   ;;  %s82_s2 = inlined_call_operand.vmem [shape: f32[1,128], index: 2, kind: input, shape index: {}]   ;;  %s83_s3 = inlined_call_operand.vmem [shape: f32[16,128], index: 3, kind: output, shape index: {}]  }
   0x1   :  { %v14_v0 = vld [vmem:[%s80_s0] sm:$0xff]  ;;  %v15_v4 = vld [vmem:[%s80_s0 + $0x8] sm:$0xff] }
   0x2   :  { %v40_v1 = vld [vmem:[%s81_s1] ss:$0 sm:$0xff] }
   0x3   :  { %v41_v2 = vld [vmem:[%s82_s2] ss:$0 sm:$0xff]  ;;  %v23_v3 = vmul.f32 %v40_v1, %v14_v0  ;;  %v24_v5 = vmul.f32 %v40_v1, %v15_v4 }
   0x5   :  { %v32_v6 = vadd.f32 %v41_v2, %v23_v3  ;;  %v33_v7 = vadd.f32 %v41_v2, %v24_v5 }
   0x7   :  { %34 = vst [vmem:[%s83_s3] sm:$0xff] %v32_v6  ;;  %35 = vst [vmem:[%s83_s3 + $0x8] sm:$0xff] %v33_v7 }

// kernel: tile.107
= control target key start
LH: loop header
LB: loop body
LE: loop exit
PB: predicated region body
PF: predicated region fallthrough
CT: control target
= control target key end

     0   :  { %s22_s0 = inlined_call_operand.vmem [shape: f32[32], index: 0, kind: input, shape index: {}]   ;;  %s23_s1 = inlined_call_operand.vmem [shape: f32[4,32], index: 1, kind: output, shape index: {}]  }
   0x1   :  { %v4_v0 = vld [vmem:[%s22_s0] ss:$0 sm:$0xff] }
   0x2   :  { %5 = vst [vmem:[%s23_s1] sm:$0xf] %v4_v0 }

// kernel: tile.108
= control target key start
LH: loop header
LB: loop body
LE: loop exit
PB: predicated region body
PF: predicated region fallthrough
CT: control target
= control target key end

     0   :  { %vm7_vm0 = vcmask 261120   ;;  %s37_s8 = smov 32   ;;  %s38_s9 = smov 64   ;;  %vm13_vm1 = vcmask 1048320   ;;  %vm19_vm2 = vcmask 785920   ;;  %vm25_vm3 = vcmask 523520   ;;  %s55_s0 = inlined_call_operand.vmem [shape: f32[4,32], index: 0, kind: input, shape index: {}]   ;;  %s56_s1 = inlined_call_operand.vmem [shape: f32[1,128], index: 1, kind: output, shape index: {}]  }
   0x1   :  { %v4_v0 = vld [vmem:[%s55_s0] sm:$0xf]  ;;  %s36_s0 = smov 96  }
   0x2   :  { %5 = vst [vmem:[#allocation1] sm:$0xf] %v4_v0 }
   0x9   :  { %v10_v1 = vld [vmem:[#allocation1 + $0x3] sm:$0x1]   ;;  %v22_v2 = vld [vmem:[#allocation1 + $0x1] sm:$0x1]   ;;  %v6_v3 = vld [vmem:[#allocation1] sm:$0x1]  }
   0xa   :  { %11 = vrot.lane.b32.xlu0 %v10_v1, %s36_s0  ;;  %23 = vrot.lane.b32.xlu1 %v22_v2, %s37_s8  ;;  %v16_v4 = vld [vmem:[#allocation1 + $0x2] sm:$0x1]   ;;  %8 = vst.msk [vmem:[#allocation0] sm:$0x1] %vm7_vm0, %v6_v3  }
   0xe   :  { %17 = vrot.lane.b32.xlu0 %v16_v4, %s38_s9 }
  0x7c   :  { %v12_v5 = vpop.permute.xlu0 %11   ;;  %v24_v6 = vpop.permute.xlu1 %23  }
  0x7d   :  { %14 = vst.msk [vmem:[#allocation0] sm:$0x1] %vm13_vm1, %v12_v5  }
  0x80   :  { %v18_v7 = vpop.permute.xlu0 %17  }
  0x81   :  { %20 = vst.msk [vmem:[#allocation0] sm:$0x1] %vm19_vm2, %v18_v7  }
  0x82   :  { %26 = vst.msk [vmem:[#allocation0] sm:$0x1] %vm25_vm3, %v24_v6  }
  0x89   :  { %v30_v8 = vld [vmem:[#allocation0] sm:$0x1] }
  0x8a   :  { %32 = vst [vmem:[%s56_s1] sm:$0x1] %v30_v8 }

// kernel: _lambda_.21
= control target key start
LH: loop header
LB: loop body
LE: loop exit
PB: predicated region body
PF: predicated region fallthrough
CT: control target
= control target key end

     0   :  { %s70_s0 = inlined_call_operand.vmem [shape: f32[8,128], index: 0, kind: input, shape index: {}]   ;;  %s71_s1 = inlined_call_operand.vmem [shape: f32[1,128], index: 1, kind: input, shape index: {}]   ;;  %s72_s2 = inlined_call_operand.vmem [shape: f32[1,128], index: 2, kind: input, shape index: {}]   ;;  %s73_s3 = inlined_call_operand.vmem [shape: f32[8,128], index: 3, kind: output, shape index: {}]  }
   0x1   :  { %v14_v0 = vld [vmem:[%s70_s0] sm:$0xff] }
   0x2   :  { %v36_v1 = vld [vmem:[%s71_s1] ss:$0 sm:$0xff] }
   0x3   :  { %v37_v2 = vld [vmem:[%s72_s2] ss:$0 sm:$0xff]  ;;  %v22_v3 = vmul.f32 %v36_v1, %v14_v0 }
   0x5   :  { %v30_v4 = vadd.f32 %v37_v2, %v22_v3 }
   0x7   :  { %31 = vst [vmem:[%s73_s3] sm:$0xff] %v30_v4 }

// kernel: _lambda_.20
= control target key start
LH: loop header
LB: loop body
LE: loop exit
PB: predicated region body
PF: predicated region fallthrough
CT: control target
= control target key end

     0   :  { %vm38_vm4 = vcmask 261120   ;;  %v411_v32 = vmov 0.0   ;;  %vm305_vm5 = vcmask 1040384   ;;  %vm311_vm6 = vcmask 254976   ;;  %s535_s1 = inlined_call_operand.vmem [shape: bf16[256,32], index: 1, kind: input, shape index: {}]   ;;  %s536_s0 = inlined_call_operand.vmem [shape: bf16[32,256], index: 0, kind: input, shape index: {}]   ;;  %s537_s2 = inlined_call_operand.vmem [shape: f32[1,32], index: 2, kind: input, shape index: {}]   ;;  %s538_s3 = inlined_call_operand.vmem [shape: f32[32,32], index: 3, kind: output, shape index: {0}]   ;;  %s539_s4 = inlined_call_operand.vmem [shape: f32[2,32], index: 4, kind: output, shape index: {1}]  }
   0x1   :  { %v395_v0 = vld [vmem:[%s535_s1 + $0x40] sm:$0xff]   ;;  %v397_v2 = vld [vmem:[%s535_s1 + $0x48] sm:$0xff]   ;;  %v399_v4 = vld [vmem:[%s535_s1 + $0x50] sm:$0xff]   ;;  %39 = vst.msk [vmem:[#allocation2] sm:$0xff] %vm38_vm4, %v411_v32 }
   0x2   :  { %v396_v1 = vld [vmem:[%s535_s1] sm:$0xff]   ;;  %350 = vmatprep.subr.bf16.mxu0 %v395_v0  ;;  %378 = vmatprep.subr.bf16.mxu1 %v395_v0  ;;  %v398_v3 = vld [vmem:[%s535_s1 + $0x8] sm:$0xff]   ;;  %v400_v5 = vld [vmem:[%s535_s1 + $0x10] sm:$0xff]   ;;  %40 = vst.msk [vmem:[#allocation2 + $0x8] sm:$0xff] %vm38_vm4, %v411_v32 }
   0x3   :  { %351 = vmatpush3.bf16.msra.mxu0 %v396_v1  ;;  %386 = vmatpush3.bf16.msra.mxu1 %v396_v1  ;;  %v401_v6 = vld [vmem:[%s535_s1 + $0x58] sm:$0xff]   ;;  %v403_v8 = vld [vmem:[%s535_s1 + $0x60] sm:$0xff]   ;;  %v405_v10 = vld [vmem:[%s535_s1 + $0x68] sm:$0xff]   ;;  %41 = vst.msk [vmem:[#allocation2 + $0x10] sm:$0xff] %vm38_vm4, %v411_v32 }
   0x4   :  { %352 = vmatprep.subr.bf16.mxu0 %v397_v2  ;;  %379 = vmatprep.subr.bf16.mxu1 %v397_v2  ;;  %v402_v7 = vld [vmem:[%s535_s1 + $0x18] sm:$0xff]   ;;  %v404_v9 = vld [vmem:[%s535_s1 + $0x20] sm:$0xff]   ;;  %v19_v12 = vld [vmem:[%s536_s0 + $0x8] sm:$0xff]  ;;  %42 = vst.msk [vmem:[#allocation2 + $0x18] sm:$0xff] %vm38_vm4, %v411_v32 }
   0x5   :  { %v18_v11 = vld [vmem:[%s536_s0] sm:$0xff]  ;;  %v20_v13 = vld [vmem:[%s536_s0 + $0x10] sm:$0xff]  ;;  %vm23_vm1 = vcmp.ge.bf16.partialorder %v19_v12, 0  ;;  %v27_v15 = vmul.bf16 1045249613, %v19_v12  ;;  %v21_v16 = vld [vmem:[%s536_s0 + $0x18] sm:$0xff] }
   0x6   :  { %vm22_vm0 = vcmp.ge.bf16.partialorder %v18_v11, 0  ;;  %v26_v14 = vmul.bf16 1045249613, %v18_v11  ;;  %vm24_vm2 = vcmp.ge.bf16.partialorder %v20_v13, 0  ;;  %v28_v17 = vmul.bf16 1045249613, %v20_v13 }
   0x7   :  { %353 = vmatpush3.bf16.msra.mxu0 %v398_v3  ;;  %387 = vmatpush3.bf16.msra.mxu1 %v398_v3  ;;  %v406_v18 = vld [vmem:[%s535_s1 + $0x28] sm:$0xff]   ;;  %v31_v20 = vsel %vm23_vm1, %v19_v12, %v27_v15  ;;  %vm25_vm3 = vcmp.ge.bf16.partialorder %v21_v16, 0  ;;  %v29_v21 = vmul.bf16 1045249613, %v21_v16  ;;  %v407_v22 = vld [vmem:[%s535_s1 + $0x70] sm:$0xff]   ;;  %v409_v28 = vld [vmem:[%s535_s1 + $0x78] sm:$0xff]  }
   0x8   :  { %354 = vmatprep.subr.bf16.mxu0 %v399_v4  ;;  %380 = vmatprep.subr.bf16.mxu1 %v399_v4  ;;  %v30_v19 = vsel %vm22_vm0, %v18_v11, %v26_v14  ;;  %v32_v24 = vsel %vm24_vm2, %v20_v13, %v28_v17  ;;  %v408_v27 = vld [vmem:[%s535_s1 + $0x30] sm:$0xff]   ;;  %v410_v29 = vld [vmem:[%s535_s1 + $0x38] sm:$0xff]   ;;  %v43_v35 = vld [vmem:[#allocation2] sm:$0xff] }
   0x9   :  { %v330_v23 = vcombine.high %v30_v19, %v31_v20  ;;  %v33_v25 = vsel %vm25_vm3, %v21_v16, %v29_v21  ;;  %v329_v30 = vcombine.low %v30_v19, %v31_v20  ;;  %v44_v43 = vld [vmem:[#allocation2 + $0x8] sm:$0xff]  ;;  %v349_v53 = vld [vmem:[%s537_s2] ss:$0 sm:$0xff] }
   0xa   :  { %v332_v26 = vcombine.high %v32_v24, %v33_v25  ;;  %v331_v31 = vcombine.low %v32_v24, %v33_v25  ;;  %v45_v37 = vld [vmem:[#allocation2 + $0x10] sm:$0xff] }
   0xb   :  { %355 = vmatpush3.bf16.msra.mxu0 %v400_v5  ;;  %388 = vmatpush3.bf16.msra.mxu1 %v400_v5  ;;  %v46_v45 = vld [vmem:[#allocation2 + $0x18] sm:$0xff] }
   0xc   :  { %356 = vmatprep.subr.bf16.mxu0 %v401_v6  ;;  %381 = vmatprep.subr.bf16.mxu1 %v401_v6 }
   0xd   :  { %227 = vmatprep.mubr.bf16.mxu0 %v330_v23  ;;  %235 = vmatprep.mubr.bf16.mxu1 %v332_v26 }
   0xf   :  { %357 = vmatpush3.bf16.msra.mxu0 %v402_v7  ;;  %389 = vmatpush3.bf16.msra.mxu1 %v402_v7 }
  0x10   :  { %358 = vmatprep.subr.bf16.mxu0 %v403_v8  ;;  %382 = vmatprep.subr.bf16.mxu1 %v403_v8 }
  0x13   :  { %359 = vmatpush3.bf16.msra.mxu0 %v404_v9  ;;  %390 = vmatpush3.bf16.msra.mxu1 %v404_v9 }
  0x14   :  { %360 = vmatprep.subr.bf16.mxu0 %v405_v10  ;;  %383 = vmatprep.subr.bf16.mxu1 %v405_v10 }
  0x17   :  { %361 = vmatpush3.bf16.msra.mxu0 %v406_v18  ;;  %391 = vmatpush3.bf16.msra.mxu1 %v406_v18 }
  0x18   :  { %362 = vmatprep.subr.bf16.mxu0 %v407_v22  ;;  %384 = vmatprep.subr.bf16.mxu1 %v407_v22 }
  0x1b   :  { %363 = vmatpush3.bf16.msra.mxu0 %v408_v27  ;;  %392 = vmatpush3.bf16.msra.mxu1 %v408_v27 }
  0x1c   :  { %364 = vmatprep.subr.bf16.mxu0 %v409_v28  ;;  %385 = vmatprep.subr.bf16.mxu1 %v409_v28 }
  0x1f   :  { %365 = vmatpush3.bf16.msra.mxu0 %v410_v29  ;;  %393 = vmatpush3.bf16.msra.mxu1 %v410_v29 }
  0x22   :  { %228 = vmatmul.mubr.bf16.vlgmr.msra.gmra.mrb[0].mxu0 %v329_v30  ;;  %236 = vmatmul.mubr.bf16.vlgmr.msra.gmra.mrb[0].mxu1 %v331_v31 }
  0xf5   :  { %v366_v33 = vpop.f32.mrb[0].mxu0  ;;  %v372_v34 = vpop.f32.mrb[0].mxu1 }
  0xf6   :  { %v367_v36 = vpop.f32.mrb[1].mxu0  ;;  %v373_v38 = vpop.f32.mrb[1].mxu1 }
  0xf7   :  { %v368_v39 = vadd.f32 %v367_v36, %v366_v33  ;;  %v369_v40 = vpop.f32.mrb[2].mxu0  ;;  %v374_v41 = vadd.f32 %v373_v38, %v372_v34  ;;  %v375_v42 = vpop.f32.mrb[2].mxu1 }
  0xf8   :  { %v370_v44 = vpop.f32.mrb[3].mxu0  ;;  %v376_v46 = vpop.f32.mrb[3].mxu1 }
  0xf9   :  { %v244_v47 = vadd.f32 %v368_v39, %v43_v35  ;;  %v246_v48 = vadd.f32 %v374_v41, %v45_v37  ;;  %v371_v49 = vadd.f32 %v370_v44, %v369_v40  ;;  %v377_v50 = vadd.f32 %v376_v46, %v375_v42 }
  0xfb   :  { %249 = vst.msk [vmem:[#allocation2] sm:$0xff] %vm38_vm4, %v244_v47  ;;  %251 = vst.msk [vmem:[#allocation2 + $0x10] sm:$0xff] %vm38_vm4, %v246_v48  ;;  %v245_v51 = vadd.f32 %v371_v49, %v44_v43  ;;  %v247_v52 = vadd.f32 %v377_v50, %v46_v45 }
  0xfd   :  { %250 = vst.msk [vmem:[#allocation2 + $0x8] sm:$0xff] %vm38_vm4, %v245_v51  ;;  %252 = vst.msk [vmem:[#allocation2 + $0x18] sm:$0xff] %vm38_vm4, %v247_v52 }
 0x102   :  { %v256_v54 = vld [vmem:[#allocation2] sm:$0xff]  ;;  %v258_v55 = vld [vmem:[#allocation2 + $0x10] sm:$0xff] }
 0x103   :  { %v267_v56 = vadd.f32 %v349_v53, %v256_v54  ;;  %v269_v57 = vadd.f32 %v349_v53, %v258_v55 }
 0x104   :  { %v257_v58 = vld [vmem:[#allocation2 + $0x8] sm:$0xff]  ;;  %v259_v59 = vld [vmem:[#allocation2 + $0x18] sm:$0xff] }
 0x105   :  { %271 = vst.msk [vmem:[%s538_s3] sm:$0xff] %vm38_vm4, %v267_v56  ;;  %273 = vst.msk [vmem:[%s538_s3 + $0x10] sm:$0xff] %vm38_vm4, %v269_v57  ;;  %v288_v60 = vmul.f32 %v267_v56, %v267_v56  ;;  %v290_v61 = vmul.f32 %v269_v57, %v269_v57  ;;  %v268_v62 = vadd.f32 %v349_v53, %v257_v58  ;;  %v275_v0 = vsel %vm38_vm4, %v267_v56, 0.0 }
 0x106   :  { %v270_v63 = vadd.f32 %v349_v53, %v259_v59  ;;  %v278_v1 = vsel %vm38_vm4, %v269_v57, 0.0 }
 0x107   :  { %272 = vst.msk [vmem:[%s538_s3 + $0x8] sm:$0xff] %vm38_vm4, %v268_v62  ;;  %v276_v2 = vsel %vm38_vm4, %v268_v62, 0.0  ;;  %v289_v3 = vmul.f32 %v268_v62, %v268_v62  ;;  %v292_v5 = vsel %vm38_vm4, %v288_v60, 0.0  ;;  %v295_v6 = vsel %vm38_vm4, %v290_v61, 0.0 }
 0x108   :  { %274 = vst.msk [vmem:[%s538_s3 + $0x18] sm:$0xff] %vm38_vm4, %v270_v63  ;;  %v277_v4 = vadd.f32 %v276_v2, %v275_v0  ;;  %v291_v8 = vmul.f32 %v270_v63, %v270_v63  ;;  %v280_v11 = vsel %vm38_vm4, %v270_v63, 0.0 }
 0x109   :  { %v293_v7 = vsel %vm38_vm4, %v289_v3, 0.0 }
 0x10a   :  { %v294_v9 = vadd.f32 %v293_v7, %v292_v5  ;;  %v279_v10 = vadd.f32 %v278_v1, %v277_v4  ;;  %v297_v14 = vsel %vm38_vm4, %v291_v8, 0.0 }
 0x10c   :  { %v281_v12 = vadd.f32 %v280_v11, %v279_v10  ;;  %v296_v13 = vadd.f32 %v295_v6, %v294_v9 }
 0x10e   :  { %v282_v15 = vrot.slane %v281_v12, 4  ;;  %v298_v16 = vadd.f32 %v297_v14, %v296_v13 }
 0x110   :  { %v283_v17 = vadd.f32 %v282_v15, %v281_v12  ;;  %v299_v18 = vrot.slane %v298_v16, 4 }
 0x112   :  { %v284_v19 = vrot.slane %v283_v17, 2  ;;  %v300_v20 = vadd.f32 %v299_v18, %v298_v16 }
 0x114   :  { %v285_v21 = vadd.f32 %v284_v19, %v283_v17  ;;  %v301_v22 = vrot.slane %v300_v20, 2 }
 0x116   :  { %v286_v23 = vrot.slane %v285_v21, 1  ;;  %v302_v24 = vadd.f32 %v301_v22, %v300_v20 }
 0x118   :  { %v303_v25 = vrot.slane %v302_v24, 1  ;;  %v287_v26 = vadd.f32 %v286_v23, %v285_v21 }
 0x11a   :  { %v304_v27 = vadd.f32 %v303_v25, %v302_v24 }
 0x11c   :  { %v306_v28 = vsel %vm305_vm5, %v287_v26, %v304_v27 }
 0x11d   :  { %312 = vst.msk [vmem:[%s539_s4] sm:$0x3] %vm311_vm6, %v306_v28 }

// kernel: tile.117
= control target key start
LH: loop header
LB: loop body
LE: loop exit
PB: predicated region body
PF: predicated region fallthrough
CT: control target
= control target key end

     0   :  { %s22_s0 = inlined_call_operand.vmem [shape: f32[64], index: 0, kind: input, shape index: {}]   ;;  %s23_s1 = inlined_call_operand.vmem [shape: f32[2,64], index: 1, kind: output, shape index: {}]  }
   0x1   :  { %v4_v0 = vld [vmem:[%s22_s0] ss:$0 sm:$0xff] }
   0x2   :  { %5 = vst [vmem:[%s23_s1] sm:$0x3] %v4_v0 }

// kernel: tile.118
= control target key start
LH: loop header
LB: loop body
LE: loop exit
PB: predicated region body
PF: predicated region fallthrough
CT: control target
= control target key end

     0   :  { %vm7_vm0 = vcmask 523264   ;;  %vm13_vm1 = vcmask 1048064   ;;  %s39_s0 = inlined_call_operand.vmem [shape: f32[2,64], index: 0, kind: input, shape index: {}]   ;;  %s40_s1 = inlined_call_operand.vmem [shape: f32[1,128], index: 1, kind: output, shape index: {}]  }
   0x1   :  { %v4_v0 = vld [vmem:[%s39_s0] sm:$0x3]  ;;  %s22_s0 = smov 64  }
   0x2   :  { %5 = vst [vmem:[#allocation1] sm:$0x3] %v4_v0 }
   0x9   :  { %v10_v1 = vld [vmem:[#allocation1 + $0x1] sm:$0x1]   ;;  %v6_v2 = vld [vmem:[#allocation1] sm:$0x1]  }
   0xa   :  { %11 = vrot.lane.b32.xlu0 %v10_v1, %s22_s0  ;;  %8 = vst.msk [vmem:[#allocation0] sm:$0x1] %vm7_vm0, %v6_v2  }
  0x7c   :  { %v12_v3 = vpop.permute.xlu0 %11  }
  0x7d   :  { %14 = vst.msk [vmem:[#allocation0] sm:$0x1] %vm13_vm1, %v12_v3  }
  0x84   :  { %v18_v4 = vld [vmem:[#allocation0] sm:$0x1] }
  0x85   :  { %20 = vst [vmem:[%s40_s1] sm:$0x1] %v18_v4 }

// kernel: _lambda_.23
= control target key start
LH: loop header
LB: loop body
LE: loop exit
PB: predicated region body
PF: predicated region fallthrough
CT: control target
= control target key end

     0   :  { %s70_s0 = inlined_call_operand.vmem [shape: f32[4,128], index: 0, kind: input, shape index: {}]   ;;  %s71_s1 = inlined_call_operand.vmem [shape: f32[1,128], index: 1, kind: input, shape index: {}]   ;;  %s72_s2 = inlined_call_operand.vmem [shape: f32[1,128], index: 2, kind: input, shape index: {}]   ;;  %s73_s3 = inlined_call_operand.vmem [shape: f32[4,128], index: 3, kind: output, shape index: {}]  }
   0x1   :  { %v14_v0 = vld [vmem:[%s70_s0] sm:$0xf] }
   0x2   :  { %v36_v1 = vld [vmem:[%s71_s1] ss:$0 sm:$0xff] }
   0x3   :  { %v37_v2 = vld [vmem:[%s72_s2] ss:$0 sm:$0xff]  ;;  %v22_v3 = vmul.f32 %v36_v1, %v14_v0 }
   0x5   :  { %v30_v4 = vadd.f32 %v37_v2, %v22_v3 }
   0x7   :  { %31 = vst [vmem:[%s73_s3] sm:$0xf] %v30_v4 }

// kernel: _lambda_.22
= control target key start
LH: loop header
LB: loop body
LE: loop exit
PB: predicated region body
PF: predicated region fallthrough
CT: control target
= control target key end

     0   :  { %vm30_vm2 = vcmask 523264   ;;  %v552_v42 = vmov 0.0   ;;  %vm414_vm3 = vcmask 1040384   ;;  %vm420_vm4 = vcmask 517120   ;;  %s694_s1 = inlined_call_operand.vmem [shape: bf16[512,64], index: 1, kind: input, shape index: {}]   ;;  %s695_s0 = inlined_call_operand.vmem [shape: bf16[8,512], index: 0, kind: input, shape index: {}]   ;;  %s696_s2 = inlined_call_operand.vmem [shape: f32[1,64], index: 2, kind: input, shape index: {}]   ;;  %s697_s3 = inlined_call_operand.vmem [shape: f32[8,64], index: 3, kind: output, shape index: {0}]   ;;  %s698_s4 = inlined_call_operand.vmem [shape: f32[2,64], index: 4, kind: output, shape index: {1}]  }
   0x1   :  { %v520_v0 = vld [vmem:[%s694_s1 + $0x40] sm:$0xff]   ;;  %v524_v4 = vld [vmem:[%s694_s1 + $0x48] sm:$0xff]   ;;  %v528_v8 = vld [vmem:[%s694_s1 + $0x50] sm:$0xff]   ;;  %31 = vst.msk [vmem:[#allocation2] sm:$0xff] %vm30_vm2, %v552_v42 }
   0x2   :  { %v521_v1 = vld [vmem:[%s694_s1 + $0xc0] sm:$0xff]   ;;  %475 = vmatprep.subr.bf16.mxu0 %v520_v0  ;;  %v525_v5 = vld [vmem:[%s694_s1 + $0xc8] sm:$0xff]   ;;  %v529_v9 = vld [vmem:[%s694_s1 + $0xd0] sm:$0xff]  }
   0x3   :  { %v522_v2 = vld [vmem:[%s694_s1] sm:$0xff]   ;;  %497 = vmatprep.subr.bf16.mxu1 %v521_v1  ;;  %v526_v6 = vld [vmem:[%s694_s1 + $0x8] sm:$0xff]   ;;  %v530_v10 = vld [vmem:[%s694_s1 + $0x10] sm:$0xff]  }
   0x4   :  { %v523_v3 = vld [vmem:[%s694_s1 + $0x80] sm:$0xff]   ;;  %476 = vmatpush3.bf16.msra.mxu0 %v522_v2  ;;  %v527_v7 = vld [vmem:[%s694_s1 + $0x88] sm:$0xff]   ;;  %v531_v11 = vld [vmem:[%s694_s1 + $0x90] sm:$0xff]  }
   0x5   :  { %498 = vmatpush3.bf16.msra.mxu1 %v523_v3  ;;  %477 = vmatprep.subr.bf16.mxu0 %v524_v4  ;;  %v532_v12 = vld [vmem:[%s694_s1 + $0x58] sm:$0xff]   ;;  %v536_v16 = vld [vmem:[%s694_s1 + $0x60] sm:$0xff]   ;;  %v540_v20 = vld [vmem:[%s694_s1 + $0x68] sm:$0xff]  }
   0x6   :  { %499 = vmatprep.subr.bf16.mxu1 %v525_v5  ;;  %v533_v13 = vld [vmem:[%s694_s1 + $0xd8] sm:$0xff]   ;;  %v537_v17 = vld [vmem:[%s694_s1 + $0xe0] sm:$0xff]   ;;  %v541_v21 = vld [vmem:[%s694_s1 + $0xe8] sm:$0xff]  }
   0x7   :  { %v534_v14 = vld [vmem:[%s694_s1 + $0x18] sm:$0xff]   ;;  %v538_v18 = vld [vmem:[%s694_s1 + $0x20] sm:$0xff]   ;;  %v542_v22 = vld [vmem:[%s694_s1 + $0x28] sm:$0xff]  }
   0x8   :  { %478 = vmatpush3.bf16.msra.mxu0 %v526_v6  ;;  %v535_v15 = vld [vmem:[%s694_s1 + $0x98] sm:$0xff]   ;;  %v539_v19 = vld [vmem:[%s694_s1 + $0xa0] sm:$0xff]   ;;  %v543_v23 = vld [vmem:[%s694_s1 + $0xa8] sm:$0xff]  }
   0x9   :  { %500 = vmatpush3.bf16.msra.mxu1 %v527_v7  ;;  %479 = vmatprep.subr.bf16.mxu0 %v528_v8  ;;  %v544_v24 = vld [vmem:[%s694_s1 + $0x70] sm:$0xff]   ;;  %v548_v28 = vld [vmem:[%s694_s1 + $0x78] sm:$0xff]   ;;  %v18_v32 = vld [vmem:[%s695_s0] sm:$0xff] }
   0xa   :  { %501 = vmatprep.subr.bf16.mxu1 %v529_v9  ;;  %v545_v25 = vld [vmem:[%s694_s1 + $0xf0] sm:$0xff]   ;;  %v549_v29 = vld [vmem:[%s694_s1 + $0xf8] sm:$0xff]   ;;  %v19_v33 = vld [vmem:[%s695_s0 + $0x8] sm:$0xff]  ;;  %vm20_vm0 = vcmp.ge.bf16.partialorder %v18_v32, 0  ;;  %v22_v34 = vmul.bf16 1045249613, %v18_v32 }
   0xb   :  { %v546_v26 = vld [vmem:[%s694_s1 + $0x30] sm:$0xff]   ;;  %v550_v30 = vld [vmem:[%s694_s1 + $0x38] sm:$0xff]   ;;  %vm21_vm1 = vcmp.ge.bf16.partialorder %v19_v33, 0  ;;  %v23_v35 = vmul.bf16 1045249613, %v19_v33  ;;  %v32_v51 = vld [vmem:[#allocation2] sm:$0xff] }
   0xc   :  { %480 = vmatpush3.bf16.msra.mxu0 %v530_v10  ;;  %v547_v27 = vld [vmem:[%s694_s1 + $0xb0] sm:$0xff]   ;;  %v551_v31 = vld [vmem:[%s694_s1 + $0xb8] sm:$0xff]   ;;  %v24_v36 = vsel %vm20_vm0, %v18_v32, %v22_v34  ;;  %v474_v56 = vld [vmem:[%s696_s2] ss:$0 sm:$0xff] }
   0xd   :  { %502 = vmatpush3.bf16.msra.mxu1 %v531_v11  ;;  %481 = vmatprep.subr.bf16.mxu0 %v532_v12  ;;  %v25_v37 = vsel %vm21_vm1, %v19_v33, %v23_v35  ;;  %v438_v38 = vcombine.low %v24_v36, %v24_v36  ;;  %v439_v39 = vcombine.high %v24_v36, %v24_v36 }
   0xe   :  { %503 = vmatprep.subr.bf16.mxu1 %v533_v13  ;;  %v440_v40 = vcombine.low %v25_v37, %v25_v37  ;;  %v441_v41 = vcombine.high %v25_v37, %v25_v37 }
   0xf   :  { %335 = vmatprep.mubr.bf16.mxu0 %v439_v39 }
  0x10   :  { %482 = vmatpush3.bf16.msra.mxu0 %v534_v14  ;;  %375 = vmatprep.mubr.bf16.mxu1 %v441_v41 }
  0x11   :  { %504 = vmatpush3.bf16.msra.mxu1 %v535_v15  ;;  %483 = vmatprep.subr.bf16.mxu0 %v536_v16 }
  0x12   :  { %505 = vmatprep.subr.bf16.mxu1 %v537_v17 }
  0x14   :  { %484 = vmatpush3.bf16.msra.mxu0 %v538_v18 }
  0x15   :  { %506 = vmatpush3.bf16.msra.mxu1 %v539_v19  ;;  %485 = vmatprep.subr.bf16.mxu0 %v540_v20 }
  0x16   :  { %507 = vmatprep.subr.bf16.mxu1 %v541_v21 }
  0x18   :  { %486 = vmatpush3.bf16.msra.mxu0 %v542_v22 }
  0x19   :  { %508 = vmatpush3.bf16.msra.mxu1 %v543_v23  ;;  %487 = vmatprep.subr.bf16.mxu0 %v544_v24 }
  0x1a   :  { %509 = vmatprep.subr.bf16.mxu1 %v545_v25 }
  0x1c   :  { %488 = vmatpush3.bf16.msra.mxu0 %v546_v26 }
  0x1d   :  { %510 = vmatpush3.bf16.msra.mxu1 %v547_v27  ;;  %489 = vmatprep.subr.bf16.mxu0 %v548_v28 }
  0x1e   :  { %511 = vmatprep.subr.bf16.mxu1 %v549_v29 }
  0x20   :  { %490 = vmatpush3.bf16.msra.mxu0 %v550_v30 }
  0x21   :  { %512 = vmatpush3.bf16.msra.mxu1 %v551_v31 }
  0x23   :  { %336 = vmatmul.mubr.bf16.vlgmr.msra.gmra.mrb[0].mxu0 %v438_v38 }
  0x24   :  { %376 = vmatmul.mubr.bf16.vlgmr.msra.gmra.mrb[0].mxu1 %v440_v40 }
  0xf6   :  { %v491_v43 = vpop.f32.mrb[0].mxu0 }
  0xf7   :  { %v513_v44 = vpop.f32.mrb[0].mxu1  ;;  %v492_v45 = vpop.f32.mrb[1].mxu0 }
  0xf8   :  { %v514_v46 = vpop.f32.mrb[1].mxu1  ;;  %v493_v47 = vadd.f32 %v492_v45, %v491_v43  ;;  %v494_v49 = vpop.f32.mrb[2].mxu0 }
  0xf9   :  { %v515_v48 = vadd.f32 %v514_v46, %v513_v44  ;;  %v516_v50 = vpop.f32.mrb[2].mxu1  ;;  %v495_v52 = vpop.f32.mrb[3].mxu0 }
  0xfa   :  { %v517_v53 = vpop.f32.mrb[3].mxu1 }
  0xfb   :  { %v378_v54 = vadd.f32 %v515_v48, %v493_v47 }
  0xfd   :  { %v383_v55 = vadd.f32 %v378_v54, %v32_v51 }
  0xff   :  { %385 = vst.msk [vmem:[#allocation2] sm:$0xff] %vm30_vm2, %v383_v55 }
 0x106   :  { %v389_v57 = vld [vmem:[#allocation2] sm:$0xff] }
 0x107   :  { %v397_v58 = vadd.f32 %v474_v56, %v389_v57 }
 0x109   :  { %398 = vst.msk [vmem:[%s697_s3] sm:$0xff] %vm30_vm2, %v397_v58  ;;  %v399_v59 = vsel %vm30_vm2, %v397_v58, 0.0  ;;  %v406_v60 = vmul.f32 %v397_v58, %v397_v58 }
 0x10a   :  { %v400_v61 = vrot.slane %v399_v59, 4 }
 0x10b   :  { %v407_v62 = vsel %vm30_vm2, %v406_v60, 0.0 }
 0x10c   :  { %v401_v63 = vadd.f32 %v400_v61, %v399_v59  ;;  %v408_v0 = vrot.slane %v407_v62, 4 }
 0x10e   :  { %v402_v1 = vrot.slane %v401_v63, 2  ;;  %v409_v2 = vadd.f32 %v408_v0, %v407_v62 }
 0x110   :  { %v403_v3 = vadd.f32 %v402_v1, %v401_v63  ;;  %v410_v4 = vrot.slane %v409_v2, 2 }
 0x112   :  { %v404_v5 = vrot.slane %v403_v3, 1  ;;  %v411_v6 = vadd.f32 %v410_v4, %v409_v2 }
 0x114   :  { %v412_v7 = vrot.slane %v411_v6, 1  ;;  %v405_v8 = vadd.f32 %v404_v5, %v403_v3 }
 0x116   :  { %v413_v9 = vadd.f32 %v412_v7, %v411_v6 }
 0x118   :  { %v415_v10 = vsel %vm414_vm3, %v405_v8, %v413_v9 }
 0x119   :  { %421 = vst.msk [vmem:[%s698_s4] sm:$0x3] %vm420_vm4, %v415_v10 }

// kernel: tile.93
= control target key start
LH: loop header
LB: loop body
LE: loop exit
PB: predicated region body
PF: predicated region fallthrough
CT: control target
= control target key end

     0   :  { %s26_s0 = inlined_call_operand.<no memory space> [shape: f32[], index: 0, kind: input, shape index: {}]   ;;  %s27_s1 = inlined_call_operand.vmem [shape: f32[1,256], index: 1, kind: output, shape index: {}]  }
   0x1   :  { %v2_v0 = vstv %s26_s0 }
   0x2   :  { %3 = vst [vmem:[%s27_s1] sm:$0x1] %v2_v0  ;;  %6 = vst [vmem:[%s27_s1 + $0x1] sm:$0x1] %v2_v0 }

// kernel: tile.127
= control target key start
LH: loop header
LB: loop body
LE: loop exit
PB: predicated region body
PF: predicated region fallthrough
CT: control target
= control target key end

     0   :  { %s22_s0 = inlined_call_operand.vmem [shape: f32[64], index: 0, kind: input, shape index: {}]   ;;  %s23_s1 = inlined_call_operand.vmem [shape: f32[4,64], index: 1, kind: output, shape index: {}]  }
   0x1   :  { %v4_v0 = vld [vmem:[%s22_s0] ss:$0 sm:$0xff] }
   0x2   :  { %5 = vst [vmem:[%s23_s1] sm:$0xf] %v4_v0 }

// kernel: tile.132
= control target key start
LH: loop header
LB: loop body
LE: loop exit
PB: predicated region body
PF: predicated region fallthrough
CT: control target
= control target key end

     0   :  { %s6_s8 = smov 3  ;;  %vm8_vm0 = vcmask 523264   ;;  %s30_s9 = smov 64   ;;  %vm15_vm1 = vcmask 1048064   ;;  %s50_s0 = inlined_call_operand.vmem [shape: f32[4,64], index: 0, kind: input, shape index: {}]   ;;  %s51_s1 = inlined_call_operand.vmem [shape: f32[1,256], index: 1, kind: output, shape index: {}]  }
   0x1   :  { %v4_v0 = vld [vmem:[%s50_s0] sm:$0xf]  ;;  %s11_s0 = smov 3 }
   0x2   :  { %5 = vst [vmem:[#allocation1] sm:$0xf] %v4_v0 }
   0x9   :  { %v12_v1 = vld [vmem:[#allocation1 + $0x1] ss:$2 sm:%s11_s0]   ;;  %v7_v2 = vld [vmem:[#allocation1] ss:$2 sm:%s6_s8]  }
   0xa   :  { %13 = vrot.lane.b32.xlu0 %v12_v1, %s30_s9  ;;  %9 = vst.msk [vmem:[#allocation0] ss:$8 sm:$0x3] %vm8_vm0, %v7_v2  }
  0x7c   :  { %v14_v3 = vpop.permute.xlu0 %13  }
  0x7d   :  { %16 = vst.msk [vmem:[#allocation0] ss:$8 sm:$0x3] %vm15_vm1, %v14_v3  }
  0x84   :  { %v20_v4 = vld [vmem:[#allocation0] sm:$0x1]  ;;  %v24_v5 = vld [vmem:[#allocation0 + $0x8] sm:$0x1] }
  0x85   :  { %22 = vst [vmem:[%s51_s1] sm:$0x1] %v20_v4  ;;  %28 = vst [vmem:[%s51_s1 + $0x1] sm:$0x1] %v24_v5 }

// kernel: _lambda_.26
= control target key start
LH: loop header
LB: loop body
LE: loop exit
PB: predicated region body
PF: predicated region fallthrough
CT: control target
= control target key end

     0   :  { %v17_v0 = vlaneseq  ;;  %v61_v1 = vmov 1983009808   ;;  %s94_s1 = inlined_call_operand.vmem [shape: f32[1,256], index: 1, kind: input, shape index: {}]   ;;  %s95_s2 = inlined_call_operand.vmem [shape: f32[1,256], index: 2, kind: input, shape index: {}]   ;;  %s96_s0 = inlined_call_operand.vmem [shape: f32[2,256], index: 0, kind: input, shape index: {}]   ;;  %s97_s3 = inlined_call_operand.vmem [shape: f32[2,256], index: 3, kind: output, shape index: {}]  }
   0x1   :  { %v27_v2 = vunpack.c.l.s4 %v61_v1  ;;  %v15_v4 = vld [vmem:[%s94_s1] sm:$0x3] }
   0x2   :  { %v18_v3 = vshrl.u32 %v17_v0, 7  ;;  %v35_v6 = vld [vmem:[%s95_s2] sm:$0x3] }
   0x3   :  { %v28_v5 = vunpack.c.0.s8 %v27_v2  ;;  %v14_v16 = vld [vmem:[%s96_s0] sm:$0xf] }
   0x4   :  { %v19_v7 = vsub.s32 0, %v18_v3  ;;  %v23_v8 = vsub.s32 1, %v18_v3 }
   0x5   :  { %v31_v9 = vsub.s32 %v28_v5, %v18_v3 }
   0x6   :  { %v20_v10 = vrot.slane %v15_v4, %v19_v7  ;;  %v24_v11 = vrot.slane %v15_v4, %v23_v8  ;;  %v40_v12 = vrot.slane %v35_v6, %v19_v7  ;;  %v44_v13 = vrot.slane %v35_v6, %v23_v8 }
   0x8   :  { %v25_v14 = vcombine.low %v20_v10, %v24_v11  ;;  %v45_v15 = vcombine.low %v40_v12, %v44_v13 }
   0xa   :  { %v32_v17 = vrot.slane %v25_v14, %v31_v9  ;;  %v52_v18 = vrot.slane %v45_v15, %v31_v9 }
   0xc   :  { %v34_v19 = vmul.f32 %v32_v17, %v14_v16 }
   0xe   :  { %v54_v20 = vadd.f32 %v52_v18, %v34_v19 }
  0x10   :  { %55 = vst [vmem:[%s97_s3] sm:$0xf] %v54_v20 }

// kernel: _lambda_.24
= control target key start
LH: loop header
LB: loop body
LE: loop exit
PB: predicated region body
PF: predicated region fallthrough
CT: control target
= control target key end

     0   :  { %vm36_vm4 = vcmask 523264   ;;  %s1219_s1 = inlined_call_operand.vmem [shape: bf16[1024,64], index: 1, kind: input, shape index: {}]   ;;  %s1220_s0 = inlined_call_operand.vmem [shape: bf16[8,1024], index: 0, kind: input, shape index: {}]   ;;  %s1221_s2 = inlined_call_operand.vmem [shape: f32[1,64], index: 2, kind: input, shape index: {}]   ;;  %s1222_s3 = inlined_call_operand.vmem [shape: f32[8,64], index: 3, kind: output, shape index: {}]  }
   0x1   :  { %v921_v0 = vld [vmem:[%s1219_s1 + $0x40] sm:$0xff]   ;;  %v925_v4 = vld [vmem:[%s1219_s1 + $0x48] sm:$0xff]   ;;  %v929_v8 = vld [vmem:[%s1219_s1 + $0x50] sm:$0xff]  }
   0x2   :  { %v922_v1 = vld [vmem:[%s1219_s1 + $0xc0] sm:$0xff]   ;;  %832 = vmatprep.subr.bf16.mxu0 %v921_v0  ;;  %v926_v5 = vld [vmem:[%s1219_s1 + $0xc8] sm:$0xff]   ;;  %v930_v9 = vld [vmem:[%s1219_s1 + $0xd0] sm:$0xff]  }
   0x3   :  { %v923_v2 = vld [vmem:[%s1219_s1] sm:$0xff]   ;;  %854 = vmatprep.subr.bf16.mxu1 %v922_v1  ;;  %v927_v6 = vld [vmem:[%s1219_s1 + $0x8] sm:$0xff]   ;;  %v931_v10 = vld [vmem:[%s1219_s1 + $0x10] sm:$0xff]  }
   0x4   :  { %v924_v3 = vld [vmem:[%s1219_s1 + $0x80] sm:$0xff]   ;;  %833 = vmatpush3.bf16.msra.mxu0 %v923_v2  ;;  %v928_v7 = vld [vmem:[%s1219_s1 + $0x88] sm:$0xff]   ;;  %v932_v11 = vld [vmem:[%s1219_s1 + $0x90] sm:$0xff]  }
   0x5   :  { %855 = vmatpush3.bf16.msra.mxu1 %v924_v3  ;;  %834 = vmatprep.subr.bf16.mxu0 %v925_v4  ;;  %v933_v12 = vld [vmem:[%s1219_s1 + $0x58] sm:$0xff]   ;;  %v937_v16 = vld [vmem:[%s1219_s1 + $0x60] sm:$0xff]   ;;  %v941_v20 = vld [vmem:[%s1219_s1 + $0x68] sm:$0xff]  }
   0x6   :  { %856 = vmatprep.subr.bf16.mxu1 %v926_v5  ;;  %v934_v13 = vld [vmem:[%s1219_s1 + $0xd8] sm:$0xff]   ;;  %v938_v17 = vld [vmem:[%s1219_s1 + $0xe0] sm:$0xff]   ;;  %v942_v21 = vld [vmem:[%s1219_s1 + $0xe8] sm:$0xff]  }
   0x7   :  { %v935_v14 = vld [vmem:[%s1219_s1 + $0x18] sm:$0xff]   ;;  %v939_v18 = vld [vmem:[%s1219_s1 + $0x20] sm:$0xff]   ;;  %v943_v22 = vld [vmem:[%s1219_s1 + $0x28] sm:$0xff]  }
   0x8   :  { %835 = vmatpush3.bf16.msra.mxu0 %v927_v6  ;;  %v936_v15 = vld [vmem:[%s1219_s1 + $0x98] sm:$0xff]   ;;  %v940_v19 = vld [vmem:[%s1219_s1 + $0xa0] sm:$0xff]   ;;  %v944_v23 = vld [vmem:[%s1219_s1 + $0xa8] sm:$0xff]  }
   0x9   :  { %857 = vmatpush3.bf16.msra.mxu1 %v928_v7  ;;  %836 = vmatprep.subr.bf16.mxu0 %v929_v8  ;;  %v945_v24 = vld [vmem:[%s1219_s1 + $0x70] sm:$0xff]   ;;  %v949_v28 = vld [vmem:[%s1219_s1 + $0x78] sm:$0xff]   ;;  %v16_v32 = vld [vmem:[%s1220_s0] sm:$0xff] }
   0xa   :  { %858 = vmatprep.subr.bf16.mxu1 %v930_v9  ;;  %v946_v25 = vld [vmem:[%s1219_s1 + $0xf0] sm:$0xff]   ;;  %v950_v29 = vld [vmem:[%s1219_s1 + $0xf8] sm:$0xff]   ;;  %v17_v33 = vld [vmem:[%s1220_s0 + $0x8] sm:$0xff]  ;;  %vm20_vm0 = vcmp.ge.bf16.partialorder %v16_v32, 0  ;;  %v24_v34 = vmul.bf16 1045249613, %v16_v32 }
   0xb   :  { %v947_v26 = vld [vmem:[%s1219_s1 + $0x30] sm:$0xff]   ;;  %v951_v30 = vld [vmem:[%s1219_s1 + $0x38] sm:$0xff]   ;;  %vm21_vm1 = vcmp.ge.bf16.partialorder %v17_v33, 0  ;;  %v25_v35 = vmul.bf16 1045249613, %v17_v33  ;;  %v953_v36 = vld [vmem:[%s1219_s1 + $0x140] sm:$0xff]  }
   0xc   :  { %837 = vmatpush3.bf16.msra.mxu0 %v931_v10  ;;  %v948_v27 = vld [vmem:[%s1219_s1 + $0xb0] sm:$0xff]   ;;  %v952_v31 = vld [vmem:[%s1219_s1 + $0xb8] sm:$0xff]   ;;  %v28_v37 = vsel %vm20_vm0, %v16_v32, %v24_v34  ;;  %v954_v39 = vld [vmem:[%s1219_s1 + $0x1c0] sm:$0xff]  }
   0xd   :  { %859 = vmatpush3.bf16.msra.mxu1 %v932_v11  ;;  %838 = vmatprep.subr.bf16.mxu0 %v933_v12  ;;  %v29_v38 = vsel %vm21_vm1, %v17_v33, %v25_v35  ;;  %v759_v40 = vcombine.low %v28_v37, %v28_v37  ;;  %v760_v41 = vcombine.high %v28_v37, %v28_v37  ;;  %v955_v44 = vld [vmem:[%s1219_s1 + $0x100] sm:$0xff]   ;;  %v957_v46 = vld [vmem:[%s1219_s1 + $0x148] sm:$0xff]   ;;  %v961_v50 = vld [vmem:[%s1219_s1 + $0x150] sm:$0xff]  }
   0xe   :  { %860 = vmatprep.subr.bf16.mxu1 %v934_v13  ;;  %v761_v42 = vcombine.low %v29_v38, %v29_v38  ;;  %v762_v43 = vcombine.high %v29_v38, %v29_v38  ;;  %v956_v45 = vld [vmem:[%s1219_s1 + $0x180] sm:$0xff]   ;;  %v958_v47 = vld [vmem:[%s1219_s1 + $0x1c8] sm:$0xff]   ;;  %v962_v51 = vld [vmem:[%s1219_s1 + $0x1d0] sm:$0xff]  }
   0xf   :  { %611 = vmatprep.mubr.bf16.mxu0 %v760_v41  ;;  %v959_v48 = vld [vmem:[%s1219_s1 + $0x108] sm:$0xff]   ;;  %v963_v52 = vld [vmem:[%s1219_s1 + $0x110] sm:$0xff]   ;;  %v965_v54 = vld [vmem:[%s1219_s1 + $0x158] sm:$0xff]  }
  0x10   :  { %839 = vmatpush3.bf16.msra.mxu0 %v935_v14  ;;  %651 = vmatprep.mubr.bf16.mxu1 %v762_v43  ;;  %v960_v49 = vld [vmem:[%s1219_s1 + $0x188] sm:$0xff]   ;;  %v964_v53 = vld [vmem:[%s1219_s1 + $0x190] sm:$0xff]   ;;  %v966_v55 = vld [vmem:[%s1219_s1 + $0x1d8] sm:$0xff]  }
  0x11   :  { %861 = vmatpush3.bf16.msra.mxu1 %v936_v15  ;;  %840 = vmatprep.subr.bf16.mxu0 %v937_v16  ;;  %v967_v56 = vld [vmem:[%s1219_s1 + $0x118] sm:$0xff]   ;;  %v969_v58 = vld [vmem:[%s1219_s1 + $0x160] sm:$0xff]   ;;  %v973_v62 = vld [vmem:[%s1219_s1 + $0x168] sm:$0xff]  }
  0x12   :  { %862 = vmatprep.subr.bf16.mxu1 %v938_v17  ;;  %v968_v57 = vld [vmem:[%s1219_s1 + $0x198] sm:$0xff]   ;;  %v970_v59 = vld [vmem:[%s1219_s1 + $0x1e0] sm:$0xff]   ;;  %v974_v63 = vld [vmem:[%s1219_s1 + $0x1e8] sm:$0xff]  }
  0x13   :  { %v971_v60 = vld [vmem:[%s1219_s1 + $0x120] sm:$0xff]   ;;  %v975_v0 = vld [vmem:[%s1219_s1 + $0x128] sm:$0xff]   ;;  %v977_v2 = vld [vmem:[%s1219_s1 + $0x170] sm:$0xff]  }
  0x14   :  { %841 = vmatpush3.bf16.msra.mxu0 %v939_v18  ;;  %v972_v61 = vld [vmem:[%s1219_s1 + $0x1a0] sm:$0xff]   ;;  %v976_v1 = vld [vmem:[%s1219_s1 + $0x1a8] sm:$0xff]   ;;  %v978_v3 = vld [vmem:[%s1219_s1 + $0x1f0] sm:$0xff]  }
  0x15   :  { %863 = vmatpush3.bf16.msra.mxu1 %v940_v19  ;;  %842 = vmatprep.subr.bf16.mxu0 %v941_v20  ;;  %v979_v4 = vld [vmem:[%s1219_s1 + $0x130] sm:$0xff]   ;;  %v981_v6 = vld [vmem:[%s1219_s1 + $0x178] sm:$0xff]   ;;  %v985_v20 = vmov 0.0  }
  0x16   :  { %864 = vmatprep.subr.bf16.mxu1 %v942_v21  ;;  %v980_v5 = vld [vmem:[%s1219_s1 + $0x1b0] sm:$0xff]   ;;  %v982_v7 = vld [vmem:[%s1219_s1 + $0x1f8] sm:$0xff]   ;;  %37 = vst.msk [vmem:[#allocation2] sm:$0xff] %vm36_vm4, %v985_v20 }
  0x17   :  { %v983_v8 = vld [vmem:[%s1219_s1 + $0x138] sm:$0xff]   ;;  %v18_v10 = vld [vmem:[%s1220_s0 + $0x10] sm:$0xff] }
  0x18   :  { %843 = vmatpush3.bf16.msra.mxu0 %v943_v22  ;;  %v984_v9 = vld [vmem:[%s1219_s1 + $0x1b8] sm:$0xff]   ;;  %vm22_vm2 = vcmp.ge.bf16.partialorder %v18_v10, 0  ;;  %v26_v11 = vmul.bf16 1045249613, %v18_v10 }
  0x19   :  { %865 = vmatpush3.bf16.msra.mxu1 %v944_v23  ;;  %844 = vmatprep.subr.bf16.mxu0 %v945_v24  ;;  %v19_v12 = vld [vmem:[%s1220_s0 + $0x18] sm:$0xff] }
  0x1a   :  { %866 = vmatprep.subr.bf16.mxu1 %v946_v25  ;;  %vm23_vm3 = vcmp.ge.bf16.partialorder %v19_v12, 0  ;;  %v27_v13 = vmul.bf16 1045249613, %v19_v12  ;;  %v30_v14 = vsel %vm22_vm2, %v18_v10, %v26_v11 }
  0x1b   :  { %v763_v15 = vcombine.low %v30_v14, %v30_v14  ;;  %v764_v16 = vcombine.high %v30_v14, %v30_v14 }
  0x1c   :  { %845 = vmatpush3.bf16.msra.mxu0 %v947_v26  ;;  %v31_v17 = vsel %vm23_vm3, %v19_v12, %v27_v13 }
  0x1d   :  { %867 = vmatpush3.bf16.msra.mxu1 %v948_v27  ;;  %846 = vmatprep.subr.bf16.mxu0 %v949_v28  ;;  %v765_v18 = vcombine.low %v31_v17, %v31_v17  ;;  %v766_v19 = vcombine.high %v31_v17, %v31_v17  ;;  %v38_v43 = vld [vmem:[#allocation2] sm:$0xff] }
  0x1e   :  { %868 = vmatprep.subr.bf16.mxu1 %v950_v29 }
  0x20   :  { %847 = vmatpush3.bf16.msra.mxu0 %v951_v30 }
  0x21   :  { %869 = vmatpush3.bf16.msra.mxu1 %v952_v31  ;;  %876 = vmatprep.subr.bf16.mxu0 %v953_v36 }
  0x22   :  { %898 = vmatprep.subr.bf16.mxu1 %v954_v39 }
  0x23   :  { %612 = vmatmul.mubr.bf16.vlgmr.msra.gmra.mrb[0].mxu0 %v759_v40 }
  0x24   :  { %652 = vmatmul.mubr.bf16.vlgmr.msra.gmra.mrb[0].mxu1 %v761_v42  ;;  %877 = vmatpush3.bf16.msra.mxu0 %v955_v44 }
  0x25   :  { %899 = vmatpush3.bf16.msra.mxu1 %v956_v45  ;;  %878 = vmatprep.subr.bf16.mxu0 %v957_v46  ;;  %v831_v46 = vld [vmem:[%s1221_s2] ss:$0 sm:$0xff] }
  0x26   :  { %900 = vmatprep.subr.bf16.mxu1 %v958_v47  ;;  %691 = vmatprep.mubr.bf16.mxu0 %v764_v16 }
  0x27   :  { %731 = vmatprep.mubr.bf16.mxu1 %v766_v19 }
  0x28   :  { %879 = vmatpush3.bf16.msra.mxu0 %v959_v48 }
  0x29   :  { %901 = vmatpush3.bf16.msra.mxu1 %v960_v49  ;;  %880 = vmatprep.subr.bf16.mxu0 %v961_v50 }
  0x2a   :  { %902 = vmatprep.subr.bf16.mxu1 %v962_v51 }
  0x2c   :  { %881 = vmatpush3.bf16.msra.mxu0 %v963_v52 }
  0x2d   :  { %903 = vmatpush3.bf16.msra.mxu1 %v964_v53  ;;  %882 = vmatprep.subr.bf16.mxu0 %v965_v54 }
  0x2e   :  { %904 = vmatprep.subr.bf16.mxu1 %v966_v55 }
  0x30   :  { %883 = vmatpush3.bf16.msra.mxu0 %v967_v56 }
  0x31   :  { %905 = vmatpush3.bf16.msra.mxu1 %v968_v57  ;;  %884 = vmatprep.subr.bf16.mxu0 %v969_v58 }
  0x32   :  { %906 = vmatprep.subr.bf16.mxu1 %v970_v59 }
  0x34   :  { %885 = vmatpush3.bf16.msra.mxu0 %v971_v60 }
  0x35   :  { %907 = vmatpush3.bf16.msra.mxu1 %v972_v61  ;;  %886 = vmatprep.subr.bf16.mxu0 %v973_v62 }
  0x36   :  { %908 = vmatprep.subr.bf16.mxu1 %v974_v63 }
  0x38   :  { %887 = vmatpush3.bf16.msra.mxu0 %v975_v0 }
  0x39   :  { %909 = vmatpush3.bf16.msra.mxu1 %v976_v1  ;;  %888 = vmatprep.subr.bf16.mxu0 %v977_v2 }
  0x3a   :  { %910 = vmatprep.subr.bf16.mxu1 %v978_v3 }
  0x3c   :  { %889 = vmatpush3.bf16.msra.mxu0 %v979_v4 }
  0x3d   :  { %911 = vmatpush3.bf16.msra.mxu1 %v980_v5  ;;  %890 = vmatprep.subr.bf16.mxu0 %v981_v6 }
  0x3e   :  { %912 = vmatprep.subr.bf16.mxu1 %v982_v7 }
  0x40   :  { %891 = vmatpush3.bf16.msra.mxu0 %v983_v8 }
  0x41   :  { %913 = vmatpush3.bf16.msra.mxu1 %v984_v9 }
  0x43   :  { %692 = vmatmul.mubr.bf16.vlgmr.msra.gmra.mrb[4].mxu0 %v763_v15 }
  0x44   :  { %732 = vmatmul.mubr.bf16.vlgmr.msra.gmra.mrb[4].mxu1 %v765_v18 }
  0xf6   :  { %v848_v21 = vpop.f32.mrb[0].mxu0 }
  0xf7   :  { %v870_v22 = vpop.f32.mrb[0].mxu1  ;;  %v849_v23 = vpop.f32.mrb[1].mxu0 }
  0xf8   :  { %v871_v24 = vpop.f32.mrb[1].mxu1  ;;  %v850_v25 = vadd.f32 %v849_v23, %v848_v21  ;;  %v851_v27 = vpop.f32.mrb[2].mxu0 }
  0xf9   :  { %v872_v26 = vadd.f32 %v871_v24, %v870_v22  ;;  %v873_v28 = vpop.f32.mrb[2].mxu1  ;;  %v852_v29 = vpop.f32.mrb[3].mxu0 }
  0xfa   :  { %v874_v30 = vpop.f32.mrb[3].mxu1 }
  0xfb   :  { %v654_v31 = vadd.f32 %v872_v26, %v850_v25 }
 0x116   :  { %v892_v32 = vpop.f32.mrb[4].mxu0 }
 0x117   :  { %v914_v33 = vpop.f32.mrb[4].mxu1  ;;  %v893_v34 = vpop.f32.mrb[5].mxu0 }
 0x118   :  { %v894_v35 = vadd.f32 %v893_v34, %v892_v32  ;;  %v915_v36 = vpop.f32.mrb[5].mxu1  ;;  %v895_v37 = vpop.f32.mrb[6].mxu0 }
 0x119   :  { %v916_v38 = vadd.f32 %v915_v36, %v914_v33  ;;  %v917_v39 = vpop.f32.mrb[6].mxu1  ;;  %v896_v40 = vpop.f32.mrb[7].mxu0 }
 0x11a   :  { %v694_v41 = vadd.f32 %v894_v35, %v654_v31  ;;  %v918_v42 = vpop.f32.mrb[7].mxu1 }
 0x11c   :  { %v734_v44 = vadd.f32 %v916_v38, %v694_v41 }
 0x11e   :  { %v739_v45 = vadd.f32 %v734_v44, %v38_v43 }
 0x120   :  { %741 = vst.msk [vmem:[#allocation2] sm:$0xff] %vm36_vm4, %v739_v45 }
 0x127   :  { %v745_v47 = vld [vmem:[#allocation2] sm:$0xff] }
 0x128   :  { %v753_v48 = vadd.f32 %v831_v46, %v745_v47 }
 0x12a   :  { %754 = vst.msk [vmem:[%s1222_s3] sm:$0xff] %vm36_vm4, %v753_v48 }

// kernel: _lambda_.25
= control target key start
LH: loop header
LB: loop body
LE: loop exit
PB: predicated region body
PF: predicated region fallthrough
CT: control target
= control target key end

     0   :  { %v891_v48 = vmov 0   ;;  %vm480_vm0 = vcmask 523264   ;;  %vm658_vm1 = vcmask 1040384   ;;  %s1158_s1 = inlined_call_operand.vmem [shape: bf16[576,256], index: 1, kind: input, shape index: {}]   ;;  %s1159_s0 = inlined_call_operand.vmem [shape: bf16[8,576], index: 0, kind: input, shape index: {}]   ;;  %s1160_s2 = inlined_call_operand.vmem [shape: f32[1,256], index: 2, kind: input, shape index: {}]   ;;  %s1161_s3 = inlined_call_operand.vmem [shape: f32[8,256], index: 3, kind: output, shape index: {0}]   ;;  %s1162_s4 = inlined_call_operand.vmem [shape: f32[2,256], index: 4, kind: output, shape index: {1}]  }
   0x1   :  { %v783_v0 = vld [vmem:[%s1158_s1 + $0x4] ss:$8 sps:$4 sm:$0xff]   ;;  %v787_v2 = vld [vmem:[%s1158_s1] ss:$8 sps:$4 sm:$0xff]   ;;  %v789_v4 = vld [vmem:[%s1158_s1 + $0x14] ss:$8 sps:$4 sm:$0xff]  }
   0x2   :  { %v785_v1 = vld [vmem:[%s1158_s1 + $0x104] ss:$8 sps:$4 sm:$0xff]   ;;  %484 = vmatprep.subr.bf16.mxu0 %v783_v0  ;;  %v788_v3 = vld [vmem:[%s1158_s1 + $0x100] ss:$8 sps:$4 sm:$0xff]   ;;  %v791_v5 = vld [vmem:[%s1158_s1 + $0x114] ss:$8 sps:$4 sm:$0xff]  }
   0x3   :  { %525 = vmatprep.subr.bf16.mxu1 %v785_v1  ;;  %485 = vmatpush1.bf16.msra.mxu0 %v787_v2  ;;  %v793_v6 = vld [vmem:[%s1158_s1 + $0x10] ss:$8 sps:$4 sm:$0xff]   ;;  %v795_v8 = vld [vmem:[%s1158_s1 + $0x24] ss:$8 sps:$4 sm:$0xff]   ;;  %v799_v10 = vld [vmem:[%s1158_s1 + $0x20] ss:$8 sps:$4 sm:$0xff]  }
   0x4   :  { %526 = vmatpush1.bf16.msra.mxu1 %v788_v3  ;;  %486 = vmatprep.subr.bf16.mxu0 %v789_v4  ;;  %v794_v7 = vld [vmem:[%s1158_s1 + $0x110] ss:$8 sps:$4 sm:$0xff]   ;;  %v797_v9 = vld [vmem:[%s1158_s1 + $0x124] ss:$8 sps:$4 sm:$0xff]   ;;  %v800_v11 = vld [vmem:[%s1158_s1 + $0x120] ss:$8 sps:$4 sm:$0xff]  }
   0x5   :  { %527 = vmatprep.subr.bf16.mxu1 %v791_v5  ;;  %v801_v12 = vld [vmem:[%s1158_s1 + $0x34] ss:$8 sps:$4 sm:$0xff]   ;;  %v805_v14 = vld [vmem:[%s1158_s1 + $0x30] ss:$8 sps:$4 sm:$0xff]   ;;  %v807_v16 = vld [vmem:[%s1158_s1 + $0x44] ss:$8 sps:$4 sm:$0xff]  }
   0x6   :  { %v803_v13 = vld [vmem:[%s1158_s1 + $0x134] ss:$8 sps:$4 sm:$0xff]   ;;  %v806_v15 = vld [vmem:[%s1158_s1 + $0x130] ss:$8 sps:$4 sm:$0xff]   ;;  %v809_v17 = vld [vmem:[%s1158_s1 + $0x144] ss:$8 sps:$4 sm:$0xff]  }
   0x7   :  { %487 = vmatpush1.bf16.msra.mxu0 %v793_v6  ;;  %v811_v18 = vld [vmem:[%s1158_s1 + $0x40] ss:$8 sps:$4 sm:$0xff]   ;;  %v813_v20 = vld [vmem:[%s1158_s1 + $0x54] ss:$8 sps:$4 sm:$0xff]   ;;  %v817_v22 = vld [vmem:[%s1158_s1 + $0x50] ss:$8 sps:$4 sm:$0xff]  }
   0x8   :  { %528 = vmatpush1.bf16.msra.mxu1 %v794_v7  ;;  %488 = vmatprep.subr.bf16.mxu0 %v795_v8  ;;  %v812_v19 = vld [vmem:[%s1158_s1 + $0x140] ss:$8 sps:$4 sm:$0xff]   ;;  %v815_v21 = vld [vmem:[%s1158_s1 + $0x154] ss:$8 sps:$4 sm:$0xff]   ;;  %v818_v23 = vld [vmem:[%s1158_s1 + $0x150] ss:$8 sps:$4 sm:$0xff]  }
   0x9   :  { %529 = vmatprep.subr.bf16.mxu1 %v797_v9  ;;  %v819_v24 = vld [vmem:[%s1158_s1 + $0x64] ss:$8 sps:$4 sm:$0xff]   ;;  %v823_v26 = vld [vmem:[%s1158_s1 + $0x60] ss:$8 sps:$4 sm:$0xff]   ;;  %v825_v28 = vld [vmem:[%s1158_s1 + $0x74] ss:$8 sps:$4 sm:$0xff]  }
   0xa   :  { %v821_v25 = vld [vmem:[%s1158_s1 + $0x164] ss:$8 sps:$4 sm:$0xff]   ;;  %v824_v27 = vld [vmem:[%s1158_s1 + $0x160] ss:$8 sps:$4 sm:$0xff]   ;;  %v827_v29 = vld [vmem:[%s1158_s1 + $0x174] ss:$8 sps:$4 sm:$0xff]  }
   0xb   :  { %489 = vmatpush1.bf16.msra.mxu0 %v799_v10  ;;  %v829_v30 = vld [vmem:[%s1158_s1 + $0x70] ss:$8 sps:$4 sm:$0xff]   ;;  %v831_v32 = vld [vmem:[%s1158_s1 + $0x84] ss:$8 sps:$4 sm:$0xff]   ;;  %v835_v34 = vld [vmem:[%s1158_s1 + $0x80] ss:$8 sps:$4 sm:$0xff]  }
   0xc   :  { %530 = vmatpush1.bf16.msra.mxu1 %v800_v11  ;;  %490 = vmatprep.subr.bf16.mxu0 %v801_v12  ;;  %v830_v31 = vld [vmem:[%s1158_s1 + $0x170] ss:$8 sps:$4 sm:$0xff]   ;;  %v833_v33 = vld [vmem:[%s1158_s1 + $0x184] ss:$8 sps:$4 sm:$0xff]   ;;  %v836_v35 = vld [vmem:[%s1158_s1 + $0x180] ss:$8 sps:$4 sm:$0xff]  }
   0xd   :  { %531 = vmatprep.subr.bf16.mxu1 %v803_v13  ;;  %v837_v36 = vld [vmem:[%s1158_s1 + $0x94] ss:$8 sps:$4 sm:$0xff]   ;;  %v841_v38 = vld [vmem:[%s1158_s1 + $0x90] ss:$8 sps:$4 sm:$0xff]   ;;  %v843_v40 = vld [vmem:[%s1158_s1 + $0xa4] ss:$8 sps:$4 sm:$0xff]  }
   0xe   :  { %v839_v37 = vld [vmem:[%s1158_s1 + $0x194] ss:$8 sps:$4 sm:$0xff]   ;;  %v842_v39 = vld [vmem:[%s1158_s1 + $0x190] ss:$8 sps:$4 sm:$0xff]   ;;  %v845_v41 = vld [vmem:[%s1158_s1 + $0x1a4] ss:$8 sps:$4 sm:$0xff]  }
   0xf   :  { %491 = vmatpush1.bf16.msra.mxu0 %v805_v14  ;;  %v847_v42 = vld [vmem:[%s1158_s1 + $0xa0] ss:$8 sps:$4 sm:$0xff]   ;;  %v849_v44 = vld [vmem:[%s1158_s1 + $0xb4] ss:$8 sps:$4 sm:$0xff]   ;;  %v853_v47 = vld [vmem:[%s1158_s1 + $0xb0] ss:$8 sps:$4 sm:$0xff]  }
  0x10   :  { %532 = vmatpush1.bf16.msra.mxu1 %v806_v15  ;;  %492 = vmatprep.subr.bf16.mxu0 %v807_v16  ;;  %v848_v43 = vld [vmem:[%s1158_s1 + $0x1a0] ss:$8 sps:$4 sm:$0xff]   ;;  %v851_v45 = vld [vmem:[%s1158_s1 + $0x1b4] ss:$8 sps:$4 sm:$0xff]   ;;  %v854_v51 = vld [vmem:[%s1158_s1 + $0x1b0] ss:$8 sps:$4 sm:$0xff]  }
  0x11   :  { %533 = vmatprep.subr.bf16.mxu1 %v809_v17  ;;  %v17_v46 = vld [vmem:[%s1159_s0] sm:$0xff]  ;;  %v18_v50 = vld [vmem:[%s1159_s0 + $0x8] sm:$0xff]  ;;  %v861_v59 = vld [vmem:[%s1158_s1 + $0xd4] ss:$8 sps:$4 sm:$0xff]  }
  0x12   :  { %v20_v49 = vmax.bf16 %v891_v48, %v17_v46  ;;  %v855_v52 = vld [vmem:[%s1158_s1 + $0xc4] ss:$8 sps:$4 sm:$0xff]   ;;  %v21_v53 = vmax.bf16 %v891_v48, %v18_v50  ;;  %v859_v57 = vld [vmem:[%s1158_s1 + $0xc0] ss:$8 sps:$4 sm:$0xff]   ;;  %v863_v60 = vld [vmem:[%s1158_s1 + $0x1d4] ss:$8 sps:$4 sm:$0xff]  }
  0x13   :  { %493 = vmatpush1.bf16.msra.mxu0 %v811_v18  ;;  %v857_v54 = vld [vmem:[%s1158_s1 + $0x1c4] ss:$8 sps:$4 sm:$0xff]   ;;  %v860_v58 = vld [vmem:[%s1158_s1 + $0x1c0] ss:$8 sps:$4 sm:$0xff]   ;;  %v865_v61 = vld [vmem:[%s1158_s1 + $0xd0] ss:$8 sps:$4 sm:$0xff]  }
  0x14   :  { %534 = vmatpush1.bf16.msra.mxu1 %v812_v19  ;;  %494 = vmatprep.subr.bf16.mxu0 %v813_v20  ;;  %v704_v55 = vcombine.high %v20_v49, %v20_v49  ;;  %v706_v56 = vcombine.high %v21_v53, %v21_v53  ;;  %v866_v62 = vld [vmem:[%s1158_s1 + $0x1d0] ss:$8 sps:$4 sm:$0xff]   ;;  %v867_v63 = vld [vmem:[%s1158_s1 + $0xe4] ss:$8 sps:$4 sm:$0xff]   ;;  %v871_v1 = vld [vmem:[%s1158_s1 + $0xe0] ss:$8 sps:$4 sm:$0xff]   ;;  %v703_v8 = vcombine.low %v20_v49, %v20_v49 }
  0x15   :  { %535 = vmatprep.subr.bf16.mxu1 %v815_v21  ;;  %v869_v0 = vld [vmem:[%s1158_s1 + $0x1e4] ss:$8 sps:$4 sm:$0xff]   ;;  %v872_v2 = vld [vmem:[%s1158_s1 + $0x1e0] ss:$8 sps:$4 sm:$0xff]   ;;  %v873_v3 = vld [vmem:[%s1158_s1 + $0xf4] ss:$8 sps:$4 sm:$0xff]   ;;  %v705_v9 = vcombine.low %v21_v53, %v21_v53 }
  0x16   :  { %516 = vmatprep.mubr.bf16.mxu0 %v704_v55  ;;  %557 = vmatprep.mubr.bf16.mxu1 %v706_v56  ;;  %v875_v4 = vld [vmem:[%s1158_s1 + $0x1f4] ss:$8 sps:$4 sm:$0xff]   ;;  %v877_v5 = vld [vmem:[%s1158_s1 + $0xf0] ss:$8 sps:$4 sm:$0xff]   ;;  %v881_v7 = vld [vmem:[%s1158_s1 + $0x204] ss:$8 sps:$4 sm:$0xff]  }
  0x17   :  { %495 = vmatpush1.bf16.msra.mxu0 %v817_v22  ;;  %v878_v6 = vld [vmem:[%s1158_s1 + $0x1f0] ss:$8 sps:$4 sm:$0xff]   ;;  %v879_v10 = vld [vmem:[%s1158_s1 + $0x200] ss:$8 sps:$4 sm:$0xff]   ;;  %v884_v11 = vld [vmem:[%s1158_s1 + $0x214] ss:$8 sps:$4 sm:$0xff]  }
  0x18   :  { %536 = vmatpush1.bf16.msra.mxu1 %v818_v23  ;;  %496 = vmatprep.subr.bf16.mxu0 %v819_v24  ;;  %v882_v12 = vld [vmem:[%s1158_s1 + $0x210] ss:$8 sps:$4 sm:$0xff]   ;;  %v887_v13 = vld [vmem:[%s1158_s1 + $0x224] ss:$8 sps:$4 sm:$0xff]   ;;  %v885_v15 = vld [vmem:[%s1158_s1 + $0x220] ss:$8 sps:$4 sm:$0xff]  }
  0x19   :  { %537 = vmatprep.subr.bf16.mxu1 %v821_v25  ;;  %v19_v14 = vld [vmem:[%s1159_s0 + $0x10] sm:$0xf]  ;;  %v890_v16 = vld [vmem:[%s1158_s1 + $0x234] ss:$8 sps:$4 sm:$0xff]  }
  0x1a   :  { %v22_v17 = vmax.bf16 %v891_v48, %v19_v14  ;;  %v888_v18 = vld [vmem:[%s1158_s1 + $0x230] ss:$8 sps:$4 sm:$0xff]  }
  0x1b   :  { %497 = vmatpush1.bf16.msra.mxu0 %v823_v26 }
  0x1c   :  { %538 = vmatpush1.bf16.msra.mxu1 %v824_v27  ;;  %498 = vmatprep.subr.bf16.mxu0 %v825_v28  ;;  %v707_v19 = vcombine.low %v22_v17, %v22_v17 }
  0x1d   :  { %539 = vmatprep.subr.bf16.mxu1 %v827_v29 }
  0x1f   :  { %499 = vmatpush1.bf16.msra.mxu0 %v829_v30  ;;  %v618_v30 = vlaneseq }
  0x20   :  { %540 = vmatpush1.bf16.msra.mxu1 %v830_v31  ;;  %500 = vmatprep.subr.bf16.mxu0 %v831_v32 }
  0x21   :  { %541 = vmatprep.subr.bf16.mxu1 %v833_v33  ;;  %v619_v31 = vshrl.u32 %v618_v30, 7  ;;  %v616_v33 = vld [vmem:[%s1160_s2] sm:$0x3] }
  0x23   :  { %501 = vmatpush1.bf16.msra.mxu0 %v835_v34  ;;  %v620_v32 = vsub.s32 0, %v619_v31  ;;  %v624_v34 = vsub.s32 1, %v619_v31 }
  0x24   :  { %542 = vmatpush1.bf16.msra.mxu1 %v836_v35  ;;  %502 = vmatprep.subr.bf16.mxu0 %v837_v36 }
  0x25   :  { %543 = vmatprep.subr.bf16.mxu1 %v839_v37  ;;  %v621_v35 = vrot.slane %v616_v33, %v620_v32  ;;  %v625_v37 = vrot.slane %v616_v33, %v624_v34 }
  0x27   :  { %503 = vmatpush1.bf16.msra.mxu0 %v841_v38 }
  0x28   :  { %544 = vmatpush1.bf16.msra.mxu1 %v842_v39  ;;  %504 = vmatprep.subr.bf16.mxu0 %v843_v40 }
  0x29   :  { %545 = vmatprep.subr.bf16.mxu1 %v845_v41 }
  0x2b   :  { %505 = vmatpush1.bf16.msra.mxu0 %v847_v42 }
  0x2c   :  { %546 = vmatpush1.bf16.msra.mxu1 %v848_v43  ;;  %506 = vmatprep.subr.bf16.mxu0 %v849_v44 }
  0x2d   :  { %547 = vmatprep.subr.bf16.mxu1 %v851_v45 }
  0x2f   :  { %507 = vmatpush1.bf16.msra.mxu0 %v853_v47 }
  0x30   :  { %548 = vmatpush1.bf16.msra.mxu1 %v854_v51  ;;  %508 = vmatprep.subr.bf16.mxu0 %v855_v52 }
  0x31   :  { %549 = vmatprep.subr.bf16.mxu1 %v857_v54 }
  0x33   :  { %509 = vmatpush1.bf16.msra.mxu0 %v859_v57 }
  0x34   :  { %550 = vmatpush1.bf16.msra.mxu1 %v860_v58  ;;  %510 = vmatprep.subr.bf16.mxu0 %v861_v59 }
  0x35   :  { %551 = vmatprep.subr.bf16.mxu1 %v863_v60 }
  0x37   :  { %511 = vmatpush1.bf16.msra.mxu0 %v865_v61 }
  0x38   :  { %552 = vmatpush1.bf16.msra.mxu1 %v866_v62  ;;  %512 = vmatprep.subr.bf16.mxu0 %v867_v63 }
  0x39   :  { %553 = vmatprep.subr.bf16.mxu1 %v869_v0 }
  0x3b   :  { %513 = vmatpush1.bf16.msra.mxu0 %v871_v1 }
  0x3c   :  { %554 = vmatpush1.bf16.msra.mxu1 %v872_v2  ;;  %514 = vmatprep.subr.bf16.mxu0 %v873_v3 }
  0x3d   :  { %555 = vmatprep.subr.bf16.mxu1 %v875_v4 }
  0x3f   :  { %515 = vmatpush1.bf16.msra.mxu0 %v877_v5 }
  0x40   :  { %556 = vmatpush1.bf16.msra.mxu1 %v878_v6  ;;  %566 = vmatprep.subr.bf16.mxu0 %v881_v7 }
  0x42   :  { %517 = vmatmul.mubr.bf16.vlgmr.msra.gmra.mrb[0].mxu0 %v703_v8 }
  0x43   :  { %558 = vmatmul.mubr.bf16.vlgmr.msra.gmra.mrb[0].mxu1 %v705_v9  ;;  %567 = vmatpush1.bf16.msra.mxu0 %v879_v10 }
  0x44   :  { %598 = vmatprep.mubr.bf16.mxu0 %v891_v48  ;;  %568 = vmatprep.subr.bf16.mxu0 %v884_v11 }
  0x47   :  { %569 = vmatpush1.bf16.msra.mxu0 %v882_v12 }
  0x48   :  { %570 = vmatprep.subr.bf16.mxu0 %v887_v13 }
  0x4b   :  { %571 = vmatpush1.bf16.msra.mxu0 %v885_v15 }
  0x4c   :  { %572 = vmatprep.subr.bf16.mxu0 %v890_v16 }
  0x4f   :  { %573 = vmatpush1.bf16.msra.mxu0 %v888_v18 }
  0x52   :  { %780 = vmatmul.mubr.msk.bf16.vlgmr.msra.gmra.mrb[4].mxu0 %vm480_vm0, %v707_v19 }
 0x115   :  { %v518_v20 = vpop.f32.mrb[0].mxu0 }
 0x116   :  { %v559_v21 = vpop.f32.mrb[0].mxu1  ;;  %v520_v23 = vpop.f32.mrb[1].mxu0 }
 0x117   :  { %v560_v22 = vadd.f32 %v559_v21, %v518_v20  ;;  %v561_v24 = vpop.f32.mrb[1].mxu1  ;;  %v522_v26 = vpop.f32.mrb[2].mxu0 }
 0x118   :  { %v562_v25 = vadd.f32 %v561_v24, %v520_v23  ;;  %v563_v27 = vpop.f32.mrb[2].mxu1  ;;  %v523_v28 = vpop.f32.mrb[3].mxu0 }
 0x119   :  { %v564_v29 = vpop.f32.mrb[3].mxu1 }
 0x125   :  { %v600_v36 = vpop.f32.mrb[4].mxu0 }
 0x126   :  { %v601_v38 = vadd.f32 %v600_v36, %v560_v22  ;;  %v602_v39 = vpop.f32.mrb[5].mxu0 }
 0x127   :  { %v603_v40 = vadd.f32 %v602_v39, %v562_v25  ;;  %v604_v41 = vpop.f32.mrb[6].mxu0 }
 0x128   :  { %v628_v42 = vadd.f32 %v621_v35, %v601_v38  ;;  %v605_v43 = vpop.f32.mrb[7].mxu0 }
 0x129   :  { %v629_v44 = vadd.f32 %v625_v37, %v603_v40 }
 0x12a   :  { %630 = vst [vmem:[%s1161_s3] sm:$0xff] %v628_v42  ;;  %v632_v45 = vrot.slane %v628_v42, 4  ;;  %v644_v46 = vmul.f32 %v628_v42, %v628_v42 }
 0x12b   :  { %631 = vst [vmem:[%s1161_s3 + $0x8] sm:$0xff] %v629_v44  ;;  %v638_v47 = vrot.slane %v629_v44, 4  ;;  %v645_v48 = vmul.f32 %v629_v44, %v629_v44 }
 0x12c   :  { %v633_v49 = vadd.f32 %v632_v45, %v628_v42  ;;  %v646_v50 = vrot.slane %v644_v46, 4 }
 0x12d   :  { %v639_v51 = vadd.f32 %v638_v47, %v629_v44  ;;  %v652_v52 = vrot.slane %v645_v48, 4 }
 0x12e   :  { %v634_v53 = vrot.slane %v633_v49, 2  ;;  %v647_v54 = vadd.f32 %v646_v50, %v644_v46 }
 0x12f   :  { %v640_v55 = vrot.slane %v639_v51, 2  ;;  %v653_v56 = vadd.f32 %v652_v52, %v645_v48 }
 0x130   :  { %v635_v57 = vadd.f32 %v634_v53, %v633_v49  ;;  %v648_v58 = vrot.slane %v647_v54, 2 }
 0x131   :  { %v641_v59 = vadd.f32 %v640_v55, %v639_v51  ;;  %v654_v60 = vrot.slane %v653_v56, 2 }
 0x132   :  { %v636_v61 = vrot.slane %v635_v57, 1  ;;  %v649_v62 = vadd.f32 %v648_v58, %v647_v54 }
 0x133   :  { %v642_v63 = vrot.slane %v641_v59, 1  ;;  %v655_v0 = vadd.f32 %v654_v60, %v653_v56 }
 0x134   :  { %v650_v1 = vrot.slane %v649_v62, 1  ;;  %v637_v3 = vadd.f32 %v636_v61, %v635_v57 }
 0x135   :  { %v656_v2 = vrot.slane %v655_v0, 1  ;;  %v643_v5 = vadd.f32 %v642_v63, %v641_v59 }
 0x136   :  { %v651_v4 = vadd.f32 %v650_v1, %v649_v62 }
 0x137   :  { %v657_v6 = vadd.f32 %v656_v2, %v655_v0 }
 0x138   :  { %v659_v7 = vsel %vm658_vm1, %v637_v3, %v651_v4 }
 0x139   :  { %v660_v8 = vsel %vm658_vm1, %v643_v5, %v657_v6 }
 0x13a   :  { %v667_v9 = vcombine.low %v659_v7, %v660_v8 }
 0x13c   :  { %781 = vst.sshfl [vmem:[%s1162_s4] sm:$0x33 pattern:$0x76325410] %v667_v9 }

// kernel: tile.92
= control target key start
LH: loop header
LB: loop body
LE: loop exit
PB: predicated region body
PF: predicated region fallthrough
CT: control target
= control target key end

     0   :  { %s20_s0 = inlined_call_operand.<no memory space> [shape: f32[], index: 0, kind: input, shape index: {}]   ;;  %s21_s1 = inlined_call_operand.vmem [shape: f32[1,128], index: 1, kind: output, shape index: {}]  }
   0x1   :  { %v2_v0 = vstv %s20_s0 }
   0x2   :  { %3 = vst [vmem:[%s21_s1] sm:$0x1] %v2_v0 }

// kernel: _lambda_.27
= control target key start
LH: loop header
LB: loop body
LE: loop exit
PB: predicated region body
PF: predicated region fallthrough
CT: control target
= control target key end

     0   :  { %s859_s15 = smov 0   ;;  %s861_s16 = smov 0   ;;  %s943_s0 = inlined_call_operand.vmem [shape: bf16[8,1152], index: 0, kind: input, shape index: {}]   ;;  %s944_s1 = inlined_call_operand.vmem [shape: bf16[1152,128], index: 1, kind: input, shape index: {}]   ;;  %s945_s2 = inlined_call_operand.vmem [shape: f32[1,128], index: 2, kind: input, shape index: {}]   ;;  %s946_s3 = inlined_call_operand.vmem [shape: f32[8,128], index: 3, kind: output, shape index: {0}]   ;;  %s947_s4 = inlined_call_operand.vmem [shape: f32[2,128], index: 4, kind: output, shape index: {1}]  }
   0x1   :  { %s863_s17 = smov 0  }
   0x2 LB: > { %s24_s18 = sadd.s32 1, %s824_s16  ;;  %p667_p0 = scmp.ge.s32.totalorder %s828_s17, 1  ;;  %s828_s17 = sphi %s863_s17, %s15_s17   ;;  %s824_s16 = sphi %s861_s16, %s949_s16   ;;  %s820_s15 = sphi %s859_s15, %s948_s15  }
   0x3   : > { %p25_p1 = scmp.ge.s32.totalorder %s24_s18, 3  ;;  %p190_p2 = scmp.lt.s32.totalorder %s828_s17, 4 }
   0x5   : > { %s951_s18 = smov (%p25_p1, %s24_s18), 0  ;;  %p191_p3 = pnand %p667_p0, %p190_p2 }
   0x6   : > { %s224_s19 = smul.u32 (!%p191_p3), 3, %s820_s15  ;;  %v830_v2 = vmov (!%p191_p3), 0   ;;  %p670_p6 = scmp.ne.s32.totalorder (!%p191_p3), %s820_s15, 0 }
   0x7   : > { %194 = sbr.rel (%p191_p3) target bundleno = 302 (0x12e), region = 32 }
   0x8   : > { %s234_s20 = smul.u32 (!%p191_p3), 48, %s820_s15  ;;  %p227_p4 = scmp.lt.s32.totalorder (!%p191_p3), %s224_s19, 8 }
   0xa   : > { %p235_p5 = scmp.lt.s32.totalorder (!%p191_p3), %s234_s20, 143 }
   0xe   : > { %s953_s19 = smov (!%p227_p4, %s224_s19), 8  ;;  %s955_s20 = smov (!%p235_p5, %s234_s20), 143 }
   0xf   : > { %s668_s21 = sshll.u32 %s953_s19, 2  ;;  %s669_s25 = sshll.u32 %s955_s20, 2  ;;  %v831_v5 = vmov (!%p670_p6), 0.0  }
  0x10   : > { %s232_s24 = scalar_lea.vmem %s943_s0, %s668_s21  ;;  %s887_s28 = scalar_lea.vmem %s944_s1, %s669_s25  ;;  %253 = vst [vmem:[#allocation2] sm:$0xff] (!%p670_p6), %v831_v5 }
  0x11   : > { %v245_v0 = vld [vmem:[%s232_s24] sm:$0xff]  ;;  %v246_v1 = vld [vmem:[%s232_s24 + $0x8] sm:$0xf]  ;;  %252 = sbr.rel (%p670_p6) target bundleno = 24 (0x18), region = 36 }
  0x12   : > { %v889_v3 = vmax.bf16 %v830_v2, %v245_v0  ;;  %v891_v4 = vmax.bf16 %v830_v2, %v246_v1 }
  0x18 PF: > { %v782_v6 = vld [vmem:[%s887_s28 + $0x40] sm:$0xff]   ;;  %v672_v7 = vcombine.high %v889_v3, %v889_v3  ;;  %v832_v8 = vmov 0.0   ;;  %v785_v11 = vld [vmem:[%s887_s28 + $0x48] sm:$0xff]   ;;  %vm833_vm0 = vmmov 0   ;;  %v788_v14 = vld [vmem:[%s887_s28 + $0x50] sm:$0xff]   ;;  %v671_v32 = vcombine.low %v889_v3, %v889_v3  ;;  %p698_p7 = scmp.ne.s32.totalorder %s820_s15, 2 }
  0x19   : > { %734 = vmatprep.subr.bf16.mxu1 %v832_v8  ;;  %v783_v9 = vld [vmem:[%s887_s28] sm:$0xff]   ;;  %703 = vmatprep.subr.bf16.mxu0 %v782_v6  ;;  %v786_v12 = vld [vmem:[%s887_s28 + $0x8] sm:$0xff]   ;;  %v789_v15 = vld [vmem:[%s887_s28 + $0x10] sm:$0xff]   ;;  %v673_v33 = vcombine.low %v891_v4, %v891_v4  ;;  %vm567_vm1 = vcmask (!%p698_p7), 1040384  }
  0x1a   : > { %v784_v10 = vld [vmem:[%s887_s28 + $0x80] sm:$0xff]   ;;  %490 = vmatprep.mubr.bf16.mxu0 %v672_v7  ;;  %704 = vmatpush3.bf16.msra.mxu0 %v783_v9  ;;  %v787_v13 = vld [vmem:[%s887_s28 + $0x88] sm:$0xff]   ;;  %v790_v16 = vld [vmem:[%s887_s28 + $0x90] sm:$0xff]  }
  0x1b   : > { %750 = vmatprep.mubr.msk.bf16.mxu1 %vm833_vm0, %v832_v8  ;;  %735 = vmatpush3.bf16.msra.mxu1 %v784_v10  ;;  %v791_v17 = vld [vmem:[%s887_s28 + $0x58] sm:$0xff]   ;;  %v794_v20 = vld [vmem:[%s887_s28 + $0x60] sm:$0xff]   ;;  %v797_v23 = vld [vmem:[%s887_s28 + $0x68] sm:$0xff]  }
  0x1c   : > { %705 = vmatprep.subr.bf16.mxu0 %v785_v11  ;;  %736 = vmatprep.subr.bf16.mxu1 %v832_v8  ;;  %v792_v18 = vld [vmem:[%s887_s28 + $0x18] sm:$0xff]   ;;  %v795_v21 = vld [vmem:[%s887_s28 + $0x20] sm:$0xff]   ;;  %v798_v24 = vld [vmem:[%s887_s28 + $0x28] sm:$0xff]  }
  0x1d   : > { %v793_v19 = vld [vmem:[%s887_s28 + $0x98] sm:$0xff]   ;;  %v796_v22 = vld [vmem:[%s887_s28 + $0xa0] sm:$0xff]   ;;  %v799_v25 = vld [vmem:[%s887_s28 + $0xa8] sm:$0xff]  }
  0x1e   : > { %706 = vmatpush3.bf16.msra.mxu0 %v786_v12  ;;  %v800_v26 = vld [vmem:[%s887_s28 + $0x70] sm:$0xff]   ;;  %v803_v29 = vld [vmem:[%s887_s28 + $0x78] sm:$0xff]   ;;  %v254_v40 = vld [vmem:[#allocation2] sm:$0xff] }
  0x1f   : > { %737 = vmatpush3.bf16.msra.mxu1 %v787_v13  ;;  %707 = vmatprep.subr.bf16.mxu0 %v788_v14  ;;  %v801_v27 = vld [vmem:[%s887_s28 + $0x30] sm:$0xff]   ;;  %v804_v30 = vld [vmem:[%s887_s28 + $0x38] sm:$0xff]   ;;  %v699_v47 = vld [vmem:[%s945_s2] ss:$0 sm:$0xff] (!%p698_p7) }
  0x20   : > { %738 = vmatprep.subr.bf16.mxu1 %v832_v8  ;;  %v802_v28 = vld [vmem:[%s887_s28 + $0xb0] sm:$0xff]   ;;  %v805_v31 = vld [vmem:[%s887_s28 + $0xb8] sm:$0xff]  }
  0x22   : > { %708 = vmatpush3.bf16.msra.mxu0 %v789_v15 }
  0x23   : > { %739 = vmatpush3.bf16.msra.mxu1 %v790_v16  ;;  %709 = vmatprep.subr.bf16.mxu0 %v791_v17 }
  0x24   : > { %740 = vmatprep.subr.bf16.mxu1 %v832_v8 }
  0x26   : > { %710 = vmatpush3.bf16.msra.mxu0 %v792_v18 }
  0x27   : > { %741 = vmatpush3.bf16.msra.mxu1 %v793_v19  ;;  %711 = vmatprep.subr.bf16.mxu0 %v794_v20 }
  0x28   : > { %742 = vmatprep.subr.bf16.mxu1 %v832_v8 }
  0x2a   : > { %712 = vmatpush3.bf16.msra.mxu0 %v795_v21 }
  0x2b   : > { %743 = vmatpush3.bf16.msra.mxu1 %v796_v22  ;;  %713 = vmatprep.subr.bf16.mxu0 %v797_v23 }
  0x2c   : > { %744 = vmatprep.subr.bf16.mxu1 %v832_v8 }
  0x2e   : > { %714 = vmatpush3.bf16.msra.mxu0 %v798_v24 }
  0x2f   : > { %745 = vmatpush3.bf16.msra.mxu1 %v799_v25  ;;  %715 = vmatprep.subr.bf16.mxu0 %v800_v26 }
  0x30   : > { %746 = vmatprep.subr.bf16.mxu1 %v832_v8 }
  0x32   : > { %716 = vmatpush3.bf16.msra.mxu0 %v801_v27 }
  0x33   : > { %747 = vmatpush3.bf16.msra.mxu1 %v802_v28  ;;  %717 = vmatprep.subr.bf16.mxu0 %v803_v29 }
  0x34   : > { %748 = vmatprep.subr.bf16.mxu1 %v832_v8 }
  0x36   : > { %718 = vmatpush3.bf16.msra.mxu0 %v804_v30 }
  0x37   : > { %749 = vmatpush3.bf16.msra.mxu1 %v805_v31 }
  0x39   : > { %491 = vmatmul.mubr.bf16.vlgmr.msra.gmra.mrb[0].mxu0 %v671_v32 }
  0x3a   : > { %751 = vmatmul.mubr.bf16.vlgmr.msra.gmra.mrb[0].mxu1 %v673_v33 }
 0x10c   : > { %v719_v34 = vpop.f32.mrb[0].mxu0 }
 0x10d   : > { %v532_v35 = vpop.f32.mrb[0].mxu1  ;;  %v720_v36 = vpop.f32.mrb[1].mxu0 }
 0x10e   : > { %v721_v37 = vadd.f32 %v720_v36, %v719_v34  ;;  %v752_v38 = vpop.f32.mrb[1].mxu1  ;;  %v722_v39 = vpop.f32.mrb[2].mxu0  ;;  %543 = sbr.rel (%p698_p7) target bundleno = 302 (0x12e), region = 40 }
 0x10f   : > { %v535_v41 = vpop.f32.mrb[2].mxu1  ;;  %v723_v42 = vpop.f32.mrb[3].mxu0 }
 0x110   : > { %v533_v43 = vadd.f32 %v721_v37, %v532_v35  ;;  %v753_v44 = vpop.f32.mrb[3].mxu1 }
 0x112   : > { %v538_v45 = vadd.f32 %v533_v43, %v254_v40 }
 0x114   : > { %539 = vst [vmem:[#allocation2] sm:$0xff] %v538_v45 }
 0x11b   : > { %v544_v46 = vld [vmem:[#allocation2] sm:$0xff] }
 0x11c   : > { %v552_v48 = vadd.f32 %v699_v47, %v544_v46 }
 0x11e   : > { %553 = vst [vmem:[%s946_s3] sm:$0xff] %v552_v48  ;;  %v554_v49 = vrot.slane %v552_v48, 4  ;;  %v560_v50 = vmul.f32 %v552_v48, %v552_v48 }
 0x120   : > { %v555_v51 = vadd.f32 %v554_v49, %v552_v48  ;;  %v561_v52 = vrot.slane %v560_v50, 4 }
 0x122   : > { %v556_v53 = vrot.slane %v555_v51, 2  ;;  %v562_v54 = vadd.f32 %v561_v52, %v560_v50 }
 0x124   : > { %v557_v55 = vadd.f32 %v556_v53, %v555_v51  ;;  %v563_v56 = vrot.slane %v562_v54, 2 }
 0x126   : > { %v558_v57 = vrot.slane %v557_v55, 1  ;;  %v564_v58 = vadd.f32 %v563_v56, %v562_v54 }
 0x128   : > { %v559_v59 = vadd.f32 %v558_v57, %v557_v55  ;;  %v565_v60 = vrot.slane %v564_v58, 1 }
 0x12a   : > { %v566_v61 = vadd.f32 %v565_v60, %v564_v58 }
 0x12c   : > { %v568_v62 = vsel %vm567_vm1, %v559_v59, %v566_v61 }
 0x12d   : > { %573 = vst [vmem:[%s947_s4] sm:$0x3] %v568_v62 }
 0x12e PF: > { %s15_s17 = sadd.s32 1, %s828_s17   ;;  %s948_s15 = smov %s824_s16 }
 0x12f   : > { %p12_p8 = scmp.ge.s32.totalorder %s15_s17, 5   ;;  %s949_s16 = smov %s951_s18 }
 0x131   :  { %14 = sbr.rel (!%p12_p8) target bundleno = 2 (0x2), region = 89 }

// kernel: tile.147
= control target key start
LH: loop header
LB: loop body
LE: loop exit
PB: predicated region body
PF: predicated region fallthrough
CT: control target
= control target key end

     0   :  { %s22_s0 = inlined_call_operand.vmem [shape: f32[16], index: 0, kind: input, shape index: {}]   ;;  %s23_s1 = inlined_call_operand.vmem [shape: f32[4,16], index: 1, kind: output, shape index: {}]  }
   0x1   :  { %v4_v0 = vld [vmem:[%s22_s0] ss:$0 sm:$0xff] }
   0x2   :  { %5 = vst [vmem:[%s23_s1] sm:$0xf] %v4_v0 }

// kernel: tile.154
= control target key start
LH: loop header
LB: loop body
LE: loop exit
PB: predicated region body
PF: predicated region fallthrough
CT: control target
= control target key end

     0   :  { %vm7_vm0 = vcmask 130048   ;;  %s37_s8 = smov 16   ;;  %s38_s9 = smov 32   ;;  %vm13_vm1 = vcmask 523648   ;;  %vm19_vm2 = vcmask 392448   ;;  %vm25_vm3 = vcmask 261248   ;;  %s55_s0 = inlined_call_operand.vmem [shape: f32[4,16], index: 0, kind: input, shape index: {}]   ;;  %s56_s1 = inlined_call_operand.vmem [shape: f32[64], index: 1, kind: output, shape index: {}]  }
   0x1   :  { %v4_v0 = vld [vmem:[%s55_s0] sm:$0xf]  ;;  %s36_s0 = smov 48  }
   0x2   :  { %5 = vst [vmem:[#allocation1] sm:$0xf] %v4_v0 }
   0x9   :  { %v10_v1 = vld [vmem:[#allocation1 + $0x3] sm:$0x1]   ;;  %v22_v2 = vld [vmem:[#allocation1 + $0x1] sm:$0x1]   ;;  %v6_v3 = vld [vmem:[#allocation1] sm:$0x1]  }
   0xa   :  { %11 = vrot.lane.b32.xlu0 %v10_v1, %s36_s0  ;;  %23 = vrot.lane.b32.xlu1 %v22_v2, %s37_s8  ;;  %v16_v4 = vld [vmem:[#allocation1 + $0x2] sm:$0x1]   ;;  %8 = vst.msk [vmem:[#allocation0] sm:$0x1] %vm7_vm0, %v6_v3  }
   0xe   :  { %17 = vrot.lane.b32.xlu0 %v16_v4, %s38_s9 }
  0x7c   :  { %v12_v5 = vpop.permute.xlu0 %11   ;;  %v24_v6 = vpop.permute.xlu1 %23  }
  0x7d   :  { %14 = vst.msk [vmem:[#allocation0] sm:$0x1] %vm13_vm1, %v12_v5  }
  0x80   :  { %v18_v7 = vpop.permute.xlu0 %17  }
  0x81   :  { %20 = vst.msk [vmem:[#allocation0] sm:$0x1] %vm19_vm2, %v18_v7  }
  0x82   :  { %26 = vst.msk [vmem:[#allocation0] sm:$0x1] %vm25_vm3, %v24_v6  }
  0x89   :  { %v30_v8 = vld [vmem:[#allocation0] sm:$0x1] }
  0x8a   :  { %32 = vst [vmem:[%s56_s1] sm:$0x1] %v30_v8 }

// kernel: _lambda_.29
= control target key start
LH: loop header
LB: loop body
LE: loop exit
PB: predicated region body
PF: predicated region fallthrough
CT: control target
= control target key end

     0   :  { %v791_v35 = vmov 0   ;;  %vm45_vm0 = vcmask 523264   ;;  %vm606_vm1 = vcmask 1040384   ;;  %vm612_vm2 = vcmask 517120   ;;  %s1002_s1 = inlined_call_operand.vmem [shape: bf16[576,64], index: 1, kind: input, shape index: {}]   ;;  %s1003_s0 = inlined_call_operand.vmem [shape: bf16[32,576], index: 0, kind: input, shape index: {}]   ;;  %s1004_s2 = inlined_call_operand.vmem [shape: f32[1,64], index: 2, kind: input, shape index: {}]   ;;  %s1005_s3 = inlined_call_operand.vmem [shape: f32[32,64], index: 3, kind: output, shape index: {0}]   ;;  %s1006_s4 = inlined_call_operand.vmem [shape: f32[2,64], index: 4, kind: output, shape index: {1}]  }
   0x1   :  { %v755_v0 = vld [vmem:[%s1002_s1 + $0x40] sm:$0xff]   ;;  %v759_v4 = vld [vmem:[%s1002_s1 + $0x48] sm:$0xff]   ;;  %v763_v8 = vld [vmem:[%s1002_s1 + $0x50] sm:$0xff]  }
   0x2   :  { %v756_v1 = vld [vmem:[%s1002_s1 + $0xc0] sm:$0xff]   ;;  %679 = vmatprep.subr.bf16.mxu0 %v755_v0  ;;  %v760_v5 = vld [vmem:[%s1002_s1 + $0xc8] sm:$0xff]   ;;  %v764_v9 = vld [vmem:[%s1002_s1 + $0xd0] sm:$0xff]  }
   0x3   :  { %v757_v2 = vld [vmem:[%s1002_s1] sm:$0xff]   ;;  %707 = vmatprep.subr.bf16.mxu1 %v756_v1  ;;  %v761_v6 = vld [vmem:[%s1002_s1 + $0x8] sm:$0xff]   ;;  %v765_v10 = vld [vmem:[%s1002_s1 + $0x10] sm:$0xff]  }
   0x4   :  { %v758_v3 = vld [vmem:[%s1002_s1 + $0x80] sm:$0xff]   ;;  %680 = vmatpush3.bf16.msra.mxu0 %v757_v2  ;;  %v762_v7 = vld [vmem:[%s1002_s1 + $0x88] sm:$0xff]   ;;  %v766_v11 = vld [vmem:[%s1002_s1 + $0x90] sm:$0xff]  }
   0x5   :  { %708 = vmatpush3.bf16.msra.mxu1 %v758_v3  ;;  %681 = vmatprep.subr.bf16.mxu0 %v759_v4  ;;  %v767_v12 = vld [vmem:[%s1002_s1 + $0x58] sm:$0xff]   ;;  %v771_v16 = vld [vmem:[%s1002_s1 + $0x60] sm:$0xff]   ;;  %v775_v20 = vld [vmem:[%s1002_s1 + $0x68] sm:$0xff]  }
   0x6   :  { %709 = vmatprep.subr.bf16.mxu1 %v760_v5  ;;  %v768_v13 = vld [vmem:[%s1002_s1 + $0xd8] sm:$0xff]   ;;  %v772_v17 = vld [vmem:[%s1002_s1 + $0xe0] sm:$0xff]   ;;  %v776_v21 = vld [vmem:[%s1002_s1 + $0xe8] sm:$0xff]  }
   0x7   :  { %v769_v14 = vld [vmem:[%s1002_s1 + $0x18] sm:$0xff]   ;;  %v773_v18 = vld [vmem:[%s1002_s1 + $0x20] sm:$0xff]   ;;  %v777_v22 = vld [vmem:[%s1002_s1 + $0x28] sm:$0xff]  }
   0x8   :  { %682 = vmatpush3.bf16.msra.mxu0 %v761_v6  ;;  %v770_v15 = vld [vmem:[%s1002_s1 + $0x98] sm:$0xff]   ;;  %v774_v19 = vld [vmem:[%s1002_s1 + $0xa0] sm:$0xff]   ;;  %v778_v23 = vld [vmem:[%s1002_s1 + $0xa8] sm:$0xff]  }
   0x9   :  { %710 = vmatpush3.bf16.msra.mxu1 %v762_v7  ;;  %683 = vmatprep.subr.bf16.mxu0 %v763_v8  ;;  %v779_v24 = vld [vmem:[%s1002_s1 + $0x70] sm:$0xff]   ;;  %v783_v28 = vld [vmem:[%s1002_s1 + $0x78] sm:$0xff]   ;;  %v17_v32 = vld [vmem:[%s1003_s0] sm:$0xff]  ;;  %v792_v7 = vmov 0.0  }
   0xa   :  { %711 = vmatprep.subr.bf16.mxu1 %v764_v9  ;;  %v780_v25 = vld [vmem:[%s1002_s1 + $0xf0] sm:$0xff]   ;;  %v784_v29 = vld [vmem:[%s1002_s1 + $0xf8] sm:$0xff]   ;;  %v18_v34 = vld [vmem:[%s1003_s0 + $0x8] sm:$0xff]  ;;  %v29_v36 = vmax.bf16 %v791_v35, %v17_v32  ;;  %48 = vst.msk [vmem:[#allocation2 + $0x10] sm:$0xff] %vm45_vm0, %v792_v7 }
   0xb   :  { %v781_v26 = vld [vmem:[%s1002_s1 + $0x30] sm:$0xff]   ;;  %v785_v30 = vld [vmem:[%s1002_s1 + $0x38] sm:$0xff]   ;;  %v30_v39 = vmax.bf16 %v791_v35, %v18_v34  ;;  %v787_v41 = vld [vmem:[%s1002_s1 + $0x100] sm:$0xff]   ;;  %46 = vst.msk [vmem:[#allocation2] sm:$0xff] %vm45_vm0, %v792_v7 }
   0xc   :  { %684 = vmatpush3.bf16.msra.mxu0 %v765_v10  ;;  %v782_v27 = vld [vmem:[%s1002_s1 + $0xb0] sm:$0xff]   ;;  %v786_v31 = vld [vmem:[%s1002_s1 + $0xb8] sm:$0xff]   ;;  %v788_v44 = vld [vmem:[%s1002_s1 + $0x108] sm:$0xff]   ;;  %47 = vst.msk [vmem:[#allocation2 + $0x8] sm:$0xff] %vm45_vm0, %v792_v7 }
   0xd   :  { %712 = vmatpush3.bf16.msra.mxu1 %v766_v11  ;;  %685 = vmatprep.subr.bf16.mxu0 %v767_v12  ;;  %v20_v33 = vld [vmem:[%s1003_s0 + $0x14] sm:$0xff]  ;;  %v21_v38 = vld [vmem:[%s1003_s0 + $0x1c] sm:$0xff]  ;;  %v23_v45 = vld [vmem:[%s1003_s0 + $0x28] sm:$0xff]  ;;  %49 = vst.msk [vmem:[#allocation2 + $0x18] sm:$0xff] %vm45_vm0, %v792_v7 }
   0xe   :  { %713 = vmatprep.subr.bf16.mxu1 %v768_v13  ;;  %v32_v37 = vmax.bf16 %v791_v35, %v20_v33  ;;  %v33_v40 = vmax.bf16 %v791_v35, %v21_v38  ;;  %v26_v46 = vld [vmem:[%s1003_s0 + $0x3c] sm:$0xff]  ;;  %v35_v49 = vmax.bf16 %v791_v35, %v23_v45  ;;  %v24_v51 = vld [vmem:[%s1003_s0 + $0x30] sm:$0xff]  ;;  %v27_v52 = vld [vmem:[%s1003_s0 + $0x44] sm:$0xff] }
   0xf   :  { %v38_v50 = vmax.bf16 %v791_v35, %v26_v46  ;;  %v36_v53 = vmax.bf16 %v791_v35, %v24_v51  ;;  %v39_v54 = vmax.bf16 %v791_v35, %v27_v52  ;;  %v19_v56 = vld [vmem:[%s1003_s0 + $0x10] sm:$0xf]  ;;  %v22_v58 = vld [vmem:[%s1003_s0 + $0x24] sm:$0xf]  ;;  %v25_v0 = vld [vmem:[%s1003_s0 + $0x38] sm:$0xf] }
  0x10   :  { %686 = vmatpush3.bf16.msra.mxu0 %v769_v14  ;;  %v631_v42 = vcombine.high %v29_v36, %v32_v37  ;;  %v630_v43 = vcombine.low %v29_v36, %v32_v37  ;;  %v633_v47 = vcombine.high %v30_v39, %v33_v40  ;;  %v632_v48 = vcombine.low %v30_v39, %v33_v40  ;;  %v789_v59 = vld [vmem:[%s1002_s1 + $0x110] sm:$0xff]   ;;  %v28_v1 = vld [vmem:[%s1003_s0 + $0x4c] sm:$0xf]  ;;  %v790_v2 = vld [vmem:[%s1002_s1 + $0x118] sm:$0xff]  }
  0x11   :  { %714 = vmatpush3.bf16.msra.mxu1 %v770_v15  ;;  %687 = vmatprep.subr.bf16.mxu0 %v771_v16  ;;  %v636_v55 = vcombine.high %v35_v49, %v38_v50  ;;  %v638_v57 = vcombine.high %v36_v53, %v39_v54  ;;  %v31_v60 = vmax.bf16 %v791_v35, %v19_v56  ;;  %v52_v36 = vld [vmem:[#allocation2 + $0x10] sm:$0xff]  ;;  %v678_v52 = vld [vmem:[%s1004_s2] ss:$0 sm:$0xff] }
  0x12   :  { %715 = vmatprep.subr.bf16.mxu1 %v772_v17  ;;  %431 = vmatprep.mubr.bf16.mxu0 %v631_v42  ;;  %v34_v61 = vmax.bf16 %v791_v35, %v22_v58  ;;  %v635_v62 = vcombine.low %v35_v49, %v38_v50  ;;  %v637_v63 = vcombine.low %v36_v53, %v39_v54  ;;  %v50_v39 = vld [vmem:[#allocation2] sm:$0xff] }
  0x13   :  { %480 = vmatprep.mubr.bf16.mxu1 %v633_v47  ;;  %v37_v4 = vmax.bf16 %v791_v35, %v25_v0  ;;  %v40_v5 = vmax.bf16 %v791_v35, %v28_v1  ;;  %v51_v46 = vld [vmem:[#allocation2 + $0x8] sm:$0xff] }
  0x14   :  { %688 = vmatpush3.bf16.msra.mxu0 %v773_v18  ;;  %v634_v3 = vcombine.low %v31_v60, %v34_v61  ;;  %v53_v42 = vld [vmem:[#allocation2 + $0x18] sm:$0xff] }
  0x15   :  { %716 = vmatpush3.bf16.msra.mxu1 %v774_v19  ;;  %689 = vmatprep.subr.bf16.mxu0 %v775_v20  ;;  %v639_v6 = vcombine.low %v37_v4, %v40_v5 }
  0x16   :  { %717 = vmatprep.subr.bf16.mxu1 %v776_v21 }
  0x18   :  { %690 = vmatpush3.bf16.msra.mxu0 %v777_v22 }
  0x19   :  { %718 = vmatpush3.bf16.msra.mxu1 %v778_v23  ;;  %691 = vmatprep.subr.bf16.mxu0 %v779_v24 }
  0x1a   :  { %719 = vmatprep.subr.bf16.mxu1 %v780_v25 }
  0x1c   :  { %692 = vmatpush3.bf16.msra.mxu0 %v781_v26 }
  0x1d   :  { %720 = vmatpush3.bf16.msra.mxu1 %v782_v27  ;;  %693 = vmatprep.subr.bf16.mxu0 %v783_v28 }
  0x1e   :  { %721 = vmatprep.subr.bf16.mxu1 %v784_v29 }
  0x20   :  { %694 = vmatpush3.bf16.msra.mxu0 %v785_v30 }
  0x21   :  { %722 = vmatpush3.bf16.msra.mxu1 %v786_v31  ;;  %741 = vmatprep.subr.bf16.mxu0 %v787_v41 }
  0x23   :  { %432 = vmatmul.mubr.bf16.vlgmr.msra.gmra.mrb[0].mxu0 %v630_v43 }
  0x24   :  { %481 = vmatmul.mubr.bf16.vlgmr.msra.gmra.mrb[0].mxu1 %v632_v48  ;;  %742 = vmatpush3.bf16.msra.mxu0 %v787_v41 }
  0x25   :  { %743 = vmatprep.subr.bf16.mxu0 %v788_v44  ;;  %439 = vmatprep.mubr.bf16.mxu0 %v636_v55 }
  0x26   :  { %488 = vmatprep.mubr.bf16.mxu1 %v638_v57 }
  0x28   :  { %744 = vmatpush3.bf16.msra.mxu0 %v788_v44 }
  0x29   :  { %745 = vmatprep.subr.bf16.mxu0 %v789_v59 }
  0x2b   :  { %440 = vmatmul.mubr.bf16.gmra.mrb[4].mxu0 %v635_v62 }
  0x2c   :  { %489 = vmatmul.mubr.bf16.gmra.mrb[4].mxu1 %v637_v63  ;;  %746 = vmatpush3.bf16.msra.mxu0 %v789_v59 }
  0x2d   :  { %747 = vmatprep.subr.bf16.mxu0 %v790_v2  ;;  %749 = vmatprep.mubr.msk.bf16.mxu0 %vm45_vm0, %v634_v3 }
  0x30   :  { %748 = vmatpush3.bf16.msra.mxu0 %v790_v2 }
  0x33   :  { %750 = vmatmul.mubr.msk.bf16.vlgmr.msra.gmra.mrb[8].mxu0 %vm45_vm0, %v639_v6 }
  0xf6   :  { %v695_v8 = vpop.f32.mrb[0].mxu0 }
  0xf7   :  { %v723_v9 = vpop.f32.mrb[0].mxu1  ;;  %v696_v10 = vpop.f32.mrb[1].mxu0 }
  0xf8   :  { %v697_v11 = vadd.f32 %v696_v10, %v695_v8  ;;  %v724_v12 = vpop.f32.mrb[1].mxu1  ;;  %v698_v13 = vpop.f32.mrb[2].mxu0 }
  0xf9   :  { %v725_v14 = vadd.f32 %v724_v12, %v723_v9  ;;  %v726_v15 = vpop.f32.mrb[2].mxu1  ;;  %v699_v16 = vpop.f32.mrb[3].mxu0 }
  0xfa   :  { %v700_v17 = vadd.f32 %v699_v16, %v698_v13  ;;  %v727_v18 = vpop.f32.mrb[3].mxu1 }
  0xfb   :  { %v728_v19 = vadd.f32 %v727_v18, %v726_v15  ;;  %v483_v20 = vadd.f32 %v725_v14, %v697_v11 }
  0xfd   :  { %v486_v21 = vadd.f32 %v728_v19, %v700_v17 }
  0xfe   :  { %v701_v22 = vpop.f32.mrb[4].mxu0 }
  0xff   :  { %v729_v23 = vpop.f32.mrb[4].mxu1  ;;  %v702_v24 = vpop.f32.mrb[5].mxu0 }
 0x100   :  { %v703_v25 = vadd.f32 %v702_v24, %v701_v22  ;;  %v730_v26 = vpop.f32.mrb[5].mxu1  ;;  %v704_v27 = vpop.f32.mrb[6].mxu0 }
 0x101   :  { %v731_v28 = vadd.f32 %v730_v26, %v729_v23  ;;  %v732_v29 = vpop.f32.mrb[6].mxu1  ;;  %v705_v30 = vpop.f32.mrb[7].mxu0 }
 0x102   :  { %v706_v31 = vadd.f32 %v705_v30, %v704_v27  ;;  %v733_v32 = vpop.f32.mrb[7].mxu1 }
 0x103   :  { %v734_v33 = vadd.f32 %v733_v32, %v732_v29  ;;  %v491_v34 = vadd.f32 %v731_v28, %v703_v25 }
 0x105   :  { %v494_v35 = vadd.f32 %v734_v33, %v706_v31 }
 0x106   :  { %v751_v37 = vpop.f32.mrb[8].mxu0 }
 0x107   :  { %v540_v38 = vadd.f32 %v751_v37, %v491_v34  ;;  %v531_v40 = vpop.f32.mrb[9].mxu0 }
 0x108   :  { %v532_v41 = vadd.f32 %v531_v40, %v483_v20  ;;  %v752_v43 = vpop.f32.mrb[10].mxu0 }
 0x109   :  { %v548_v44 = vadd.f32 %v540_v38, %v52_v36  ;;  %v543_v45 = vadd.f32 %v752_v43, %v494_v35  ;;  %v534_v47 = vpop.f32.mrb[11].mxu0 }
 0x10a   :  { %v546_v48 = vadd.f32 %v532_v41, %v50_v39  ;;  %v535_v49 = vadd.f32 %v534_v47, %v486_v21 }
 0x10b   :  { %552 = vst.msk [vmem:[#allocation2 + $0x10] sm:$0xff] %vm45_vm0, %v548_v44  ;;  %v549_v50 = vadd.f32 %v543_v45, %v53_v42 }
 0x10c   :  { %550 = vst.msk [vmem:[#allocation2] sm:$0xff] %vm45_vm0, %v546_v48  ;;  %v547_v51 = vadd.f32 %v535_v49, %v51_v46 }
 0x10d   :  { %553 = vst.msk [vmem:[#allocation2 + $0x18] sm:$0xff] %vm45_vm0, %v549_v50 }
 0x10e   :  { %551 = vst.msk [vmem:[#allocation2 + $0x8] sm:$0xff] %vm45_vm0, %v547_v51 }
 0x112   :  { %v559_v53 = vld [vmem:[#allocation2 + $0x10] sm:$0xff] }
 0x113   :  { %v570_v54 = vadd.f32 %v678_v52, %v559_v53  ;;  %v557_v55 = vld [vmem:[#allocation2] sm:$0xff] }
 0x114   :  { %v568_v56 = vadd.f32 %v678_v52, %v557_v55  ;;  %v560_v57 = vld [vmem:[#allocation2 + $0x18] sm:$0xff] }
 0x115   :  { %574 = vst.msk [vmem:[%s1005_s3 + $0x10] sm:$0xff] %vm45_vm0, %v570_v54  ;;  %v571_v58 = vadd.f32 %v678_v52, %v560_v57  ;;  %v558_v59 = vld [vmem:[#allocation2 + $0x8] sm:$0xff]  ;;  %v591_v62 = vmul.f32 %v570_v54, %v570_v54  ;;  %v579_v3 = vsel %vm45_vm0, %v570_v54, 0.0 }
 0x116   :  { %572 = vst.msk [vmem:[%s1005_s3] sm:$0xff] %vm45_vm0, %v568_v56  ;;  %v589_v60 = vmul.f32 %v568_v56, %v568_v56  ;;  %v569_v61 = vadd.f32 %v678_v52, %v558_v59  ;;  %v576_v63 = vsel %vm45_vm0, %v568_v56, 0.0 }
 0x117   :  { %575 = vst.msk [vmem:[%s1005_s3 + $0x18] sm:$0xff] %vm45_vm0, %v571_v58  ;;  %v592_v5 = vmul.f32 %v571_v58, %v571_v58  ;;  %v596_v9 = vsel %vm45_vm0, %v591_v62, 0.0  ;;  %v581_v10 = vsel %vm45_vm0, %v571_v58, 0.0 }
 0x118   :  { %573 = vst.msk [vmem:[%s1005_s3 + $0x8] sm:$0xff] %vm45_vm0, %v569_v61  ;;  %v577_v0 = vsel %vm45_vm0, %v569_v61, 0.0  ;;  %v590_v1 = vmul.f32 %v569_v61, %v569_v61  ;;  %v593_v4 = vsel %vm45_vm0, %v589_v60, 0.0 }
 0x119   :  { %v578_v2 = vadd.f32 %v577_v0, %v576_v63  ;;  %v598_v13 = vsel %vm45_vm0, %v592_v5, 0.0 }
 0x11a   :  { %v594_v6 = vsel %vm45_vm0, %v590_v1, 0.0 }
 0x11b   :  { %v580_v7 = vadd.f32 %v579_v3, %v578_v2  ;;  %v595_v8 = vadd.f32 %v594_v6, %v593_v4 }
 0x11d   :  { %v582_v11 = vadd.f32 %v581_v10, %v580_v7  ;;  %v597_v12 = vadd.f32 %v596_v9, %v595_v8 }
 0x11f   :  { %v583_v14 = vrot.slane %v582_v11, 4  ;;  %v599_v15 = vadd.f32 %v598_v13, %v597_v12 }
 0x121   :  { %v584_v16 = vadd.f32 %v583_v14, %v582_v11  ;;  %v600_v17 = vrot.slane %v599_v15, 4 }
 0x123   :  { %v585_v18 = vrot.slane %v584_v16, 2  ;;  %v601_v19 = vadd.f32 %v600_v17, %v599_v15 }
 0x125   :  { %v586_v20 = vadd.f32 %v585_v18, %v584_v16  ;;  %v602_v21 = vrot.slane %v601_v19, 2 }
 0x127   :  { %v587_v22 = vrot.slane %v586_v20, 1  ;;  %v603_v23 = vadd.f32 %v602_v21, %v601_v19 }
 0x129   :  { %v604_v24 = vrot.slane %v603_v23, 1  ;;  %v588_v25 = vadd.f32 %v587_v22, %v586_v20 }
 0x12b   :  { %v605_v26 = vadd.f32 %v604_v24, %v603_v23 }
 0x12d   :  { %v607_v27 = vsel %vm606_vm1, %v588_v25, %v605_v26 }
 0x12e   :  { %613 = vst.msk [vmem:[%s1006_s4] sm:$0x3] %vm612_vm2, %v607_v27 }

// kernel: tile.165
= control target key start
LH: loop header
LB: loop body
LE: loop exit
PB: predicated region body
PF: predicated region fallthrough
CT: control target
= control target key end

     0   :  { %s22_s0 = inlined_call_operand.vmem [shape: f32[8], index: 0, kind: input, shape index: {}]   ;;  %s23_s1 = inlined_call_operand.vmem [shape: f32[4,8], index: 1, kind: output, shape index: {}]  }
   0x1   :  { %v4_v0 = vld [vmem:[%s22_s0] ss:$0 sm:$0xff] }
   0x2   :  { %5 = vst [vmem:[%s23_s1] sm:$0xf] %v4_v0 }

// kernel: tile.172
= control target key start
LH: loop header
LB: loop body
LE: loop exit
PB: predicated region body
PF: predicated region fallthrough
CT: control target
= control target key end

     0   :  { %vm7_vm0 = vcmask 64512   ;;  %s37_s8 = smov 8   ;;  %s38_s9 = smov 16   ;;  %vm13_vm1 = vcmask 261312   ;;  %vm19_vm2 = vcmask 195712   ;;  %vm25_vm3 = vcmask 130112   ;;  %s55_s0 = inlined_call_operand.vmem [shape: f32[4,8], index: 0, kind: input, shape index: {}]   ;;  %s56_s1 = inlined_call_operand.vmem [shape: f32[32], index: 1, kind: output, shape index: {}]  }
   0x1   :  { %v4_v0 = vld [vmem:[%s55_s0] sm:$0xf]  ;;  %s36_s0 = smov 24  }
   0x2   :  { %5 = vst [vmem:[#allocation1] sm:$0xf] %v4_v0 }
   0x9   :  { %v10_v1 = vld [vmem:[#allocation1 + $0x3] sm:$0x1]   ;;  %v22_v2 = vld [vmem:[#allocation1 + $0x1] sm:$0x1]   ;;  %v6_v3 = vld [vmem:[#allocation1] sm:$0x1]  }
   0xa   :  { %11 = vrot.lane.b32.xlu0 %v10_v1, %s36_s0  ;;  %23 = vrot.lane.b32.xlu1 %v22_v2, %s37_s8  ;;  %v16_v4 = vld [vmem:[#allocation1 + $0x2] sm:$0x1]   ;;  %8 = vst.msk [vmem:[#allocation0] sm:$0x1] %vm7_vm0, %v6_v3  }
   0xe   :  { %17 = vrot.lane.b32.xlu0 %v16_v4, %s38_s9 }
  0x7c   :  { %v12_v5 = vpop.permute.xlu0 %11   ;;  %v24_v6 = vpop.permute.xlu1 %23  }
  0x7d   :  { %14 = vst.msk [vmem:[#allocation0] sm:$0x1] %vm13_vm1, %v12_v5  }
  0x80   :  { %v18_v7 = vpop.permute.xlu0 %17  }
  0x81   :  { %20 = vst.msk [vmem:[#allocation0] sm:$0x1] %vm19_vm2, %v18_v7  }
  0x82   :  { %26 = vst.msk [vmem:[#allocation0] sm:$0x1] %vm25_vm3, %v24_v6  }
  0x89   :  { %v30_v8 = vld [vmem:[#allocation0] sm:$0x1] }
  0x8a   :  { %32 = vst [vmem:[%s56_s1] sm:$0x1] %v30_v8 }

// kernel: _lambda_.32
= control target key start
LH: loop header
LB: loop body
LE: loop exit
PB: predicated region body
PF: predicated region fallthrough
CT: control target
= control target key end

     0   :  { %s100_s0 = inlined_call_operand.vmem [shape: f32[32,128], index: 0, kind: input, shape index: {}]   ;;  %s101_s1 = inlined_call_operand.vmem [shape: f32[1,128], index: 1, kind: input, shape index: {}]   ;;  %s102_s2 = inlined_call_operand.vmem [shape: f32[1,128], index: 2, kind: input, shape index: {}]   ;;  %s103_s3 = inlined_call_operand.vmem [shape: f32[32,128], index: 3, kind: output, shape index: {}]  }
   0x1   :  { %v14_v0 = vld [vmem:[%s100_s0] sm:$0xff]  ;;  %v15_v4 = vld [vmem:[%s100_s0 + $0x8] sm:$0xff]  ;;  %v16_v5 = vld [vmem:[%s100_s0 + $0x10] sm:$0xff] }
   0x2   :  { %v48_v1 = vld [vmem:[%s101_s1] ss:$0 sm:$0xff]  ;;  %v17_v6 = vld [vmem:[%s100_s0 + $0x18] sm:$0xff] }
   0x3   :  { %v49_v2 = vld [vmem:[%s102_s2] ss:$0 sm:$0xff]  ;;  %v25_v3 = vmul.f32 %v48_v1, %v14_v0  ;;  %v26_v7 = vmul.f32 %v48_v1, %v15_v4  ;;  %v27_v8 = vmul.f32 %v48_v1, %v16_v5  ;;  %v28_v9 = vmul.f32 %v48_v1, %v17_v6 }
   0x5   :  { %v36_v10 = vadd.f32 %v49_v2, %v25_v3  ;;  %v37_v11 = vadd.f32 %v49_v2, %v26_v7  ;;  %v38_v12 = vadd.f32 %v49_v2, %v27_v8  ;;  %v39_v13 = vadd.f32 %v49_v2, %v28_v9 }
   0x7   :  { %40 = vst [vmem:[%s103_s3] sm:$0xff] %v36_v10  ;;  %41 = vst [vmem:[%s103_s3 + $0x8] sm:$0xff] %v37_v11 }
   0x8   :  { %42 = vst [vmem:[%s103_s3 + $0x10] sm:$0xff] %v38_v12  ;;  %43 = vst [vmem:[%s103_s3 + $0x18] sm:$0xff] %v39_v13 }

// kernel: _lambda_.31
= control target key start
LH: loop header
LB: loop body
LE: loop exit
PB: predicated region body
PF: predicated region fallthrough
CT: control target
= control target key end

     0   :  { %v986_v14 = vmov 0   ;;  %vm85_vm0 = vcmask 261120   ;;  %vm781_vm1 = vcmask 1040384   ;;  %vm787_vm2 = vcmask 254976   ;;  %s1373_s1 = inlined_call_operand.vmem [shape: bf16[288,32], index: 1, kind: input, shape index: {}]   ;;  %s1374_s0 = inlined_call_operand.vmem [shape: bf16[128,288], index: 0, kind: input, shape index: {}]   ;;  %s1375_s2 = inlined_call_operand.vmem [shape: f32[1,32], index: 2, kind: input, shape index: {}]   ;;  %s1376_s3 = inlined_call_operand.vmem [shape: f32[128,32], index: 3, kind: output, shape index: {0}]   ;;  %s1377_s4 = inlined_call_operand.vmem [shape: f32[2,32], index: 4, kind: output, shape index: {1}]  }
   0x1   :  { %v968_v0 = vld [vmem:[%s1373_s1 + $0x40] sm:$0xff]   ;;  %v970_v2 = vld [vmem:[%s1373_s1 + $0x48] sm:$0xff]   ;;  %v972_v4 = vld [vmem:[%s1373_s1 + $0x50] sm:$0xff]  }
   0x2   :  { %v969_v1 = vld [vmem:[%s1373_s1] sm:$0xff]   ;;  %856 = vmatprep.subr.bf16.mxu0 %v968_v0  ;;  %950 = vmatprep.subr.bf16.mxu1 %v968_v0  ;;  %v971_v3 = vld [vmem:[%s1373_s1 + $0x8] sm:$0xff]   ;;  %v973_v5 = vld [vmem:[%s1373_s1 + $0x10] sm:$0xff]  }
   0x3   :  { %857 = vmatpush3.bf16.msra.mxu0 %v969_v1  ;;  %958 = vmatpush3.bf16.msra.mxu1 %v969_v1  ;;  %v974_v6 = vld [vmem:[%s1373_s1 + $0x58] sm:$0xff]   ;;  %v976_v8 = vld [vmem:[%s1373_s1 + $0x60] sm:$0xff]   ;;  %v978_v10 = vld [vmem:[%s1373_s1 + $0x68] sm:$0xff]  }
   0x4   :  { %858 = vmatprep.subr.bf16.mxu0 %v970_v2  ;;  %951 = vmatprep.subr.bf16.mxu1 %v970_v2  ;;  %v975_v7 = vld [vmem:[%s1373_s1 + $0x18] sm:$0xff]   ;;  %v977_v9 = vld [vmem:[%s1373_s1 + $0x20] sm:$0xff]   ;;  %v19_v12 = vld [vmem:[%s1374_s0 + $0xc] sm:$0xff] }
   0x5   :  { %v17_v11 = vld [vmem:[%s1374_s0] sm:$0xff]  ;;  %v41_v13 = vld [vmem:[%s1374_s0 + $0x90] sm:$0xff]  ;;  %v51_v16 = vmax.bf16 %v986_v14, %v19_v12  ;;  %v979_v20 = vld [vmem:[%s1373_s1 + $0x28] sm:$0xff]  }
   0x6   :  { %v49_v15 = vmax.bf16 %v986_v14, %v17_v11  ;;  %v43_v17 = vld [vmem:[%s1374_s0 + $0x9c] sm:$0xff]  ;;  %v73_v18 = vmax.bf16 %v986_v14, %v41_v13  ;;  %v980_v22 = vld [vmem:[%s1373_s1 + $0x70] sm:$0xff]   ;;  %v23_v27 = vld [vmem:[%s1374_s0 + $0x24] sm:$0xff] }
   0x7   :  { %859 = vmatpush3.bf16.msra.mxu0 %v971_v3  ;;  %959 = vmatpush3.bf16.msra.mxu1 %v971_v3  ;;  %v75_v19 = vmax.bf16 %v986_v14, %v43_v17  ;;  %v981_v24 = vld [vmem:[%s1373_s1 + $0x30] sm:$0xff]   ;;  %v982_v25 = vld [vmem:[%s1373_s1 + $0x78] sm:$0xff]   ;;  %v45_v28 = vld [vmem:[%s1374_s0 + $0xa8] sm:$0xff]  ;;  %v55_v32 = vmax.bf16 %v986_v14, %v23_v27 }
   0x8   :  { %860 = vmatprep.subr.bf16.mxu0 %v972_v4  ;;  %952 = vmatprep.subr.bf16.mxu1 %v972_v4  ;;  %v806_v21 = vcombine.high %v49_v15, %v51_v16  ;;  %v21_v26 = vld [vmem:[%s1374_s0 + $0x18] sm:$0xff]  ;;  %v984_v33 = vld [vmem:[%s1373_s1 + $0x80] sm:$0xff]   ;;  %v77_v34 = vmax.bf16 %v986_v14, %v45_v28  ;;  %v805_v36 = vcombine.low %v49_v15, %v51_v16  ;;  %v985_v39 = vld [vmem:[%s1373_s1 + $0x88] sm:$0xff]  }
   0x9   :  { %v824_v23 = vcombine.high %v73_v18, %v75_v19  ;;  %v47_v29 = vld [vmem:[%s1374_s0 + $0xb4] sm:$0xff]  ;;  %v53_v31 = vmax.bf16 %v986_v14, %v21_v26  ;;  %v823_v37 = vcombine.low %v73_v18, %v75_v19  ;;  %v27_v42 = vld [vmem:[%s1374_s0 + $0x3c] sm:$0xff]  ;;  %v18_v43 = vld [vmem:[%s1374_s0 + $0x8] sm:$0xf] }
   0xa   :  { %439 = vmatprep.mubr.bf16.mxu0 %v806_v21  ;;  %v983_v30 = vld [vmem:[%s1373_s1 + $0x38] sm:$0xff]   ;;  %v79_v35 = vmax.bf16 %v986_v14, %v47_v29  ;;  %v25_v40 = vld [vmem:[%s1374_s0 + $0x30] sm:$0xff]  ;;  %v59_v46 = vmax.bf16 %v986_v14, %v27_v42  ;;  %v50_v47 = vmax.bf16 %v986_v14, %v18_v43  ;;  %v22_v53 = vld [vmem:[%s1374_s0 + $0x20] sm:$0xf] }
   0xb   :  { %861 = vmatpush3.bf16.msra.mxu0 %v973_v5  ;;  %960 = vmatpush3.bf16.msra.mxu1 %v973_v5  ;;  %v809_v38 = vcombine.high %v53_v31, %v55_v32  ;;  %v20_v44 = vld [vmem:[%s1374_s0 + $0x14] sm:$0xf]  ;;  %v57_v45 = vmax.bf16 %v986_v14, %v25_v40  ;;  %v808_v49 = vcombine.low %v53_v31, %v55_v32  ;;  %v24_v54 = vld [vmem:[%s1374_s0 + $0x2c] sm:$0xf]  ;;  %v26_v57 = vld [vmem:[%s1374_s0 + $0x38] sm:$0xf] }
   0xc   :  { %862 = vmatprep.subr.bf16.mxu0 %v974_v6  ;;  %953 = vmatprep.subr.bf16.mxu1 %v974_v6  ;;  %v827_v41 = vcombine.high %v77_v34, %v79_v35  ;;  %v52_v48 = vmax.bf16 %v986_v14, %v20_v44  ;;  %v826_v50 = vcombine.low %v77_v34, %v79_v35  ;;  %v29_v55 = vld [vmem:[%s1374_s0 + $0x48] sm:$0xff]  ;;  %v31_v56 = vld [vmem:[%s1374_s0 + $0x54] sm:$0xff]  ;;  %v28_v58 = vld [vmem:[%s1374_s0 + $0x44] sm:$0xf]  ;;  %v987_v44 = vmov 0.0  }
   0xd   :  { %487 = vmatprep.mubr.bf16.mxu1 %v824_v23  ;;  %v812_v51 = vcombine.high %v57_v45, %v59_v46  ;;  %v54_v59 = vmax.bf16 %v986_v14, %v22_v53  ;;  %v56_v60 = vmax.bf16 %v986_v14, %v24_v54  ;;  %v61_v61 = vmax.bf16 %v986_v14, %v29_v55  ;;  %v30_v5 = vld [vmem:[%s1374_s0 + $0x50] sm:$0xf]  ;;  %v32_v6 = vld [vmem:[%s1374_s0 + $0x5c] sm:$0xf]  ;;  %v40_v23 = vld [vmem:[%s1374_s0 + $0x8c] sm:$0xf] }
   0xe   :  { %v807_v52 = vcombine.low %v50_v47, %v52_v48  ;;  %v63_v62 = vmax.bf16 %v986_v14, %v31_v56  ;;  %v58_v63 = vmax.bf16 %v986_v14, %v26_v57  ;;  %v60_v0 = vmax.bf16 %v986_v14, %v28_v58  ;;  %v42_v26 = vld [vmem:[%s1374_s0 + $0x98] sm:$0xf]  ;;  %v44_v27 = vld [vmem:[%s1374_s0 + $0xa4] sm:$0xf]  ;;  %88 = vst.msk [vmem:[#allocation2 + $0x10] sm:$0xff] %vm85_vm0, %v987_v44 }
   0xf   :  { %863 = vmatpush3.bf16.msra.mxu0 %v975_v7  ;;  %961 = vmatpush3.bf16.msra.mxu1 %v975_v7  ;;  %v811_v1 = vcombine.low %v57_v45, %v59_v46  ;;  %v810_v2 = vcombine.low %v54_v59, %v56_v60  ;;  %v33_v7 = vld [vmem:[%s1374_s0 + $0x60] sm:$0xff]  ;;  %v62_v11 = vmax.bf16 %v986_v14, %v30_v5 }
  0x10   :  { %864 = vmatprep.subr.bf16.mxu0 %v976_v8  ;;  %954 = vmatprep.subr.bf16.mxu1 %v976_v8  ;;  %v815_v3 = vcombine.high %v61_v61, %v63_v62  ;;  %v813_v4 = vcombine.low %v58_v63, %v60_v0  ;;  %v35_v8 = vld [vmem:[%s1374_s0 + $0x6c] sm:$0xff]  ;;  %v64_v12 = vmax.bf16 %v986_v14, %v32_v6 }
  0x11   :  { %v65_v13 = vmax.bf16 %v986_v14, %v33_v7  ;;  %v67_v15 = vmax.bf16 %v986_v14, %v35_v8  ;;  %v814_v18 = vcombine.low %v61_v61, %v63_v62  ;;  %v72_v29 = vmax.bf16 %v986_v14, %v40_v23  ;;  %86 = vst.msk [vmem:[#allocation2] sm:$0xff] %vm85_vm0, %v987_v44 }
  0x12   :  { %v816_v19 = vcombine.low %v62_v11, %v64_v12  ;;  %v74_v32 = vmax.bf16 %v986_v14, %v42_v26  ;;  %87 = vst.msk [vmem:[#allocation2 + $0x8] sm:$0xff] %vm85_vm0, %v987_v44  ;;  %89 = vst.msk [vmem:[#allocation2 + $0x18] sm:$0xff] %vm85_vm0, %v987_v44 }
  0x13   :  { %865 = vmatpush3.bf16.msra.mxu0 %v977_v9  ;;  %962 = vmatpush3.bf16.msra.mxu1 %v977_v9  ;;  %v34_v9 = vld [vmem:[%s1374_s0 + $0x68] sm:$0xf]  ;;  %v817_v34 = vcombine.low %v65_v13, %v67_v15  ;;  %90 = vst.msk [vmem:[#allocation2 + $0x20] sm:$0xff] %vm85_vm0, %v987_v44  ;;  %91 = vst.msk [vmem:[#allocation2 + $0x28] sm:$0xff] %vm85_vm0, %v987_v44 }
  0x14   :  { %866 = vmatprep.subr.bf16.mxu0 %v978_v10  ;;  %955 = vmatprep.subr.bf16.mxu1 %v978_v10  ;;  %v36_v10 = vld [vmem:[%s1374_s0 + $0x74] sm:$0xf]  ;;  %v66_v16 = vmax.bf16 %v986_v14, %v34_v9  ;;  %92 = vst.msk [vmem:[#allocation2 + $0x30] sm:$0xff] %vm85_vm0, %v987_v44  ;;  %93 = vst.msk [vmem:[#allocation2 + $0x38] sm:$0xff] %vm85_vm0, %v987_v44 }
  0x15   :  { %v68_v17 = vmax.bf16 %v986_v14, %v36_v10  ;;  %94 = vst.msk [vmem:[#allocation2 + $0x40] sm:$0xff] %vm85_vm0, %v987_v44  ;;  %95 = vst.msk [vmem:[#allocation2 + $0x48] sm:$0xff] %vm85_vm0, %v987_v44  ;;  %v104_v5 = vld [vmem:[#allocation2 + $0x10] sm:$0xff] }
  0x16   :  { %96 = vst.msk [vmem:[#allocation2 + $0x50] sm:$0xff] %vm85_vm0, %v987_v44  ;;  %97 = vst.msk [vmem:[#allocation2 + $0x58] sm:$0xff] %vm85_vm0, %v987_v44 }
  0x17   :  { %867 = vmatpush3.bf16.msra.mxu0 %v979_v20  ;;  %963 = vmatpush3.bf16.msra.mxu1 %v979_v20  ;;  %v818_v20 = vcombine.high %v65_v13, %v67_v15  ;;  %v819_v21 = vcombine.low %v66_v16, %v68_v17  ;;  %98 = vst.msk [vmem:[#allocation2 + $0x60] sm:$0xff] %vm85_vm0, %v987_v44  ;;  %99 = vst.msk [vmem:[#allocation2 + $0x68] sm:$0xff] %vm85_vm0, %v987_v44 }
  0x18   :  { %868 = vmatprep.subr.bf16.mxu0 %v980_v22  ;;  %956 = vmatprep.subr.bf16.mxu1 %v980_v22  ;;  %v38_v22 = vld [vmem:[%s1374_s0 + $0x80] sm:$0xf]  ;;  %100 = vst.msk [vmem:[#allocation2 + $0x70] sm:$0xff] %vm85_vm0, %v987_v44  ;;  %101 = vst.msk [vmem:[#allocation2 + $0x78] sm:$0xff] %vm85_vm0, %v987_v44 }
  0x19   :  { %v70_v28 = vmax.bf16 %v986_v14, %v38_v22  ;;  %v102_v9 = vld [vmem:[#allocation2] sm:$0xff]  ;;  %v105_v15 = vld [vmem:[#allocation2 + $0x18] sm:$0xff] }
  0x1b   :  { %869 = vmatpush3.bf16.msra.mxu0 %v981_v24  ;;  %964 = vmatpush3.bf16.msra.mxu1 %v981_v24  ;;  %v37_v24 = vld [vmem:[%s1374_s0 + $0x78] sm:$0xff]  ;;  %v822_v35 = vcombine.low %v70_v28, %v72_v29 }
  0x1c   :  { %870 = vmatprep.subr.bf16.mxu0 %v982_v25  ;;  %957 = vmatprep.subr.bf16.mxu1 %v982_v25  ;;  %v39_v25 = vld [vmem:[%s1374_s0 + $0x84] sm:$0xff] }
  0x1d   :  { %v71_v31 = vmax.bf16 %v986_v14, %v39_v25 }
  0x1f   :  { %871 = vmatpush3.bf16.msra.mxu0 %v983_v30  ;;  %965 = vmatpush3.bf16.msra.mxu1 %v983_v30  ;;  %v69_v30 = vmax.bf16 %v986_v14, %v37_v24 }
  0x20   :  { %930 = vmatprep.subr.bf16.mxu1 %v984_v33 }
  0x21   :  { %v820_v42 = vcombine.low %v69_v30, %v71_v31 }
  0x22   :  { %440 = vmatmul.mubr.bf16.vlgmr.msra.gmra.mrb[0].mxu0 %v805_v36  ;;  %488 = vmatmul.mubr.bf16.vlgmr.msra.gmra.mrb[0].mxu1 %v823_v37  ;;  %v821_v36 = vcombine.high %v69_v30, %v71_v31  ;;  %v106_v30 = vld [vmem:[#allocation2 + $0x20] sm:$0xff] }
  0x23   :  { %931 = vmatpush3.bf16.msra.mxu1 %v984_v33  ;;  %447 = vmatprep.mubr.bf16.mxu0 %v809_v38  ;;  %v76_v33 = vmax.bf16 %v986_v14, %v44_v27  ;;  %v46_v38 = vld [vmem:[%s1374_s0 + $0xb0] sm:$0xf] }
  0x24   :  { %495 = vmatprep.mubr.bf16.mxu1 %v827_v41  ;;  %932 = vmatprep.subr.bf16.mxu1 %v985_v39  ;;  %v78_v40 = vmax.bf16 %v986_v14, %v46_v38 }
  0x25   :  { %v825_v37 = vcombine.low %v74_v32, %v76_v33  ;;  %v1234_v32 = vld [vmem:[%s1375_s2] ss:$0 sm:$0xff] }
  0x27   :  { %933 = vmatpush3.bf16.msra.mxu1 %v985_v39  ;;  %v48_v39 = vld [vmem:[%s1374_s0 + $0xbc] sm:$0xf] }
  0x28   :  { %v80_v41 = vmax.bf16 %v986_v14, %v48_v39  ;;  %v107_v39 = vld [vmem:[#allocation2 + $0x28] sm:$0xff] }
  0x2a   :  { %448 = vmatmul.mubr.bf16.gmra.mrb[4].mxu0 %v808_v49  ;;  %496 = vmatmul.mubr.bf16.gmra.mrb[4].mxu1 %v826_v50  ;;  %v828_v43 = vcombine.low %v78_v40, %v80_v41 }
  0x2b   :  { %455 = vmatprep.mubr.bf16.mxu0 %v812_v51  ;;  %934 = vmatprep.mubr.msk.bf16.mxu1 %vm85_vm0, %v807_v52 }
  0x32   :  { %456 = vmatmul.mubr.bf16.gmra.mrb[8].mxu0 %v811_v1  ;;  %935 = vmatmul.mubr.msk.bf16.vlgmr.msra.gmra.mrb[8].mxu1 %vm85_vm0, %v810_v2 }
  0x33   :  { %463 = vmatprep.mubr.bf16.mxu0 %v815_v3  ;;  %938 = vmatprep.mubr.msk.bf16.mxu1 %vm85_vm0, %v813_v4 }
  0x3a   :  { %464 = vmatmul.mubr.bf16.gmra.mrb[12].mxu0 %v814_v18  ;;  %939 = vmatmul.mubr.msk.bf16.gmra.mrb[12].mxu1 %vm85_vm0, %v816_v19 }
  0x3b   :  { %471 = vmatprep.mubr.bf16.mxu0 %v818_v20  ;;  %942 = vmatprep.mubr.msk.bf16.mxu1 %vm85_vm0, %v819_v21  ;;  %v103_v20 = vld [vmem:[#allocation2 + $0x8] sm:$0xff] }
  0x42   :  { %472 = vmatmul.mubr.bf16.gmra.mrb[16].mxu0 %v817_v34  ;;  %943 = vmatmul.mubr.msk.bf16.gmra.mrb[16].mxu1 %vm85_vm0, %v822_v35 }
  0x43   :  { %479 = vmatprep.mubr.bf16.mxu0 %v821_v36  ;;  %946 = vmatprep.mubr.msk.bf16.mxu1 %vm85_vm0, %v825_v37  ;;  %v108_v37 = vld [vmem:[#allocation2 + $0x30] sm:$0xff] }
  0x4a   :  { %480 = vmatmul.mubr.bf16.gmra.mrb[20].mxu0 %v820_v42  ;;  %947 = vmatmul.mubr.msk.bf16.gmra.mrb[20].mxu1 %vm85_vm0, %v828_v43 }
  0xf5   :  { %v872_v14 = vpop.f32.mrb[0].mxu0  ;;  %v908_v45 = vpop.f32.mrb[0].mxu1 }
  0xf6   :  { %v873_v46 = vpop.f32.mrb[1].mxu0  ;;  %v909_v47 = vpop.f32.mrb[1].mxu1 }
  0xf7   :  { %v874_v48 = vadd.f32 %v873_v46, %v872_v14  ;;  %v875_v49 = vpop.f32.mrb[2].mxu0  ;;  %v1219_v50 = vadd.f32 %v909_v47, %v908_v45  ;;  %v911_v51 = vpop.f32.mrb[2].mxu1  ;;  %v109_v47 = vld [vmem:[#allocation2 + $0x38] sm:$0xff] }
  0xf8   :  { %v876_v52 = vpop.f32.mrb[3].mxu0  ;;  %v912_v53 = vpop.f32.mrb[3].mxu1 }
  0xf9   :  { %v877_v54 = vadd.f32 %v876_v52, %v875_v49  ;;  %v1221_v55 = vadd.f32 %v912_v53, %v911_v51 }
  0xfd   :  { %v878_v56 = vpop.f32.mrb[4].mxu0  ;;  %v914_v57 = vpop.f32.mrb[4].mxu1 }
  0xfe   :  { %v879_v58 = vpop.f32.mrb[5].mxu0  ;;  %v915_v59 = vpop.f32.mrb[5].mxu1 }
  0xff   :  { %v880_v60 = vadd.f32 %v879_v58, %v878_v56  ;;  %v881_v61 = vpop.f32.mrb[6].mxu0  ;;  %v1223_v62 = vadd.f32 %v915_v59, %v914_v57  ;;  %v917_v63 = vpop.f32.mrb[6].mxu1 }
 0x100   :  { %v882_v0 = vpop.f32.mrb[7].mxu0  ;;  %v918_v1 = vpop.f32.mrb[7].mxu1 }
 0x101   :  { %v883_v2 = vadd.f32 %v882_v0, %v881_v61  ;;  %v1225_v3 = vadd.f32 %v918_v1, %v917_v63 }
 0x105   :  { %v884_v4 = vpop.f32.mrb[8].mxu0  ;;  %v936_v6 = vpop.f32.mrb[8].mxu1 }
 0x106   :  { %v547_v7 = vadd.f32 %v936_v6, %v880_v60  ;;  %v885_v8 = vpop.f32.mrb[9].mxu0  ;;  %v538_v10 = vpop.f32.mrb[9].mxu1 }
 0x107   :  { %v886_v11 = vadd.f32 %v885_v8, %v884_v4  ;;  %v539_v12 = vadd.f32 %v874_v48, %v538_v10  ;;  %v887_v13 = vpop.f32.mrb[10].mxu0  ;;  %v937_v16 = vpop.f32.mrb[10].mxu1 }
 0x108   :  { %v603_v17 = vadd.f32 %v547_v7, %v104_v5  ;;  %v550_v18 = vadd.f32 %v937_v16, %v883_v2  ;;  %v888_v19 = vpop.f32.mrb[11].mxu0  ;;  %v541_v21 = vpop.f32.mrb[11].mxu1 }
 0x109   :  { %v601_v22 = vadd.f32 %v539_v12, %v102_v9  ;;  %v889_v23 = vadd.f32 %v888_v19, %v887_v13  ;;  %v542_v24 = vadd.f32 %v877_v54, %v541_v21  ;;  %v110_v13 = vld [vmem:[#allocation2 + $0x40] sm:$0xff] }
 0x10a   :  { %619 = vst.msk [vmem:[#allocation2 + $0x10] sm:$0xff] %vm85_vm0, %v603_v17  ;;  %v604_v25 = vadd.f32 %v550_v18, %v105_v15 }
 0x10b   :  { %617 = vst.msk [vmem:[#allocation2] sm:$0xff] %vm85_vm0, %v601_v22  ;;  %v602_v26 = vadd.f32 %v542_v24, %v103_v20 }
 0x10c   :  { %620 = vst.msk [vmem:[#allocation2 + $0x18] sm:$0xff] %vm85_vm0, %v604_v25 }
 0x10d   :  { %618 = vst.msk [vmem:[#allocation2 + $0x8] sm:$0xff] %vm85_vm0, %v602_v26  ;;  %v890_v27 = vpop.f32.mrb[12].mxu0  ;;  %v940_v28 = vpop.f32.mrb[12].mxu1 }
 0x10e   :  { %v891_v29 = vpop.f32.mrb[13].mxu0  ;;  %v554_v31 = vpop.f32.mrb[13].mxu1 }
 0x10f   :  { %v892_v33 = vadd.f32 %v891_v29, %v890_v27  ;;  %v555_v34 = vadd.f32 %v886_v11, %v554_v31  ;;  %v893_v35 = vpop.f32.mrb[14].mxu0  ;;  %v941_v36 = vpop.f32.mrb[14].mxu1  ;;  %v111_v27 = vld [vmem:[#allocation2 + $0x48] sm:$0xff] }
 0x110   :  { %v894_v38 = vpop.f32.mrb[15].mxu0  ;;  %v557_v40 = vpop.f32.mrb[15].mxu1 }
 0x111   :  { %v638_v41 = vld [vmem:[#allocation2 + $0x10] sm:$0xff]  ;;  %v563_v42 = vadd.f32 %v940_v28, %v892_v33  ;;  %v605_v43 = vadd.f32 %v555_v34, %v106_v30  ;;  %v895_v44 = vadd.f32 %v894_v38, %v893_v35  ;;  %v558_v14 = vadd.f32 %v889_v23, %v557_v40 }
 0x112   :  { %v661_v45 = vadd.f32 %v1234_v32, %v638_v41  ;;  %v636_v46 = vld [vmem:[#allocation2] sm:$0xff]  ;;  %v116_v40 = vld [vmem:[#allocation2 + $0x70] sm:$0xff] }
 0x113   :  { %v659_v48 = vadd.f32 %v1234_v32, %v636_v46  ;;  %v639_v49 = vld [vmem:[#allocation2 + $0x18] sm:$0xff]  ;;  %v607_v51 = vadd.f32 %v563_v42, %v108_v37  ;;  %621 = vst.msk [vmem:[#allocation2 + $0x20] sm:$0xff] %vm85_vm0, %v605_v43  ;;  %v566_v52 = vadd.f32 %v941_v36, %v895_v44  ;;  %v606_v53 = vadd.f32 %v558_v14, %v107_v39 }
 0x114   :  { %677 = vst.msk [vmem:[%s1376_s3 + $0x10] sm:$0xff] %vm85_vm0, %v661_v45  ;;  %v662_v54 = vadd.f32 %v1234_v32, %v639_v49  ;;  %v637_v56 = vld [vmem:[#allocation2 + $0x8] sm:$0xff]  ;;  %v730_v63 = vmul.f32 %v661_v45, %v661_v45  ;;  %v694_v9 = vsel %vm85_vm0, %v661_v45, 0.0 }
 0x115   :  { %675 = vst.msk [vmem:[%s1376_s3] sm:$0xff] %vm85_vm0, %v659_v48  ;;  %v728_v57 = vmul.f32 %v659_v48, %v659_v48  ;;  %v660_v58 = vadd.f32 %v1234_v32, %v637_v56  ;;  %623 = vst.msk [vmem:[#allocation2 + $0x30] sm:$0xff] %vm85_vm0, %v607_v51  ;;  %v608_v59 = vadd.f32 %v566_v52, %v109_v47  ;;  %v896_v60 = vpop.f32.mrb[16].mxu0  ;;  %v1251_v61 = vpop.f32.mrb[16].mxu1  ;;  %v691_v2 = vsel %vm85_vm0, %v659_v48, 0.0 }
 0x116   :  { %622 = vst.msk [vmem:[#allocation2 + $0x28] sm:$0xff] %vm85_vm0, %v606_v53  ;;  %678 = vst.msk [vmem:[%s1376_s3 + $0x18] sm:$0xff] %vm85_vm0, %v662_v54  ;;  %v897_v0 = vpop.f32.mrb[17].mxu0  ;;  %v570_v1 = vpop.f32.mrb[17].mxu1  ;;  %v731_v10 = vmul.f32 %v662_v54, %v662_v54  ;;  %v747_v20 = vsel %vm85_vm0, %v730_v63, 0.0  ;;  %v696_v24 = vsel %vm85_vm0, %v662_v54, 0.0 }
 0x117   :  { %676 = vst.msk [vmem:[%s1376_s3 + $0x8] sm:$0xff] %vm85_vm0, %v660_v58  ;;  %v692_v4 = vsel %vm85_vm0, %v660_v58, 0.0  ;;  %v729_v5 = vmul.f32 %v660_v58, %v660_v58  ;;  %624 = vst.msk [vmem:[#allocation2 + $0x38] sm:$0xff] %vm85_vm0, %v608_v59  ;;  %v898_v6 = vadd.f32 %v897_v0, %v896_v60  ;;  %v899_v7 = vpop.f32.mrb[18].mxu0  ;;  %v1264_v8 = vpop.f32.mrb[18].mxu1  ;;  %v744_v16 = vsel %vm85_vm0, %v728_v57, 0.0 }
 0x118   :  { %v693_v11 = vadd.f32 %v692_v4, %v691_v2  ;;  %v900_v12 = vpop.f32.mrb[19].mxu0  ;;  %v573_v15 = vpop.f32.mrb[19].mxu1  ;;  %v749_v29 = vsel %vm85_vm0, %v731_v10, 0.0  ;;  %v114_v59 = vld [vmem:[#allocation2 + $0x60] sm:$0xff]  ;;  %v117_v60 = vld [vmem:[#allocation2 + $0x78] sm:$0xff] }
 0x119   :  { %v745_v17 = vsel %vm85_vm0, %v729_v5, 0.0  ;;  %v901_v18 = vadd.f32 %v900_v12, %v899_v7  ;;  %v571_v19 = vadd.f32 %v898_v6, %v570_v1  ;;  %v112_v6 = vld [vmem:[#allocation2 + $0x50] sm:$0xff] }
 0x11a   :  { %v695_v21 = vadd.f32 %v694_v9, %v693_v11  ;;  %v746_v22 = vadd.f32 %v745_v17, %v744_v16  ;;  %v640_v23 = vld [vmem:[#allocation2 + $0x20] sm:$0xff]  ;;  %v115_v9 = vld [vmem:[#allocation2 + $0x68] sm:$0xff] }
 0x11b   :  { %v663_v25 = vadd.f32 %v1234_v32, %v640_v23  ;;  %v609_v26 = vadd.f32 %v571_v19, %v110_v13  ;;  %v574_v28 = vadd.f32 %v901_v18, %v573_v15  ;;  %v113_v15 = vld [vmem:[#allocation2 + $0x58] sm:$0xff] }
 0x11c   :  { %v748_v30 = vadd.f32 %v747_v20, %v746_v22  ;;  %v642_v31 = vld [vmem:[#allocation2 + $0x30] sm:$0xff]  ;;  %v697_v33 = vadd.f32 %v696_v24, %v695_v21 }
 0x11d   :  { %v641_v34 = vld [vmem:[#allocation2 + $0x28] sm:$0xff]  ;;  %v665_v35 = vadd.f32 %v1234_v32, %v642_v31  ;;  %679 = vst.msk [vmem:[%s1376_s3 + $0x20] sm:$0xff] %vm85_vm0, %v663_v25  ;;  %v698_v36 = vsel %vm85_vm0, %v663_v25, 0.0  ;;  %v732_v37 = vmul.f32 %v663_v25, %v663_v25  ;;  %625 = vst.msk [vmem:[#allocation2 + $0x40] sm:$0xff] %vm85_vm0, %v609_v26  ;;  %v902_v39 = vpop.f32.mrb[20].mxu0  ;;  %v948_v41 = vpop.f32.mrb[20].mxu1  ;;  %v610_v44 = vadd.f32 %v574_v28, %v111_v27 }
 0x11e   :  { %v664_v38 = vadd.f32 %v1234_v32, %v641_v34  ;;  %v750_v42 = vadd.f32 %v749_v29, %v748_v30  ;;  %v643_v43 = vld [vmem:[#allocation2 + $0x38] sm:$0xff]  ;;  %v595_v14 = vadd.f32 %v948_v41, %v1223_v62  ;;  %v903_v45 = vpop.f32.mrb[21].mxu0  ;;  %v586_v46 = vpop.f32.mrb[21].mxu1  ;;  %v699_v47 = vadd.f32 %v698_v36, %v697_v33 }
 0x11f   :  { %681 = vst.msk [vmem:[%s1376_s3 + $0x30] sm:$0xff] %vm85_vm0, %v665_v35  ;;  %v751_v48 = vsel %vm85_vm0, %v732_v37, 0.0  ;;  %v666_v49 = vadd.f32 %v1234_v32, %v643_v43  ;;  %v905_v51 = vpop.f32.mrb[22].mxu0  ;;  %v949_v52 = vpop.f32.mrb[22].mxu1  ;;  %626 = vst.msk [vmem:[#allocation2 + $0x48] sm:$0xff] %vm85_vm0, %v610_v44  ;;  %v904_v0 = vadd.f32 %v903_v45, %v902_v39  ;;  %v587_v1 = vadd.f32 %v1219_v50, %v586_v46 }
 0x120   :  { %680 = vst.msk [vmem:[%s1376_s3 + $0x28] sm:$0xff] %vm85_vm0, %v664_v38  ;;  %v700_v62 = vsel %vm85_vm0, %v664_v38, 0.0  ;;  %v733_v53 = vmul.f32 %v664_v38, %v664_v38  ;;  %v615_v54 = vadd.f32 %v595_v14, %v116_v40  ;;  %v906_v56 = vpop.f32.mrb[23].mxu0  ;;  %v589_v57 = vpop.f32.mrb[23].mxu1  ;;  %v752_v58 = vadd.f32 %v751_v48, %v750_v42 }
 0x121   :  { %682 = vst.msk [vmem:[%s1376_s3 + $0x38] sm:$0xff] %vm85_vm0, %v666_v49  ;;  %v598_v2 = vadd.f32 %v949_v52, %v1225_v3  ;;  %v734_v4 = vmul.f32 %v665_v35, %v665_v35  ;;  %v701_v5 = vadd.f32 %v700_v62, %v699_v47  ;;  %v907_v7 = vadd.f32 %v906_v56, %v905_v51 }
 0x122   :  { %v753_v63 = vsel %vm85_vm0, %v733_v53, 0.0  ;;  %631 = vst.msk [vmem:[#allocation2 + $0x70] sm:$0xff] %vm85_vm0, %v615_v54  ;;  %v579_v11 = vadd.f32 %v1251_v61, %v904_v0  ;;  %v613_v12 = vadd.f32 %v587_v1, %v114_v59  ;;  %v590_v16 = vadd.f32 %v1221_v55, %v589_v57 }
 0x123   :  { %v616_v13 = vadd.f32 %v598_v2, %v117_v60  ;;  %v754_v17 = vadd.f32 %v753_v63, %v752_v58  ;;  %v582_v50 = vadd.f32 %v1264_v8, %v907_v7  ;;  %v702_v3 = vsel %vm85_vm0, %v665_v35, 0.0 }
 0x124   :  { %v644_v10 = vld [vmem:[#allocation2 + $0x40] sm:$0xff]  ;;  %v611_v19 = vadd.f32 %v579_v11, %v112_v6  ;;  %629 = vst.msk [vmem:[#allocation2 + $0x60] sm:$0xff] %vm85_vm0, %v613_v12  ;;  %v614_v20 = vadd.f32 %v590_v16, %v115_v9  ;;  %v703_v21 = vadd.f32 %v702_v3, %v701_v5  ;;  %v755_v22 = vsel %vm85_vm0, %v734_v4, 0.0 }
 0x125   :  { %v667_v18 = vadd.f32 %v1234_v32, %v644_v10  ;;  %632 = vst.msk [vmem:[#allocation2 + $0x78] sm:$0xff] %vm85_vm0, %v616_v13  ;;  %v612_v61 = vadd.f32 %v582_v50, %v113_v15  ;;  %v735_v23 = vmul.f32 %v666_v49, %v666_v49  ;;  %v756_v25 = vadd.f32 %v755_v22, %v754_v17 }
 0x126   :  { %v645_v55 = vld [vmem:[#allocation2 + $0x48] sm:$0xff]  ;;  %627 = vst.msk [vmem:[#allocation2 + $0x50] sm:$0xff] %vm85_vm0, %v611_v19  ;;  %630 = vst.msk [vmem:[#allocation2 + $0x68] sm:$0xff] %vm85_vm0, %v614_v20  ;;  %v704_v27 = vsel %vm85_vm0, %v666_v49, 0.0 }
 0x127   :  { %683 = vst.msk [vmem:[%s1376_s3 + $0x40] sm:$0xff] %vm85_vm0, %v667_v18  ;;  %v736_v8 = vmul.f32 %v667_v18, %v667_v18  ;;  %v668_v24 = vadd.f32 %v1234_v32, %v645_v55  ;;  %628 = vst.msk [vmem:[#allocation2 + $0x58] sm:$0xff] %vm85_vm0, %v612_v61  ;;  %v706_v28 = vsel %vm85_vm0, %v667_v18, 0.0  ;;  %v705_v30 = vadd.f32 %v704_v27, %v703_v21 }
 0x128   :  { %v757_v31 = vsel %vm85_vm0, %v735_v23, 0.0 }
 0x129   :  { %v650_v26 = vld [vmem:[#allocation2 + $0x70] sm:$0xff]  ;;  %684 = vst.msk [vmem:[%s1376_s3 + $0x48] sm:$0xff] %vm85_vm0, %v668_v24  ;;  %v759_v33 = vsel %vm85_vm0, %v736_v8, 0.0  ;;  %v737_v34 = vmul.f32 %v668_v24, %v668_v24  ;;  %v707_v35 = vadd.f32 %v706_v28, %v705_v30  ;;  %v758_v36 = vadd.f32 %v757_v31, %v756_v25 }
 0x12a   :  { %v673_v29 = vadd.f32 %v1234_v32, %v650_v26  ;;  %v708_v39 = vsel %vm85_vm0, %v668_v24, 0.0 }
 0x12b   :  { %v648_v37 = vld [vmem:[#allocation2 + $0x60] sm:$0xff]  ;;  %v760_v42 = vadd.f32 %v759_v33, %v758_v36  ;;  %v761_v14 = vsel %vm85_vm0, %v737_v34, 0.0  ;;  %v709_v47 = vadd.f32 %v708_v39, %v707_v35 }
 0x12c   :  { %689 = vst.msk [vmem:[%s1376_s3 + $0x70] sm:$0xff] %vm85_vm0, %v673_v29  ;;  %v651_v38 = vld [vmem:[#allocation2 + $0x78] sm:$0xff]  ;;  %v671_v40 = vadd.f32 %v1234_v32, %v648_v37  ;;  %v742_v4 = vmul.f32 %v673_v29, %v673_v29  ;;  %v718_v10 = vsel %vm85_vm0, %v673_v29, 0.0 }
 0x12d   :  { %v674_v41 = vadd.f32 %v1234_v32, %v651_v38  ;;  %v646_v43 = vld [vmem:[#allocation2 + $0x50] sm:$0xff]  ;;  %v649_v44 = vld [vmem:[#allocation2 + $0x68] sm:$0xff]  ;;  %v762_v62 = vadd.f32 %v761_v14, %v760_v42 }
 0x12e   :  { %v669_v45 = vadd.f32 %v1234_v32, %v646_v43  ;;  %687 = vst.msk [vmem:[%s1376_s3 + $0x60] sm:$0xff] %vm85_vm0, %v671_v40  ;;  %v647_v46 = vld [vmem:[#allocation2 + $0x58] sm:$0xff]  ;;  %v672_v49 = vadd.f32 %v1234_v32, %v649_v44  ;;  %v740_v57 = vmul.f32 %v671_v40, %v671_v40  ;;  %v714_v63 = vsel %vm85_vm0, %v671_v40, 0.0 }
 0x12f   :  { %690 = vst.msk [vmem:[%s1376_s3 + $0x78] sm:$0xff] %vm85_vm0, %v674_v41  ;;  %v670_v48 = vadd.f32 %v1234_v32, %v647_v46  ;;  %v743_v11 = vmul.f32 %v674_v41, %v674_v41  ;;  %v771_v16 = vsel %vm85_vm0, %v742_v4, 0.0  ;;  %v720_v17 = vsel %vm85_vm0, %v674_v41, 0.0 }
 0x130   :  { %685 = vst.msk [vmem:[%s1376_s3 + $0x50] sm:$0xff] %vm85_vm0, %v669_v45  ;;  %v710_v51 = vsel %vm85_vm0, %v669_v45, 0.0  ;;  %v738_v52 = vmul.f32 %v669_v45, %v669_v45  ;;  %688 = vst.msk [vmem:[%s1376_s3 + $0x68] sm:$0xff] %vm85_vm0, %v672_v49  ;;  %v741_v0 = vmul.f32 %v672_v49, %v672_v49  ;;  %v767_v5 = vsel %vm85_vm0, %v740_v57, 0.0 }
 0x131   :  { %v711_v53 = vadd.f32 %v710_v51, %v709_v47  ;;  %686 = vst.msk [vmem:[%s1376_s3 + $0x58] sm:$0xff] %vm85_vm0, %v670_v48  ;;  %v712_v54 = vsel %vm85_vm0, %v670_v48, 0.0  ;;  %v739_v56 = vmul.f32 %v670_v48, %v670_v48  ;;  %v716_v6 = vsel %vm85_vm0, %v672_v49, 0.0 }
 0x132   :  { %v763_v32 = vsel %vm85_vm0, %v738_v52, 0.0  ;;  %v769_v12 = vsel %vm85_vm0, %v741_v0, 0.0  ;;  %v773_v3 = vsel %vm85_vm0, %v743_v11, 0.0 }
 0x133   :  { %v764_v58 = vadd.f32 %v763_v32, %v762_v62  ;;  %v713_v59 = vadd.f32 %v712_v54, %v711_v53  ;;  %v765_v60 = vsel %vm85_vm0, %v739_v56, 0.0 }
 0x135   :  { %v766_v1 = vadd.f32 %v765_v60, %v764_v58  ;;  %v715_v2 = vadd.f32 %v714_v63, %v713_v59 }
 0x137   :  { %v717_v7 = vadd.f32 %v716_v6, %v715_v2  ;;  %v768_v9 = vadd.f32 %v767_v5, %v766_v1 }
 0x139   :  { %v719_v13 = vadd.f32 %v718_v10, %v717_v7  ;;  %v770_v15 = vadd.f32 %v769_v12, %v768_v9 }
 0x13b   :  { %v721_v18 = vadd.f32 %v720_v17, %v719_v13  ;;  %v772_v50 = vadd.f32 %v771_v16, %v770_v15 }
 0x13d   :  { %v722_v19 = vrot.slane %v721_v18, 4  ;;  %v774_v20 = vadd.f32 %v773_v3, %v772_v50 }
 0x13f   :  { %v723_v21 = vadd.f32 %v722_v19, %v721_v18  ;;  %v775_v55 = vrot.slane %v774_v20, 4 }
 0x141   :  { %v724_v61 = vrot.slane %v723_v21, 2  ;;  %v776_v22 = vadd.f32 %v775_v55, %v774_v20 }
 0x143   :  { %v725_v23 = vadd.f32 %v724_v61, %v723_v21  ;;  %v777_v8 = vrot.slane %v776_v22, 2 }
 0x145   :  { %v726_v24 = vrot.slane %v725_v23, 1  ;;  %v778_v25 = vadd.f32 %v777_v8, %v776_v22 }
 0x147   :  { %v779_v26 = vrot.slane %v778_v25, 1  ;;  %v727_v27 = vadd.f32 %v726_v24, %v725_v23 }
 0x149   :  { %v780_v28 = vadd.f32 %v779_v26, %v778_v25 }
 0x14b   :  { %v782_v29 = vsel %vm781_vm1, %v727_v27, %v780_v28 }
 0x14c   :  { %788 = vst.msk [vmem:[%s1377_s4] sm:$0x3] %vm787_vm2, %v782_v29 }

// kernel: tile.182
= control target key start
LH: loop header
LB: loop body
LE: loop exit
PB: predicated region body
PF: predicated region fallthrough
CT: control target
= control target key end

     0   :  { %s22_s0 = inlined_call_operand.vmem [shape: f32[4], index: 0, kind: input, shape index: {}]   ;;  %s23_s1 = inlined_call_operand.vmem [shape: f32[4,4], index: 1, kind: output, shape index: {}]  }
   0x1   :  { %v4_v0 = vld [vmem:[%s22_s0] ss:$0 sm:$0xff] }
   0x2   :  { %5 = vst [vmem:[%s23_s1] sm:$0xf] %v4_v0 }

// kernel: tile.183
= control target key start
LH: loop header
LB: loop body
LE: loop exit
PB: predicated region body
PF: predicated region fallthrough
CT: control target
= control target key end

     0   :  { %vm7_vm0 = vcmask 31744   ;;  %s37_s8 = smov 4   ;;  %s38_s9 = smov 8   ;;  %vm13_vm1 = vcmask 130144   ;;  %vm19_vm2 = vcmask 97344   ;;  %vm25_vm3 = vcmask 64544   ;;  %s55_s0 = inlined_call_operand.vmem [shape: f32[4,4], index: 0, kind: input, shape index: {}]   ;;  %s56_s1 = inlined_call_operand.vmem [shape: f32[1,16], index: 1, kind: output, shape index: {}]  }
   0x1   :  { %v4_v0 = vld [vmem:[%s55_s0] sm:$0xf]  ;;  %s36_s0 = smov 12  }
   0x2   :  { %5 = vst [vmem:[#allocation1] sm:$0xf] %v4_v0 }
   0x9   :  { %v10_v1 = vld [vmem:[#allocation1 + $0x3] sm:$0x1]   ;;  %v22_v2 = vld [vmem:[#allocation1 + $0x1] sm:$0x1]   ;;  %v6_v3 = vld [vmem:[#allocation1] sm:$0x1]  }
   0xa   :  { %11 = vrot.lane.b32.xlu0 %v10_v1, %s36_s0  ;;  %23 = vrot.lane.b32.xlu1 %v22_v2, %s37_s8  ;;  %v16_v4 = vld [vmem:[#allocation1 + $0x2] sm:$0x1]   ;;  %8 = vst.msk [vmem:[#allocation0] sm:$0x1] %vm7_vm0, %v6_v3  }
   0xe   :  { %17 = vrot.lane.b32.xlu0 %v16_v4, %s38_s9 }
  0x7c   :  { %v12_v5 = vpop.permute.xlu0 %11   ;;  %v24_v6 = vpop.permute.xlu1 %23  }
  0x7d   :  { %14 = vst.msk [vmem:[#allocation0] sm:$0x1] %vm13_vm1, %v12_v5  }
  0x80   :  { %v18_v7 = vpop.permute.xlu0 %17  }
  0x81   :  { %20 = vst.msk [vmem:[#allocation0] sm:$0x1] %vm19_vm2, %v18_v7  }
  0x82   :  { %26 = vst.msk [vmem:[#allocation0] sm:$0x1] %vm25_vm3, %v24_v6  }
  0x89   :  { %v30_v8 = vld [vmem:[#allocation0] sm:$0x1] }
  0x8a   :  { %32 = vst [vmem:[%s56_s1] sm:$0x1] %v30_v8 }

// kernel: _lambda_.33
= control target key start
LH: loop header
LB: loop body
LE: loop exit
PB: predicated region body
PF: predicated region fallthrough
CT: control target
= control target key end

     0   :  { %s1310_s12 = smov 0   ;;  %s1312_s13 = smov 0   ;;  %s1684_s0 = inlined_call_operand.vmem [shape: bf16[512,144], index: 0, kind: input, shape index: {}]   ;;  %s1685_s1 = inlined_call_operand.vmem [shape: bf16[144,16], index: 1, kind: input, shape index: {}]   ;;  %s1686_s2 = inlined_call_operand.vmem [shape: f32[1,16], index: 2, kind: input, shape index: {}]   ;;  %s1687_s3 = inlined_call_operand.vmem [shape: f32[512,16], index: 3, kind: output, shape index: {}]  }
   0x1   :  { %s1314_s14 = smov 0  }
   0x2 LB: > { %s25_s15 = sadd.s32 1, %s1282_s13  ;;  %p1080_p0 = scmp.ge.s32.totalorder %s1286_s14, 1  ;;  %s1286_s14 = sphi %s1314_s14, %s13_s14   ;;  %s1282_s13 = sphi %s1312_s13, %s1689_s13   ;;  %s1278_s12 = sphi %s1310_s12, %s1688_s12  }
   0x3   : > { %p27_p1 = scmp.ge.s32.totalorder %s25_s15, 2  ;;  %p169_p2 = scmp.lt.s32.totalorder %s1286_s14, 3 }
   0x5   : > { %s1691_s15 = smov (%p27_p1, %s25_s15), 0  ;;  %p170_p3 = pnand %p1080_p0, %p169_p2 }
   0x6   : > { %v1191_v0 = vld [vmem:[%s1685_s1] sm:$0xff] (!%p170_p3)   ;;  %v1288_v1 = vmov (!%p170_p3), 0   ;;  %s1081_s18 = sshll.u32 (!%p170_p3), %s1278_s12, 5  ;;  %v1192_v2 = vld [vmem:[%s1685_s1 + $0x8] sm:$0xff] (!%p170_p3)   ;;  %vm296_vm0 = vcmask (!%p170_p3), 130048   ;;  %v1193_v3 = vld [vmem:[%s1685_s1 + $0x10] sm:$0xff] (!%p170_p3)  }
   0x7   : > { %173 = sbr.rel (%p170_p3) target bundleno = 339 (0x153), region = 32  ;;  %626 = vmatprep.subr.bf16.mxu0 (!%p170_p3), %v1288_v1  ;;  %1147 = vmatprep.subr.bf16.mxu1 (!%p170_p3), %v1288_v1  ;;  %p205_p4 = scmp.lt.s32.totalorder (!%p170_p3), %s1081_s18, 63  ;;  %v1289_v4 = vmov (!%p170_p3), 0.0   ;;  %v1194_v8 = vld [vmem:[%s1685_s1 + $0x18] sm:$0xff] (!%p170_p3)   ;;  %v1195_v16 = vld [vmem:[%s1685_s1 + $0x20] sm:$0xff] (!%p170_p3)   ;;  %v1196_v17 = vld [vmem:[%s1685_s1 + $0x28] sm:$0xff] (!%p170_p3)  }
   0x8   : > { %627 = vmatpush1.bf16.msra.mxu0 (!%p170_p3), %v1191_v0  ;;  %1156 = vmatpush1.bf16.msra.mxu1 (!%p170_p3), %v1191_v0  ;;  %297 = vst.msk [vmem:[#allocation2] sm:$0xff] (!%p170_p3), %vm296_vm0, %v1289_v4  ;;  %298 = vst.msk [vmem:[#allocation2 + $0x8] sm:$0xff] (!%p170_p3), %vm296_vm0, %v1289_v4  ;;  %v1197_v18 = vld [vmem:[%s1685_s1 + $0x30] sm:$0xff] (!%p170_p3)   ;;  %v1198_v26 = vld [vmem:[%s1685_s1 + $0x38] sm:$0xff] (!%p170_p3)  }
   0x9   : > { %628 = vmatprep.subr.bf16.mxu0 (!%p170_p3), %v1288_v1  ;;  %1148 = vmatprep.subr.bf16.mxu1 (!%p170_p3), %v1288_v1  ;;  %299 = vst.msk [vmem:[#allocation2 + $0x10] sm:$0xff] (!%p170_p3), %vm296_vm0, %v1289_v4  ;;  %300 = vst.msk [vmem:[#allocation2 + $0x18] sm:$0xff] (!%p170_p3), %vm296_vm0, %v1289_v4  ;;  %v1199_v37 = vld [vmem:[%s1685_s1 + $0x40] sm:$0xff] (!%p170_p3)  }
   0xa   : > { %301 = vst.msk [vmem:[#allocation2 + $0x20] sm:$0xff] (!%p170_p3), %vm296_vm0, %v1289_v4  ;;  %302 = vst.msk [vmem:[#allocation2 + $0x28] sm:$0xff] (!%p170_p3), %vm296_vm0, %v1289_v4 }
   0xb   : > { %303 = vst.msk [vmem:[#allocation2 + $0x30] sm:$0xff] (!%p170_p3), %vm296_vm0, %v1289_v4  ;;  %304 = vst.msk [vmem:[#allocation2 + $0x38] sm:$0xff] (!%p170_p3), %vm296_vm0, %v1289_v4 }
   0xc   : > { %629 = vmatpush1.bf16.msra.mxu0 (!%p170_p3), %v1192_v2  ;;  %1157 = vmatpush1.bf16.msra.mxu1 (!%p170_p3), %v1192_v2  ;;  %305 = vst.msk [vmem:[#allocation2 + $0x40] sm:$0xff] (!%p170_p3), %vm296_vm0, %v1289_v4  ;;  %306 = vst.msk [vmem:[#allocation2 + $0x48] sm:$0xff] (!%p170_p3), %vm296_vm0, %v1289_v4 }
   0xd   : > { %307 = vst.msk [vmem:[#allocation2 + $0x50] sm:$0xff] (!%p170_p3), %vm296_vm0, %v1289_v4  ;;  %308 = vst.msk [vmem:[#allocation2 + $0x58] sm:$0xff] (!%p170_p3), %vm296_vm0, %v1289_v4  ;;  %630 = vmatprep.subr.bf16.mxu0 (!%p170_p3), %v1288_v1  ;;  %1149 = vmatprep.subr.bf16.mxu1 (!%p170_p3), %v1288_v1 }
   0xe   : > { %s1693_s18 = smov (!%p205_p4, %s1081_s18), 63  ;;  %309 = vst.msk [vmem:[#allocation2 + $0x60] sm:$0xff] %vm296_vm0, %v1289_v4  ;;  %310 = vst.msk [vmem:[#allocation2 + $0x68] sm:$0xff] %vm296_vm0, %v1289_v4 }
   0xf   : > { %s1146_s23 = sshll.u32 %s1693_s18, 3  ;;  %311 = vst.msk [vmem:[#allocation2 + $0x70] sm:$0xff] %vm296_vm0, %v1289_v4  ;;  %312 = vst.msk [vmem:[#allocation2 + $0x78] sm:$0xff] %vm296_vm0, %v1289_v4 }
  0x10   : > { %313 = vst.msk [vmem:[#allocation2 + $0x80] sm:$0xff] %vm296_vm0, %v1289_v4  ;;  %314 = vst.msk [vmem:[#allocation2 + $0x88] sm:$0xff] %vm296_vm0, %v1289_v4  ;;  %s1383_s26 = scalar_lea.vmem %s1684_s0, %s1146_s23  ;;  %631 = vmatpush1.bf16.msra.mxu0 %v1193_v3  ;;  %1158 = vmatpush1.bf16.msra.mxu1 %v1193_v3  ;;  %s1561_s20 = scalar_lea.vmem %s1687_s3, %s1146_s23 }
  0x11   : > { %315 = vst.msk [vmem:[#allocation2 + $0x90] sm:$0xff] %vm296_vm0, %v1289_v4  ;;  %316 = vst.msk [vmem:[#allocation2 + $0x98] sm:$0xff] %vm296_vm0, %v1289_v4  ;;  %v228_v5 = vld [vmem:[%s1383_s26] sm:$0xff]  ;;  %v229_v6 = vld [vmem:[%s1383_s26 + $0x8] sm:$0xff]  ;;  %632 = vmatprep.subr.bf16.mxu0 %v1288_v1  ;;  %1150 = vmatprep.subr.bf16.mxu1 %v1288_v1 }
  0x12   : > { %317 = vst.msk [vmem:[#allocation2 + $0xa0] sm:$0xff] %vm296_vm0, %v1289_v4  ;;  %318 = vst.msk [vmem:[#allocation2 + $0xa8] sm:$0xff] %vm296_vm0, %v1289_v4  ;;  %v244_v7 = vld [vmem:[%s1383_s26 + $0x80] sm:$0xff]  ;;  %v1392_v9 = vmax.bf16 %v1288_v1, %v228_v5  ;;  %v1395_v10 = vmax.bf16 %v1288_v1, %v229_v6  ;;  %v245_v11 = vld [vmem:[%s1383_s26 + $0x88] sm:$0xff] }
  0x13   : > { %319 = vst.msk [vmem:[#allocation2 + $0xb0] sm:$0xff] %vm296_vm0, %v1289_v4  ;;  %320 = vst.msk [vmem:[#allocation2 + $0xb8] sm:$0xff] %vm296_vm0, %v1289_v4  ;;  %v1399_v12 = vmax.bf16 %v1288_v1, %v244_v7  ;;  %v277_v13 = vmax.bf16 %v1288_v1, %v245_v11  ;;  %v242_v19 = vld [vmem:[%s1383_s26 + $0x70] sm:$0xff]  ;;  %v243_v20 = vld [vmem:[%s1383_s26 + $0x78] sm:$0xff] }
  0x14   : > { %321 = vst.msk [vmem:[#allocation2 + $0xc0] sm:$0xff] %vm296_vm0, %v1289_v4  ;;  %322 = vst.msk [vmem:[#allocation2 + $0xc8] sm:$0xff] %vm296_vm0, %v1289_v4  ;;  %v1087_v14 = vcombine.high %v1392_v9, %v1395_v10  ;;  %633 = vmatpush1.bf16.msra.mxu0 %v1194_v8  ;;  %1159 = vmatpush1.bf16.msra.mxu1 %v1194_v8  ;;  %v258_v21 = vld [vmem:[%s1383_s26 + $0xf0] sm:$0xff]  ;;  %v259_v22 = vld [vmem:[%s1383_s26 + $0xf8] sm:$0xff]  ;;  %v1429_v23 = vmax.bf16 %v1288_v1, %v242_v19 }
  0x15   : > { %323 = vst.msk [vmem:[#allocation2 + $0xd0] sm:$0xff] %vm296_vm0, %v1289_v4  ;;  %324 = vst.msk [vmem:[#allocation2 + $0xd8] sm:$0xff] %vm296_vm0, %v1289_v4  ;;  %v1103_v15 = vcombine.high %v1399_v12, %v277_v13  ;;  %634 = vmatprep.subr.bf16.mxu0 %v1288_v1  ;;  %1151 = vmatprep.subr.bf16.mxu1 %v1288_v1  ;;  %v1432_v24 = vmax.bf16 %v1288_v1, %v243_v20  ;;  %v230_v27 = vld [vmem:[%s1383_s26 + $0x10] sm:$0xff]  ;;  %v231_v29 = vld [vmem:[%s1383_s26 + $0x18] sm:$0xff] }
  0x16   : > { %325 = vst.msk [vmem:[#allocation2 + $0xe0] sm:$0xff] %vm296_vm0, %v1289_v4  ;;  %326 = vst.msk [vmem:[#allocation2 + $0xe8] sm:$0xff] %vm296_vm0, %v1289_v4  ;;  %1127 = vmatprep.mubr.msk.bf16.mxu0 %vm296_vm0, %v1087_v14  ;;  %v1435_v25 = vmax.bf16 %v1288_v1, %v258_v21  ;;  %v1442_v28 = vmax.bf16 %v1288_v1, %v259_v22  ;;  %v246_v30 = vld [vmem:[%s1383_s26 + $0x90] sm:$0xff]  ;;  %v247_v31 = vld [vmem:[%s1383_s26 + $0x98] sm:$0xff]  ;;  %v262_v36 = vmax.bf16 %v1288_v1, %v230_v27 }
  0x17   : > { %327 = vst.msk [vmem:[#allocation2 + $0xf0] sm:$0xff] %vm296_vm0, %v1289_v4  ;;  %328 = vst.msk [vmem:[#allocation2 + $0xf8] sm:$0xff] %vm296_vm0, %v1289_v4  ;;  %1135 = vmatprep.mubr.msk.bf16.mxu1 %vm296_vm0, %v1103_v15  ;;  %v1101_v32 = vcombine.high %v1429_v23, %v1432_v24  ;;  %v1100_v34 = vcombine.low %v1429_v23, %v1432_v24  ;;  %v263_v38 = vmax.bf16 %v1288_v1, %v231_v29  ;;  %v232_v45 = vld [vmem:[%s1383_s26 + $0x20] sm:$0xff]  ;;  %v233_v46 = vld [vmem:[%s1383_s26 + $0x28] sm:$0xff] }
  0x18   : > { %635 = vmatpush1.bf16.msra.mxu0 %v1195_v16  ;;  %1160 = vmatpush1.bf16.msra.mxu1 %v1195_v16  ;;  %v1117_v33 = vcombine.high %v1435_v25, %v1442_v28  ;;  %v1116_v35 = vcombine.low %v1435_v25, %v1442_v28  ;;  %v278_v39 = vmax.bf16 %v1288_v1, %v246_v30  ;;  %v248_v47 = vld [vmem:[%s1383_s26 + $0xa0] sm:$0xff]  ;;  %v249_v48 = vld [vmem:[%s1383_s26 + $0xa8] sm:$0xff]  ;;  %v234_v57 = vld [vmem:[%s1383_s26 + $0x30] sm:$0xff] }
  0x19   : > { %636 = vmatprep.subr.bf16.mxu0 %v1288_v1  ;;  %1152 = vmatprep.subr.bf16.mxu1 %v1288_v1  ;;  %v279_v40 = vmax.bf16 %v1288_v1, %v247_v31  ;;  %v1086_v41 = vcombine.low %v1392_v9, %v1395_v10  ;;  %v1102_v42 = vcombine.low %v1399_v12, %v277_v13  ;;  %v235_v58 = vld [vmem:[%s1383_s26 + $0x38] sm:$0xff]  ;;  %v250_v59 = vld [vmem:[%s1383_s26 + $0xb0] sm:$0xff]  ;;  %v236_v6 = vld [vmem:[%s1383_s26 + $0x40] sm:$0xff] }
  0x1a   : > { %v1089_v43 = vcombine.high %v262_v36, %v263_v38  ;;  %v264_v49 = vmax.bf16 %v1288_v1, %v232_v45  ;;  %v265_v50 = vmax.bf16 %v1288_v1, %v233_v46  ;;  %v280_v51 = vmax.bf16 %v1288_v1, %v248_v47  ;;  %v251_v60 = vld [vmem:[%s1383_s26 + $0xb8] sm:$0xff]  ;;  %v237_v7 = vld [vmem:[%s1383_s26 + $0x48] sm:$0xff]  ;;  %v252_v8 = vld [vmem:[%s1383_s26 + $0xc0] sm:$0xff] }
  0x1b   : > { %v1105_v44 = vcombine.high %v278_v39, %v279_v40  ;;  %v281_v52 = vmax.bf16 %v1288_v1, %v249_v48  ;;  %v1088_v53 = vcombine.low %v262_v36, %v263_v38  ;;  %v1104_v54 = vcombine.low %v278_v39, %v279_v40  ;;  %v253_v9 = vld [vmem:[%s1383_s26 + $0xc8] sm:$0xff]  ;;  %v239_v19 = vld [vmem:[%s1383_s26 + $0x58] sm:$0xff]  ;;  %v254_v20 = vld [vmem:[%s1383_s26 + $0xd0] sm:$0xff] }
  0x1c   : > { %637 = vmatpush1.bf16.msra.mxu0 %v1196_v17  ;;  %1161 = vmatpush1.bf16.msra.mxu1 %v1196_v17  ;;  %v1091_v55 = vcombine.high %v264_v49, %v265_v50  ;;  %v266_v61 = vmax.bf16 %v1288_v1, %v234_v57  ;;  %v267_v62 = vmax.bf16 %v1288_v1, %v235_v58  ;;  %v255_v21 = vld [vmem:[%s1383_s26 + $0xd8] sm:$0xff]  ;;  %v240_v38 = vld [vmem:[%s1383_s26 + $0x60] sm:$0xff]  ;;  %v241_v39 = vld [vmem:[%s1383_s26 + $0x68] sm:$0xff] }
  0x1d   : > { %638 = vmatprep.subr.bf16.mxu0 %v1288_v1  ;;  %1153 = vmatprep.subr.bf16.mxu1 %v1288_v1  ;;  %v1107_v56 = vcombine.high %v280_v51, %v281_v52  ;;  %v282_v63 = vmax.bf16 %v1288_v1, %v250_v59  ;;  %v283_v0 = vmax.bf16 %v1288_v1, %v251_v60  ;;  %v256_v40 = vld [vmem:[%s1383_s26 + $0xe0] sm:$0xff] }
  0x1e   : > { %v1090_v2 = vcombine.low %v264_v49, %v265_v50  ;;  %v1106_v3 = vcombine.low %v280_v51, %v281_v52  ;;  %v1093_v4 = vcombine.high %v266_v61, %v267_v62  ;;  %v268_v10 = vmax.bf16 %v1288_v1, %v236_v6  ;;  %v345_v52 = vld [vmem:[#allocation2 + $0x80] sm:$0xff] }
  0x1f   : > { %v1109_v5 = vcombine.high %v282_v63, %v283_v0  ;;  %v269_v11 = vmax.bf16 %v1288_v1, %v237_v7  ;;  %v284_v12 = vmax.bf16 %v1288_v1, %v252_v8  ;;  %v285_v13 = vmax.bf16 %v1288_v1, %v253_v9 }
  0x20   : > { %639 = vmatpush1.bf16.msra.mxu0 %v1197_v18  ;;  %1162 = vmatpush1.bf16.msra.mxu1 %v1197_v18  ;;  %v1092_v14 = vcombine.low %v266_v61, %v267_v62  ;;  %v1108_v15 = vcombine.low %v282_v63, %v283_v0  ;;  %v238_v18 = vld [vmem:[%s1383_s26 + $0x50] sm:$0xff]  ;;  %v286_v27 = vmax.bf16 %v1288_v1, %v254_v20  ;;  %v1542_v61 = vld [vmem:[%s1686_s2] ss:$0 sm:$0xff]  ;;  %v332_v0 = vld [vmem:[#allocation2 + $0x18] sm:$0xff] }
  0x21   : > { %640 = vmatprep.subr.bf16.mxu0 %v1288_v1  ;;  %1154 = vmatprep.subr.bf16.mxu1 %v1288_v1  ;;  %v1095_v16 = vcombine.high %v268_v10, %v269_v11  ;;  %v1111_v17 = vcombine.high %v284_v12, %v285_v13  ;;  %v270_v22 = vmax.bf16 %v1288_v1, %v238_v18 }
  0x22   : > { %v287_v29 = vmax.bf16 %v1288_v1, %v255_v21  ;;  %v1094_v30 = vcombine.low %v268_v10, %v269_v11  ;;  %v1110_v31 = vcombine.low %v284_v12, %v285_v13  ;;  %v333_v21 = vld [vmem:[#allocation2 + $0x20] sm:$0xff] }
  0x24   : > { %641 = vmatpush1.bf16.msra.mxu0 %v1198_v26  ;;  %1163 = vmatpush1.bf16.msra.mxu1 %v1198_v26  ;;  %v271_v26 = vmax.bf16 %v1288_v1, %v239_v19  ;;  %v1112_v47 = vcombine.low %v286_v27, %v287_v29 }
  0x25   : > { %642 = vmatprep.subr.bf16.mxu0 %v1288_v1  ;;  %1155 = vmatprep.subr.bf16.mxu1 %v1288_v1 }
  0x26   : > { %v1097_v36 = vcombine.high %v270_v22, %v271_v26  ;;  %v1096_v46 = vcombine.low %v270_v22, %v271_v26  ;;  %v349_v22 = vld [vmem:[#allocation2 + $0xa0] sm:$0xff] }
  0x28   : > { %643 = vmatpush1.bf16.msra.mxu0 %v1199_v37  ;;  %1164 = vmatpush1.bf16.msra.mxu1 %v1199_v37  ;;  %v1113_v37 = vcombine.high %v286_v27, %v287_v29  ;;  %v334_v29 = vld [vmem:[#allocation2 + $0x28] sm:$0xff] }
  0x2b   : > { %659 = vmatmul.mubr.bf16.vlgmr.msra.gmra.mrb[0].mxu0 %v1086_v41  ;;  %723 = vmatmul.mubr.bf16.vlgmr.msra.gmra.mrb[0].mxu1 %v1102_v42  ;;  %v257_v41 = vld [vmem:[%s1383_s26 + $0xe8] sm:$0xff]  ;;  %v272_v42 = vmax.bf16 %v1288_v1, %v240_v38 }
  0x2c   : > { %1128 = vmatprep.mubr.msk.bf16.mxu0 %vm296_vm0, %v1089_v43  ;;  %1136 = vmatprep.mubr.msk.bf16.mxu1 %vm296_vm0, %v1105_v44  ;;  %v273_v43 = vmax.bf16 %v1288_v1, %v241_v39  ;;  %v288_v44 = vmax.bf16 %v1288_v1, %v256_v40  ;;  %v289_v45 = vmax.bf16 %v1288_v1, %v257_v41  ;;  %v329_v1 = vld [vmem:[#allocation2] sm:$0xff] }
  0x2e   : > { %v1099_v48 = vcombine.high %v272_v42, %v273_v43  ;;  %v1115_v49 = vcombine.high %v288_v44, %v289_v45  ;;  %v1098_v50 = vcombine.low %v272_v42, %v273_v43  ;;  %v1114_v51 = vcombine.low %v288_v44, %v289_v45 }
  0x33   : > { %667 = vmatmul.mubr.bf16.gmra.mrb[4].mxu0 %v1088_v53  ;;  %731 = vmatmul.mubr.bf16.gmra.mrb[4].mxu1 %v1104_v54 }
  0x34   : > { %1129 = vmatprep.mubr.msk.bf16.mxu0 %vm296_vm0, %v1091_v55  ;;  %1137 = vmatprep.mubr.msk.bf16.mxu1 %vm296_vm0, %v1107_v56  ;;  %v330_v55 = vld [vmem:[#allocation2 + $0x8] sm:$0xff] }
  0x35   : > { %v346_v56 = vld [vmem:[#allocation2 + $0x88] sm:$0xff] }
  0x3b   : > { %675 = vmatmul.mubr.bf16.gmra.mrb[8].mxu0 %v1090_v2  ;;  %739 = vmatmul.mubr.bf16.gmra.mrb[8].mxu1 %v1106_v3  ;;  %v348_v2 = vld [vmem:[#allocation2 + $0x98] sm:$0xff] }
  0x3c   : > { %1130 = vmatprep.mubr.msk.bf16.mxu0 %vm296_vm0, %v1093_v4  ;;  %1138 = vmatprep.mubr.msk.bf16.mxu1 %vm296_vm0, %v1109_v5 }
  0x43   : > { %683 = vmatmul.mubr.bf16.gmra.mrb[12].mxu0 %v1092_v14  ;;  %747 = vmatmul.mubr.bf16.gmra.mrb[12].mxu1 %v1108_v15 }
  0x44   : > { %1131 = vmatprep.mubr.msk.bf16.mxu0 %vm296_vm0, %v1095_v16  ;;  %1139 = vmatprep.mubr.msk.bf16.mxu1 %vm296_vm0, %v1111_v17 }
  0x4b   : > { %691 = vmatmul.mubr.bf16.gmra.mrb[16].mxu0 %v1094_v30  ;;  %755 = vmatmul.mubr.bf16.gmra.mrb[16].mxu1 %v1110_v31  ;;  %v350_v30 = vld [vmem:[#allocation2 + $0xa8] sm:$0xff] }
  0x4c   : > { %1132 = vmatprep.mubr.msk.bf16.mxu0 %vm296_vm0, %v1097_v36  ;;  %1140 = vmatprep.mubr.msk.bf16.mxu1 %vm296_vm0, %v1113_v37 }
  0x53   : > { %699 = vmatmul.mubr.bf16.gmra.mrb[20].mxu0 %v1096_v46  ;;  %763 = vmatmul.mubr.bf16.gmra.mrb[20].mxu1 %v1112_v47 }
  0x54   : > { %1133 = vmatprep.mubr.msk.bf16.mxu0 %vm296_vm0, %v1099_v48  ;;  %1141 = vmatprep.mubr.msk.bf16.mxu1 %vm296_vm0, %v1115_v49 }
  0x5b   : > { %707 = vmatmul.mubr.bf16.gmra.mrb[24].mxu0 %v1098_v50  ;;  %771 = vmatmul.mubr.bf16.gmra.mrb[24].mxu1 %v1114_v51 }
  0x5c   : > { %1134 = vmatprep.mubr.msk.bf16.mxu0 %vm296_vm0, %v1101_v32  ;;  %1142 = vmatprep.mubr.msk.bf16.mxu1 %vm296_vm0, %v1117_v33 }
  0x63   : > { %715 = vmatmul.mubr.bf16.gmra.mrb[28].mxu0 %v1100_v34  ;;  %779 = vmatmul.mubr.bf16.gmra.mrb[28].mxu1 %v1116_v35  ;;  %v331_v34 = vld [vmem:[#allocation2 + $0x10] sm:$0xff] }
  0x64   : > { %v347_v35 = vld [vmem:[#allocation2 + $0x90] sm:$0xff] }
  0xfe   : > { %v660_v53 = vpop.f32.mrb[0].mxu0  ;;  %v724_v54 = vpop.f32.mrb[0].mxu1 }
  0xff   : > { %v787_v32 = vadd.f32 %v660_v53, %v329_v1  ;;  %v803_v57 = vadd.f32 %v724_v54, %v345_v52  ;;  %v662_v58 = vpop.f32.mrb[1].mxu0  ;;  %v726_v59 = vpop.f32.mrb[1].mxu1  ;;  %v335_v52 = vld [vmem:[#allocation2 + $0x30] sm:$0xff] }
 0x100   : > { %v663_v60 = vpop.f32.mrb[2].mxu0  ;;  %v727_v33 = vpop.f32.mrb[2].mxu1  ;;  %v351_v53 = vld [vmem:[#allocation2 + $0xb0] sm:$0xff]  ;;  %v352_v58 = vld [vmem:[#allocation2 + $0xb8] sm:$0xff] }
 0x101   : > { %819 = vst.msk [vmem:[#allocation2] sm:$0xff] %vm296_vm0, %v787_v32  ;;  %835 = vst.msk [vmem:[#allocation2 + $0x80] sm:$0xff] %vm296_vm0, %v803_v57  ;;  %v788_v23 = vadd.f32 %v663_v60, %v330_v55  ;;  %v804_v24 = vadd.f32 %v727_v33, %v346_v56  ;;  %v665_v25 = vpop.f32.mrb[3].mxu0  ;;  %v729_v28 = vpop.f32.mrb[3].mxu1  ;;  %v336_v57 = vld [vmem:[#allocation2 + $0x38] sm:$0xff] }
 0x103   : > { %820 = vst.msk [vmem:[#allocation2 + $0x8] sm:$0xff] %vm296_vm0, %v788_v23  ;;  %836 = vst.msk [vmem:[#allocation2 + $0x88] sm:$0xff] %vm296_vm0, %v804_v24 }
 0x106   : > { %v668_v62 = vpop.f32.mrb[4].mxu0  ;;  %v732_v63 = vpop.f32.mrb[4].mxu1 }
 0x107   : > { %v789_v3 = vadd.f32 %v668_v62, %v331_v34  ;;  %v805_v4 = vadd.f32 %v732_v63, %v347_v35  ;;  %v670_v5 = vpop.f32.mrb[5].mxu0  ;;  %v734_v6 = vpop.f32.mrb[5].mxu1 }
 0x108   : > { %v854_v7 = vld [vmem:[#allocation2] sm:$0xff]  ;;  %v671_v9 = vpop.f32.mrb[6].mxu0  ;;  %v735_v10 = vpop.f32.mrb[6].mxu1 }
 0x109   : > { %v870_v8 = vld [vmem:[#allocation2 + $0x80] sm:$0xff]  ;;  %v893_v11 = vadd.f32 %v1542_v61, %v854_v7  ;;  %821 = vst.msk [vmem:[#allocation2 + $0x10] sm:$0xff] %vm296_vm0, %v789_v3  ;;  %837 = vst.msk [vmem:[#allocation2 + $0x90] sm:$0xff] %vm296_vm0, %v805_v4  ;;  %v790_v13 = vadd.f32 %v671_v9, %v332_v0  ;;  %v806_v14 = vadd.f32 %v735_v10, %v348_v2  ;;  %v673_v15 = vpop.f32.mrb[7].mxu0  ;;  %v737_v16 = vpop.f32.mrb[7].mxu1 }
 0x10a   : > { %v909_v12 = vadd.f32 %v1542_v61, %v870_v8  ;;  %v855_v17 = vld [vmem:[#allocation2 + $0x8] sm:$0xff]  ;;  %v337_v10 = vld [vmem:[#allocation2 + $0x40] sm:$0xff] }
 0x10b   : > { %v871_v18 = vld [vmem:[#allocation2 + $0x88] sm:$0xff]  ;;  %1200 = vtanh.f32 %v893_v11  ;;  %v894_v19 = vadd.f32 %v1542_v61, %v855_v17  ;;  %822 = vst.msk [vmem:[#allocation2 + $0x18] sm:$0xff] %vm296_vm0, %v790_v13  ;;  %838 = vst.msk [vmem:[#allocation2 + $0x98] sm:$0xff] %vm296_vm0, %v806_v14  ;;  %v353_v11 = vld [vmem:[#allocation2 + $0xc0] sm:$0xff] }
 0x10c   : > { %v910_v20 = vadd.f32 %v1542_v61, %v871_v18  ;;  %1202 = vtanh.f32 %v909_v12  ;;  %v338_v16 = vld [vmem:[#allocation2 + $0x48] sm:$0xff] }
 0x10d   : > { %1204 = vtanh.f32 %v894_v19  ;;  %v354_v17 = vld [vmem:[#allocation2 + $0xc8] sm:$0xff] }
 0x10e   : > { %1206 = vtanh.f32 %v910_v20  ;;  %v676_v26 = vpop.f32.mrb[8].mxu0  ;;  %v740_v27 = vpop.f32.mrb[8].mxu1 }
 0x10f   : > { %v791_v31 = vadd.f32 %v676_v26, %v333_v21  ;;  %v807_v36 = vadd.f32 %v740_v27, %v349_v22  ;;  %v678_v37 = vpop.f32.mrb[9].mxu0  ;;  %v742_v38 = vpop.f32.mrb[9].mxu1 }
 0x110   : > { %v856_v39 = vld [vmem:[#allocation2 + $0x10] sm:$0xff]  ;;  %v679_v41 = vpop.f32.mrb[10].mxu0  ;;  %v743_v42 = vpop.f32.mrb[10].mxu1 }
 0x111   : > { %v872_v40 = vld [vmem:[#allocation2 + $0x90] sm:$0xff]  ;;  %v895_v43 = vadd.f32 %v1542_v61, %v856_v39  ;;  %823 = vst.msk [vmem:[#allocation2 + $0x20] sm:$0xff] %vm296_vm0, %v791_v31  ;;  %839 = vst.msk [vmem:[#allocation2 + $0xa0] sm:$0xff] %vm296_vm0, %v807_v36  ;;  %v792_v45 = vadd.f32 %v679_v41, %v334_v29  ;;  %v808_v46 = vadd.f32 %v743_v42, %v350_v30  ;;  %v681_v47 = vpop.f32.mrb[11].mxu0  ;;  %v745_v48 = vpop.f32.mrb[11].mxu1 }
 0x112   : > { %v911_v44 = vadd.f32 %v1542_v61, %v872_v40  ;;  %v857_v49 = vld [vmem:[#allocation2 + $0x18] sm:$0xff]  ;;  %v355_v47 = vld [vmem:[#allocation2 + $0xd0] sm:$0xff] }
 0x113   : > { %v873_v50 = vld [vmem:[#allocation2 + $0x98] sm:$0xff]  ;;  %1208 = vtanh.f32 %v895_v43  ;;  %v896_v51 = vadd.f32 %v1542_v61, %v857_v49  ;;  %824 = vst.msk [vmem:[#allocation2 + $0x28] sm:$0xff] %vm296_vm0, %v792_v45  ;;  %840 = vst.msk [vmem:[#allocation2 + $0xa8] sm:$0xff] %vm296_vm0, %v808_v46  ;;  %v339_v46 = vld [vmem:[#allocation2 + $0x50] sm:$0xff] }
 0x114   : > { %v912_v1 = vadd.f32 %v1542_v61, %v873_v50  ;;  %1210 = vtanh.f32 %v911_v44 }
 0x115   : > { %v1201_v54 = vpop.eup %1200  ;;  %1212 = vtanh.f32 %v896_v51 }
 0x116   : > { %v1203_v55 = vpop.eup %1202  ;;  %957 = vst.msk [vmem:[%s1561_s20] sm:$0xff] %vm296_vm0, %v1201_v54  ;;  %1214 = vtanh.f32 %v912_v1  ;;  %v684_v56 = vpop.f32.mrb[12].mxu0  ;;  %v340_v1 = vld [vmem:[#allocation2 + $0x58] sm:$0xff] }
 0x117   : > { %v748_v32 = vpop.f32.mrb[12].mxu1  ;;  %v1205_v59 = vpop.eup %1204  ;;  %973 = vst.msk [vmem:[%s1561_s20 + $0x80] sm:$0xff] %vm296_vm0, %v1203_v55  ;;  %v793_v60 = vadd.f32 %v684_v56, %v335_v52  ;;  %v356_v52 = vld [vmem:[#allocation2 + $0xd8] sm:$0xff] }
 0x118   : > { %v809_v33 = vadd.f32 %v748_v32, %v351_v53  ;;  %v686_v23 = vpop.f32.mrb[13].mxu0  ;;  %v750_v24 = vpop.f32.mrb[13].mxu1  ;;  %958 = vst.msk [vmem:[%s1561_s20 + $0x8] sm:$0xff] %vm296_vm0, %v1205_v59  ;;  %v858_v28 = vld [vmem:[#allocation2 + $0x20] sm:$0xff] }
 0x119   : > { %v1207_v25 = vpop.eup %1206  ;;  %v874_v34 = vld [vmem:[#allocation2 + $0xa0] sm:$0xff]  ;;  %v687_v35 = vpop.f32.mrb[14].mxu0  ;;  %v897_v63 = vadd.f32 %v1542_v61, %v858_v28  ;;  %825 = vst.msk [vmem:[#allocation2 + $0x30] sm:$0xff] %vm296_vm0, %v793_v60 }
 0x11a   : > { %v751_v62 = vpop.f32.mrb[14].mxu1  ;;  %974 = vst.msk [vmem:[%s1561_s20 + $0x88] sm:$0xff] %vm296_vm0, %v1207_v25  ;;  %v913_v0 = vadd.f32 %v1542_v61, %v874_v34  ;;  %841 = vst.msk [vmem:[#allocation2 + $0xb0] sm:$0xff] %vm296_vm0, %v809_v33  ;;  %v794_v2 = vadd.f32 %v687_v35, %v336_v57  ;;  %v689_v4 = vpop.f32.mrb[15].mxu0  ;;  %v859_v6 = vld [vmem:[#allocation2 + $0x28] sm:$0xff] }
 0x11b   : > { %v810_v3 = vadd.f32 %v751_v62, %v352_v58  ;;  %v753_v5 = vpop.f32.mrb[15].mxu1  ;;  %v875_v7 = vld [vmem:[#allocation2 + $0xa8] sm:$0xff]  ;;  %1216 = vtanh.f32 %v897_v63  ;;  %v898_v8 = vadd.f32 %v1542_v61, %v859_v6  ;;  %v357_v4 = vld [vmem:[#allocation2 + $0xe0] sm:$0xff] }
 0x11c   : > { %v914_v9 = vadd.f32 %v1542_v61, %v875_v7  ;;  %826 = vst.msk [vmem:[#allocation2 + $0x38] sm:$0xff] %vm296_vm0, %v794_v2  ;;  %1218 = vtanh.f32 %v913_v0 }
 0x11d   : > { %842 = vst.msk [vmem:[#allocation2 + $0xb8] sm:$0xff] %vm296_vm0, %v810_v3  ;;  %v1209_v12 = vpop.eup %1208  ;;  %1220 = vtanh.f32 %v898_v8  ;;  %v341_v3 = vld [vmem:[#allocation2 + $0x60] sm:$0xff] }
 0x11e   : > { %v1211_v13 = vpop.eup %1210  ;;  %959 = vst.msk [vmem:[%s1561_s20 + $0x10] sm:$0xff] %vm296_vm0, %v1209_v12  ;;  %1222 = vtanh.f32 %v914_v9  ;;  %v692_v14 = vpop.f32.mrb[16].mxu0  ;;  %v342_v9 = vld [vmem:[#allocation2 + $0x68] sm:$0xff] }
 0x11f   : > { %v756_v15 = vpop.f32.mrb[16].mxu1  ;;  %v1213_v18 = vpop.eup %1212  ;;  %975 = vst.msk [vmem:[%s1561_s20 + $0x90] sm:$0xff] %vm296_vm0, %v1211_v13  ;;  %v795_v19 = vadd.f32 %v692_v14, %v337_v10  ;;  %v358_v10 = vld [vmem:[#allocation2 + $0xe8] sm:$0xff] }
 0x120   : > { %v811_v20 = vadd.f32 %v756_v15, %v353_v11  ;;  %v694_v21 = vpop.f32.mrb[17].mxu0  ;;  %v758_v22 = vpop.f32.mrb[17].mxu1  ;;  %960 = vst.msk [vmem:[%s1561_s20 + $0x18] sm:$0xff] %vm296_vm0, %v1213_v18  ;;  %v860_v27 = vld [vmem:[#allocation2 + $0x30] sm:$0xff] }
 0x121   : > { %v1215_v26 = vpop.eup %1214  ;;  %v876_v29 = vld [vmem:[#allocation2 + $0xb0] sm:$0xff]  ;;  %v695_v30 = vpop.f32.mrb[18].mxu0  ;;  %v899_v36 = vadd.f32 %v1542_v61, %v860_v27  ;;  %827 = vst.msk [vmem:[#allocation2 + $0x40] sm:$0xff] %vm296_vm0, %v795_v19 }
 0x122   : > { %v759_v31 = vpop.f32.mrb[18].mxu1  ;;  %976 = vst.msk [vmem:[%s1561_s20 + $0x98] sm:$0xff] %vm296_vm0, %v1215_v26  ;;  %v915_v37 = vadd.f32 %v1542_v61, %v876_v29  ;;  %843 = vst.msk [vmem:[#allocation2 + $0xc0] sm:$0xff] %vm296_vm0, %v811_v20  ;;  %v796_v38 = vadd.f32 %v695_v30, %v338_v16  ;;  %v697_v40 = vpop.f32.mrb[19].mxu0 }
 0x123   : > { %v812_v39 = vadd.f32 %v759_v31, %v354_v17  ;;  %v761_v41 = vpop.f32.mrb[19].mxu1  ;;  %v861_v42 = vld [vmem:[#allocation2 + $0x38] sm:$0xff]  ;;  %1224 = vtanh.f32 %v899_v36  ;;  %v359_v40 = vld [vmem:[#allocation2 + $0xf0] sm:$0xff] }
 0x124   : > { %v877_v43 = vld [vmem:[#allocation2 + $0xb8] sm:$0xff]  ;;  %v900_v44 = vadd.f32 %v1542_v61, %v861_v42  ;;  %828 = vst.msk [vmem:[#allocation2 + $0x48] sm:$0xff] %vm296_vm0, %v796_v38  ;;  %1226 = vtanh.f32 %v915_v37 }
 0x125   : > { %v916_v45 = vadd.f32 %v1542_v61, %v877_v43  ;;  %844 = vst.msk [vmem:[#allocation2 + $0xc8] sm:$0xff] %vm296_vm0, %v812_v39  ;;  %v1217_v48 = vpop.eup %1216  ;;  %v343_v39 = vld [vmem:[#allocation2 + $0x70] sm:$0xff] }
 0x126   : > { %1228 = vtanh.f32 %v900_v44  ;;  %v1219_v49 = vpop.eup %1218  ;;  %961 = vst.msk [vmem:[%s1561_s20 + $0x20] sm:$0xff] %vm296_vm0, %v1217_v48  ;;  %v700_v50 = vpop.f32.mrb[20].mxu0 }
 0x127   : > { %1230 = vtanh.f32 %v916_v45  ;;  %v764_v51 = vpop.f32.mrb[20].mxu1  ;;  %v1221_v53 = vpop.eup %1220  ;;  %977 = vst.msk [vmem:[%s1561_s20 + $0xa0] sm:$0xff] %vm296_vm0, %v1219_v49  ;;  %v797_v54 = vadd.f32 %v700_v50, %v339_v46  ;;  %v344_v45 = vld [vmem:[#allocation2 + $0x78] sm:$0xff] }
 0x128   : > { %v813_v55 = vadd.f32 %v764_v51, %v355_v47  ;;  %v702_v56 = vpop.f32.mrb[21].mxu0  ;;  %v766_v32 = vpop.f32.mrb[21].mxu1  ;;  %962 = vst.msk [vmem:[%s1561_s20 + $0x28] sm:$0xff] %vm296_vm0, %v1221_v53  ;;  %v862_v58 = vld [vmem:[#allocation2 + $0x40] sm:$0xff]  ;;  %v360_v46 = vld [vmem:[#allocation2 + $0xf8] sm:$0xff] }
 0x129   : > { %v1223_v57 = vpop.eup %1222  ;;  %v878_v59 = vld [vmem:[#allocation2 + $0xc0] sm:$0xff]  ;;  %v703_v60 = vpop.f32.mrb[22].mxu0  ;;  %v901_v23 = vadd.f32 %v1542_v61, %v862_v58  ;;  %829 = vst.msk [vmem:[#allocation2 + $0x50] sm:$0xff] %vm296_vm0, %v797_v54 }
 0x12a   : > { %v767_v33 = vpop.f32.mrb[22].mxu1  ;;  %978 = vst.msk [vmem:[%s1561_s20 + $0xa8] sm:$0xff] %vm296_vm0, %v1223_v57  ;;  %v917_v24 = vadd.f32 %v1542_v61, %v878_v59  ;;  %845 = vst.msk [vmem:[#allocation2 + $0xd0] sm:$0xff] %vm296_vm0, %v813_v55  ;;  %v798_v25 = vadd.f32 %v703_v60, %v340_v1  ;;  %v705_v34 = vpop.f32.mrb[23].mxu0 }
 0x12b   : > { %v814_v28 = vadd.f32 %v767_v33, %v356_v52  ;;  %v769_v35 = vpop.f32.mrb[23].mxu1  ;;  %v863_v62 = vld [vmem:[#allocation2 + $0x48] sm:$0xff]  ;;  %1232 = vtanh.f32 %v901_v23 }
 0x12c   : > { %v879_v63 = vld [vmem:[#allocation2 + $0xc8] sm:$0xff]  ;;  %v902_v0 = vadd.f32 %v1542_v61, %v863_v62  ;;  %830 = vst.msk [vmem:[#allocation2 + $0x58] sm:$0xff] %vm296_vm0, %v798_v25  ;;  %1234 = vtanh.f32 %v917_v24 }
 0x12d   : > { %v918_v2 = vadd.f32 %v1542_v61, %v879_v63  ;;  %846 = vst.msk [vmem:[#allocation2 + $0xd8] sm:$0xff] %vm296_vm0, %v814_v28  ;;  %v1225_v5 = vpop.eup %1224 }
 0x12e   : > { %1236 = vtanh.f32 %v902_v0  ;;  %v1227_v6 = vpop.eup %1226  ;;  %963 = vst.msk [vmem:[%s1561_s20 + $0x30] sm:$0xff] %vm296_vm0, %v1225_v5  ;;  %v708_v7 = vpop.f32.mrb[24].mxu0 }
 0x12f   : > { %1238 = vtanh.f32 %v918_v2  ;;  %v772_v8 = vpop.f32.mrb[24].mxu1  ;;  %979 = vst.msk [vmem:[%s1561_s20 + $0xb0] sm:$0xff] %vm296_vm0, %v1227_v6  ;;  %v799_v12 = vadd.f32 %v708_v7, %v341_v3  ;;  %v710_v14 = vpop.f32.mrb[25].mxu0 }
 0x130   : > { %v1229_v11 = vpop.eup %1228  ;;  %v815_v13 = vadd.f32 %v772_v8, %v357_v4  ;;  %v774_v15 = vpop.f32.mrb[25].mxu1  ;;  %v864_v17 = vld [vmem:[#allocation2 + $0x50] sm:$0xff] }
 0x131   : > { %v1231_v16 = vpop.eup %1230  ;;  %964 = vst.msk [vmem:[%s1561_s20 + $0x38] sm:$0xff] %vm296_vm0, %v1229_v11  ;;  %v880_v18 = vld [vmem:[#allocation2 + $0xd0] sm:$0xff]  ;;  %v711_v19 = vpop.f32.mrb[26].mxu0  ;;  %v903_v21 = vadd.f32 %v1542_v61, %v864_v17  ;;  %831 = vst.msk [vmem:[#allocation2 + $0x60] sm:$0xff] %vm296_vm0, %v799_v12 }
 0x132   : > { %v775_v20 = vpop.f32.mrb[26].mxu1  ;;  %980 = vst.msk [vmem:[%s1561_s20 + $0xb8] sm:$0xff] %vm296_vm0, %v1231_v16  ;;  %v919_v22 = vadd.f32 %v1542_v61, %v880_v18  ;;  %847 = vst.msk [vmem:[#allocation2 + $0xe0] sm:$0xff] %vm296_vm0, %v815_v13  ;;  %v800_v26 = vadd.f32 %v711_v19, %v342_v9  ;;  %v713_v29 = vpop.f32.mrb[27].mxu0 }
 0x133   : > { %v816_v27 = vadd.f32 %v775_v20, %v358_v10  ;;  %v777_v30 = vpop.f32.mrb[27].mxu1  ;;  %v865_v31 = vld [vmem:[#allocation2 + $0x58] sm:$0xff]  ;;  %1240 = vtanh.f32 %v903_v21 }
 0x134   : > { %v881_v36 = vld [vmem:[#allocation2 + $0xd8] sm:$0xff]  ;;  %v904_v37 = vadd.f32 %v1542_v61, %v865_v31  ;;  %832 = vst.msk [vmem:[#allocation2 + $0x68] sm:$0xff] %vm296_vm0, %v800_v26  ;;  %1242 = vtanh.f32 %v919_v22 }
 0x135   : > { %v920_v38 = vadd.f32 %v1542_v61, %v881_v36  ;;  %848 = vst.msk [vmem:[#allocation2 + $0xe8] sm:$0xff] %vm296_vm0, %v816_v27  ;;  %v1233_v41 = vpop.eup %1232 }
 0x136   : > { %1244 = vtanh.f32 %v904_v37  ;;  %v1235_v42 = vpop.eup %1234  ;;  %965 = vst.msk [vmem:[%s1561_s20 + $0x40] sm:$0xff] %vm296_vm0, %v1233_v41  ;;  %v716_v43 = vpop.f32.mrb[28].mxu0 }
 0x137   : > { %1246 = vtanh.f32 %v920_v38  ;;  %v780_v44 = vpop.f32.mrb[28].mxu1  ;;  %981 = vst.msk [vmem:[%s1561_s20 + $0xc0] sm:$0xff] %vm296_vm0, %v1235_v42  ;;  %v801_v48 = vadd.f32 %v716_v43, %v343_v39  ;;  %v718_v50 = vpop.f32.mrb[29].mxu0 }
 0x138   : > { %v1237_v47 = vpop.eup %1236  ;;  %v817_v49 = vadd.f32 %v780_v44, %v359_v40  ;;  %v782_v51 = vpop.f32.mrb[29].mxu1  ;;  %v866_v52 = vld [vmem:[#allocation2 + $0x60] sm:$0xff] }
 0x139   : > { %v1239_v1 = vpop.eup %1238  ;;  %966 = vst.msk [vmem:[%s1561_s20 + $0x48] sm:$0xff] %vm296_vm0, %v1237_v47  ;;  %v882_v53 = vld [vmem:[#allocation2 + $0xe0] sm:$0xff]  ;;  %v719_v54 = vpop.f32.mrb[30].mxu0  ;;  %v905_v56 = vadd.f32 %v1542_v61, %v866_v52  ;;  %833 = vst.msk [vmem:[#allocation2 + $0x70] sm:$0xff] %vm296_vm0, %v801_v48 }
 0x13a   : > { %v783_v55 = vpop.f32.mrb[30].mxu1  ;;  %982 = vst.msk [vmem:[%s1561_s20 + $0xc8] sm:$0xff] %vm296_vm0, %v1239_v1  ;;  %v921_v32 = vadd.f32 %v1542_v61, %v882_v53  ;;  %849 = vst.msk [vmem:[#allocation2 + $0xf0] sm:$0xff] %vm296_vm0, %v817_v49  ;;  %v802_v57 = vadd.f32 %v719_v54, %v344_v45  ;;  %v721_v59 = vpop.f32.mrb[31].mxu0 }
 0x13b   : > { %v818_v58 = vadd.f32 %v783_v55, %v360_v46  ;;  %v785_v60 = vpop.f32.mrb[31].mxu1  ;;  %v867_v33 = vld [vmem:[#allocation2 + $0x68] sm:$0xff]  ;;  %1248 = vtanh.f32 %v905_v56 }
 0x13c   : > { %v883_v23 = vld [vmem:[#allocation2 + $0xe8] sm:$0xff]  ;;  %v906_v24 = vadd.f32 %v1542_v61, %v867_v33  ;;  %834 = vst.msk [vmem:[#allocation2 + $0x78] sm:$0xff] %vm296_vm0, %v802_v57  ;;  %1250 = vtanh.f32 %v921_v32 }
 0x13d   : > { %v922_v25 = vadd.f32 %v1542_v61, %v883_v23  ;;  %850 = vst.msk [vmem:[#allocation2 + $0xf8] sm:$0xff] %vm296_vm0, %v818_v58  ;;  %v1241_v28 = vpop.eup %1240 }
 0x13e   : > { %1252 = vtanh.f32 %v906_v24  ;;  %v1243_v34 = vpop.eup %1242  ;;  %967 = vst.msk [vmem:[%s1561_s20 + $0x50] sm:$0xff] %vm296_vm0, %v1241_v28 }
 0x13f   : > { %1254 = vtanh.f32 %v922_v25  ;;  %983 = vst.msk [vmem:[%s1561_s20 + $0xd0] sm:$0xff] %vm296_vm0, %v1243_v34 }
 0x140   : > { %v1245_v35 = vpop.eup %1244  ;;  %v868_v63 = vld [vmem:[#allocation2 + $0x70] sm:$0xff] }
 0x141   : > { %v1247_v62 = vpop.eup %1246  ;;  %968 = vst.msk [vmem:[%s1561_s20 + $0x58] sm:$0xff] %vm296_vm0, %v1245_v35  ;;  %v884_v0 = vld [vmem:[#allocation2 + $0xf0] sm:$0xff]  ;;  %v907_v2 = vadd.f32 %v1542_v61, %v868_v63 }
 0x142   : > { %984 = vst.msk [vmem:[%s1561_s20 + $0xd8] sm:$0xff] %vm296_vm0, %v1247_v62  ;;  %v923_v3 = vadd.f32 %v1542_v61, %v884_v0 }
 0x143   : > { %v869_v4 = vld [vmem:[#allocation2 + $0x78] sm:$0xff]  ;;  %1256 = vtanh.f32 %v907_v2 }
 0x144   : > { %v885_v5 = vld [vmem:[#allocation2 + $0xf8] sm:$0xff]  ;;  %v908_v6 = vadd.f32 %v1542_v61, %v869_v4  ;;  %1258 = vtanh.f32 %v923_v3 }
 0x145   : > { %v924_v7 = vadd.f32 %v1542_v61, %v885_v5  ;;  %v1249_v8 = vpop.eup %1248 }
 0x146   : > { %1260 = vtanh.f32 %v908_v6  ;;  %v1251_v9 = vpop.eup %1250  ;;  %969 = vst.msk [vmem:[%s1561_s20 + $0x60] sm:$0xff] %vm296_vm0, %v1249_v8 }
 0x147   : > { %1262 = vtanh.f32 %v924_v7  ;;  %985 = vst.msk [vmem:[%s1561_s20 + $0xe0] sm:$0xff] %vm296_vm0, %v1251_v9 }
 0x148   : > { %v1253_v10 = vpop.eup %1252 }
 0x149   : > { %v1255_v11 = vpop.eup %1254  ;;  %970 = vst.msk [vmem:[%s1561_s20 + $0x68] sm:$0xff] %vm296_vm0, %v1253_v10 }
 0x14a   : > { %986 = vst.msk [vmem:[%s1561_s20 + $0xe8] sm:$0xff] %vm296_vm0, %v1255_v11 }
 0x14d   : > { %v1257_v12 = vpop.eup %1256 }
 0x14e   : > { %v1259_v61 = vpop.eup %1258  ;;  %971 = vst.msk [vmem:[%s1561_s20 + $0x70] sm:$0xff] %vm296_vm0, %v1257_v12 }
 0x14f   : > { %987 = vst.msk [vmem:[%s1561_s20 + $0xf0] sm:$0xff] %vm296_vm0, %v1259_v61 }
 0x150   : > { %v1261_v13 = vpop.eup %1260 }
 0x151   : > { %v1263_v14 = vpop.eup %1262  ;;  %972 = vst.msk [vmem:[%s1561_s20 + $0x78] sm:$0xff] %vm296_vm0, %v1261_v13 }
 0x152   : > { %988 = vst.msk [vmem:[%s1561_s20 + $0xf8] sm:$0xff] %vm296_vm0, %v1263_v14 }
 0x153 PF: > { %s13_s14 = sadd.s32 1, %s1286_s14   ;;  %s1688_s12 = smov %s1282_s13 }
 0x154   : > { %p10_p5 = scmp.ge.s32.totalorder %s13_s14, 4   ;;  %s1689_s13 = smov %s1691_s15 }
 0x156   :  { %12 = sbr.rel (!%p10_p5) target bundleno = 2 (0x2), region = 73 }

</bundles_post_ra>
